<compile_context>
chip_gen: v5e
topology: v5e:2x2
jax: 0.10.0
libtpu: 0.0.40
codegen_flags: <defaults>
</compile_context>

<pallas_src>
import functools

import numpy as np

import jax
import jax.numpy as jnp
from jax import lax
from jax.experimental import pallas as pl
from jax.experimental.pallas import tpu as pltpu


# ---------------------------------------------------------------------------
# Fused per-stage kernel (up-conv + pixel shuffle + concat + conv1/ReLU + conv2)
# ---------------------------------------------------------------------------
def _stage_kernel(x_ref, enc_ref, wup_ref, bup_ref, w1_ref, b1_ref,
                  w2_ref, b2_ref, out_ref,
                  cat_ref, buf1_ref, h1_ref, buf2_ref,
                  *, H0, W0, Wsrc, P, C):
    f32 = jnp.float32
    bf16 = jnp.bfloat16
    H1 = 2 * H0
    R = H1 * P                    # packed rows of the up/concat buffer
    M1 = (H1 - 2) * P             # packed rows of the conv1 result
    M2 = (H1 - 4) * P             # packed rows of the conv2 result (output)

    # Zero the concat buffer (covers padded pair-columns and the tail rows that
    # the pair-buffer build over-reads) and the conv1-result tail rows.
    cat_ref[...] = jnp.zeros_like(cat_ref)
    h1_ref[pl.ds(M1, h1_ref.shape[0] - M1), :] = jnp.zeros(
        (h1_ref.shape[0] - M1, 2 * C), f32)

    # --- ConvTranspose2d(k=2, s=2): ONE fused matmul, N = 4*C -----------------
    plane = jnp.dot(x_ref[0], wup_ref[...], preferred_element_type=f32)
    plane = plane + bup_ref[...]                       # (H0*Wsrc, 4C) f32

    # --- 2x2 pixel shuffle into the packed-pair layout: aligned chunk stores --
    # cat row (2i+kh)*P + j holds pixels (2i+kh, 2j) and (2i+kh, 2j+1):
    # lanes [0:2C] = up-half (even|odd), lanes [2C:4C] = enc-half (even|odd).
    for i in range(H0):
        for kh in range(2):
            cat_ref[pl.ds((2 * i + kh) * P, W0), pl.ds(0, 2 * C)] = (
                plane[i * Wsrc:i * Wsrc + W0, kh * 2 * C:(kh + 1) * 2 * C])

    # --- Channel concat with the (pre-cropped, pre-packed) encoder feature ----
    cat_ref[pl.ds(0, R), pl.ds(2 * C, 2 * C)] = enc_ref[0]

    # --- Block conv1: pair buffer [cat[r] | cat[r+1]] then 3 aligned dots -----
    buf1_ref[:, pl.ds(0, 4 * C)] = cat_ref[pl.ds(0, R), :].astype(bf16)
    buf1_ref[:, pl.ds(4 * C, 4 * C)] = cat_ref[pl.ds(1, R), :].astype(bf16)
    acc1 = jnp.zeros((M1, 2 * C), f32)
    for dh in range(3):
        acc1 = acc1 + jnp.dot(buf1_ref[pl.ds(dh * P, M1), :], w1_ref[dh],
                              preferred_element_type=f32)
    h1_ref[pl.ds(0, M1), :] = jnp.maximum(acc1 + b1_ref[...], 0.0)

    # --- Block conv2: same structure on the conv1 activation ------------------
    buf2_ref[:, pl.ds(0, 2 * C)] = h1_ref[pl.ds(0, M1), :].astype(bf16)
    buf2_ref[:, pl.ds(2 * C, 2 * C)] = h1_ref[pl.ds(1, M1), :].astype(bf16)
    acc2 = jnp.zeros((M2, 2 * C), f32)
    for dh in range(3):
        acc2 = acc2 + jnp.dot(buf2_ref[pl.ds(dh * P, M2), :], w2_ref[dh],
                              preferred_element_type=f32)

    # Whole-block, lane-dense output store (pre-crop packed layout).
    out_ref[0] = acc2 + b2_ref[...]


# ---------------------------------------------------------------------------
# Wrapper glue (layout only: crop/pack enc, call kernel, unpack final output)
# ---------------------------------------------------------------------------
def _round_up(x, m):
    return (x + m - 1) // m * m


def _pack_enc(enc, H1, W1, P):
    """torchvision CenterCrop to (H1, W1), pack W-pairs along channels, pad."""
    N, He, We, C = enc.shape
    top = int(round((He - H1) / 2.0))
    left = int(round((We - W1) / 2.0))
    ec = enc[:, top:top + H1, left:left + W1, :]
    W0 = W1 // 2
    ep = ec.reshape(N, H1, W0, 2 * C)
    if P > W0:
        ep = jnp.pad(ep, ((0, 0), (0, 0), (0, P - W0), (0, 0)))
    return ep.reshape(N, H1 * P, 2 * C).astype(jnp.float32)


def _decoder_stage(xf, enc, pp, H0, W0):
    """xf: (N, H0*Wsrc, Cin) bf16 flat input; valid pixel cols are [0, W0)."""
    N, rows, Cin = xf.shape
    Wsrc = rows // H0
    C = pp["wup"].shape[1] // 4
    H1, W1 = 2 * H0, 2 * W0
    P = _round_up(W0, 8)
    R, M1, M2 = H1 * P, (H1 - 2) * P, (H1 - 4) * P

    ep = _pack_enc(enc, H1, W1, P)                      # (N, R, 2C) f32

    kernel = functools.partial(_stage_kernel, H0=H0, W0=W0, Wsrc=Wsrc, P=P, C=C)
    out = pl.pallas_call(
        kernel,
        out_shape=jax.ShapeDtypeStruct((N, M2, 2 * C), jnp.float32),
        grid=(N,),
        in_specs=[
            pl.BlockSpec((1, rows, Cin), lambda n: (n, 0, 0)),       # x (flat)
            pl.BlockSpec((1, R, 2 * C), lambda n: (n, 0, 0)),        # enc packed
            pl.BlockSpec((Cin, 4 * C), lambda n: (0, 0)),            # up-conv W
            pl.BlockSpec((1, 4 * C), lambda n: (0, 0)),              # up-conv b
            pl.BlockSpec((3, 8 * C, 2 * C), lambda n: (0, 0, 0)),    # conv1 W
            pl.BlockSpec((1, 2 * C), lambda n: (0, 0)),              # conv1 b
            pl.BlockSpec((3, 4 * C, 2 * C), lambda n: (0, 0, 0)),    # conv2 W
            pl.BlockSpec((1, 2 * C), lambda n: (0, 0)),              # conv2 b
        ],
        out_specs=pl.BlockSpec((1, M2, 2 * C), lambda n: (n, 0, 0)),
        scratch_shapes=[
            pltpu.VMEM((R + 8, 4 * C), jnp.float32),     # up|enc concat (packed)
            pltpu.VMEM((R, 8 * C), jnp.bfloat16),        # conv1 dot operand
            pltpu.VMEM((M1 + 8, 2 * C), jnp.float32),    # conv1 activation
            pltpu.VMEM((M1, 4 * C), jnp.bfloat16),       # conv2 dot operand
        ],
        compiler_params=pltpu.CompilerParams(
            dimension_semantics=("parallel",)),
    )(xf, ep, pp["wup"], pp["bup"], pp["w1"], pp["b1"], pp["w2"], pp["b2"])
    return out, H1 - 4, W1 - 4, P


def decoder_forward(x_nhwc, enc_features, packed_params):
    N, H, W, Cin = x_nhwc.shape
    xf = x_nhwc.reshape(N, H * W, Cin).astype(jnp.bfloat16)
    out = None
    for i, pp in enumerate(packed_params):
        C = pp["wup"].shape[1] // 4
        out_p, Ho, Wo, P = _decoder_stage(xf, enc_features[i], pp, H, W)
        full = out_p.reshape(N, Ho, P, 2, C).reshape(N, Ho, 2 * P, C)
        if i + 1 < len(packed_params):
            # Next stage consumes the garbage-column flat layout directly.
            xf = full.reshape(N, Ho * 2 * P, C).astype(jnp.bfloat16)
            H, W = Ho, Wo
        else:
            out = full[:, :, :Wo, :]                     # strip garbage columns
    return out


# ---------------------------------------------------------------------------
# One-time parameter packing (hoisted out of the jitted forward).
# ---------------------------------------------------------------------------
def pack_params(params):
    packed = []
    for p in params:
        wu = np.asarray(p["up_w"], np.float32)   # (Cin, Co, 2, 2)
        bu = np.asarray(p["up_b"], np.float32)
        w1 = np.asarray(p["c1_w"], np.float32)   # (Co, 2*Co, 3, 3)
        b1 = np.asarray(p["c1_b"], np.float32)
        w2 = np.asarray(p["c2_w"], np.float32)   # (Co, Co, 3, 3)
        b2 = np.asarray(p["c2_b"], np.float32)
        Cin, Co = wu.shape[0], wu.shape[1]

        # Up-conv: columns ordered [kh=0:(kw=0,kw=1) | kh=1:(kw=0,kw=1)].
        wup = np.zeros((Cin, 4 * Co), np.float32)
        for kh in range(2):
            for kw in range(2):
                wup[:, (2 * kh + kw) * Co:(2 * kh + kw + 1) * Co] = wu[:, :, kh, kw]

        # Conv1: rows = [delta(2)][beta(4: up-even, up-odd, enc-even, enc-odd)][c]
        #        cols = [e(2: even/odd output pixel)][co].
        W1 = np.zeros((3, 8 * Co, 2 * Co), np.float32)
        for dh in range(3):
            for delta in range(2):
                for beta in range(4):
                    e_b, half = beta % 2, beta // 2
                    for e in range(2):
                        kw = 2 * delta + e_b - e
                        if 0 <= kw <= 2:
                            r0 = delta * 4 * Co + beta * Co
                            W1[dh, r0:r0 + Co, e * Co:(e + 1) * Co] = \
                                w1[:, half * Co:(half + 1) * Co, dh, kw].T

        # Conv2: rows = [delta(2)][e_b(2)][c]; cols = [e(2)][co].
        W2 = np.zeros((3, 4 * Co, 2 * Co), np.float32)
        for dh in range(3):
            for delta in range(2):
                for e_b in range(2):
                    for e in range(2):
                        kw = 2 * delta + e_b - e
                        if 0 <= kw <= 2:
                            r0 = delta * 2 * Co + e_b * Co
                            W2[dh, r0:r0 + Co, e * Co:(e + 1) * Co] = \
                                w2[:, :, dh, kw].T

        packed.append(dict(
            wup=jnp.asarray(wup, jnp.bfloat16),
            bup=jnp.asarray(np.tile(bu, 4).reshape(1, 4 * Co), jnp.float32),
            w1=jnp.asarray(W1, jnp.bfloat16),
            b1=jnp.asarray(np.tile(b1, 2).reshape(1, 2 * Co), jnp.float32),
            w2=jnp.asarray(W2, jnp.bfloat16),
            b2=jnp.asarray(np.tile(b2, 2).reshape(1, 2 * Co), jnp.float32),
        ))
    return packed


# ---------------------------------------------------------------------------
# Pure-JAX (XLA, f32) reference for correctness cross-check.
# ---------------------------------------------------------------------------
def center_crop(feat, Ho, Wo):
    _, Hf, Wf, _ = feat.shape
    top = int(round((Hf - Ho) / 2.0))
    left = int(round((Wf - Wo) / 2.0))
    return feat[:, top:top + Ho, left:left + Wo, :]


def _ref_conv3x3(x, w_torch, b, apply_relu):
    w = jnp.transpose(w_torch, (2, 3, 1, 0))       # HWIO
    y = lax.conv_general_dilated(x, w, (1, 1), "VALID",
                                 dimension_numbers=("NHWC", "HWIO", "NHWC"))
    y = y + b
    return jnp.maximum(y, 0.0) if apply_relu else y


def _ref_conv_transpose(x, w_torch, b):
    N, H, W, _ = x.shape
    Cout = w_torch.shape[1]
    t = jnp.einsum("nijc,cdkl->nikjld", x, w_torch)   # (N, H, 2, W, 2, Cout)
    return t.reshape(N, 2 * H, 2 * W, Cout) + b


def decoder_reference(x, enc_features, params):
    for i, p in enumerate(params):
        x = _ref_conv_transpose(x, p["up_w"], p["up_b"])
        ef = center_crop(enc_features[i], x.shape[1], x.shape[2])
        x = jnp.concatenate([x, ef], axis=-1)
        x = _ref_conv3x3(x, p["c1_w"], p["c1_b"], True)
        x = _ref_conv3x3(x, p["c2_w"], p["c2_b"], False)
    return x


# ---------------------------------------------------------------------------
# Deterministic parameter init (shapes follow the PyTorch module __init__).
# ---------------------------------------------------------------------------
def init_params(key, channels):
    params = []
    for i in range(len(channels) - 1):
        cin, cout = channels[i], channels[i + 1]
        key, *ks = jax.random.split(key, 7)
        params.append(dict(
            up_w=jax.random.normal(ks[0], (cin, cout, 2, 2), jnp.float32) * 0.05,
            up_b=jax.random.normal(ks[1], (cout,), jnp.float32) * 0.05,
            c1_w=jax.random.normal(ks[2], (cout, cin, 3, 3), jnp.float32) * 0.05,
            c1_b=jax.random.normal(ks[3], (cout,), jnp.float32) * 0.05,
            c2_w=jax.random.normal(ks[4], (cout, cout, 3, 3), jnp.float32) * 0.05,
            c2_b=jax.random.normal(ks[5], (cout,), jnp.float32) * 0.05,
        ))
    return params


if __name__ == "__main__":
    channels = (64, 32, 16)
    key = jax.random.PRNGKey(0)
    kp, kx, ke0, ke1 = jax.random.split(key, 4)

    params = init_params(kp, channels)

    # NHWC inputs (equivalent NCHW: x (2,64,8,8), enc0 (2,32,20,20), enc1 (2,16,28,28))
    x = jax.random.normal(kx, (2, 8, 8, 64), jnp.float32)
    enc_features = [
        jax.random.normal(ke0, (2, 20, 20, 32), jnp.float32),
        jax.random.normal(ke1, (2, 28, 28, 16), jnp.float32),
    ]

    # Pre-round inputs/weights to bf16 so the bf16-MXU kernel and the f32
    # reference see the same quantized operands; remaining delta is bf16
    # rounding of the in-kernel intermediates + accumulation order.
    q = lambda a: a.astype(jnp.bfloat16).astype(jnp.float32)
    x = q(x)
    enc_features = [q(e) for e in enc_features]
    params = jax.tree_util.tree_map(q, params)

    packed = pack_params(params)          # one-time packing, outside jit

    fwd = jax.jit(decoder_forward)
    out = jax.block_until_ready(fwd(x, enc_features, packed))

    # Expected output: stage0 -> (2,12,12,32), stage1 -> (2,20,20,16)
    assert out.shape == (2, 20, 20, 16), out.shape

    ref = jax.block_until_ready(decoder_reference(x, enc_features, params))
    max_err = float(jnp.max(jnp.abs(out - ref)))
    assert jnp.allclose(out, ref, rtol=4e-2, atol=4e-2), max_err

    print("KERNEL_OK")
</pallas_src>

<mosaic_0001>
module attributes {stable_mosaic.version = 11 : i64} {
  func.func @_stage_kernel(%arg0: i32, %arg1: memref<1x64x64xbf16, #tpu.memory_space<vmem>>, %arg2: memref<1x128x64xf32, #tpu.memory_space<vmem>>, %arg3: memref<64x128xbf16, #tpu.memory_space<vmem>>, %arg4: memref<1x128xf32, #tpu.memory_space<vmem>>, %arg5: memref<3x256x64xbf16, #tpu.memory_space<vmem>>, %arg6: memref<1x64xf32, #tpu.memory_space<vmem>>, %arg7: memref<3x128x64xbf16, #tpu.memory_space<vmem>>, %arg8: memref<1x64xf32, #tpu.memory_space<vmem>>, %arg9: memref<1x96x64xf32, #tpu.memory_space<vmem>>, %arg10: memref<136x128xf32, #tpu.memory_space<vmem>>, %arg11: memref<128x256xbf16, #tpu.memory_space<vmem>>, %arg12: memref<120x64xf32, #tpu.memory_space<vmem>>, %arg13: memref<112x128xbf16, #tpu.memory_space<vmem>>) attributes {dimension_semantics = [#tpu.dimension_semantics<parallel>], iteration_bounds = array<i64: 2>, scalar_prefetch = 0 : i64, scratch_operands = 4 : i64, tpu.core_type = #tpu.core_type<tc>, window_params = [{transform_indices = @transform_0, window_bounds = array<i64: 1, 64, 64>}, {transform_indices = @transform_1, window_bounds = array<i64: 1, 128, 64>}, {pipeline_mode = #tpu.pipeline_mode<synchronous>, transform_indices = @transform_2, window_bounds = array<i64: 64, 128>}, {pipeline_mode = #tpu.pipeline_mode<synchronous>, transform_indices = @transform_3, window_bounds = array<i64: 1, 128>}, {pipeline_mode = #tpu.pipeline_mode<synchronous>, transform_indices = @transform_4, window_bounds = array<i64: 3, 256, 64>}, {pipeline_mode = #tpu.pipeline_mode<synchronous>, transform_indices = @transform_5, window_bounds = array<i64: 1, 64>}, {pipeline_mode = #tpu.pipeline_mode<synchronous>, transform_indices = @transform_6, window_bounds = array<i64: 3, 128, 64>}, {pipeline_mode = #tpu.pipeline_mode<synchronous>, transform_indices = @transform_7, window_bounds = array<i64: 1, 64>}, {transform_indices = @transform_8, window_bounds = array<i64: 1, 96, 64>}]} {
    %cst = arith.constant 0.000000e+00 : f32
    %0 = vector.broadcast %cst : f32 to vector<136x128xf32>
    %c0 = arith.constant 0 : index
    %c0_0 = arith.constant 0 : index
    %1 = vector.load %arg10[%c0, %c0_0] : memref<136x128xf32, #tpu.memory_space<vmem>>, vector<136x128xf32>
    tpu.vector_store %arg10[%c0, %c0_0], %0 {strides = array<i32>} : memref<136x128xf32, #tpu.memory_space<vmem>>, vector<136x128xf32>,
    %cst_1 = arith.constant 0.000000e+00 : f32
    %2 = vector.broadcast %cst_1 : f32 to vector<8x64xf32>
    %c112 = arith.constant 112 : index
    %c0_2 = arith.constant 0 : index
    %3 = vector.load %arg12[%c112, %c0_2] : memref<120x64xf32, #tpu.memory_space<vmem>>, vector<8x64xf32>
    tpu.vector_store %arg12[%c112, %c0_2], %2 {strides = array<i32>} : memref<120x64xf32, #tpu.memory_space<vmem>>, vector<8x64xf32>,
    %c0_3 = arith.constant 0 : index
    %c0_4 = arith.constant 0 : index
    %c0_5 = arith.constant 0 : index
    %4 = vector.load %arg1[%c0_3, %c0_4, %c0_5] : memref<1x64x64xbf16, #tpu.memory_space<vmem>>, vector<1x64x64xbf16>
    %5 = vector.shape_cast %4 : vector<1x64x64xbf16> to vector<64x64xbf16>
    %c0_6 = arith.constant 0 : index
    %c0_7 = arith.constant 0 : index
    %6 = vector.load %arg3[%c0_6, %c0_7] : memref<64x128xbf16, #tpu.memory_space<vmem>>, vector<64x128xbf16>
    %cst_8 = arith.constant dense<0.000000e+00> : vector<64x128xf32>
    %7 = tpu.matmul %5, %6, %cst_8 {dimension_numbers = #tpu.dot_dimension_numbers<[1], [0], [0], [1], [0, 0, 1, 1], [], []>} : vector<64x64xbf16>, vector<64x128xbf16>, vector<64x128xf32> -> vector<64x128xf32>
    %c0_9 = arith.constant 0 : index
    %c0_10 = arith.constant 0 : index
    %8 = vector.load %arg4[%c0_9, %c0_10] : memref<1x128xf32, #tpu.memory_space<vmem>>, vector<1x128xf32>
    %9 = vector.broadcast %8 : vector<1x128xf32> to vector<64x128xf32>
    %10 = arith.addf %7, %9 : vector<64x128xf32>
    %11 = vector.extract_strided_slice %10 {offsets = [0, 0], sizes = [8, 64], strides = [1, 1]} : vector<64x128xf32> to vector<8x64xf32>
    %c0_11 = arith.constant 0 : index
    %c0_12 = arith.constant 0 : index
    %12 = vector.load %arg10[%c0_11, %c0_12] : memref<136x128xf32, #tpu.memory_space<vmem>>, vector<8x64xf32>
    tpu.vector_store %arg10[%c0_11, %c0_12], %11 {strides = array<i32>} : memref<136x128xf32, #tpu.memory_space<vmem>>, vector<8x64xf32>,
    %13 = vector.extract_strided_slice %10 {offsets = [0, 64], sizes = [8, 64], strides = [1, 1]} : vector<64x128xf32> to vector<8x64xf32>
    %c8 = arith.constant 8 : index
    %c0_13 = arith.constant 0 : index
    %14 = vector.load %arg10[%c8, %c0_13] : memref<136x128xf32, #tpu.memory_space<vmem>>, vector<8x64xf32>
    tpu.vector_store %arg10[%c8, %c0_13], %13 {strides = array<i32>} : memref<136x128xf32, #tpu.memory_space<vmem>>, vector<8x64xf32>,
    %15 = vector.extract_strided_slice %10 {offsets = [8, 0], sizes = [8, 64], strides = [1, 1]} : vector<64x128xf32> to vector<8x64xf32>
    %c16 = arith.constant 16 : index
    %c0_14 = arith.constant 0 : index
    %16 = vector.load %arg10[%c16, %c0_14] : memref<136x128xf32, #tpu.memory_space<vmem>>, vector<8x64xf32>
    tpu.vector_store %arg10[%c16, %c0_14], %15 {strides = array<i32>} : memref<136x128xf32, #tpu.memory_space<vmem>>, vector<8x64xf32>,
    %17 = vector.extract_strided_slice %10 {offsets = [8, 64], sizes = [8, 64], strides = [1, 1]} : vector<64x128xf32> to vector<8x64xf32>
    %c24 = arith.constant 24 : index
    %c0_15 = arith.constant 0 : index
    %18 = vector.load %arg10[%c24, %c0_15] : memref<136x128xf32, #tpu.memory_space<vmem>>, vector<8x64xf32>
    tpu.vector_store %arg10[%c24, %c0_15], %17 {strides = array<i32>} : memref<136x128xf32, #tpu.memory_space<vmem>>, vector<8x64xf32>,
    %19 = vector.extract_strided_slice %10 {offsets = [16, 0], sizes = [8, 64], strides = [1, 1]} : vector<64x128xf32> to vector<8x64xf32>
    %c32 = arith.constant 32 : index
    %c0_16 = arith.constant 0 : index
    %20 = vector.load %arg10[%c32, %c0_16] : memref<136x128xf32, #tpu.memory_space<vmem>>, vector<8x64xf32>
    tpu.vector_store %arg10[%c32, %c0_16], %19 {strides = array<i32>} : memref<136x128xf32, #tpu.memory_space<vmem>>, vector<8x64xf32>,
    %21 = vector.extract_strided_slice %10 {offsets = [16, 64], sizes = [8, 64], strides = [1, 1]} : vector<64x128xf32> to vector<8x64xf32>
    %c40 = arith.constant 40 : index
    %c0_17 = arith.constant 0 : index
    %22 = vector.load %arg10[%c40, %c0_17] : memref<136x128xf32, #tpu.memory_space<vmem>>, vector<8x64xf32>
    tpu.vector_store %arg10[%c40, %c0_17], %21 {strides = array<i32>} : memref<136x128xf32, #tpu.memory_space<vmem>>, vector<8x64xf32>,
    %23 = vector.extract_strided_slice %10 {offsets = [24, 0], sizes = [8, 64], strides = [1, 1]} : vector<64x128xf32> to vector<8x64xf32>
    %c48 = arith.constant 48 : index
    %c0_18 = arith.constant 0 : index
    %24 = vector.load %arg10[%c48, %c0_18] : memref<136x128xf32, #tpu.memory_space<vmem>>, vector<8x64xf32>
    tpu.vector_store %arg10[%c48, %c0_18], %23 {strides = array<i32>} : memref<136x128xf32, #tpu.memory_space<vmem>>, vector<8x64xf32>,
    %25 = vector.extract_strided_slice %10 {offsets = [24, 64], sizes = [8, 64], strides = [1, 1]} : vector<64x128xf32> to vector<8x64xf32>
    %c56 = arith.constant 56 : index
    %c0_19 = arith.constant 0 : index
    %26 = vector.load %arg10[%c56, %c0_19] : memref<136x128xf32, #tpu.memory_space<vmem>>, vector<8x64xf32>
    tpu.vector_store %arg10[%c56, %c0_19], %25 {strides = array<i32>} : memref<136x128xf32, #tpu.memory_space<vmem>>, vector<8x64xf32>,
    %27 = vector.extract_strided_slice %10 {offsets = [32, 0], sizes = [8, 64], strides = [1, 1]} : vector<64x128xf32> to vector<8x64xf32>
    %c64 = arith.constant 64 : index
    %c0_20 = arith.constant 0 : index
    %28 = vector.load %arg10[%c64, %c0_20] : memref<136x128xf32, #tpu.memory_space<vmem>>, vector<8x64xf32>
    tpu.vector_store %arg10[%c64, %c0_20], %27 {strides = array<i32>} : memref<136x128xf32, #tpu.memory_space<vmem>>, vector<8x64xf32>,
    %29 = vector.extract_strided_slice %10 {offsets = [32, 64], sizes = [8, 64], strides = [1, 1]} : vector<64x128xf32> to vector<8x64xf32>
    %c72 = arith.constant 72 : index
    %c0_21 = arith.constant 0 : index
    %30 = vector.load %arg10[%c72, %c0_21] : memref<136x128xf32, #tpu.memory_space<vmem>>, vector<8x64xf32>
    tpu.vector_store %arg10[%c72, %c0_21], %29 {strides = array<i32>} : memref<136x128xf32, #tpu.memory_space<vmem>>, vector<8x64xf32>,
    %31 = vector.extract_strided_slice %10 {offsets = [40, 0], sizes = [8, 64], strides = [1, 1]} : vector<64x128xf32> to vector<8x64xf32>
    %c80 = arith.constant 80 : index
    %c0_22 = arith.constant 0 : index
    %32 = vector.load %arg10[%c80, %c0_22] : memref<136x128xf32, #tpu.memory_space<vmem>>, vector<8x64xf32>
    tpu.vector_store %arg10[%c80, %c0_22], %31 {strides = array<i32>} : memref<136x128xf32, #tpu.memory_space<vmem>>, vector<8x64xf32>,
    %33 = vector.extract_strided_slice %10 {offsets = [40, 64], sizes = [8, 64], strides = [1, 1]} : vector<64x128xf32> to vector<8x64xf32>
    %c88 = arith.constant 88 : index
    %c0_23 = arith.constant 0 : index
    %34 = vector.load %arg10[%c88, %c0_23] : memref<136x128xf32, #tpu.memory_space<vmem>>, vector<8x64xf32>
    tpu.vector_store %arg10[%c88, %c0_23], %33 {strides = array<i32>} : memref<136x128xf32, #tpu.memory_space<vmem>>, vector<8x64xf32>,
    %35 = vector.extract_strided_slice %10 {offsets = [48, 0], sizes = [8, 64], strides = [1, 1]} : vector<64x128xf32> to vector<8x64xf32>
    %c96 = arith.constant 96 : index
    %c0_24 = arith.constant 0 : index
    %36 = vector.load %arg10[%c96, %c0_24] : memref<136x128xf32, #tpu.memory_space<vmem>>, vector<8x64xf32>
    tpu.vector_store %arg10[%c96, %c0_24], %35 {strides = array<i32>} : memref<136x128xf32, #tpu.memory_space<vmem>>, vector<8x64xf32>,
    %37 = vector.extract_strided_slice %10 {offsets = [48, 64], sizes = [8, 64], strides = [1, 1]} : vector<64x128xf32> to vector<8x64xf32>
    %c104 = arith.constant 104 : index
    %c0_25 = arith.constant 0 : index
    %38 = vector.load %arg10[%c104, %c0_25] : memref<136x128xf32, #tpu.memory_space<vmem>>, vector<8x64xf32>
    tpu.vector_store %arg10[%c104, %c0_25], %37 {strides = array<i32>} : memref<136x128xf32, #tpu.memory_space<vmem>>, vector<8x64xf32>,
    %39 = vector.extract_strided_slice %10 {offsets = [56, 0], sizes = [8, 64], strides = [1, 1]} : vector<64x128xf32> to vector<8x64xf32>
    %c112_26 = arith.constant 112 : index
    %c0_27 = arith.constant 0 : index
    %40 = vector.load %arg10[%c112_26, %c0_27] : memref<136x128xf32, #tpu.memory_space<vmem>>, vector<8x64xf32>
    tpu.vector_store %arg10[%c112_26, %c0_27], %39 {strides = array<i32>} : memref<136x128xf32, #tpu.memory_space<vmem>>, vector<8x64xf32>,
    %41 = vector.extract_strided_slice %10 {offsets = [56, 64], sizes = [8, 64], strides = [1, 1]} : vector<64x128xf32> to vector<8x64xf32>
    %c120 = arith.constant 120 : index
    %c0_28 = arith.constant 0 : index
    %42 = vector.load %arg10[%c120, %c0_28] : memref<136x128xf32, #tpu.memory_space<vmem>>, vector<8x64xf32>
    tpu.vector_store %arg10[%c120, %c0_28], %41 {strides = array<i32>} : memref<136x128xf32, #tpu.memory_space<vmem>>, vector<8x64xf32>,
    %c0_29 = arith.constant 0 : index
    %c0_30 = arith.constant 0 : index
    %c0_31 = arith.constant 0 : index
    %43 = vector.load %arg2[%c0_29, %c0_30, %c0_31] : memref<1x128x64xf32, #tpu.memory_space<vmem>>, vector<1x128x64xf32>
    %44 = vector.shape_cast %43 : vector<1x128x64xf32> to vector<128x64xf32>
    %c0_32 = arith.constant 0 : index
    %c64_33 = arith.constant 64 : index
    %45 = vector.load %arg10[%c0_32, %c64_33] : memref<136x128xf32, #tpu.memory_space<vmem>>, vector<128x64xf32>
    tpu.vector_store %arg10[%c0_32, %c64_33], %44 {strides = array<i32>} : memref<136x128xf32, #tpu.memory_space<vmem>>, vector<128x64xf32>,
    %c0_34 = arith.constant 0 : index
    %c0_35 = arith.constant 0 : index
    %46 = vector.load %arg10[%c0_34, %c0_35] : memref<136x128xf32, #tpu.memory_space<vmem>>, vector<128x128xf32>
    %47 = arith.truncf %46 : vector<128x128xf32> to vector<128x128xbf16>
    %c0_36 = arith.constant 0 : index
    %c0_37 = arith.constant 0 : index
    %48 = vector.load %arg11[%c0_36, %c0_37] : memref<128x256xbf16, #tpu.memory_space<vmem>>, vector<128x128xbf16>
    tpu.vector_store %arg11[%c0_36, %c0_37], %47 {strides = array<i32>} : memref<128x256xbf16, #tpu.memory_space<vmem>>, vector<128x128xbf16>,
    %c1 = arith.constant 1 : index
    %c0_38 = arith.constant 0 : index
    %49 = vector.load %arg10[%c1, %c0_38] : memref<136x128xf32, #tpu.memory_space<vmem>>, vector<128x128xf32>
    %50 = arith.truncf %49 : vector<128x128xf32> to vector<128x128xbf16>
    %c0_39 = arith.constant 0 : index
    %c128 = arith.constant 128 : index
    %51 = vector.load %arg11[%c0_39, %c128] : memref<128x256xbf16, #tpu.memory_space<vmem>>, vector<128x128xbf16>
    tpu.vector_store %arg11[%c0_39, %c128], %50 {strides = array<i32>} : memref<128x256xbf16, #tpu.memory_space<vmem>>, vector<128x128xbf16>,
    %cst_40 = arith.constant 0.000000e+00 : f32
    %52 = vector.broadcast %cst_40 : f32 to vector<112x64xf32>
    %c0_41 = arith.constant 0 : index
    %c0_42 = arith.constant 0 : index
    %53 = vector.load %arg11[%c0_41, %c0_42] : memref<128x256xbf16, #tpu.memory_space<vmem>>, vector<112x256xbf16>
    %c0_43 = arith.constant 0 : index
    %c0_44 = arith.constant 0 : index
    %c0_45 = arith.constant 0 : index
    %54 = vector.load %arg5[%c0_43, %c0_44, %c0_45] : memref<3x256x64xbf16, #tpu.memory_space<vmem>>, vector<1x256x64xbf16>
    %55 = vector.shape_cast %54 : vector<1x256x64xbf16> to vector<256x64xbf16>
    %cst_46 = arith.constant dense<0.000000e+00> : vector<112x64xf32>
    %56 = tpu.matmul %53, %55, %cst_46 {dimension_numbers = #tpu.dot_dimension_numbers<[1], [0], [0], [1], [0, 0, 1, 1], [], []>} : vector<112x256xbf16>, vector<256x64xbf16>, vector<112x64xf32> -> vector<112x64xf32>
    %57 = arith.addf %52, %56 : vector<112x64xf32>
    %c8_47 = arith.constant 8 : index
    %c0_48 = arith.constant 0 : index
    %58 = vector.load %arg11[%c8_47, %c0_48] : memref<128x256xbf16, #tpu.memory_space<vmem>>, vector<112x256xbf16>
    %c1_49 = arith.constant 1 : index
    %c0_50 = arith.constant 0 : index
    %c0_51 = arith.constant 0 : index
    %59 = vector.load %arg5[%c1_49, %c0_50, %c0_51] : memref<3x256x64xbf16, #tpu.memory_space<vmem>>, vector<1x256x64xbf16>
    %60 = vector.shape_cast %59 : vector<1x256x64xbf16> to vector<256x64xbf16>
    %cst_52 = arith.constant dense<0.000000e+00> : vector<112x64xf32>
    %61 = tpu.matmul %58, %60, %cst_52 {dimension_numbers = #tpu.dot_dimension_numbers<[1], [0], [0], [1], [0, 0, 1, 1], [], []>} : vector<112x256xbf16>, vector<256x64xbf16>, vector<112x64xf32> -> vector<112x64xf32>
    %62 = arith.addf %57, %61 : vector<112x64xf32>
    %c16_53 = arith.constant 16 : index
    %c0_54 = arith.constant 0 : index
    %63 = vector.load %arg11[%c16_53, %c0_54] : memref<128x256xbf16, #tpu.memory_space<vmem>>, vector<112x256xbf16>
    %c2 = arith.constant 2 : index
    %c0_55 = arith.constant 0 : index
    %c0_56 = arith.constant 0 : index
    %64 = vector.load %arg5[%c2, %c0_55, %c0_56] : memref<3x256x64xbf16, #tpu.memory_space<vmem>>, vector<1x256x64xbf16>
    %65 = vector.shape_cast %64 : vector<1x256x64xbf16> to vector<256x64xbf16>
    %cst_57 = arith.constant dense<0.000000e+00> : vector<112x64xf32>
    %66 = tpu.matmul %63, %65, %cst_57 {dimension_numbers = #tpu.dot_dimension_numbers<[1], [0], [0], [1], [0, 0, 1, 1], [], []>} : vector<112x256xbf16>, vector<256x64xbf16>, vector<112x64xf32> -> vector<112x64xf32>
    %67 = arith.addf %62, %66 : vector<112x64xf32>
    %c0_58 = arith.constant 0 : index
    %c0_59 = arith.constant 0 : index
    %68 = vector.load %arg6[%c0_58, %c0_59] : memref<1x64xf32, #tpu.memory_space<vmem>>, vector<1x64xf32>
    %69 = vector.broadcast %68 : vector<1x64xf32> to vector<112x64xf32>
    %70 = arith.addf %67, %69 : vector<112x64xf32>
    %cst_60 = arith.constant 0.000000e+00 : f32
    %71 = vector.broadcast %cst_60 : f32 to vector<112x64xf32>
    %72 = arith.maximumf %70, %71 : vector<112x64xf32>
    %c0_61 = arith.constant 0 : index
    %c0_62 = arith.constant 0 : index
    %73 = vector.load %arg12[%c0_61, %c0_62] : memref<120x64xf32, #tpu.memory_space<vmem>>, vector<112x64xf32>
    tpu.vector_store %arg12[%c0_61, %c0_62], %72 {strides = array<i32>} : memref<120x64xf32, #tpu.memory_space<vmem>>, vector<112x64xf32>,
    %c0_63 = arith.constant 0 : index
    %c0_64 = arith.constant 0 : index
    %74 = vector.load %arg12[%c0_63, %c0_64] : memref<120x64xf32, #tpu.memory_space<vmem>>, vector<112x64xf32>
    %75 = arith.truncf %74 : vector<112x64xf32> to vector<112x64xbf16>
    %c0_65 = arith.constant 0 : index
    %c0_66 = arith.constant 0 : index
    %76 = vector.load %arg13[%c0_65, %c0_66] : memref<112x128xbf16, #tpu.memory_space<vmem>>, vector<112x64xbf16>
    tpu.vector_store %arg13[%c0_65, %c0_66], %75 {strides = array<i32>} : memref<112x128xbf16, #tpu.memory_space<vmem>>, vector<112x64xbf16>,
    %c1_67 = arith.constant 1 : index
    %c0_68 = arith.constant 0 : index
    %77 = vector.load %arg12[%c1_67, %c0_68] : memref<120x64xf32, #tpu.memory_space<vmem>>, vector<112x64xf32>
    %78 = arith.truncf %77 : vector<112x64xf32> to vector<112x64xbf16>
    %c0_69 = arith.constant 0 : index
    %c64_70 = arith.constant 64 : index
    %79 = vector.load %arg13[%c0_69, %c64_70] : memref<112x128xbf16, #tpu.memory_space<vmem>>, vector<112x64xbf16>
    tpu.vector_store %arg13[%c0_69, %c64_70], %78 {strides = array<i32>} : memref<112x128xbf16, #tpu.memory_space<vmem>>, vector<112x64xbf16>,
    %cst_71 = arith.constant 0.000000e+00 : f32
    %80 = vector.broadcast %cst_71 : f32 to vector<96x64xf32>
    %c0_72 = arith.constant 0 : index
    %c0_73 = arith.constant 0 : index
    %81 = vector.load %arg13[%c0_72, %c0_73] : memref<112x128xbf16, #tpu.memory_space<vmem>>, vector<96x128xbf16>
    %c0_74 = arith.constant 0 : index
    %c0_75 = arith.constant 0 : index
    %c0_76 = arith.constant 0 : index
    %82 = vector.load %arg7[%c0_74, %c0_75, %c0_76] : memref<3x128x64xbf16, #tpu.memory_space<vmem>>, vector<1x128x64xbf16>
    %83 = vector.shape_cast %82 : vector<1x128x64xbf16> to vector<128x64xbf16>
    %cst_77 = arith.constant dense<0.000000e+00> : vector<96x64xf32>
    %84 = tpu.matmul %81, %83, %cst_77 {dimension_numbers = #tpu.dot_dimension_numbers<[1], [0], [0], [1], [0, 0, 1, 1], [], []>} : vector<96x128xbf16>, vector<128x64xbf16>, vector<96x64xf32> -> vector<96x64xf32>
    %85 = arith.addf %80, %84 : vector<96x64xf32>
    %c8_78 = arith.constant 8 : index
    %c0_79 = arith.constant 0 : index
    %86 = vector.load %arg13[%c8_78, %c0_79] : memref<112x128xbf16, #tpu.memory_space<vmem>>, vector<96x128xbf16>
    %c1_80 = arith.constant 1 : index
    %c0_81 = arith.constant 0 : index
    %c0_82 = arith.constant 0 : index
    %87 = vector.load %arg7[%c1_80, %c0_81, %c0_82] : memref<3x128x64xbf16, #tpu.memory_space<vmem>>, vector<1x128x64xbf16>
    %88 = vector.shape_cast %87 : vector<1x128x64xbf16> to vector<128x64xbf16>
    %cst_83 = arith.constant dense<0.000000e+00> : vector<96x64xf32>
    %89 = tpu.matmul %86, %88, %cst_83 {dimension_numbers = #tpu.dot_dimension_numbers<[1], [0], [0], [1], [0, 0, 1, 1], [], []>} : vector<96x128xbf16>, vector<128x64xbf16>, vector<96x64xf32> -> vector<96x64xf32>
    %90 = arith.addf %85, %89 : vector<96x64xf32>
    %c16_84 = arith.constant 16 : index
    %c0_85 = arith.constant 0 : index
    %91 = vector.load %arg13[%c16_84, %c0_85] : memref<112x128xbf16, #tpu.memory_space<vmem>>, vector<96x128xbf16>
    %c2_86 = arith.constant 2 : index
    %c0_87 = arith.constant 0 : index
    %c0_88 = arith.constant 0 : index
    %92 = vector.load %arg7[%c2_86, %c0_87, %c0_88] : memref<3x128x64xbf16, #tpu.memory_space<vmem>>, vector<1x128x64xbf16>
    %93 = vector.shape_cast %92 : vector<1x128x64xbf16> to vector<128x64xbf16>
    %cst_89 = arith.constant dense<0.000000e+00> : vector<96x64xf32>
    %94 = tpu.matmul %91, %93, %cst_89 {dimension_numbers = #tpu.dot_dimension_numbers<[1], [0], [0], [1], [0, 0, 1, 1], [], []>} : vector<96x128xbf16>, vector<128x64xbf16>, vector<96x64xf32> -> vector<96x64xf32>
    %95 = arith.addf %90, %94 : vector<96x64xf32>
    %c0_90 = arith.constant 0 : index
    %c0_91 = arith.constant 0 : index
    %96 = vector.load %arg8[%c0_90, %c0_91] : memref<1x64xf32, #tpu.memory_space<vmem>>, vector<1x64xf32>
    %97 = vector.broadcast %96 : vector<1x64xf32> to vector<96x64xf32>
    %98 = arith.addf %95, %97 : vector<96x64xf32>
    %c0_92 = arith.constant 0 : index
    %c0_93 = arith.constant 0 : index
    %c0_94 = arith.constant 0 : index
    %99 = vector.load %arg9[%c0_92, %c0_93, %c0_94] : memref<1x96x64xf32, #tpu.memory_space<vmem>>, vector<1x96x64xf32>
    %100 = vector.shape_cast %99 : vector<1x96x64xf32> to vector<96x64xf32>
    %101 = vector.shape_cast %98 : vector<96x64xf32> to vector<1x96x64xf32>
    tpu.vector_store %arg9[%c0_92, %c0_93, %c0_94], %101 {strides = array<i32>} : memref<1x96x64xf32, #tpu.memory_space<vmem>>, vector<1x96x64xf32>,
    return
  }
  func.func @transform_0(%arg0: i32) -> (i32, i32, i32) {
    %c0_i32 = arith.constant 0 : i32
    %c0_i32_0 = arith.constant 0 : i32
    %c0_i32_1 = arith.constant 0 : i32
    return %arg0, %c0_i32, %c0_i32_0 : i32, i32, i32
  }
  func.func @transform_1(%arg0: i32) -> (i32, i32, i32) {
    %c0_i32 = arith.constant 0 : i32
    %c0_i32_0 = arith.constant 0 : i32
    %c0_i32_1 = arith.constant 0 : i32
    return %arg0, %c0_i32, %c0_i32_0 : i32, i32, i32
  }
  func.func @transform_2(%arg0: i32) -> (i32, i32) {
    %c0_i32 = arith.constant 0 : i32
    %c0_i32_0 = arith.constant 0 : i32
    %c0_i32_1 = arith.constant 0 : i32
    return %c0_i32, %c0_i32_0 : i32, i32
  }
  func.func @transform_3(%arg0: i32) -> (i32, i32) {
    %c0_i32 = arith.constant 0 : i32
    %c0_i32_0 = arith.constant 0 : i32
    %c0_i32_1 = arith.constant 0 : i32
    return %c0_i32, %c0_i32_0 : i32, i32
  }
  func.func @transform_4(%arg0: i32) -> (i32, i32, i32) {
    %c0_i32 = arith.constant 0 : i32
    %c0_i32_0 = arith.constant 0 : i32
    %c0_i32_1 = arith.constant 0 : i32
    %c0_i32_2 = arith.constant 0 : i32
    return %c0_i32, %c0_i32_0, %c0_i32_1 : i32, i32, i32
  }
  func.func @transform_5(%arg0: i32) -> (i32, i32) {
    %c0_i32 = arith.constant 0 : i32
    %c0_i32_0 = arith.constant 0 : i32
    %c0_i32_1 = arith.constant 0 : i32
    return %c0_i32, %c0_i32_0 : i32, i32
  }
  func.func @transform_6(%arg0: i32) -> (i32, i32, i32) {
    %c0_i32 = arith.constant 0 : i32
    %c0_i32_0 = arith.constant 0 : i32
    %c0_i32_1 = arith.constant 0 : i32
    %c0_i32_2 = arith.constant 0 : i32
    return %c0_i32, %c0_i32_0, %c0_i32_1 : i32, i32, i32
  }
  func.func @transform_7(%arg0: i32) -> (i32, i32) {
    %c0_i32 = arith.constant 0 : i32
    %c0_i32_0 = arith.constant 0 : i32
    %c0_i32_1 = arith.constant 0 : i32
    return %c0_i32, %c0_i32_0 : i32, i32
  }
  func.func @transform_8(%arg0: i32) -> (i32, i32, i32) {
    %c0_i32 = arith.constant 0 : i32
    %c0_i32_0 = arith.constant 0 : i32
    %c0_i32_1 = arith.constant 0 : i32
    return %arg0, %c0_i32, %c0_i32_0 : i32, i32, i32
  }
}

module attributes {stable_mosaic.version = 11 : i64} {
  func.func @_stage_kernel(%arg0: i32, %arg1: memref<1x192x32xbf16, #tpu.memory_space<vmem>>, %arg2: memref<1x384x32xf32, #tpu.memory_space<vmem>>, %arg3: memref<32x64xbf16, #tpu.memory_space<vmem>>, %arg4: memref<1x64xf32, #tpu.memory_space<vmem>>, %arg5: memref<3x128x32xbf16, #tpu.memory_space<vmem>>, %arg6: memref<1x32xf32, #tpu.memory_space<vmem>>, %arg7: memref<3x64x32xbf16, #tpu.memory_space<vmem>>, %arg8: memref<1x32xf32, #tpu.memory_space<vmem>>, %arg9: memref<1x320x32xf32, #tpu.memory_space<vmem>>, %arg10: memref<392x64xf32, #tpu.memory_space<vmem>>, %arg11: memref<384x128xbf16, #tpu.memory_space<vmem>>, %arg12: memref<360x32xf32, #tpu.memory_space<vmem>>, %arg13: memref<352x64xbf16, #tpu.memory_space<vmem>>) attributes {dimension_semantics = [#tpu.dimension_semantics<parallel>], iteration_bounds = array<i64: 2>, scalar_prefetch = 0 : i64, scratch_operands = 4 : i64, tpu.core_type = #tpu.core_type<tc>, window_params = [{transform_indices = @transform_0, window_bounds = array<i64: 1, 192, 32>}, {transform_indices = @transform_1, window_bounds = array<i64: 1, 384, 32>}, {pipeline_mode = #tpu.pipeline_mode<synchronous>, transform_indices = @transform_2, window_bounds = array<i64: 32, 64>}, {pipeline_mode = #tpu.pipeline_mode<synchronous>, transform_indices = @transform_3, window_bounds = array<i64: 1, 64>}, {pipeline_mode = #tpu.pipeline_mode<synchronous>, transform_indices = @transform_4, window_bounds = array<i64: 3, 128, 32>}, {pipeline_mode = #tpu.pipeline_mode<synchronous>, transform_indices = @transform_5, window_bounds = array<i64: 1, 32>}, {pipeline_mode = #tpu.pipeline_mode<synchronous>, transform_indices = @transform_6, window_bounds = array<i64: 3, 64, 32>}, {pipeline_mode = #tpu.pipeline_mode<synchronous>, transform_indices = @transform_7, window_bounds = array<i64: 1, 32>}, {transform_indices = @transform_8, window_bounds = array<i64: 1, 320, 32>}]} {
    %cst = arith.constant 0.000000e+00 : f32
    %0 = vector.broadcast %cst : f32 to vector<392x64xf32>
    %c0 = arith.constant 0 : index
    %c0_0 = arith.constant 0 : index
    %1 = vector.load %arg10[%c0, %c0_0] : memref<392x64xf32, #tpu.memory_space<vmem>>, vector<392x64xf32>
    tpu.vector_store %arg10[%c0, %c0_0], %0 {strides = array<i32>} : memref<392x64xf32, #tpu.memory_space<vmem>>, vector<392x64xf32>,
    %cst_1 = arith.constant 0.000000e+00 : f32
    %2 = vector.broadcast %cst_1 : f32 to vector<8x32xf32>
    %c352 = arith.constant 352 : index
    %c0_2 = arith.constant 0 : index
    %3 = vector.load %arg12[%c352, %c0_2] : memref<360x32xf32, #tpu.memory_space<vmem>>, vector<8x32xf32>
    tpu.vector_store %arg12[%c352, %c0_2], %2 {strides = array<i32>} : memref<360x32xf32, #tpu.memory_space<vmem>>, vector<8x32xf32>,
    %c0_3 = arith.constant 0 : index
    %c0_4 = arith.constant 0 : index
    %c0_5 = arith.constant 0 : index
    %4 = vector.load %arg1[%c0_3, %c0_4, %c0_5] : memref<1x192x32xbf16, #tpu.memory_space<vmem>>, vector<1x192x32xbf16>
    %5 = vector.shape_cast %4 : vector<1x192x32xbf16> to vector<192x32xbf16>
    %c0_6 = arith.constant 0 : index
    %c0_7 = arith.constant 0 : index
    %6 = vector.load %arg3[%c0_6, %c0_7] : memref<32x64xbf16, #tpu.memory_space<vmem>>, vector<32x64xbf16>
    %cst_8 = arith.constant dense<0.000000e+00> : vector<192x64xf32>
    %7 = tpu.matmul %5, %6, %cst_8 {dimension_numbers = #tpu.dot_dimension_numbers<[1], [0], [0], [1], [0, 0, 1, 1], [], []>} : vector<192x32xbf16>, vector<32x64xbf16>, vector<192x64xf32> -> vector<192x64xf32>
    %c0_9 = arith.constant 0 : index
    %c0_10 = arith.constant 0 : index
    %8 = vector.load %arg4[%c0_9, %c0_10] : memref<1x64xf32, #tpu.memory_space<vmem>>, vector<1x64xf32>
    %9 = vector.broadcast %8 : vector<1x64xf32> to vector<192x64xf32>
    %10 = arith.addf %7, %9 : vector<192x64xf32>
    %11 = vector.extract_strided_slice %10 {offsets = [0, 0], sizes = [12, 32], strides = [1, 1]} : vector<192x64xf32> to vector<12x32xf32>
    %c0_11 = arith.constant 0 : index
    %c0_12 = arith.constant 0 : index
    %12 = vector.load %arg10[%c0_11, %c0_12] : memref<392x64xf32, #tpu.memory_space<vmem>>, vector<12x32xf32>
    tpu.vector_store %arg10[%c0_11, %c0_12], %11 {strides = array<i32>} : memref<392x64xf32, #tpu.memory_space<vmem>>, vector<12x32xf32>,
    %13 = vector.extract_strided_slice %10 {offsets = [0, 32], sizes = [12, 32], strides = [1, 1]} : vector<192x64xf32> to vector<12x32xf32>
    %c16 = arith.constant 16 : index
    %c0_13 = arith.constant 0 : index
    %14 = vector.load %arg10[%c16, %c0_13] : memref<392x64xf32, #tpu.memory_space<vmem>>, vector<12x32xf32>
    tpu.vector_store %arg10[%c16, %c0_13], %13 {strides = array<i32>} : memref<392x64xf32, #tpu.memory_space<vmem>>, vector<12x32xf32>,
    %15 = vector.extract_strided_slice %10 {offsets = [16, 0], sizes = [12, 32], strides = [1, 1]} : vector<192x64xf32> to vector<12x32xf32>
    %c32 = arith.constant 32 : index
    %c0_14 = arith.constant 0 : index
    %16 = vector.load %arg10[%c32, %c0_14] : memref<392x64xf32, #tpu.memory_space<vmem>>, vector<12x32xf32>
    tpu.vector_store %arg10[%c32, %c0_14], %15 {strides = array<i32>} : memref<392x64xf32, #tpu.memory_space<vmem>>, vector<12x32xf32>,
    %17 = vector.extract_strided_slice %10 {offsets = [16, 32], sizes = [12, 32], strides = [1, 1]} : vector<192x64xf32> to vector<12x32xf32>
    %c48 = arith.constant 48 : index
    %c0_15 = arith.constant 0 : index
    %18 = vector.load %arg10[%c48, %c0_15] : memref<392x64xf32, #tpu.memory_space<vmem>>, vector<12x32xf32>
    tpu.vector_store %arg10[%c48, %c0_15], %17 {strides = array<i32>} : memref<392x64xf32, #tpu.memory_space<vmem>>, vector<12x32xf32>,
    %19 = vector.extract_strided_slice %10 {offsets = [32, 0], sizes = [12, 32], strides = [1, 1]} : vector<192x64xf32> to vector<12x32xf32>
    %c64 = arith.constant 64 : index
    %c0_16 = arith.constant 0 : index
    %20 = vector.load %arg10[%c64, %c0_16] : memref<392x64xf32, #tpu.memory_space<vmem>>, vector<12x32xf32>
    tpu.vector_store %arg10[%c64, %c0_16], %19 {strides = array<i32>} : memref<392x64xf32, #tpu.memory_space<vmem>>, vector<12x32xf32>,
    %21 = vector.extract_strided_slice %10 {offsets = [32, 32], sizes = [12, 32], strides = [1, 1]} : vector<192x64xf32> to vector<12x32xf32>
    %c80 = arith.constant 80 : index
    %c0_17 = arith.constant 0 : index
    %22 = vector.load %arg10[%c80, %c0_17] : memref<392x64xf32, #tpu.memory_space<vmem>>, vector<12x32xf32>
    tpu.vector_store %arg10[%c80, %c0_17], %21 {strides = array<i32>} : memref<392x64xf32, #tpu.memory_space<vmem>>, vector<12x32xf32>,
    %23 = vector.extract_strided_slice %10 {offsets = [48, 0], sizes = [12, 32], strides = [1, 1]} : vector<192x64xf32> to vector<12x32xf32>
    %c96 = arith.constant 96 : index
    %c0_18 = arith.constant 0 : index
    %24 = vector.load %arg10[%c96, %c0_18] : memref<392x64xf32, #tpu.memory_space<vmem>>, vector<12x32xf32>
    tpu.vector_store %arg10[%c96, %c0_18], %23 {strides = array<i32>} : memref<392x64xf32, #tpu.memory_space<vmem>>, vector<12x32xf32>,
    %25 = vector.extract_strided_slice %10 {offsets = [48, 32], sizes = [12, 32], strides = [1, 1]} : vector<192x64xf32> to vector<12x32xf32>
    %c112 = arith.constant 112 : index
    %c0_19 = arith.constant 0 : index
    %26 = vector.load %arg10[%c112, %c0_19] : memref<392x64xf32, #tpu.memory_space<vmem>>, vector<12x32xf32>
    tpu.vector_store %arg10[%c112, %c0_19], %25 {strides = array<i32>} : memref<392x64xf32, #tpu.memory_space<vmem>>, vector<12x32xf32>,
    %27 = vector.extract_strided_slice %10 {offsets = [64, 0], sizes = [12, 32], strides = [1, 1]} : vector<192x64xf32> to vector<12x32xf32>
    %c128 = arith.constant 128 : index
    %c0_20 = arith.constant 0 : index
    %28 = vector.load %arg10[%c128, %c0_20] : memref<392x64xf32, #tpu.memory_space<vmem>>, vector<12x32xf32>
    tpu.vector_store %arg10[%c128, %c0_20], %27 {strides = array<i32>} : memref<392x64xf32, #tpu.memory_space<vmem>>, vector<12x32xf32>,
    %29 = vector.extract_strided_slice %10 {offsets = [64, 32], sizes = [12, 32], strides = [1, 1]} : vector<192x64xf32> to vector<12x32xf32>
    %c144 = arith.constant 144 : index
    %c0_21 = arith.constant 0 : index
    %30 = vector.load %arg10[%c144, %c0_21] : memref<392x64xf32, #tpu.memory_space<vmem>>, vector<12x32xf32>
    tpu.vector_store %arg10[%c144, %c0_21], %29 {strides = array<i32>} : memref<392x64xf32, #tpu.memory_space<vmem>>, vector<12x32xf32>,
    %31 = vector.extract_strided_slice %10 {offsets = [80, 0], sizes = [12, 32], strides = [1, 1]} : vector<192x64xf32> to vector<12x32xf32>
    %c160 = arith.constant 160 : index
    %c0_22 = arith.constant 0 : index
    %32 = vector.load %arg10[%c160, %c0_22] : memref<392x64xf32, #tpu.memory_space<vmem>>, vector<12x32xf32>
    tpu.vector_store %arg10[%c160, %c0_22], %31 {strides = array<i32>} : memref<392x64xf32, #tpu.memory_space<vmem>>, vector<12x32xf32>,
    %33 = vector.extract_strided_slice %10 {offsets = [80, 32], sizes = [12, 32], strides = [1, 1]} : vector<192x64xf32> to vector<12x32xf32>
    %c176 = arith.constant 176 : index
    %c0_23 = arith.constant 0 : index
    %34 = vector.load %arg10[%c176, %c0_23] : memref<392x64xf32, #tpu.memory_space<vmem>>, vector<12x32xf32>
    tpu.vector_store %arg10[%c176, %c0_23], %33 {strides = array<i32>} : memref<392x64xf32, #tpu.memory_space<vmem>>, vector<12x32xf32>,
    %35 = vector.extract_strided_slice %10 {offsets = [96, 0], sizes = [12, 32], strides = [1, 1]} : vector<192x64xf32> to vector<12x32xf32>
    %c192 = arith.constant 192 : index
    %c0_24 = arith.constant 0 : index
    %36 = vector.load %arg10[%c192, %c0_24] : memref<392x64xf32, #tpu.memory_space<vmem>>, vector<12x32xf32>
    tpu.vector_store %arg10[%c192, %c0_24], %35 {strides = array<i32>} : memref<392x64xf32, #tpu.memory_space<vmem>>, vector<12x32xf32>,
    %37 = vector.extract_strided_slice %10 {offsets = [96, 32], sizes = [12, 32], strides = [1, 1]} : vector<192x64xf32> to vector<12x32xf32>
    %c208 = arith.constant 208 : index
    %c0_25 = arith.constant 0 : index
    %38 = vector.load %arg10[%c208, %c0_25] : memref<392x64xf32, #tpu.memory_space<vmem>>, vector<12x32xf32>
    tpu.vector_store %arg10[%c208, %c0_25], %37 {strides = array<i32>} : memref<392x64xf32, #tpu.memory_space<vmem>>, vector<12x32xf32>,
    %39 = vector.extract_strided_slice %10 {offsets = [112, 0], sizes = [12, 32], strides = [1, 1]} : vector<192x64xf32> to vector<12x32xf32>
    %c224 = arith.constant 224 : index
    %c0_26 = arith.constant 0 : index
    %40 = vector.load %arg10[%c224, %c0_26] : memref<392x64xf32, #tpu.memory_space<vmem>>, vector<12x32xf32>
    tpu.vector_store %arg10[%c224, %c0_26], %39 {strides = array<i32>} : memref<392x64xf32, #tpu.memory_space<vmem>>, vector<12x32xf32>,
    %41 = vector.extract_strided_slice %10 {offsets = [112, 32], sizes = [12, 32], strides = [1, 1]} : vector<192x64xf32> to vector<12x32xf32>
    %c240 = arith.constant 240 : index
    %c0_27 = arith.constant 0 : index
    %42 = vector.load %arg10[%c240, %c0_27] : memref<392x64xf32, #tpu.memory_space<vmem>>, vector<12x32xf32>
    tpu.vector_store %arg10[%c240, %c0_27], %41 {strides = array<i32>} : memref<392x64xf32, #tpu.memory_space<vmem>>, vector<12x32xf32>,
    %43 = vector.extract_strided_slice %10 {offsets = [128, 0], sizes = [12, 32], strides = [1, 1]} : vector<192x64xf32> to vector<12x32xf32>
    %c256 = arith.constant 256 : index
    %c0_28 = arith.constant 0 : index
    %44 = vector.load %arg10[%c256, %c0_28] : memref<392x64xf32, #tpu.memory_space<vmem>>, vector<12x32xf32>
    tpu.vector_store %arg10[%c256, %c0_28], %43 {strides = array<i32>} : memref<392x64xf32, #tpu.memory_space<vmem>>, vector<12x32xf32>,
    %45 = vector.extract_strided_slice %10 {offsets = [128, 32], sizes = [12, 32], strides = [1, 1]} : vector<192x64xf32> to vector<12x32xf32>
    %c272 = arith.constant 272 : index
    %c0_29 = arith.constant 0 : index
    %46 = vector.load %arg10[%c272, %c0_29] : memref<392x64xf32, #tpu.memory_space<vmem>>, vector<12x32xf32>
    tpu.vector_store %arg10[%c272, %c0_29], %45 {strides = array<i32>} : memref<392x64xf32, #tpu.memory_space<vmem>>, vector<12x32xf32>,
    %47 = vector.extract_strided_slice %10 {offsets = [144, 0], sizes = [12, 32], strides = [1, 1]} : vector<192x64xf32> to vector<12x32xf32>
    %c288 = arith.constant 288 : index
    %c0_30 = arith.constant 0 : index
    %48 = vector.load %arg10[%c288, %c0_30] : memref<392x64xf32, #tpu.memory_space<vmem>>, vector<12x32xf32>
    tpu.vector_store %arg10[%c288, %c0_30], %47 {strides = array<i32>} : memref<392x64xf32, #tpu.memory_space<vmem>>, vector<12x32xf32>,
    %49 = vector.extract_strided_slice %10 {offsets = [144, 32], sizes = [12, 32], strides = [1, 1]} : vector<192x64xf32> to vector<12x32xf32>
    %c304 = arith.constant 304 : index
    %c0_31 = arith.constant 0 : index
    %50 = vector.load %arg10[%c304, %c0_31] : memref<392x64xf32, #tpu.memory_space<vmem>>, vector<12x32xf32>
    tpu.vector_store %arg10[%c304, %c0_31], %49 {strides = array<i32>} : memref<392x64xf32, #tpu.memory_space<vmem>>, vector<12x32xf32>,
    %51 = vector.extract_strided_slice %10 {offsets = [160, 0], sizes = [12, 32], strides = [1, 1]} : vector<192x64xf32> to vector<12x32xf32>
    %c320 = arith.constant 320 : index
    %c0_32 = arith.constant 0 : index
    %52 = vector.load %arg10[%c320, %c0_32] : memref<392x64xf32, #tpu.memory_space<vmem>>, vector<12x32xf32>
    tpu.vector_store %arg10[%c320, %c0_32], %51 {strides = array<i32>} : memref<392x64xf32, #tpu.memory_space<vmem>>, vector<12x32xf32>,
    %53 = vector.extract_strided_slice %10 {offsets = [160, 32], sizes = [12, 32], strides = [1, 1]} : vector<192x64xf32> to vector<12x32xf32>
    %c336 = arith.constant 336 : index
    %c0_33 = arith.constant 0 : index
    %54 = vector.load %arg10[%c336, %c0_33] : memref<392x64xf32, #tpu.memory_space<vmem>>, vector<12x32xf32>
    tpu.vector_store %arg10[%c336, %c0_33], %53 {strides = array<i32>} : memref<392x64xf32, #tpu.memory_space<vmem>>, vector<12x32xf32>,
    %55 = vector.extract_strided_slice %10 {offsets = [176, 0], sizes = [12, 32], strides = [1, 1]} : vector<192x64xf32> to vector<12x32xf32>
    %c352_34 = arith.constant 352 : index
    %c0_35 = arith.constant 0 : index
    %56 = vector.load %arg10[%c352_34, %c0_35] : memref<392x64xf32, #tpu.memory_space<vmem>>, vector<12x32xf32>
    tpu.vector_store %arg10[%c352_34, %c0_35], %55 {strides = array<i32>} : memref<392x64xf32, #tpu.memory_space<vmem>>, vector<12x32xf32>,
    %57 = vector.extract_strided_slice %10 {offsets = [176, 32], sizes = [12, 32], strides = [1, 1]} : vector<192x64xf32> to vector<12x32xf32>
    %c368 = arith.constant 368 : index
    %c0_36 = arith.constant 0 : index
    %58 = vector.load %arg10[%c368, %c0_36] : memref<392x64xf32, #tpu.memory_space<vmem>>, vector<12x32xf32>
    tpu.vector_store %arg10[%c368, %c0_36], %57 {strides = array<i32>} : memref<392x64xf32, #tpu.memory_space<vmem>>, vector<12x32xf32>,
    %c0_37 = arith.constant 0 : index
    %c0_38 = arith.constant 0 : index
    %c0_39 = arith.constant 0 : index
    %59 = vector.load %arg2[%c0_37, %c0_38, %c0_39] : memref<1x384x32xf32, #tpu.memory_space<vmem>>, vector<1x384x32xf32>
    %60 = vector.shape_cast %59 : vector<1x384x32xf32> to vector<384x32xf32>
    %c0_40 = arith.constant 0 : index
    %c32_41 = arith.constant 32 : index
    %61 = vector.load %arg10[%c0_40, %c32_41] : memref<392x64xf32, #tpu.memory_space<vmem>>, vector<384x32xf32>
    tpu.vector_store %arg10[%c0_40, %c32_41], %60 {strides = array<i32>} : memref<392x64xf32, #tpu.memory_space<vmem>>, vector<384x32xf32>,
    %c0_42 = arith.constant 0 : index
    %c0_43 = arith.constant 0 : index
    %62 = vector.load %arg10[%c0_42, %c0_43] : memref<392x64xf32, #tpu.memory_space<vmem>>, vector<384x64xf32>
    %63 = arith.truncf %62 : vector<384x64xf32> to vector<384x64xbf16>
    %c0_44 = arith.constant 0 : index
    %c0_45 = arith.constant 0 : index
    %64 = vector.load %arg11[%c0_44, %c0_45] : memref<384x128xbf16, #tpu.memory_space<vmem>>, vector<384x64xbf16>
    tpu.vector_store %arg11[%c0_44, %c0_45], %63 {strides = array<i32>} : memref<384x128xbf16, #tpu.memory_space<vmem>>, vector<384x64xbf16>,
    %c1 = arith.constant 1 : index
    %c0_46 = arith.constant 0 : index
    %65 = vector.load %arg10[%c1, %c0_46] : memref<392x64xf32, #tpu.memory_space<vmem>>, vector<384x64xf32>
    %66 = arith.truncf %65 : vector<384x64xf32> to vector<384x64xbf16>
    %c0_47 = arith.constant 0 : index
    %c64_48 = arith.constant 64 : index
    %67 = vector.load %arg11[%c0_47, %c64_48] : memref<384x128xbf16, #tpu.memory_space<vmem>>, vector<384x64xbf16>
    tpu.vector_store %arg11[%c0_47, %c64_48], %66 {strides = array<i32>} : memref<384x128xbf16, #tpu.memory_space<vmem>>, vector<384x64xbf16>,
    %cst_49 = arith.constant 0.000000e+00 : f32
    %68 = vector.broadcast %cst_49 : f32 to vector<352x32xf32>
    %c0_50 = arith.constant 0 : index
    %c0_51 = arith.constant 0 : index
    %69 = vector.load %arg11[%c0_50, %c0_51] : memref<384x128xbf16, #tpu.memory_space<vmem>>, vector<352x128xbf16>
    %c0_52 = arith.constant 0 : index
    %c0_53 = arith.constant 0 : index
    %c0_54 = arith.constant 0 : index
    %70 = vector.load %arg5[%c0_52, %c0_53, %c0_54] : memref<3x128x32xbf16, #tpu.memory_space<vmem>>, vector<1x128x32xbf16>
    %71 = vector.shape_cast %70 : vector<1x128x32xbf16> to vector<128x32xbf16>
    %cst_55 = arith.constant dense<0.000000e+00> : vector<352x32xf32>
    %72 = tpu.matmul %69, %71, %cst_55 {dimension_numbers = #tpu.dot_dimension_numbers<[1], [0], [0], [1], [0, 0, 1, 1], [], []>} : vector<352x128xbf16>, vector<128x32xbf16>, vector<352x32xf32> -> vector<352x32xf32>
    %73 = arith.addf %68, %72 : vector<352x32xf32>
    %c16_56 = arith.constant 16 : index
    %c0_57 = arith.constant 0 : index
    %74 = vector.load %arg11[%c16_56, %c0_57] : memref<384x128xbf16, #tpu.memory_space<vmem>>, vector<352x128xbf16>
    %c1_58 = arith.constant 1 : index
    %c0_59 = arith.constant 0 : index
    %c0_60 = arith.constant 0 : index
    %75 = vector.load %arg5[%c1_58, %c0_59, %c0_60] : memref<3x128x32xbf16, #tpu.memory_space<vmem>>, vector<1x128x32xbf16>
    %76 = vector.shape_cast %75 : vector<1x128x32xbf16> to vector<128x32xbf16>
    %cst_61 = arith.constant dense<0.000000e+00> : vector<352x32xf32>
    %77 = tpu.matmul %74, %76, %cst_61 {dimension_numbers = #tpu.dot_dimension_numbers<[1], [0], [0], [1], [0, 0, 1, 1], [], []>} : vector<352x128xbf16>, vector<128x32xbf16>, vector<352x32xf32> -> vector<352x32xf32>
    %78 = arith.addf %73, %77 : vector<352x32xf32>
    %c32_62 = arith.constant 32 : index
    %c0_63 = arith.constant 0 : index
    %79 = vector.load %arg11[%c32_62, %c0_63] : memref<384x128xbf16, #tpu.memory_space<vmem>>, vector<352x128xbf16>
    %c2 = arith.constant 2 : index
    %c0_64 = arith.constant 0 : index
    %c0_65 = arith.constant 0 : index
    %80 = vector.load %arg5[%c2, %c0_64, %c0_65] : memref<3x128x32xbf16, #tpu.memory_space<vmem>>, vector<1x128x32xbf16>
    %81 = vector.shape_cast %80 : vector<1x128x32xbf16> to vector<128x32xbf16>
    %cst_66 = arith.constant dense<0.000000e+00> : vector<352x32xf32>
    %82 = tpu.matmul %79, %81, %cst_66 {dimension_numbers = #tpu.dot_dimension_numbers<[1], [0], [0], [1], [0, 0, 1, 1], [], []>} : vector<352x128xbf16>, vector<128x32xbf16>, vector<352x32xf32> -> vector<352x32xf32>
    %83 = arith.addf %78, %82 : vector<352x32xf32>
    %c0_67 = arith.constant 0 : index
    %c0_68 = arith.constant 0 : index
    %84 = vector.load %arg6[%c0_67, %c0_68] : memref<1x32xf32, #tpu.memory_space<vmem>>, vector<1x32xf32>
    %85 = vector.broadcast %84 : vector<1x32xf32> to vector<352x32xf32>
    %86 = arith.addf %83, %85 : vector<352x32xf32>
    %cst_69 = arith.constant 0.000000e+00 : f32
    %87 = vector.broadcast %cst_69 : f32 to vector<352x32xf32>
    %88 = arith.maximumf %86, %87 : vector<352x32xf32>
    %c0_70 = arith.constant 0 : index
    %c0_71 = arith.constant 0 : index
    %89 = vector.load %arg12[%c0_70, %c0_71] : memref<360x32xf32, #tpu.memory_space<vmem>>, vector<352x32xf32>
    tpu.vector_store %arg12[%c0_70, %c0_71], %88 {strides = array<i32>} : memref<360x32xf32, #tpu.memory_space<vmem>>, vector<352x32xf32>,
    %c0_72 = arith.constant 0 : index
    %c0_73 = arith.constant 0 : index
    %90 = vector.load %arg12[%c0_72, %c0_73] : memref<360x32xf32, #tpu.memory_space<vmem>>, vector<352x32xf32>
    %91 = arith.truncf %90 : vector<352x32xf32> to vector<352x32xbf16>
    %c0_74 = arith.constant 0 : index
    %c0_75 = arith.constant 0 : index
    %92 = vector.load %arg13[%c0_74, %c0_75] : memref<352x64xbf16, #tpu.memory_space<vmem>>, vector<352x32xbf16>
    tpu.vector_store %arg13[%c0_74, %c0_75], %91 {strides = array<i32>} : memref<352x64xbf16, #tpu.memory_space<vmem>>, vector<352x32xbf16>,
    %c1_76 = arith.constant 1 : index
    %c0_77 = arith.constant 0 : index
    %93 = vector.load %arg12[%c1_76, %c0_77] : memref<360x32xf32, #tpu.memory_space<vmem>>, vector<352x32xf32>
    %94 = arith.truncf %93 : vector<352x32xf32> to vector<352x32xbf16>
    %c0_78 = arith.constant 0 : index
    %c32_79 = arith.constant 32 : index
    %95 = vector.load %arg13[%c0_78, %c32_79] : memref<352x64xbf16, #tpu.memory_space<vmem>>, vector<352x32xbf16>
    tpu.vector_store %arg13[%c0_78, %c32_79], %94 {strides = array<i32>} : memref<352x64xbf16, #tpu.memory_space<vmem>>, vector<352x32xbf16>,
    %cst_80 = arith.constant 0.000000e+00 : f32
    %96 = vector.broadcast %cst_80 : f32 to vector<320x32xf32>
    %c0_81 = arith.constant 0 : index
    %c0_82 = arith.constant 0 : index
    %97 = vector.load %arg13[%c0_81, %c0_82] : memref<352x64xbf16, #tpu.memory_space<vmem>>, vector<320x64xbf16>
    %c0_83 = arith.constant 0 : index
    %c0_84 = arith.constant 0 : index
    %c0_85 = arith.constant 0 : index
    %98 = vector.load %arg7[%c0_83, %c0_84, %c0_85] : memref<3x64x32xbf16, #tpu.memory_space<vmem>>, vector<1x64x32xbf16>
    %99 = vector.shape_cast %98 : vector<1x64x32xbf16> to vector<64x32xbf16>
    %cst_86 = arith.constant dense<0.000000e+00> : vector<320x32xf32>
    %100 = tpu.matmul %97, %99, %cst_86 {dimension_numbers = #tpu.dot_dimension_numbers<[1], [0], [0], [1], [0, 0, 1, 1], [], []>} : vector<320x64xbf16>, vector<64x32xbf16>, vector<320x32xf32> -> vector<320x32xf32>
    %101 = arith.addf %96, %100 : vector<320x32xf32>
    %c16_87 = arith.constant 16 : index
    %c0_88 = arith.constant 0 : index
    %102 = vector.load %arg13[%c16_87, %c0_88] : memref<352x64xbf16, #tpu.memory_space<vmem>>, vector<320x64xbf16>
    %c1_89 = arith.constant 1 : index
    %c0_90 = arith.constant 0 : index
    %c0_91 = arith.constant 0 : index
    %103 = vector.load %arg7[%c1_89, %c0_90, %c0_91] : memref<3x64x32xbf16, #tpu.memory_space<vmem>>, vector<1x64x32xbf16>
    %104 = vector.shape_cast %103 : vector<1x64x32xbf16> to vector<64x32xbf16>
    %cst_92 = arith.constant dense<0.000000e+00> : vector<320x32xf32>
    %105 = tpu.matmul %102, %104, %cst_92 {dimension_numbers = #tpu.dot_dimension_numbers<[1], [0], [0], [1], [0, 0, 1, 1], [], []>} : vector<320x64xbf16>, vector<64x32xbf16>, vector<320x32xf32> -> vector<320x32xf32>
    %106 = arith.addf %101, %105 : vector<320x32xf32>
    %c32_93 = arith.constant 32 : index
    %c0_94 = arith.constant 0 : index
    %107 = vector.load %arg13[%c32_93, %c0_94] : memref<352x64xbf16, #tpu.memory_space<vmem>>, vector<320x64xbf16>
    %c2_95 = arith.constant 2 : index
    %c0_96 = arith.constant 0 : index
    %c0_97 = arith.constant 0 : index
    %108 = vector.load %arg7[%c2_95, %c0_96, %c0_97] : memref<3x64x32xbf16, #tpu.memory_space<vmem>>, vector<1x64x32xbf16>
    %109 = vector.shape_cast %108 : vector<1x64x32xbf16> to vector<64x32xbf16>
    %cst_98 = arith.constant dense<0.000000e+00> : vector<320x32xf32>
    %110 = tpu.matmul %107, %109, %cst_98 {dimension_numbers = #tpu.dot_dimension_numbers<[1], [0], [0], [1], [0, 0, 1, 1], [], []>} : vector<320x64xbf16>, vector<64x32xbf16>, vector<320x32xf32> -> vector<320x32xf32>
    %111 = arith.addf %106, %110 : vector<320x32xf32>
    %c0_99 = arith.constant 0 : index
    %c0_100 = arith.constant 0 : index
    %112 = vector.load %arg8[%c0_99, %c0_100] : memref<1x32xf32, #tpu.memory_space<vmem>>, vector<1x32xf32>
    %113 = vector.broadcast %112 : vector<1x32xf32> to vector<320x32xf32>
    %114 = arith.addf %111, %113 : vector<320x32xf32>
    %c0_101 = arith.constant 0 : index
    %c0_102 = arith.constant 0 : index
    %c0_103 = arith.constant 0 : index
    %115 = vector.load %arg9[%c0_101, %c0_102, %c0_103] : memref<1x320x32xf32, #tpu.memory_space<vmem>>, vector<1x320x32xf32>
    %116 = vector.shape_cast %115 : vector<1x320x32xf32> to vector<320x32xf32>
    %117 = vector.shape_cast %114 : vector<320x32xf32> to vector<1x320x32xf32>
    tpu.vector_store %arg9[%c0_101, %c0_102, %c0_103], %117 {strides = array<i32>} : memref<1x320x32xf32, #tpu.memory_space<vmem>>, vector<1x320x32xf32>,
    return
  }
  func.func @transform_0(%arg0: i32) -> (i32, i32, i32) {
    %c0_i32 = arith.constant 0 : i32
    %c0_i32_0 = arith.constant 0 : i32
    %c0_i32_1 = arith.constant 0 : i32
    return %arg0, %c0_i32, %c0_i32_0 : i32, i32, i32
  }
  func.func @transform_1(%arg0: i32) -> (i32, i32, i32) {
    %c0_i32 = arith.constant 0 : i32
    %c0_i32_0 = arith.constant 0 : i32
    %c0_i32_1 = arith.constant 0 : i32
    return %arg0, %c0_i32, %c0_i32_0 : i32, i32, i32
  }
  func.func @transform_2(%arg0: i32) -> (i32, i32) {
    %c0_i32 = arith.constant 0 : i32
    %c0_i32_0 = arith.constant 0 : i32
    %c0_i32_1 = arith.constant 0 : i32
    return %c0_i32, %c0_i32_0 : i32, i32
  }
  func.func @transform_3(%arg0: i32) -> (i32, i32) {
    %c0_i32 = arith.constant 0 : i32
    %c0_i32_0 = arith.constant 0 : i32
    %c0_i32_1 = arith.constant 0 : i32
    return %c0_i32, %c0_i32_0 : i32, i32
  }
  func.func @transform_4(%arg0: i32) -> (i32, i32, i32) {
    %c0_i32 = arith.constant 0 : i32
    %c0_i32_0 = arith.constant 0 : i32
    %c0_i32_1 = arith.constant 0 : i32
    %c0_i32_2 = arith.constant 0 : i32
    return %c0_i32, %c0_i32_0, %c0_i32_1 : i32, i32, i32
  }
  func.func @transform_5(%arg0: i32) -> (i32, i32) {
    %c0_i32 = arith.constant 0 : i32
    %c0_i32_0 = arith.constant 0 : i32
    %c0_i32_1 = arith.constant 0 : i32
    return %c0_i32, %c0_i32_0 : i32, i32
  }
  func.func @transform_6(%arg0: i32) -> (i32, i32, i32) {
    %c0_i32 = arith.constant 0 : i32
    %c0_i32_0 = arith.constant 0 : i32
    %c0_i32_1 = arith.constant 0 : i32
    %c0_i32_2 = arith.constant 0 : i32
    return %c0_i32, %c0_i32_0, %c0_i32_1 : i32, i32, i32
  }
  func.func @transform_7(%arg0: i32) -> (i32, i32) {
    %c0_i32 = arith.constant 0 : i32
    %c0_i32_0 = arith.constant 0 : i32
    %c0_i32_1 = arith.constant 0 : i32
    return %c0_i32, %c0_i32_0 : i32, i32
  }
  func.func @transform_8(%arg0: i32) -> (i32, i32, i32) {
    %c0_i32 = arith.constant 0 : i32
    %c0_i32_0 = arith.constant 0 : i32
    %c0_i32_1 = arith.constant 0 : i32
    return %arg0, %c0_i32, %c0_i32_0 : i32, i32, i32
  }
}

</mosaic_0001>

<bundles_post_ra>
// kernel: decoder_forward.2
= control target key start
LH: loop header
LB: loop body
LE: loop exit
PB: predicated region body
PF: predicated region fallthrough
CT: control target
= control target key end

     0   :  { %s3043_s27 = smov 0   ;;  %s3635_s0 = inlined_call_operand.vmem [shape: bf16[2,64,64], index: 0, kind: input, shape index: {}]   ;;  %s3636_s1 = inlined_call_operand.vmem [shape: f32[2,128,64], index: 1, kind: input, shape index: {}]   ;;  %s3637_s2 = inlined_call_operand.vmem [shape: bf16[64,128], index: 2, kind: input, shape index: {}]   ;;  %s3638_s3 = inlined_call_operand.vmem [shape: f32[1,128], index: 3, kind: input, shape index: {}]   ;;  %s3639_s4 = inlined_call_operand.vmem [shape: bf16[3,256,64], index: 4, kind: input, shape index: {}]   ;;  %s3640_s5 = inlined_call_operand.vmem [shape: f32[1,64], index: 5, kind: input, shape index: {}]   ;;  %s3641_s6 = inlined_call_operand.vmem [shape: bf16[3,128,64], index: 6, kind: input, shape index: {}]   ;;  %s3642_s7 = inlined_call_operand.vmem [shape: f32[1,64], index: 7, kind: input, shape index: {}]   ;;  %s3643_s8 = inlined_call_operand.vmem [shape: f32[2,96,64], index: 8, kind: output, shape index: {}]  }
   0x1 LB: > { %s2273_s28 = sadd.s32 4294967295, %s2994_s27   ;;  %p2277_p0 = scmp.ge.s32.totalorder %s2994_s27, 1  ;;  %s2994_s27 = sphi %s3043_s27, %s18_s27  }
   0x2   : > { %p272_p1 = scmp.lt.s32.totalorder %s2994_s27, 3 }
   0x4   : > { %p273_p2 = pnand %p2277_p0, %p272_p1 }
   0x5   : > { %p311_p3 = scmp.lt.s32.totalorder (!%p273_p2), %s2273_s28, 1  ;;  %s2996_s23 = smov (!%p273_p2), 64  }
   0x6   : > { %276 = sbr.rel (%p273_p2) target bundleno = 1059 (0x423), region = 52 }
   0xb   : > { %v2794_v0 = vld [vmem:[%s3637_s2 + $0x18] sm:$0xff]  ;;  %v2793_v1 = vld [vmem:[%s3637_s2 + $0x10] sm:$0xff]  ;;  %s3645_s28 = smov (!%p311_p3, %s2273_s28), 1  ;;  %v2792_v2 = vld [vmem:[%s3637_s2 + $0x8] sm:$0xff]  ;;  %vm344_vm0 = vcmask 523264   ;;  %v2997_v9 = vmov 0.0  }
   0xc   : > { %426 = vmatpush.bf16.msra.mxu0 %v2794_v0  ;;  %s2785_s13 = sshll.u32 %s3645_s28, 5  ;;  %v2791_v3 = vld [vmem:[%s3637_s2] sm:$0xff]  ;;  %s2786_s19 = sshll.u32 %s3645_s28, 7  ;;  %332 = vst [vmem:[#allocation2 + $0x28] sm:$0xff] %v2997_v9  ;;  %v2818_v43 = vld [vmem:[%s3639_s4 + $0xb8] sm:$0xff]  ;;  %vm579_vm1 = vcmask 1048064  }
   0xd   : > { %s315_s18 = scalar_lea.vmem %s3635_s0, %s2785_s13  ;;  %s3074_s22 = scalar_lea.vmem %s3636_s1, %s2786_s19  ;;  %327 = vst [vmem:[#allocation2] sm:$0xff] %v2997_v9  ;;  %v2985_v14 = vld [vmem:[%s3638_s3] ss:$0 sm:$0xff]  ;;  %v2826_v44 = vld [vmem:[%s3639_s4 + $0xf8] sm:$0xff]  ;;  %938 = vmatpush.bf16.msra.mxu1 %v2818_v43  ;;  %v2817_v46 = vld [vmem:[%s3639_s4 + $0xb0] sm:$0xff]  ;;  %vm1630_vm2 = vcmask 519168  }
   0xe   : > { %v2787_v4 = vld [vmem:[%s315_s18] sm:$0xff]  ;;  %v2788_v5 = vld [vmem:[%s315_s18 + $0x8] sm:$0xff]  ;;  %v2789_v7 = vld [vmem:[%s315_s18 + $0x10] sm:$0xff]  ;;  %328 = vst [vmem:[#allocation2 + $0x8] sm:$0xff] %v2997_v9  ;;  %982 = vmatpush.bf16.msra.mxu2 %v2826_v44  ;;  %vm1729_vm3 = vcmask 1043968   ;;  %s2974_s17 = smul.u32 96, %s3645_s28 }
   0xf   : > { %v500_v6 = vld [vmem:[%s3074_s22 + $0x8] sm:$0xff]  ;;  %v2790_v8 = vld [vmem:[%s315_s18 + $0x18] sm:$0xff]  ;;  %v501_v10 = vld [vmem:[%s3074_s22 + $0x10] sm:$0xff]  ;;  %329 = vst [vmem:[#allocation2 + $0x10] sm:$0xff] %v2997_v9 }
  0x10   : > { %427 = vmatpush.bf16.msra.mxu0 %v2793_v1  ;;  %533 = vrot.lane.b32.xlu1 %v500_v6, %s2996_s23  ;;  %330 = vst [vmem:[#allocation2 + $0x18] sm:$0xff] %v2997_v9  ;;  %v502_v11 = vld [vmem:[%s3074_s22 + $0x18] sm:$0xff]  ;;  %v504_v12 = vld [vmem:[%s3074_s22 + $0x28] sm:$0xff]  ;;  %v503_v21 = vld [vmem:[%s3074_s22 + $0x20] sm:$0xff] }
  0x11   : > { %331 = vst [vmem:[#allocation2 + $0x20] sm:$0xff] %v2997_v9  ;;  %537 = vrot.lane.b32.xlu2 %v502_v11, %s2996_s23  ;;  %v506_v13 = vld [vmem:[%s3074_s22 + $0x38] sm:$0xff]  ;;  %v508_v19 = vld [vmem:[%s3074_s22 + $0x48] sm:$0xff]  ;;  %v505_v24 = vld [vmem:[%s3074_s22 + $0x30] sm:$0xff]  ;;  %939 = vmatpush.bf16.msra.mxu1 %v2817_v46 }
  0x12   : > { %333 = vst [vmem:[#allocation2 + $0x30] sm:$0xff] %v2997_v9  ;;  %v510_v26 = vld [vmem:[%s3074_s22 + $0x58] sm:$0xff]  ;;  %v507_v28 = vld [vmem:[%s3074_s22 + $0x40] sm:$0xff]  ;;  %v512_v30 = vld [vmem:[%s3074_s22 + $0x68] sm:$0xff] }
  0x13   : > { %334 = vst [vmem:[#allocation2 + $0x38] sm:$0xff] %v2997_v9  ;;  %v509_v32 = vld [vmem:[%s3074_s22 + $0x50] sm:$0xff]  ;;  %v514_v34 = vld [vmem:[%s3074_s22 + $0x78] sm:$0xff]  ;;  %v511_v36 = vld [vmem:[%s3074_s22 + $0x60] sm:$0xff] }
  0x14   : > { %428 = vmatpush.bf16.msra.mxu0 %v2792_v2  ;;  %335 = vst [vmem:[#allocation2 + $0x40] sm:$0xff] %v2997_v9  ;;  %v513_v39 = vld [vmem:[%s3074_s22 + $0x70] sm:$0xff]  ;;  %v499_v41 = vld [vmem:[%s3074_s22] sm:$0xff]  ;;  %v2816_v48 = vld [vmem:[%s3639_s4 + $0xa8] sm:$0xff]  ;;  %s3592_s22 = scalar_lea.vmem %s3643_s8, %s2974_s17 }
  0x15   : > { %336 = vst [vmem:[#allocation2 + $0x48] sm:$0xff] %v2997_v9  ;;  %v2825_v47 = vld [vmem:[%s3639_s4 + $0xf0] sm:$0xff]  ;;  %v2824_v49 = vld [vmem:[%s3639_s4 + $0xe8] sm:$0xff]  ;;  %940 = vmatpush.bf16.msra.mxu1 %v2816_v48  ;;  %v2815_v51 = vld [vmem:[%s3639_s4 + $0xa0] sm:$0xff] }
  0x16   : > { %337 = vst [vmem:[#allocation2 + $0x50] sm:$0xff] %v2997_v9  ;;  %983 = vmatpush.bf16.msra.mxu2 %v2825_v47  ;;  %v2823_v52 = vld [vmem:[%s3639_s4 + $0xe0] sm:$0xff]  ;;  %v2814_v55 = vld [vmem:[%s3639_s4 + $0x98] sm:$0xff]  ;;  %v2813_v57 = vld [vmem:[%s3639_s4 + $0x90] sm:$0xff] }
  0x17   : > { %338 = vst [vmem:[#allocation2 + $0x58] sm:$0xff] %v2997_v9  ;;  %v2822_v56 = vld [vmem:[%s3639_s4 + $0xd8] sm:$0xff]  ;;  %v2821_v58 = vld [vmem:[%s3639_s4 + $0xd0] sm:$0xff]  ;;  %v2812_v61 = vld [vmem:[%s3639_s4 + $0x88] sm:$0xff] }
  0x18   : > { %429 = vmatpush.bf16.msra.mxu0 %v2791_v3  ;;  %535 = vrot.lane.b32.xlu1 %v501_v10, %s2996_s23  ;;  %339 = vst [vmem:[#allocation2 + $0x60] sm:$0xff] %v2997_v9  ;;  %v2820_v62 = vld [vmem:[%s3639_s4 + $0xc8] sm:$0xff]  ;;  %v2802_v63 = vld [vmem:[%s3639_s4 + $0x38] sm:$0xff]  ;;  %v2811_v0 = vld [vmem:[%s3639_s4 + $0x80] sm:$0xff] }
  0x19   : > { %340 = vst [vmem:[#allocation2 + $0x68] sm:$0xff] %v2997_v9  ;;  %941 = vmatpush.bf16.msra.mxu1 %v2815_v51  ;;  %2947 = vmatpush.bf16.msra.mxu3 %v2802_v63  ;;  %v2819_v1 = vld [vmem:[%s3639_s4 + $0xc0] sm:$0xff]  ;;  %v2801_v2 = vld [vmem:[%s3639_s4 + $0x30] sm:$0xff]  ;;  %v2810_v6 = vld [vmem:[%s3639_s4 + $0x78] sm:$0xff] }
  0x1a   : > { %341 = vst [vmem:[#allocation2 + $0x70] sm:$0xff] %v2997_v9  ;;  %984 = vmatpush.bf16.msra.mxu2 %v2824_v49  ;;  %v2809_v10 = vld [vmem:[%s3639_s4 + $0x70] sm:$0xff]  ;;  %v2799_v11 = vld [vmem:[%s3639_s4 + $0x20] sm:$0xff] }
  0x1b   : > { %2315 = vmatmul.msk.bf16.vlgmr.msra.gmra.mxu0 %vm344_vm0, %v2787_v4  ;;  %342 = vst [vmem:[#allocation2 + $0x78] sm:$0xff] %v2997_v9  ;;  %v2803_v48 = vld [vmem:[%s3639_s4 + $0x40] sm:$0xff] }
  0x1c   : > { %343 = vst [vmem:[#allocation2 + $0x80] sm:$0xff] %v2997_v9  ;;  %1197 = vmatpush.bf16.msrb.mxu0 %v2810_v6 }
  0x1d   : > { %345 = vst.msk [vmem:[#allocation4 + $0x70] sm:$0xff] %vm344_vm0, %v2997_v9  ;;  %942 = vmatpush.bf16.msra.mxu1 %v2814_v55  ;;  %2949 = vmatpush.bf16.msra.mxu3 %v2801_v2  ;;  %v2800_v9 = vld [vmem:[%s3639_s4 + $0x28] sm:$0xff] }
  0x1e   : > { %985 = vmatpush.bf16.msra.mxu2 %v2823_v52 }
  0x20   : > { %541 = vrot.lane.b32.xlu1 %v504_v12, %s2996_s23  ;;  %1198 = vmatpush.bf16.msrb.mxu0 %v2809_v10 }
  0x21   : > { %943 = vmatpush.bf16.msra.mxu1 %v2813_v57  ;;  %2951 = vmatpush.bf16.msra.mxu3 %v2800_v9 }
  0x22   : > { %986 = vmatpush.bf16.msra.mxu2 %v2822_v56 }
  0x25   : > { %944 = vmatpush.bf16.msra.mxu1 %v2812_v61  ;;  %2953 = vmatpush.bf16.msra.mxu3 %v2799_v11 }
  0x26   : > { %987 = vmatpush.bf16.msra.mxu2 %v2821_v58 }
  0x28   : > { %545 = vrot.lane.b32.xlu1 %v506_v13, %s2996_s23 }
  0x29   : > { %945 = vmatpush.bf16.msra.mxu1 %v2811_v0 }
  0x2a   : > { %988 = vmatpush.bf16.msra.mxu2 %v2820_v62 }
  0x2b   : > { %2316 = vmatmul.msk.bf16.gmra.mxu0 %vm344_vm0, %v2788_v5 }
  0x2d   : > { %1153 = vmatpush.bf16.msrb.mxu1 %v2802_v63 }
  0x2e   : > { %989 = vmatpush.bf16.msra.mxu2 %v2819_v1 }
  0x30   : > { %549 = vrot.lane.b32.xlu1 %v508_v19, %s2996_s23 }
  0x31   : > { %1154 = vmatpush.bf16.msrb.mxu1 %v2801_v2 }
  0x32   : > { %2946 = vmatpush.bf16.msrb.mxu2 %v2802_v63 }
  0x35   : > { %1155 = vmatpush.bf16.msrb.mxu1 %v2800_v9 }
  0x36   : > { %2948 = vmatpush.bf16.msrb.mxu2 %v2801_v2 }
  0x38   : > { %553 = vrot.lane.b32.xlu1 %v510_v26, %s2996_s23 }
  0x39   : > { %1156 = vmatpush.bf16.msrb.mxu1 %v2799_v11 }
  0x3a   : > { %2950 = vmatpush.bf16.msrb.mxu2 %v2800_v9 }
  0x3b   : > { %2317 = vmatmul.msk.bf16.gmra.mxu0 %vm344_vm0, %v2789_v7 }
  0x3e   : > { %2952 = vmatpush.bf16.msrb.mxu2 %v2799_v11 }
  0x40   : > { %557 = vrot.lane.b32.xlu1 %v512_v30, %s2996_s23  ;;  %v2796_v30 = vld [vmem:[%s3639_s4 + $0x8] sm:$0xff] }
  0x48   : > { %561 = vrot.lane.b32.xlu1 %v514_v34, %s2996_s23  ;;  %v2795_v34 = vld [vmem:[%s3639_s4] sm:$0xff] }
  0x4b   : > { %2318 = vmatmul.msk.bf16.gmra.mxu0 %vm344_vm0, %v2790_v8 }
  0x6b   : > { %v3156_v53 = vpop.permute.xlu2 %537 }
  0x82   : > { %v534_v42 = vpop.permute.xlu1 %533 }
  0x8a   : > { %v536_v45 = vpop.permute.xlu1 %535 }
  0x92   : > { %v542_v59 = vpop.permute.xlu1 %541 }
  0x98   : > { %v431_v15 = vpop.f32.mrf.mxu0 }
  0x99   : > { %v432_v16 = vadd.f32 %v2985_v14, %v431_v15 }
  0x9a   : > { %v546_v8 = vpop.permute.xlu1 %545 }
  0x9b   : > { %453 = vrot.lane.b32.xlu0 %v432_v16, %s2996_s23  ;;  %451 = vst.msk [vmem:[#allocation2] sm:$0xff] %vm344_vm0, %v432_v16 }
  0xa0   : > { %v433_v17 = vpop.f32.mrf.mxu0 }
  0xa1   : > { %v434_v18 = vadd.f32 %v2985_v14, %v433_v17  ;;  %v2798_v17 = vld [vmem:[%s3639_s4 + $0x18] sm:$0xff] }
  0xa2   : > { %2955 = vmatpush.bf16.msra.mxu3 %v2798_v17  ;;  %1157 = vmatpush.bf16.msrb.mxu1 %v2798_v17 }
  0xa3   : > { %459 = vrot.lane.b32.xlu0 %v434_v18, %s2996_s23  ;;  %457 = vst.msk [vmem:[#allocation2 + $0x10] sm:$0xff] %vm344_vm0, %v434_v18  ;;  %2954 = vmatpush.bf16.msrb.mxu2 %v2798_v17 }
  0xa4   : > { %582 = vst.msk [vmem:[#allocation2 + $0x10] sm:$0xff] %vm579_vm1, %v536_v45  ;;  %v2804_v45 = vld [vmem:[%s3639_s4 + $0x48] sm:$0xff] }
  0xa8   : > { %v436_v20 = vpop.f32.mrf.mxu0 }
  0xa9   : > { %v437_v22 = vadd.f32 %v2985_v14, %v436_v20 }
  0xab   : > { %465 = vrot.lane.b32.xlu2 %v437_v22, %s2996_s23  ;;  %539 = vrot.lane.b32.xlu0 %v503_v21, %s2996_s23  ;;  %463 = vst.msk [vmem:[#allocation2 + $0x20] sm:$0xff] %vm344_vm0, %v437_v22  ;;  %v598_v50 = vld [vmem:[#allocation2 + $0x10] sm:$0xff]  ;;  %v550_v22 = vpop.permute.xlu1 %549 }
  0xac   : > { %v614_v54 = vpack.c.bf16 %v598_v50, %v598_v50 }
  0xae   : > { %630 = vst [vmem:[#allocation3 + $0x10] sm:$0xf] %v614_v54 }
  0xb0   : > { %v438_v23 = vpop.f32.mrf.mxu0 }
  0xb1   : > { %v439_v25 = vadd.f32 %v2985_v14, %v438_v23  ;;  %v2807_v23 = vld [vmem:[%s3639_s4 + $0x60] sm:$0xff] }
  0xb3   : > { %471 = vrot.lane.b32.xlu2 %v439_v25, %s2996_s23  ;;  %543 = vrot.lane.b32.xlu0 %v505_v24, %s2996_s23  ;;  %469 = vst.msk [vmem:[#allocation2 + $0x30] sm:$0xff] %vm344_vm0, %v439_v25  ;;  %v2797_v24 = vld [vmem:[%s3639_s4 + $0x10] sm:$0xff]  ;;  %v554_v47 = vpop.permute.xlu1 %553 }
  0xb4   : > { %2957 = vmatpush.bf16.msra.mxu3 %v2797_v24  ;;  %1158 = vmatpush.bf16.msrb.mxu1 %v2797_v24 }
  0xb5   : > { %2956 = vmatpush.bf16.msrb.mxu2 %v2797_v24 }
  0xb8   : > { %v441_v27 = vpop.f32.mrf.mxu0  ;;  %2959 = vmatpush.bf16.msra.mxu3 %v2796_v30  ;;  %1159 = vmatpush.bf16.msrb.mxu1 %v2796_v30 }
  0xb9   : > { %v442_v29 = vadd.f32 %v2985_v14, %v441_v27  ;;  %v2806_v27 = vld [vmem:[%s3639_s4 + $0x58] sm:$0xff]  ;;  %2958 = vmatpush.bf16.msrb.mxu2 %v2796_v30 }
  0xbb   : > { %477 = vrot.lane.b32.xlu2 %v442_v29, %s2996_s23  ;;  %547 = vrot.lane.b32.xlu0 %v507_v28, %s2996_s23  ;;  %475 = vst.msk [vmem:[#allocation2 + $0x40] sm:$0xff] %vm344_vm0, %v442_v29 }
  0xbc   : > { %2961 = vmatpush.bf16.msra.mxu3 %v2795_v34  ;;  %1160 = vmatpush.bf16.msrb.mxu1 %v2795_v34 }
  0xbd   : > { %2960 = vmatpush.bf16.msrb.mxu2 %v2795_v34 }
  0xc0   : > { %v443_v31 = vpop.f32.mrf.mxu0 }
  0xc1   : > { %v444_v33 = vadd.f32 %v2985_v14, %v443_v31 }
  0xc3   : > { %483 = vrot.lane.b32.xlu2 %v444_v33, %s2996_s23  ;;  %551 = vrot.lane.b32.xlu0 %v509_v32, %s2996_s23  ;;  %481 = vst.msk [vmem:[#allocation2 + $0x50] sm:$0xff] %vm344_vm0, %v444_v33  ;;  %v2805_v33 = vld [vmem:[%s3639_s4 + $0x50] sm:$0xff] }
  0xc8   : > { %v446_v35 = vpop.f32.mrf.mxu0 }
  0xc9   : > { %v447_v37 = vadd.f32 %v2985_v14, %v446_v35 }
  0xcb   : > { %489 = vrot.lane.b32.xlu2 %v447_v37, %s2996_s23  ;;  %555 = vrot.lane.b32.xlu0 %v511_v36, %s2996_s23  ;;  %487 = vst.msk [vmem:[#allocation2 + $0x60] sm:$0xff] %vm344_vm0, %v447_v37 }
  0xd0   : > { %v448_v38 = vpop.f32.mrf.mxu0 }
  0xd1   : > { %v449_v40 = vadd.f32 %v2985_v14, %v448_v38  ;;  %v2808_v14 = vld [vmem:[%s3639_s4 + $0x68] sm:$0xff] }
  0xd2   : > { %1199 = vmatpush.bf16.msrb.mxu0 %v2808_v14 }
  0xd3   : > { %495 = vrot.lane.b32.xlu2 %v449_v40, %s2996_s23  ;;  %559 = vrot.lane.b32.xlu0 %v513_v39, %s2996_s23  ;;  %493 = vst.msk [vmem:[#allocation2 + $0x70] sm:$0xff] %vm344_vm0, %v449_v40 }
  0xd6   : > { %1200 = vmatpush.bf16.msrb.mxu0 %v2807_v23 }
  0xda   : > { %1201 = vmatpush.bf16.msrb.mxu0 %v2806_v27 }
  0xdb   : > { %531 = vrot.lane.b32.xlu2 %v499_v41, %s2996_s23 }
  0xde   : > { %1202 = vmatpush.bf16.msrb.mxu0 %v2805_v33 }
  0xe2   : > { %1203 = vmatpush.bf16.msrb.mxu0 %v2804_v45 }
  0xe6   : > { %1204 = vmatpush.bf16.msrb.mxu0 %v2803_v48 }
 0x105   : > { %v466_v60 = vpop.permute.xlu2 %465 }
 0x106   : > { %468 = vst.msk [vmem:[#allocation2 + $0x28] sm:$0xff] %vm344_vm0, %v466_v60 }
 0x107   : > { %585 = vst.msk [vmem:[#allocation2 + $0x28] sm:$0xff] %vm579_vm1, %v542_v59 }
 0x10d   : > { %v472_v3 = vpop.permute.xlu2 %471  ;;  %v454_v4 = vpop.permute.xlu0 %453 }
 0x10e   : > { %474 = vst.msk [vmem:[#allocation2 + $0x38] sm:$0xff] %vm344_vm0, %v472_v3  ;;  %v601_v5 = vld [vmem:[#allocation2 + $0x28] sm:$0xff] }
 0x10f   : > { %456 = vst.msk [vmem:[#allocation2 + $0x8] sm:$0xff] %vm344_vm0, %v454_v4  ;;  %v617_v7 = vpack.c.bf16 %v601_v5, %v601_v5 }
 0x110   : > { %581 = vst.msk [vmem:[#allocation2 + $0x8] sm:$0xff] %vm579_vm1, %v534_v42 }
 0x111   : > { %633 = vst [vmem:[#allocation3 + $0x28] sm:$0xf] %v617_v7 }
 0x112   : > { %587 = vst.msk [vmem:[#allocation2 + $0x38] sm:$0xff] %vm579_vm1, %v546_v8 }
 0x115   : > { %v478_v12 = vpop.permute.xlu2 %477  ;;  %v460_v13 = vpop.permute.xlu0 %459 }
 0x116   : > { %480 = vst.msk [vmem:[#allocation2 + $0x48] sm:$0xff] %vm344_vm0, %v478_v12 }
 0x117   : > { %v597_v15 = vld [vmem:[#allocation2 + $0x8] sm:$0xff]  ;;  %462 = vst.msk [vmem:[#allocation2 + $0x18] sm:$0xff] %vm344_vm0, %v460_v13 }
 0x118   : > { %v645_v16 = vld [vmem:[#allocation2 + $0x9] sm:$0xff]  ;;  %v613_v18 = vpack.c.bf16 %v597_v15, %v597_v15  ;;  %583 = vst.msk [vmem:[#allocation2 + $0x18] sm:$0xff] %vm579_vm1, %v3156_v53 }
 0x119   : > { %v661_v19 = vpack.c.bf16 %v645_v16, %v645_v16  ;;  %v603_v20 = vld [vmem:[#allocation2 + $0x38] sm:$0xff]  ;;  %589 = vst.msk [vmem:[#allocation2 + $0x48] sm:$0xff] %vm579_vm1, %v550_v22 }
 0x11a   : > { %629 = vst [vmem:[#allocation3 + $0x8] sm:$0xf] %v613_v18  ;;  %v619_v21 = vpack.c.bf16 %v603_v20, %v603_v20  ;;  %v558_v18 = vpop.permute.xlu1 %557 }
 0x11b   : > { %677 = vst [vmem:[#allocation3 + $0xc] sm:$0xf] %v661_v19 }
 0x11c   : > { %635 = vst [vmem:[#allocation3 + $0x38] sm:$0xf] %v619_v21 }
 0x11d   : > { %v484_v25 = vpop.permute.xlu2 %483  ;;  %v540_v26 = vpop.permute.xlu0 %539 }
 0x11e   : > { %486 = vst.msk [vmem:[#allocation2 + $0x58] sm:$0xff] %vm344_vm0, %v484_v25 }
 0x11f   : > { %v599_v28 = vld [vmem:[#allocation2 + $0x18] sm:$0xff]  ;;  %584 = vst.msk [vmem:[#allocation2 + $0x20] sm:$0xff] %vm579_vm1, %v540_v26 }
 0x120   : > { %v646_v29 = vld [vmem:[#allocation2 + $0x11] sm:$0xff]  ;;  %v615_v31 = vpack.c.bf16 %v599_v28, %v599_v28  ;;  %v605_v35 = vld [vmem:[#allocation2 + $0x48] sm:$0xff]  ;;  %591 = vst.msk [vmem:[#allocation2 + $0x58] sm:$0xff] %vm579_vm1, %v554_v47 }
 0x121   : > { %v662_v32 = vpack.c.bf16 %v646_v29, %v646_v29  ;;  %v621_v38 = vpack.c.bf16 %v605_v35, %v605_v35 }
 0x122   : > { %631 = vst [vmem:[#allocation3 + $0x18] sm:$0xf] %v615_v31  ;;  %v3242_v46 = vld [vmem:[#allocation3 + $0x8] sm:$0xff] }
 0x123   : > { %678 = vst [vmem:[#allocation3 + $0x14] sm:$0xf] %v662_v32  ;;  %v786_v50 = vunpack.c.l.b16 %v3242_v46  ;;  %v787_v52 = vunpack.c.h.b16 %v3242_v46 }
 0x124   : > { %637 = vst [vmem:[#allocation3 + $0x48] sm:$0xf] %v621_v38 }
 0x125   : > { %v490_v36 = vpop.permute.xlu2 %489  ;;  %v544_v37 = vpop.permute.xlu0 %543 }
 0x126   : > { %v600_v39 = vld [vmem:[#allocation2 + $0x20] sm:$0xff]  ;;  %492 = vst.msk [vmem:[#allocation2 + $0x68] sm:$0xff] %vm344_vm0, %v490_v36 }
 0x127   : > { %v647_v40 = vld [vmem:[#allocation2 + $0x19] sm:$0xff]  ;;  %v648_v41 = vld [vmem:[#allocation2 + $0x21] sm:$0xff]  ;;  %v616_v42 = vpack.c.bf16 %v600_v39, %v600_v39  ;;  %586 = vst.msk [vmem:[#allocation2 + $0x30] sm:$0xff] %vm579_vm1, %v544_v37 }
 0x128   : > { %v663_v43 = vpack.c.bf16 %v647_v40, %v647_v40  ;;  %v664_v44 = vpack.c.bf16 %v648_v41, %v648_v41  ;;  %v607_v2 = vld [vmem:[#allocation2 + $0x58] sm:$0xff]  ;;  %593 = vst.msk [vmem:[#allocation2 + $0x68] sm:$0xff] %vm579_vm1, %v558_v18 }
 0x129   : > { %632 = vst [vmem:[#allocation3 + $0x20] sm:$0xf] %v616_v42  ;;  %v623_v3 = vpack.c.bf16 %v607_v2, %v607_v2 }
 0x12a   : > { %679 = vst [vmem:[#allocation3 + $0x1c] sm:$0xf] %v663_v43  ;;  %v3247_v49 = vld [vmem:[#allocation3 + $0x10] sm:$0xff] }
 0x12b   : > { %680 = vst [vmem:[#allocation3 + $0x24] sm:$0xf] %v664_v44  ;;  %v788_v51 = vunpack.c.l.b16 %v3247_v49  ;;  %v789_v53 = vunpack.c.h.b16 %v3247_v49 }
 0x12c   : > { %639 = vst [vmem:[#allocation3 + $0x58] sm:$0xf] %v623_v3 }
 0x12d   : > { %v496_v54 = vpop.permute.xlu2 %495  ;;  %v814_v55 = vpack.c.b16 %v788_v51, %v786_v50  ;;  %v815_v56 = vpack.c.b16 %v789_v53, %v787_v52  ;;  %v548_v57 = vpop.permute.xlu0 %547 }
 0x12e   : > { %v602_v58 = vld [vmem:[#allocation2 + $0x30] sm:$0xff]  ;;  %498 = vst.msk [vmem:[#allocation2 + $0x78] sm:$0xff] %vm344_vm0, %v496_v54  ;;  %v562_v54 = vpop.permute.xlu1 %561 }
 0x12f   : > { %v649_v59 = vld [vmem:[#allocation2 + $0x29] sm:$0xff]  ;;  %v650_v60 = vld [vmem:[#allocation2 + $0x31] sm:$0xff]  ;;  %v618_v61 = vpack.c.bf16 %v602_v58, %v602_v58  ;;  %946 = vmatmul.bf16.vlgmr.msra.gmra.mxu1 %v814_v55  ;;  %990 = vmatmul.bf16.vlgmr.msra.gmra.mxu2 %v815_v56  ;;  %588 = vst.msk [vmem:[#allocation2 + $0x40] sm:$0xff] %vm579_vm1, %v548_v57 }
 0x130   : > { %v665_v62 = vpack.c.bf16 %v649_v59, %v649_v59  ;;  %v666_v63 = vpack.c.bf16 %v650_v60, %v650_v60  ;;  %v609_v38 = vld [vmem:[#allocation2 + $0x68] sm:$0xff]  ;;  %595 = vst.msk [vmem:[#allocation2 + $0x78] sm:$0xff] %vm579_vm1, %v562_v54 }
 0x131   : > { %634 = vst [vmem:[#allocation3 + $0x30] sm:$0xf] %v618_v61  ;;  %v3262_v0 = vld [vmem:[#allocation3 + $0x18] sm:$0xff]  ;;  %v625_v40 = vpack.c.bf16 %v609_v38, %v609_v38 }
 0x132   : > { %681 = vst [vmem:[#allocation3 + $0x2c] sm:$0xf] %v665_v62  ;;  %v790_v1 = vunpack.c.l.b16 %v3262_v0  ;;  %v3267_v6 = vld [vmem:[#allocation3 + $0x20] sm:$0xff]  ;;  %v791_v15 = vunpack.c.h.b16 %v3262_v0 }
 0x133   : > { %682 = vst [vmem:[#allocation3 + $0x34] sm:$0xf] %v666_v63  ;;  %v792_v14 = vunpack.c.l.b16 %v3267_v6  ;;  %v793_v16 = vunpack.c.h.b16 %v3267_v6  ;;  %v2855_v6 = vld [vmem:[%s3639_s4 + $0x170] sm:$0xff] }
 0x134   : > { %v3265_v4 = vpack.c.b16 %v790_v1, %v788_v51  ;;  %641 = vst [vmem:[#allocation3 + $0x68] sm:$0xf] %v625_v40  ;;  %v1032_v18 = vpack.c.b16 %v791_v15, %v789_v53 }
 0x135   : > { %v532_v5 = vpop.permute.xlu2 %531  ;;  %v552_v7 = vpop.permute.xlu0 %551  ;;  %v816_v23 = vpack.c.b16 %v792_v14, %v790_v1  ;;  %v817_v24 = vpack.c.b16 %v793_v16, %v791_v15 }
 0x136   : > { %v604_v8 = vld [vmem:[#allocation2 + $0x40] sm:$0xff]  ;;  %580 = vst.msk [vmem:[#allocation2] sm:$0xff] %vm579_vm1, %v532_v5 }
 0x137   : > { %v651_v9 = vld [vmem:[#allocation2 + $0x39] sm:$0xff]  ;;  %v652_v10 = vld [vmem:[#allocation2 + $0x41] sm:$0xff]  ;;  %v620_v11 = vpack.c.bf16 %v604_v8, %v604_v8  ;;  %590 = vst.msk [vmem:[#allocation2 + $0x50] sm:$0xff] %vm579_vm1, %v552_v7 }
 0x138   : > { %v667_v12 = vpack.c.bf16 %v651_v9, %v651_v9  ;;  %v668_v13 = vpack.c.bf16 %v652_v10, %v652_v10  ;;  %v659_v10 = vld [vmem:[#allocation2 + $0x79] sm:$0xff] }
 0x139   : > { %636 = vst [vmem:[#allocation3 + $0x40] sm:$0xf] %v620_v11  ;;  %v3274_v17 = vld [vmem:[#allocation3 + $0x28] sm:$0xff] }
 0x13a   : > { %683 = vst [vmem:[#allocation3 + $0x3c] sm:$0xf] %v667_v12  ;;  %v794_v19 = vunpack.c.l.b16 %v3274_v17  ;;  %v3285_v33 = vld [vmem:[#allocation3 + $0x30] sm:$0xff]  ;;  %v795_v56 = vunpack.c.h.b16 %v3274_v17 }
 0x13b   : > { %684 = vst [vmem:[#allocation3 + $0x44] sm:$0xf] %v668_v13  ;;  %v796_v36 = vunpack.c.l.b16 %v3285_v33  ;;  %v797_v57 = vunpack.c.h.b16 %v3285_v33  ;;  %v675_v13 = vpack.c.bf16 %v659_v10, %v659_v10  ;;  %v2847_v33 = vld [vmem:[%s3639_s4 + $0x130] sm:$0xff]  ;;  %v2513_v10 = vld [vmem:[#allocation3 + $0x10] sm:$0xf] }
 0x13c   : > { %v3278_v20 = vpack.c.b16 %v794_v19, %v792_v14  ;;  %v1034_v53 = vpack.c.b16 %v795_v56, %v793_v16 }
 0x13d   : > { %v596_v21 = vld [vmem:[#allocation2] sm:$0xff]  ;;  %v556_v25 = vpop.permute.xlu0 %555  ;;  %v818_v62 = vpack.c.b16 %v796_v36, %v794_v19  ;;  %v819_v63 = vpack.c.b16 %v797_v57, %v795_v56  ;;  %691 = vst [vmem:[#allocation3 + $0x7c] sm:$0xf] %v675_v13  ;;  %v2829_v13 = vld [vmem:[#allocation3 + $0x24] sm:$0xf] }
 0x13e   : > { %v644_v22 = vld [vmem:[#allocation2 + $0x1] sm:$0xff]  ;;  %v612_v26 = vpack.c.bf16 %v596_v21, %v596_v21  ;;  %v606_v28 = vld [vmem:[#allocation2 + $0x50] sm:$0xff]  ;;  %592 = vst.msk [vmem:[#allocation2 + $0x60] sm:$0xff] %vm579_vm1, %v556_v25 }
 0x13f   : > { %v660_v27 = vpack.c.bf16 %v644_v22, %v644_v22  ;;  %v653_v29 = vld [vmem:[#allocation2 + $0x49] sm:$0xff]  ;;  %v654_v30 = vld [vmem:[#allocation2 + $0x51] sm:$0xff]  ;;  %951 = vmatmul.bf16.gmra.mxu1 %v816_v23  ;;  %995 = vmatmul.bf16.gmra.mxu2 %v817_v24  ;;  %v622_v31 = vpack.c.bf16 %v606_v28, %v606_v28 }
 0x140   : > { %v669_v32 = vpack.c.bf16 %v653_v29, %v653_v29  ;;  %628 = vst [vmem:[#allocation3] sm:$0xf] %v612_v26  ;;  %v670_v34 = vpack.c.bf16 %v654_v30, %v654_v30 }
 0x141   : > { %676 = vst [vmem:[#allocation3 + $0x4] sm:$0xf] %v660_v27  ;;  %v3287_v35 = vld [vmem:[#allocation3 + $0x38] sm:$0xff] }
 0x142   : > { %638 = vst [vmem:[#allocation3 + $0x50] sm:$0xf] %v622_v31  ;;  %v798_v37 = vunpack.c.l.b16 %v3287_v35  ;;  %v3305_v1 = vld [vmem:[#allocation3 + $0x40] sm:$0xff]  ;;  %v799_v14 = vunpack.c.h.b16 %v3287_v35  ;;  %v2856_v31 = vld [vmem:[%s3639_s4 + $0x178] sm:$0xff] }
 0x143   : > { %685 = vst [vmem:[#allocation3 + $0x4c] sm:$0xf] %v669_v32  ;;  %v800_v8 = vunpack.c.l.b16 %v3305_v1  ;;  %v801_v17 = vunpack.c.h.b16 %v3305_v1  ;;  %1498 = vmatpush.bf16.msra.mxu2 %v2856_v31 }
 0x144   : > { %v1035_v39 = vpack.c.b16 %v798_v37, %v796_v36  ;;  %686 = vst [vmem:[#allocation3 + $0x54] sm:$0xf] %v670_v34  ;;  %v2854_v34 = vld [vmem:[%s3639_s4 + $0x168] sm:$0xff]  ;;  %v1036_v38 = vpack.c.b16 %v799_v14, %v797_v57  ;;  %v2849_v57 = vld [vmem:[%s3639_s4 + $0x140] sm:$0xff] }
 0x145   : > { %v608_v41 = vld [vmem:[#allocation2 + $0x60] sm:$0xff]  ;;  %v560_v44 = vpop.permute.xlu0 %559  ;;  %v820_v21 = vpack.c.b16 %v800_v8, %v798_v37  ;;  %v821_v22 = vpack.c.b16 %v801_v17, %v799_v14 }
 0x146   : > { %v655_v42 = vld [vmem:[#allocation2 + $0x59] sm:$0xff]  ;;  %v656_v43 = vld [vmem:[#allocation2 + $0x61] sm:$0xff]  ;;  %1176 = vmatmul.bf16.vlgmr.msra.gmra.mxu3 %v1035_v39  ;;  %v624_v45 = vpack.c.bf16 %v608_v41, %v608_v41  ;;  %594 = vst.msk [vmem:[#allocation2 + $0x70] sm:$0xff] %vm579_vm1, %v560_v44 }
 0x147   : > { %v671_v47 = vpack.c.bf16 %v655_v42, %v655_v42  ;;  %v672_v48 = vpack.c.bf16 %v656_v43, %v656_v43  ;;  %1499 = vmatpush.bf16.msra.mxu2 %v2855_v6  ;;  %v2853_v37 = vld [vmem:[%s3639_s4 + $0x160] sm:$0xff]  ;;  %v2848_v41 = vld [vmem:[%s3639_s4 + $0x138] sm:$0xff]  ;;  %v2851_v43 = vld [vmem:[%s3639_s4 + $0x150] sm:$0xff] }
 0x148   : > { %v692_v51 = vld [vmem:[#allocation3] sm:$0xff]  ;;  %640 = vst [vmem:[#allocation3 + $0x60] sm:$0xf] %v624_v45  ;;  %v2852_v42 = vld [vmem:[%s3639_s4 + $0x158] sm:$0xff]  ;;  %1454 = vmatpush.bf16.msra.mxu1 %v2848_v41  ;;  %v2834_v41 = vld [vmem:[#allocation3 + $0x44] sm:$0xf0] }
 0x149   : > { %v1028_v55 = vunpack.c.h.b16 %v692_v51  ;;  %687 = vst [vmem:[#allocation3 + $0x5c] sm:$0xf] %v671_v47  ;;  %v1027_v58 = vunpack.c.l.b16 %v692_v51  ;;  %v2846_v44 = vld [vmem:[%s3639_s4 + $0x128] sm:$0xff] }
 0x14a   : > { %688 = vst [vmem:[#allocation3 + $0x64] sm:$0xf] %v672_v48  ;;  %v3296_v60 = vld [vmem:[#allocation3 + $0x48] sm:$0xff]  ;;  %v2850_v45 = vld [vmem:[%s3639_s4 + $0x148] sm:$0xff] }
 0x14b   : > { %v1030_v59 = vpack.c.b16 %v787_v52, %v1028_v55  ;;  %v3301_v61 = vpack.c.b16 %v786_v50, %v1027_v58  ;;  %v802_v2 = vunpack.c.l.b16 %v3296_v60  ;;  %v611_v50 = vld [vmem:[#allocation2 + $0x78] sm:$0xff]  ;;  %v803_v49 = vunpack.c.h.b16 %v3296_v60  ;;  %1500 = vmatpush.bf16.msra.mxu2 %v2854_v34  ;;  %v2845_v55 = vld [vmem:[%s3639_s4 + $0x120] sm:$0xff]  ;;  %v2833_v6 = vld [vmem:[#allocation3 + $0x44] sm:$0xf] }
 0x14c   : > { %v627_v11 = vpack.c.bf16 %v611_v50, %v611_v50  ;;  %v3317_v23 = vld [vmem:[#allocation3 + $0x50] sm:$0xff]  ;;  %1455 = vmatpush.bf16.msra.mxu1 %v2847_v33  ;;  %v2537_v33 = vld [vmem:[#allocation3 + $0x40] sm:$0xf] }
 0x14d   : > { %1205 = vmatmul.bf16.vlgmr.msrb.gmra.mxu0 %v1030_v59  ;;  %v610_v3 = vld [vmem:[#allocation2 + $0x70] sm:$0xff]  ;;  %v1037_v46 = vpack.c.b16 %v802_v2, %v800_v8  ;;  %v804_v25 = vunpack.c.l.b16 %v3317_v23  ;;  %v805_v0 = vunpack.c.h.b16 %v3317_v23  ;;  %v1038_v56 = vpack.c.b16 %v803_v49, %v801_v17  ;;  %v2844_v60 = vld [vmem:[%s3639_s4 + $0x118] sm:$0xff] }
 0x14e   : > { %v657_v5 = vld [vmem:[#allocation2 + $0x69] sm:$0xff]  ;;  %v626_v52 = vpack.c.bf16 %v610_v3, %v610_v3  ;;  %v658_v9 = vld [vmem:[#allocation2 + $0x71] sm:$0xff]  ;;  %643 = vst [vmem:[#allocation3 + $0x78] sm:$0xf] %v627_v11  ;;  %v2515_v3 = vld [vmem:[#allocation3 + $0x18] sm:$0xf0] }
 0x14f   : > { %956 = vmatmul.bf16.gmra.mxu1 %v818_v62  ;;  %1000 = vmatmul.bf16.gmra.mxu2 %v819_v63  ;;  %v673_v7 = vpack.c.bf16 %v657_v5, %v657_v5  ;;  %v674_v12 = vpack.c.bf16 %v658_v9, %v658_v9  ;;  %v822_v27 = vpack.c.b16 %v804_v25, %v802_v2  ;;  %v2843_v62 = vld [vmem:[%s3639_s4 + $0x110] sm:$0xff]  ;;  %v2842_v63 = vld [vmem:[%s3639_s4 + $0x108] sm:$0xff]  ;;  %v2841_v2 = vld [vmem:[%s3639_s4 + $0x100] sm:$0xff] }
 0x150   : > { %642 = vst [vmem:[#allocation3 + $0x70] sm:$0xf] %v626_v52  ;;  %v3315_v19 = vld [vmem:[#allocation3 + $0x58] sm:$0xff]  ;;  %v823_v28 = vpack.c.b16 %v805_v0, %v803_v49  ;;  %1501 = vmatpush.bf16.msra.mxu2 %v2853_v37  ;;  %1456 = vmatpush.bf16.msra.mxu1 %v2846_v44 }
 0x151   : > { %689 = vst [vmem:[#allocation3 + $0x6c] sm:$0xf] %v673_v7  ;;  %v806_v24 = vunpack.c.l.b16 %v3315_v19  ;;  %v3327_v29 = vld [vmem:[#allocation3 + $0x60] sm:$0xff]  ;;  %v807_v35 = vunpack.c.h.b16 %v3315_v19  ;;  %v2827_v7 = vld [vmem:[#allocation3 + $0x14] sm:$0xf] }
 0x152   : > { %690 = vst [vmem:[#allocation3 + $0x74] sm:$0xf] %v674_v12  ;;  %v808_v32 = vunpack.c.l.b16 %v3327_v29  ;;  %v809_v36 = vunpack.c.h.b16 %v3327_v29  ;;  %v2518_v8 = vor.u32 %v2827_v7, %v2515_v3  ;;  %v2828_v12 = vld [vmem:[#allocation3 + $0x14] sm:$0xf0]  ;;  %v2547_v44 = vld [vmem:[#allocation3 + $0x58] sm:$0xf0] }
 0x153   : > { %v1039_v26 = vpack.c.b16 %v806_v24, %v804_v25  ;;  %v1040_v1 = vpack.c.b16 %v807_v35, %v805_v0  ;;  %v2514_v17 = vor.u32 %v2828_v12, %v2513_v10  ;;  %v2831_v25 = vld [vmem:[#allocation3 + $0x34] sm:$0xf] }
 0x154   : > { %v824_v39 = vpack.c.b16 %v808_v32, %v806_v24  ;;  %v825_v40 = vpack.c.b16 %v809_v36, %v807_v35  ;;  %1502 = vmatpush.bf16.msra.mxu2 %v2852_v42  ;;  %1457 = vmatpush.bf16.msra.mxu1 %v2845_v55  ;;  %v2521_v24 = vld [vmem:[#allocation3 + $0x20] sm:$0xf] }
 0x156   : > { %1181 = vmatmul.bf16.gmra.mxu3 %v1037_v46 }
 0x158   : > { %v3325_v15 = vld [vmem:[#allocation3 + $0x68] sm:$0xff]  ;;  %1503 = vmatpush.bf16.msra.mxu2 %v2851_v43  ;;  %1458 = vmatpush.bf16.msra.mxu1 %v2844_v60  ;;  %v2835_v43 = vld [vmem:[#allocation3 + $0x54] sm:$0xf]  ;;  %v2837_v60 = vld [vmem:[#allocation3 + $0x64] sm:$0xf] }
 0x159   : > { %v810_v30 = vunpack.c.l.b16 %v3325_v15  ;;  %v738_v47 = vld [vmem:[#allocation3 + $0x70] sm:$0xff]  ;;  %v811_v51 = vunpack.c.h.b16 %v3325_v15 }
 0x15a   : > { %v812_v48 = vunpack.c.l.b16 %v738_v47  ;;  %v813_v54 = vunpack.c.h.b16 %v738_v47  ;;  %v2839_v10 = vld [vmem:[#allocation3 + $0x74] sm:$0xf] }
 0x15b   : > { %v1041_v16 = vpack.c.b16 %v810_v30, %v808_v32  ;;  %v1042_v5 = vpack.c.b16 %v811_v51, %v809_v36  ;;  %v2529_v32 = vld [vmem:[#allocation3 + $0x30] sm:$0xf] }
 0x15c   : > { %1504 = vmatpush.bf16.msra.mxu2 %v2850_v45  ;;  %v826_v58 = vpack.c.b16 %v812_v48, %v810_v30  ;;  %v827_v59 = vpack.c.b16 %v813_v54, %v811_v51  ;;  %1459 = vmatpush.bf16.msra.mxu1 %v2843_v62  ;;  %v2832_v30 = vld [vmem:[#allocation3 + $0x34] sm:$0xf0]  ;;  %v2538_v48 = vor.u32 %v2834_v41, %v2537_v33  ;;  %v2555_v62 = vld [vmem:[#allocation3 + $0x68] sm:$0xf0] }
 0x15d   : > { %1210 = vmatmul.bf16.gmra.mxu0 %v1032_v18  ;;  %v2530_v36 = vor.u32 %v2832_v30, %v2529_v32  ;;  %v2550_v51 = vor.u32 %v2835_v43, %v2547_v44  ;;  %v2558_v3 = vor.u32 %v2837_v60, %v2555_v62 }
 0x15f   : > { %961 = vmatmul.bf16.gmra.mxu1 %v820_v21  ;;  %1005 = vmatmul.bf16.gmra.mxu2 %v821_v22  ;;  %v2830_v22 = vld [vmem:[#allocation3 + $0x24] sm:$0xf0] }
 0x160   : > { %1505 = vmatpush.bf16.msra.mxu2 %v2849_v57  ;;  %1460 = vmatpush.bf16.msra.mxu1 %v2842_v63  ;;  %v2545_v57 = vld [vmem:[#allocation3 + $0x50] sm:$0xf] }
 0x164   : > { %1461 = vmatpush.bf16.msra.mxu1 %v2841_v2 }
 0x166   : > { %1186 = vmatmul.bf16.gmra.mxu3 %v1039_v26  ;;  %v2531_v26 = vld [vmem:[#allocation3 + $0x38] sm:$0xf0] }
 0x167   : > { %v2534_v15 = vor.u32 %v2831_v25, %v2531_v26 }
 0x16d   : > { %1215 = vmatmul.bf16.gmra.mxu0 %v1034_v53  ;;  %v2522_v53 = vor.u32 %v2830_v22, %v2521_v24  ;;  %v2561_v22 = vld [vmem:[#allocation3 + $0x70] sm:$0xf] }
 0x16f   : > { %966 = vmatmul.bf16.gmra.mxu1 %v822_v27  ;;  %1010 = vmatmul.bf16.gmra.mxu2 %v823_v28 }
 0x176   : > { %1191 = vmatmul.bf16.gmra.mxu3 %v1041_v16  ;;  %v2539_v16 = vld [vmem:[#allocation3 + $0x48] sm:$0xf0] }
 0x177   : > { %v2542_v37 = vor.u32 %v2833_v6, %v2539_v16 }
 0x17d   : > { %1220 = vmatmul.bf16.gmra.mxu0 %v1036_v38 }
 0x17f   : > { %971 = vmatmul.bf16.gmra.mxu1 %v824_v39  ;;  %1015 = vmatmul.bf16.gmra.mxu2 %v825_v40 }
 0x18d   : > { %1225 = vmatmul.bf16.gmra.mxu0 %v1038_v56 }
 0x18f   : > { %976 = vmatmul.bf16.gmra.mxu1 %v826_v58  ;;  %1020 = vmatmul.bf16.gmra.mxu2 %v827_v59  ;;  %v2836_v59 = vld [vmem:[#allocation3 + $0x54] sm:$0xf0] }
 0x190   : > { %v2546_v2 = vor.u32 %v2836_v59, %v2545_v57 }
 0x19d   : > { %1230 = vmatmul.bf16.gmra.mxu0 %v1040_v1 }
 0x19f   : > { %1161 = vmatmul.bf16.vlgmr.msrb.gmra.mxu1 %v3301_v61  ;;  %1171 = vmatmul.bf16.vlgmr.msrb.gmra.mxu2 %v3278_v20  ;;  %v2523_v61 = vld [vmem:[#allocation3 + $0x28] sm:$0xf0] }
 0x1a0   : > { %v2526_v18 = vor.u32 %v2829_v13, %v2523_v61 }
 0x1ac   : > { %v947_v52 = vpop.f32.mrf.mxu1 }
 0x1ad   : > { %1235 = vmatmul.bf16.gmra.mxu0 %v1042_v5 }
 0x1af   : > { %1166 = vmatmul.bf16.gmra.mxu1 %v3265_v4  ;;  %1506 = vmatmul.bf16.vlgmr.msra.gmra.mxu2 %v2518_v8  ;;  %v2553_v8 = vld [vmem:[#allocation3 + $0x60] sm:$0xf] }
 0x1b2   : > { %v991_v46 = vpop.f32.mrf.mxu2 }
 0x1b3   : > { %v3387_v50 = vadd.f32 %v991_v46, %v947_v52 }
 0x1b4   : > { %v949_v9 = vpop.f32.mrf.mxu1 }
 0x1ba   : > { %v993_v11 = vpop.f32.mrf.mxu2 }
 0x1bb   : > { %v3389_v14 = vadd.f32 %v993_v11, %v949_v9  ;;  %v2838_v9 = vld [vmem:[#allocation3 + $0x64] sm:$0xf0]  ;;  %v2563_v11 = vld [vmem:[#allocation3 + $0x78] sm:$0xf0] }
 0x1bc   : > { %v952_v20 = vpop.f32.mrf.mxu1  ;;  %v2554_v61 = vor.u32 %v2838_v9, %v2553_v8 }
 0x1bf   : > { %1462 = vmatmul.bf16.vlgmr.msra.gmra.mxu1 %v2514_v17  ;;  %1511 = vmatmul.bf16.gmra.mxu2 %v2526_v18 }
 0x1c2   : > { %v996_v19 = vpop.f32.mrf.mxu2 }
 0x1c3   : > { %v3391_v21 = vadd.f32 %v996_v19, %v952_v20  ;;  %v2566_v20 = vor.u32 %v2839_v10, %v2563_v11 }
 0x1c4   : > { %v954_v4 = vpop.f32.mrf.mxu1 }
 0x1ca   : > { %v998_v23 = vpop.f32.mrf.mxu2 }
 0x1cb   : > { %v3393_v49 = vadd.f32 %v998_v23, %v954_v4  ;;  %v2840_v23 = vld [vmem:[#allocation3 + $0x74] sm:$0xf0] }
 0x1cc   : > { %v957_v0 = vpop.f32.mrf.mxu1  ;;  %v2562_v26 = vor.u32 %v2840_v23, %v2561_v22  ;;  %v1177_v22 = vpop.f32.mrf.mxu3 }
 0x1cf   : > { %1467 = vmatmul.bf16.gmra.mxu1 %v2522_v53  ;;  %1516 = vmatmul.bf16.gmra.mxu2 %v2534_v15 }
 0x1d2   : > { %v1001_v27 = vpop.f32.mrf.mxu2 }
 0x1d3   : > { %v3395_v28 = vadd.f32 %v1001_v27, %v957_v0  ;;  %v1206_v0 = vpop.f32.mrf.mxu0 }
 0x1d4   : > { %v959_v29 = vpop.f32.mrf.mxu1 }
 0x1da   : > { %v1003_v31 = vpop.f32.mrf.mxu2 }
 0x1db   : > { %v3397_v34 = vadd.f32 %v1003_v31, %v959_v29  ;;  %v1208_v27 = vpop.f32.mrf.mxu0 }
 0x1dc   : > { %v962_v35 = vpop.f32.mrf.mxu1 }
 0x1df   : > { %1472 = vmatmul.bf16.gmra.mxu1 %v2530_v36  ;;  %1521 = vmatmul.bf16.gmra.mxu2 %v2542_v37 }
 0x1e2   : > { %v1006_v38 = vpop.f32.mrf.mxu2 }
 0x1e3   : > { %v3399_v39 = vadd.f32 %v1006_v38, %v962_v35  ;;  %v1211_v32 = vpop.f32.mrf.mxu0 }
 0x1e4   : > { %v964_v40 = vpop.f32.mrf.mxu1 }
 0x1ea   : > { %v1008_v42 = vpop.f32.mrf.mxu2 }
 0x1eb   : > { %v3401_v45 = vadd.f32 %v1008_v42, %v964_v40  ;;  %v3421_v40 = vld [vmem:[%s3640_s5] ss:$0 sm:$0xff]  ;;  %v1213_v41 = vpop.f32.mrf.mxu0 }
 0x1ec   : > { %v967_v47 = vpop.f32.mrf.mxu1 }
 0x1ef   : > { %1477 = vmatmul.bf16.gmra.mxu1 %v2538_v48  ;;  %1526 = vmatmul.bf16.gmra.mxu2 %v2550_v51 }
 0x1f2   : > { %v1011_v54 = vpop.f32.mrf.mxu2 }
 0x1f3   : > { %v3403_v55 = vadd.f32 %v1011_v54, %v967_v47 }
 0x1f4   : > { %v969_v56 = vpop.f32.mrf.mxu1 }
 0x1fa   : > { %v1013_v58 = vpop.f32.mrf.mxu2 }
 0x1fb   : > { %v3405_v63 = vadd.f32 %v1013_v58, %v969_v56  ;;  %v1216_v56 = vpop.f32.mrf.mxu0 }
 0x1fc   : > { %v972_v1 = vpop.f32.mrf.mxu1 }
 0x1ff   : > { %1482 = vmatmul.bf16.gmra.mxu1 %v2546_v2  ;;  %1531 = vmatmul.bf16.gmra.mxu2 %v2558_v3 }
 0x202   : > { %v1016_v5 = vpop.f32.mrf.mxu2 }
 0x203   : > { %v3407_v52 = vadd.f32 %v1016_v5, %v972_v1 }
 0x204   : > { %v974_v7 = vpop.f32.mrf.mxu1 }
 0x20a   : > { %v1018_v46 = vpop.f32.mrf.mxu2 }
 0x20b   : > { %v3409_v12 = vadd.f32 %v1018_v46, %v974_v7 }
 0x20c   : > { %v977_v13 = vpop.f32.mrf.mxu1 }
 0x20f   : > { %1487 = vmatmul.bf16.gmra.mxu1 %v2554_v61  ;;  %1536 = vmatmul.bf16.gmra.mxu2 %v2566_v20 }
 0x212   : > { %v1021_v17 = vpop.f32.mrf.mxu2 }
 0x213   : > { %v3411_v18 = vadd.f32 %v1021_v17, %v977_v13 }
 0x214   : > { %v979_v19 = vpop.f32.mrf.mxu1 }
 0x21a   : > { %v1023_v4 = vpop.f32.mrf.mxu2 }
 0x21b   : > { %v3413_v24 = vadd.f32 %v1023_v4, %v979_v19 }
 0x21c   : > { %v1162_v25 = vpop.f32.mrf.mxu1 }
 0x21d   : > { %v1163_v16 = vadd.f32 %v1162_v25, %v3387_v50 }
 0x21f   : > { %1492 = vmatmul.bf16.gmra.mxu1 %v2562_v26  ;;  %v1207_v37 = vadd.f32 %v1206_v0, %v1163_v16 }
 0x222   : > { %v1172_v53 = vpop.f32.mrf.mxu2 }
 0x223   : > { %v1173_v19 = vadd.f32 %v1172_v53, %v3395_v28 }
 0x224   : > { %v1164_v15 = vpop.f32.mrf.mxu1 }
 0x225   : > { %v1165_v33 = vadd.f32 %v1164_v15, %v3389_v14 }
 0x227   : > { %v1209_v51 = vadd.f32 %v1208_v27, %v1165_v33  ;;  %v1217_v27 = vadd.f32 %v1216_v56, %v1173_v19 }
 0x22a   : > { %v3415_v29 = vpop.f32.mrf.mxu2 }
 0x22b   : > { %v1175_v28 = vadd.f32 %v3415_v29, %v3397_v34 }
 0x22c   : > { %v1167_v30 = vpop.f32.mrf.mxu1 }
 0x22d   : > { %v1168_v57 = vadd.f32 %v1167_v30, %v3391_v21  ;;  %v1218_v21 = vpop.f32.mrf.mxu0 }
 0x22f   : > { %v1212_v1 = vadd.f32 %v1211_v32, %v1168_v57 }
 0x232   : > { %v1507_v31 = vpop.f32.mrf.mxu2 }
 0x234   : > { %v1169_v6 = vpop.f32.mrf.mxu1 }
 0x235   : > { %v1170_v7 = vadd.f32 %v1169_v6, %v3393_v49  ;;  %v1221_v25 = vpop.f32.mrf.mxu0 }
 0x237   : > { %v1214_v13 = vadd.f32 %v1213_v41, %v1170_v7  ;;  %v1179_v41 = vpop.f32.mrf.mxu3 }
 0x23a   : > { %v1509_v35 = vpop.f32.mrf.mxu2 }
 0x23c   : > { %v1463_v36 = vpop.f32.mrf.mxu1 }
 0x23d   : > { %v1508_v38 = vadd.f32 %v1507_v31, %v1463_v36 }
 0x23f   : > { %v1542_v42 = vadd.f32 %v1508_v38, %v1207_v37 }
 0x241   : > { %v1560_v43 = vadd.f32 %v3421_v40, %v1542_v42  ;;  %v1219_v42 = vadd.f32 %v1218_v21, %v1175_v28 }
 0x242   : > { %v1512_v44 = vpop.f32.mrf.mxu2 }
 0x243   : > { %v1574_v47 = vmax.f32 %v1560_v43, 0.0 }
 0x244   : > { %v1465_v48 = vpop.f32.mrf.mxu1 }
 0x245   : > { %1588 = vst.msk [vmem:[#allocation4] sm:$0xff] %vm344_vm0, %v1574_v47  ;;  %v1510_v50 = vadd.f32 %v1509_v35, %v1465_v48  ;;  %v1223_v47 = vpop.f32.mrf.mxu0 }
 0x247   : > { %v1543_v54 = vadd.f32 %v1510_v50, %v1209_v51  ;;  %v1178_v51 = vadd.f32 %v1177_v22, %v3399_v39 }
 0x249   : > { %v1561_v58 = vadd.f32 %v3421_v40, %v1543_v54 }
 0x24a   : > { %v1514_v59 = vpop.f32.mrf.mxu2 }
 0x24b   : > { %v1575_v60 = vmax.f32 %v1561_v58, 0.0  ;;  %v1222_v58 = vadd.f32 %v1221_v25, %v1178_v51 }
 0x24c   : > { %v1468_v62 = vpop.f32.mrf.mxu1  ;;  %v1602_v14 = vld [vmem:[#allocation4] sm:$0xff] }
 0x24d   : > { %1589 = vst.msk [vmem:[#allocation4 + $0x8] sm:$0xff] %vm344_vm0, %v1575_v60  ;;  %v1513_v2 = vadd.f32 %v1512_v44, %v1468_v62  ;;  %v1616_v3 = vpack.c.bf16 %v1602_v14, %v1602_v14  ;;  %v1182_v14 = vpop.f32.mrf.mxu3 }
 0x24f   : > { %v1544_v5 = vadd.f32 %v1513_v2, %v1212_v1  ;;  %1631 = vst.msk [vmem:[#allocation5] sm:$0xf] %vm1630_vm2, %v1616_v3  ;;  %v1226_v2 = vpop.f32.mrf.mxu0 }
 0x251   : > { %v1562_v8 = vadd.f32 %v3421_v40, %v1544_v5  ;;  %v1180_v5 = vadd.f32 %v1179_v41, %v3401_v45  ;;  %v1183_v45 = vadd.f32 %v1182_v14, %v3403_v55 }
 0x252   : > { %v1517_v46 = vpop.f32.mrf.mxu2 }
 0x253   : > { %v1576_v9 = vmax.f32 %v1562_v8, 0.0 }
 0x254   : > { %v1470_v10 = vpop.f32.mrf.mxu1  ;;  %v1603_v11 = vld [vmem:[#allocation4 + $0x8] sm:$0xff] }
 0x255   : > { %1590 = vst.msk [vmem:[#allocation4 + $0x10] sm:$0xff] %vm344_vm0, %v1576_v9  ;;  %v1515_v61 = vadd.f32 %v1514_v59, %v1470_v10  ;;  %v1617_v20 = vpack.c.bf16 %v1603_v11, %v1603_v11  ;;  %v1224_v9 = vadd.f32 %v1223_v47, %v1180_v5 }
 0x257   : > { %v1545_v17 = vadd.f32 %v1515_v61, %v1214_v13  ;;  %1632 = vst.msk [vmem:[#allocation5 + $0x4] sm:$0xf] %vm1630_vm2, %v1617_v20  ;;  %v1184_v20 = vpop.f32.mrf.mxu3  ;;  %v1228_v19 = vpop.f32.mrf.mxu0 }
 0x258   : > { %v1185_v55 = vadd.f32 %v1184_v20, %v3405_v63 }
 0x259   : > { %v1563_v4 = vadd.f32 %v3421_v40, %v1545_v17 }
 0x25a   : > { %v1519_v49 = vpop.f32.mrf.mxu2 }
 0x25b   : > { %v1577_v23 = vmax.f32 %v1563_v4, 0.0 }
 0x25c   : > { %v1473_v26 = vpop.f32.mrf.mxu1  ;;  %v1646_v0 = vld [vmem:[#allocation4 + $0x9] sm:$0xff] }
 0x25d   : > { %v1604_v15 = vld [vmem:[#allocation4 + $0x10] sm:$0xff]  ;;  %1591 = vst.msk [vmem:[#allocation4 + $0x18] sm:$0xff] %vm344_vm0, %v1577_v23  ;;  %v1518_v30 = vadd.f32 %v1517_v46, %v1473_v26  ;;  %v1660_v31 = vpack.c.bf16 %v1646_v0, %v1646_v0  ;;  %v1227_v26 = vadd.f32 %v1226_v2, %v1183_v45  ;;  %v2870_v2 = vld [vmem:[%s3641_s6 + $0x68] sm:$0xff] }
 0x25e   : > { %v1618_v32 = vpack.c.bf16 %v1604_v15, %v1604_v15 }
 0x25f   : > { %v1546_v6 = vadd.f32 %v1518_v30, %v1217_v27  ;;  %1689 = vrot.lane.b32.xlu0 %v1660_v31, %s2996_s23  ;;  %v1231_v28 = vpop.f32.mrf.mxu0 }
 0x260   : > { %1633 = vst.msk [vmem:[#allocation5 + $0x8] sm:$0xf] %vm1630_vm2, %v1618_v32  ;;  %v1187_v32 = vpop.f32.mrf.mxu3 }
 0x261   : > { %v1564_v53 = vadd.f32 %v3421_v40, %v1546_v6  ;;  %v1188_v63 = vadd.f32 %v1187_v32, %v3407_v52  ;;  %v2871_v52 = vld [vmem:[%s3641_s6 + $0x70] sm:$0xff] }
 0x262   : > { %v1522_v16 = vpop.f32.mrf.mxu2 }
 0x263   : > { %v1578_v35 = vmax.f32 %v1564_v53, 0.0 }
 0x264   : > { %v1475_v36 = vpop.f32.mrf.mxu1  ;;  %v1647_v37 = vld [vmem:[#allocation4 + $0x11] sm:$0xff] }
 0x265   : > { %v1605_v38 = vld [vmem:[#allocation4 + $0x18] sm:$0xff]  ;;  %1592 = vst.msk [vmem:[#allocation4 + $0x20] sm:$0xff] %vm344_vm0, %v1578_v35  ;;  %v1520_v33 = vadd.f32 %v1519_v49, %v1475_v36  ;;  %v1661_v43 = vpack.c.bf16 %v1647_v37, %v1647_v37  ;;  %v1229_v36 = vadd.f32 %v1228_v19, %v1185_v55  ;;  %v2868_v19 = vld [vmem:[%s3641_s6 + $0x58] sm:$0xff] }
 0x266   : > { %v1619_v44 = vpack.c.bf16 %v1605_v38, %v1605_v38 }
 0x267   : > { %v1547_v48 = vadd.f32 %v1520_v33, %v1219_v42  ;;  %1691 = vrot.lane.b32.xlu1 %v1661_v43, %s2996_s23 }
 0x268   : > { %1634 = vst.msk [vmem:[#allocation5 + $0xc] sm:$0xf] %vm1630_vm2, %v1619_v44 }
 0x269   : > { %v1565_v34 = vadd.f32 %v3421_v40, %v1547_v48 }
 0x26a   : > { %v1524_v29 = vpop.f32.mrf.mxu2 }
 0x26b   : > { %v1579_v50 = vmax.f32 %v1565_v34, 0.0 }
 0x26c   : > { %v1478_v54 = vpop.f32.mrf.mxu1  ;;  %v1648_v56 = vld [vmem:[#allocation4 + $0x19] sm:$0xff] }
 0x26d   : > { %v1606_v57 = vld [vmem:[#allocation4 + $0x20] sm:$0xff]  ;;  %1593 = vst.msk [vmem:[#allocation4 + $0x28] sm:$0xff] %vm344_vm0, %v1579_v50  ;;  %v1523_v59 = vadd.f32 %v1522_v16, %v1478_v54  ;;  %v1662_v60 = vpack.c.bf16 %v1648_v56, %v1648_v56  ;;  %v2872_v54 = vld [vmem:[%s3641_s6 + $0x78] sm:$0xff] }
 0x26e   : > { %v1620_v62 = vpack.c.bf16 %v1606_v57, %v1606_v57  ;;  %v1189_v57 = vpop.f32.mrf.mxu3  ;;  %1874 = vmatpush.bf16.msrb.mxu3 %v2872_v54 }
 0x26f   : > { %v1548_v1 = vadd.f32 %v1523_v59, %v1222_v58  ;;  %1693 = vrot.lane.b32.xlu2 %v1662_v60, %s2996_s23  ;;  %v1233_v58 = vpop.f32.mrf.mxu0  ;;  %v1190_v14 = vadd.f32 %v1189_v57, %v3409_v12  ;;  %v2869_v12 = vld [vmem:[%s3641_s6 + $0x60] sm:$0xff] }
 0x270   : > { %1635 = vst.msk [vmem:[#allocation5 + $0x10] sm:$0xf] %vm1630_vm2, %v1620_v62  ;;  %v2865_v57 = vld [vmem:[%s3641_s6 + $0x40] sm:$0xff] }
 0x271   : > { %v1566_v3 = vadd.f32 %v3421_v40, %v1548_v1 }
 0x272   : > { %v1527_v39 = vpop.f32.mrf.mxu2  ;;  %1875 = vmatpush.bf16.msrb.mxu3 %v2871_v52 }
 0x273   : > { %v1580_v7 = vmax.f32 %v1566_v3, 0.0 }
 0x274   : > { %v1480_v8 = vpop.f32.mrf.mxu1  ;;  %v1649_v21 = vld [vmem:[#allocation4 + $0x21] sm:$0xff] }
 0x275   : > { %v1607_v46 = vld [vmem:[#allocation4 + $0x28] sm:$0xff]  ;;  %1594 = vst.msk [vmem:[#allocation4 + $0x30] sm:$0xff] %vm344_vm0, %v1580_v7  ;;  %v1525_v10 = vadd.f32 %v1524_v29, %v1480_v8  ;;  %v1663_v11 = vpack.c.bf16 %v1649_v21, %v1649_v21  ;;  %v1232_v29 = vadd.f32 %v1231_v28, %v1188_v63  ;;  %v1234_v7 = vadd.f32 %v1233_v58, %v1190_v14  ;;  %v2886_v58 = vld [vmem:[%s3641_s6 + $0xb8] sm:$0xff]  ;;  %v2862_v14 = vld [vmem:[%s3641_s6 + $0x28] sm:$0xff] }
 0x276   : > { %v1621_v13 = vpack.c.bf16 %v1607_v46, %v1607_v46  ;;  %1876 = vmatpush.bf16.msrb.mxu3 %v2870_v2  ;;  %v2884_v2 = vld [vmem:[%s3641_s6 + $0xa8] sm:$0xff] }
 0x277   : > { %v1549_v61 = vadd.f32 %v1525_v10, %v1224_v9  ;;  %1695 = vrot.lane.b32.xlu0 %v1663_v11, %s2996_s23  ;;  %v1192_v10 = vpop.f32.mrf.mxu3  ;;  %v1236_v11 = vpop.f32.mrf.mxu0 }
 0x278   : > { %1636 = vst.msk [vmem:[#allocation5 + $0x14] sm:$0xf] %vm1630_vm2, %v1621_v13  ;;  %v1193_v20 = vadd.f32 %v1192_v10, %v3411_v18 }
 0x279   : > { %v1567_v17 = vadd.f32 %v3421_v40, %v1549_v61 }
 0x27a   : > { %v1529_v49 = vpop.f32.mrf.mxu2  ;;  %1877 = vmatpush.bf16.msrb.mxu3 %v2869_v12  ;;  %v2882_v12 = vld [vmem:[%s3641_s6 + $0x98] sm:$0xff] }
 0x27b   : > { %v1581_v4 = vmax.f32 %v1567_v17, 0.0 }
 0x27c   : > { %v1483_v22 = vpop.f32.mrf.mxu1  ;;  %v1650_v23 = vld [vmem:[#allocation4 + $0x29] sm:$0xff] }
 0x27d   : > { %v1608_v25 = vld [vmem:[#allocation4 + $0x30] sm:$0xff]  ;;  %1595 = vst.msk [vmem:[#allocation4 + $0x38] sm:$0xff] %vm344_vm0, %v1581_v4  ;;  %v1528_v0 = vadd.f32 %v1527_v39, %v1483_v22  ;;  %v1664_v15 = vpack.c.bf16 %v1650_v23, %v1650_v23  ;;  %v1237_v22 = vadd.f32 %v1236_v11, %v1193_v20  ;;  %v2859_v11 = vld [vmem:[%s3641_s6 + $0x10] sm:$0xff] }
 0x27e   : > { %v1622_v27 = vpack.c.bf16 %v1608_v25, %v1608_v25  ;;  %1878 = vmatpush.bf16.msrb.mxu3 %v2868_v19  ;;  %v2857_v19 = vld [vmem:[%s3641_s6] sm:$0xff] }
 0x27f   : > { %v1550_v30 = vadd.f32 %v1528_v0, %v1227_v26  ;;  %1697 = vrot.lane.b32.xlu1 %v1664_v15, %s2996_s23  ;;  %v1194_v15 = vpop.f32.mrf.mxu3 }
 0x280   : > { %1637 = vst.msk [vmem:[#allocation5 + $0x18] sm:$0xf] %vm1630_vm2, %v1622_v27  ;;  %v1238_v27 = vpop.f32.mrf.mxu0 }
 0x281   : > { %v1568_v31 = vadd.f32 %v3421_v40, %v1550_v30  ;;  %v1195_v30 = vadd.f32 %v1194_v15, %v3413_v24  ;;  %v2867_v24 = vld [vmem:[%s3641_s6 + $0x50] sm:$0xff] }
 0x282   : > { %v1532_v42 = vpop.f32.mrf.mxu2  ;;  %1879 = vmatpush.bf16.msrb.mxu3 %v2867_v24 }
 0x283   : > { %v1582_v6 = vmax.f32 %v1568_v31, 0.0 }
 0x284   : > { %v1485_v53 = vpop.f32.mrf.mxu1  ;;  %v1651_v16 = vld [vmem:[#allocation4 + $0x31] sm:$0xff] }
 0x285   : > { %v1609_v35 = vld [vmem:[#allocation4 + $0x38] sm:$0xff]  ;;  %1596 = vst.msk [vmem:[#allocation4 + $0x40] sm:$0xff] %vm344_vm0, %v1582_v6  ;;  %v1530_v37 = vadd.f32 %v1529_v49, %v1485_v53  ;;  %v1665_v38 = vpack.c.bf16 %v1651_v16, %v1651_v16  ;;  %v1239_v53 = vadd.f32 %v1238_v27, %v1195_v30 }
 0x286   : > { %v1623_v41 = vpack.c.bf16 %v1609_v35, %v1609_v35 }
 0x287   : > { %v1551_v33 = vadd.f32 %v1530_v37, %v1229_v36  ;;  %1699 = vrot.lane.b32.xlu2 %v1665_v38, %s2996_s23 }
 0x288   : > { %1638 = vst.msk [vmem:[#allocation5 + $0x1c] sm:$0xf] %vm1630_vm2, %v1623_v41  ;;  %v1645_v41 = vld [vmem:[#allocation4 + $0x1] sm:$0xff] }
 0x289   : > { %v1569_v43 = vadd.f32 %v3421_v40, %v1551_v33 }
 0x28a   : > { %v1534_v60 = vpop.f32.mrf.mxu2 }
 0x28b   : > { %v1583_v44 = vmax.f32 %v1569_v43, 0.0 }
 0x28c   : > { %v1488_v47 = vpop.f32.mrf.mxu1  ;;  %v1652_v48 = vld [vmem:[#allocation4 + $0x39] sm:$0xff] }
 0x28d   : > { %v1610_v34 = vld [vmem:[#allocation4 + $0x40] sm:$0xff]  ;;  %1597 = vst.msk [vmem:[#allocation4 + $0x48] sm:$0xff] %vm344_vm0, %v1583_v44  ;;  %v1533_v51 = vadd.f32 %v1532_v42, %v1488_v47  ;;  %v1666_v50 = vpack.c.bf16 %v1652_v48, %v1652_v48  ;;  %v1659_v44 = vpack.c.bf16 %v1645_v41, %v1645_v41  ;;  %v2864_v48 = vld [vmem:[%s3641_s6 + $0x38] sm:$0xff] }
 0x28e   : > { %v1624_v56 = vpack.c.bf16 %v1610_v34, %v1610_v34  ;;  %1975 = vmatpush.bf16.msra.mxu0 %v2864_v48 }
 0x28f   : > { %v1552_v59 = vadd.f32 %v1533_v51, %v1232_v29  ;;  %1701 = vrot.lane.b32.xlu0 %v1666_v50, %s2996_s23 }
 0x290   : > { %1639 = vst.msk [vmem:[#allocation5 + $0x20] sm:$0xf] %vm1630_vm2, %v1624_v56 }
 0x291   : > { %v1570_v62 = vadd.f32 %v3421_v40, %v1552_v59  ;;  %v2863_v59 = vld [vmem:[%s3641_s6 + $0x30] sm:$0xff] }
 0x292   : > { %v1537_v61 = vpop.f32.mrf.mxu2  ;;  %1976 = vmatpush.bf16.msra.mxu0 %v2863_v59 }
 0x293   : > { %v1584_v1 = vmax.f32 %v1570_v62, 0.0 }
 0x294   : > { %v1490_v3 = vpop.f32.mrf.mxu1  ;;  %v1653_v39 = vld [vmem:[#allocation4 + $0x41] sm:$0xff] }
 0x295   : > { %v1611_v5 = vld [vmem:[#allocation4 + $0x48] sm:$0xff]  ;;  %1598 = vst.msk [vmem:[#allocation4 + $0x50] sm:$0xff] %vm344_vm0, %v1584_v1  ;;  %v1535_v8 = vadd.f32 %v1534_v60, %v1490_v3  ;;  %v1667_v21 = vpack.c.bf16 %v1653_v39, %v1653_v39 }
 0x296   : > { %v1625_v46 = vpack.c.bf16 %v1611_v5, %v1611_v5  ;;  %v2885_v60 = vld [vmem:[%s3641_s6 + $0xb0] sm:$0xff]  ;;  %1977 = vmatpush.bf16.msra.mxu0 %v2862_v14  ;;  %v2861_v5 = vld [vmem:[%s3641_s6 + $0x20] sm:$0xff] }
 0x297   : > { %v1553_v9 = vadd.f32 %v1535_v8, %v1234_v7  ;;  %1703 = vrot.lane.b32.xlu1 %v1667_v21, %s2996_s23  ;;  %v2883_v7 = vld [vmem:[%s3641_s6 + $0xa0] sm:$0xff]  ;;  %v2860_v21 = vld [vmem:[%s3641_s6 + $0x18] sm:$0xff] }
 0x298   : > { %1640 = vst.msk [vmem:[#allocation5 + $0x24] sm:$0xf] %vm1630_vm2, %v1625_v46 }
 0x299   : > { %v1571_v13 = vadd.f32 %v3421_v40, %v1553_v9 }
 0x29a   : > { %v1539_v32 = vpop.f32.mrf.mxu2  ;;  %1978 = vmatpush.bf16.msra.mxu0 %v2861_v5 }
 0x29b   : > { %v1585_v17 = vmax.f32 %v1571_v13, 0.0  ;;  %v2881_v13 = vld [vmem:[%s3641_s6 + $0x90] sm:$0xff] }
 0x29c   : > { %v1493_v45 = vpop.f32.mrf.mxu1  ;;  %v1654_v4 = vld [vmem:[#allocation4 + $0x49] sm:$0xff] }
 0x29d   : > { %v1612_v49 = vld [vmem:[#allocation4 + $0x50] sm:$0xff]  ;;  %1599 = vst.msk [vmem:[#allocation4 + $0x58] sm:$0xff] %vm344_vm0, %v1585_v17  ;;  %v1538_v23 = vadd.f32 %v1537_v61, %v1493_v45  ;;  %v1668_v25 = vpack.c.bf16 %v1654_v4, %v1654_v4  ;;  %v2858_v17 = vld [vmem:[%s3641_s6 + $0x8] sm:$0xff] }
 0x29e   : > { %v1626_v26 = vpack.c.bf16 %v1612_v49, %v1612_v49  ;;  %1979 = vmatpush.bf16.msra.mxu0 %v2860_v21  ;;  %v2880_v4 = vld [vmem:[%s3641_s6 + $0x88] sm:$0xff] }
 0x29f   : > { %v1554_v0 = vadd.f32 %v1538_v23, %v1237_v22  ;;  %1705 = vrot.lane.b32.xlu2 %v1668_v25, %s2996_s23  ;;  %v2879_v23 = vld [vmem:[%s3641_s6 + $0x80] sm:$0xff] }
 0x2a0   : > { %1641 = vst.msk [vmem:[#allocation5 + $0x28] sm:$0xf] %vm1630_vm2, %v1626_v26 }
 0x2a1   : > { %v1572_v18 = vadd.f32 %v3421_v40, %v1554_v0 }
 0x2a2   : > { %1980 = vmatpush.bf16.msra.mxu0 %v2859_v11 }
 0x2a3   : > { %v1586_v31 = vmax.f32 %v1572_v18, 0.0 }
 0x2a4   : > { %v1495_v55 = vpop.f32.mrf.mxu1  ;;  %v1655_v6 = vld [vmem:[#allocation4 + $0x51] sm:$0xff] }
 0x2a5   : > { %v1613_v28 = vld [vmem:[#allocation4 + $0x58] sm:$0xff]  ;;  %1600 = vst.msk [vmem:[#allocation4 + $0x60] sm:$0xff] %vm344_vm0, %v1586_v31  ;;  %v1540_v16 = vadd.f32 %v1539_v32, %v1495_v55  ;;  %v1669_v35 = vpack.c.bf16 %v1655_v6, %v1655_v6 }
 0x2a6   : > { %v1627_v36 = vpack.c.bf16 %v1613_v28, %v1613_v28  ;;  %1981 = vmatpush.bf16.msra.mxu0 %v2858_v17 }
 0x2a7   : > { %v1555_v37 = vadd.f32 %v1540_v16, %v1239_v53  ;;  %1707 = vrot.lane.b32.xlu0 %v1669_v35, %s2996_s23 }
 0x2a8   : > { %1642 = vst.msk [vmem:[#allocation5 + $0x2c] sm:$0xf] %vm1630_vm2, %v1627_v36 }
 0x2a9   : > { %v1573_v38 = vadd.f32 %v3421_v40, %v1555_v37  ;;  %v2866_v40 = vld [vmem:[%s3641_s6 + $0x48] sm:$0xff] }
 0x2aa   : > { %1880 = vmatpush.bf16.msrb.mxu3 %v2866_v40  ;;  %1982 = vmatpush.bf16.msra.mxu0 %v2857_v19 }
 0x2ab   : > { %v1587_v42 = vmax.f32 %v1573_v38, 0.0 }
 0x2ac   : > { %v1656_v33 = vld [vmem:[#allocation4 + $0x59] sm:$0xff] }
 0x2ad   : > { %v1614_v43 = vld [vmem:[#allocation4 + $0x60] sm:$0xff]  ;;  %1601 = vst.msk [vmem:[#allocation4 + $0x68] sm:$0xff] %vm344_vm0, %v1587_v42  ;;  %v1670_v63 = vpack.c.bf16 %v1656_v33, %v1656_v33 }
 0x2ae   : > { %v1628_v47 = vpack.c.bf16 %v1614_v43, %v1614_v43  ;;  %1881 = vmatpush.bf16.msrb.mxu3 %v2865_v57  ;;  %v3587_v57 = vld [vmem:[%s3642_s7] ss:$0 sm:$0xff] }
 0x2af   : > { %1709 = vrot.lane.b32.xlu1 %v1670_v63, %s2996_s23  ;;  %1687 = vrot.lane.b32.xlu0 %v1659_v44, %s2996_s23 }
 0x2b0   : > { %1643 = vst.msk [vmem:[#allocation5 + $0x30] sm:$0xf] %vm1630_vm2, %v1628_v47 }
 0x2b2   : > { %2127 = vmatpush.bf16.msra.mxu3 %v2886_v58 }
 0x2b4   : > { %v1657_v34 = vld [vmem:[#allocation4 + $0x61] sm:$0xff]  ;;  %v1658_v29 = vld [vmem:[#allocation4 + $0x69] sm:$0xff] }
 0x2b5   : > { %v1615_v51 = vld [vmem:[#allocation4 + $0x68] sm:$0xff]  ;;  %v1671_v50 = vpack.c.bf16 %v1657_v34, %v1657_v34  ;;  %v1672_v54 = vpack.c.bf16 %v1658_v29, %v1658_v29 }
 0x2b6   : > { %v1629_v56 = vpack.c.bf16 %v1615_v51, %v1615_v51  ;;  %2128 = vmatpush.bf16.msra.mxu3 %v2885_v60 }
 0x2b7   : > { %1711 = vrot.lane.b32.xlu2 %v1671_v50, %s2996_s23  ;;  %1713 = vrot.lane.b32.xlu1 %v1672_v54, %s2996_s23 }
 0x2b8   : > { %1644 = vst.msk [vmem:[#allocation5 + $0x34] sm:$0xf] %vm1630_vm2, %v1629_v56 }
 0x2ba   : > { %2129 = vmatpush.bf16.msra.mxu3 %v2884_v2 }
 0x2be   : > { %2130 = vmatpush.bf16.msra.mxu3 %v2883_v7 }
 0x2c2   : > { %2131 = vmatpush.bf16.msra.mxu3 %v2882_v12 }
 0x2c6   : > { %2132 = vmatpush.bf16.msra.mxu3 %v2881_v13 }
 0x2c9   : > { %v1694_v52 = vpop.permute.xlu2 %1693 }
 0x2ca   : > { %1733 = vst.msk [vmem:[#allocation5 + $0xc] sm:$0xf] %vm1729_vm3, %v1694_v52  ;;  %2133 = vmatpush.bf16.msra.mxu3 %v2880_v4 }
 0x2ce   : > { %2134 = vmatpush.bf16.msra.mxu3 %v2879_v23 }
 0x2d1   : > { %v1690_v62 = vpop.permute.xlu0 %1689 }
 0x2d2   : > { %1731 = vst.msk [vmem:[#allocation5 + $0x4] sm:$0xf] %vm1729_vm3, %v1690_v62 }
 0x2d9   : > { %v1692_v1 = vpop.permute.xlu1 %1691 }
 0x2da   : > { %1732 = vst.msk [vmem:[#allocation5 + $0x8] sm:$0xf] %vm1729_vm3, %v1692_v1 }
 0x2e1   : > { %v1700_v3 = vpop.permute.xlu2 %1699  ;;  %v2964_v39 = vld [vmem:[#allocation5 + $0x4] sm:$0xff]  }
 0x2e2   : > { %1736 = vst.msk [vmem:[#allocation5 + $0x18] sm:$0xf] %vm1729_vm3, %v1700_v3  ;;  %1882 = vmatmul.bf16.vlgmr.msrb.gmra.mxu3 %v2964_v39  ;;  %v2911_v31 = vld [vmem:[#allocation5 + $0x8] sm:$0xff]  }
 0x2e3   : > { %v2873_v32 = vld [vmem:[#allocation5 + $0x8] sm:$0xff] }
 0x2e9   : > { %v1696_v8 = vpop.permute.xlu0 %1695 }
 0x2ea   : > { %1734 = vst.msk [vmem:[#allocation5 + $0x10] sm:$0xf] %vm1729_vm3, %v1696_v8 }
 0x2f1   : > { %v1698_v46 = vpop.permute.xlu1 %1697  ;;  %v2966_v9 = vld [vmem:[#allocation5 + $0xc] sm:$0xff]  }
 0x2f2   : > { %1735 = vst.msk [vmem:[#allocation5 + $0x14] sm:$0xf] %vm1729_vm3, %v1698_v46  ;;  %1887 = vmatmul.bf16.gmra.mxu3 %v2966_v9 }
 0x2f9   : > { %v1706_v10 = vpop.permute.xlu2 %1705  ;;  %v2968_v20 = vld [vmem:[#allocation5 + $0x14] sm:$0xff]  }
 0x2fa   : > { %1739 = vst.msk [vmem:[#allocation5 + $0x24] sm:$0xf] %vm1729_vm3, %v1706_v10  ;;  %v2912_v55 = vld [vmem:[#allocation5 + $0x10] sm:$0xff]  }
 0x2fb   : > { %v2874_v6 = vld [vmem:[#allocation5 + $0x10] sm:$0xff] }
 0x301   : > { %v1702_v61 = vpop.permute.xlu0 %1701 }
 0x302   : > { %1737 = vst.msk [vmem:[#allocation5 + $0x1c] sm:$0xf] %vm1729_vm3, %v1702_v61  ;;  %1892 = vmatmul.bf16.gmra.mxu3 %v2968_v20 }
 0x309   : > { %v1704_v45 = vpop.permute.xlu1 %1703  ;;  %v2913_v28 = vld [vmem:[#allocation5 + $0x18] sm:$0xff]  }
 0x30a   : > { %1738 = vst.msk [vmem:[#allocation5 + $0x20] sm:$0xf] %vm1729_vm3, %v1704_v45  ;;  %v2875_v53 = vld [vmem:[#allocation5 + $0x18] sm:$0xff] }
 0x311   : > { %v1712_v49 = vpop.permute.xlu2 %1711  ;;  %v2970_v22 = vld [vmem:[#allocation5 + $0x1c] sm:$0xff]  }
 0x312   : > { %1742 = vst.msk [vmem:[#allocation5 + $0x30] sm:$0xf] %vm1729_vm3, %v1712_v49  ;;  %1897 = vmatmul.bf16.gmra.mxu3 %v2970_v22  ;;  %v2914_v35 = vld [vmem:[#allocation5 + $0x20] sm:$0xff]  }
 0x313   : > { %v2876_v37 = vld [vmem:[#allocation5 + $0x20] sm:$0xff] }
 0x319   : > { %v1708_v25 = vpop.permute.xlu0 %1707 }
 0x31a   : > { %1740 = vst.msk [vmem:[#allocation5 + $0x28] sm:$0xf] %vm1729_vm3, %v1708_v25 }
 0x321   : > { %v1710_v26 = vpop.permute.xlu1 %1709  ;;  %v1688_v0 = vpop.permute.xlu0 %1687  ;;  %v2972_v18 = vld [vmem:[#allocation5 + $0x24] sm:$0xff]  }
 0x322   : > { %1741 = vst.msk [vmem:[#allocation5 + $0x2c] sm:$0xf] %vm1729_vm3, %v1710_v26  ;;  %1902 = vmatmul.bf16.gmra.mxu3 %v2972_v18 }
 0x323   : > { %1730 = vst.msk [vmem:[#allocation5] sm:$0xf] %vm1729_vm3, %v1688_v0 }
 0x329   : > { %v1714_v15 = vpop.permute.xlu1 %1713  ;;  %v2973_v30 = vld [vmem:[#allocation5 + $0x2c] sm:$0xff] }
 0x32a   : > { %1743 = vst.msk [vmem:[#allocation5 + $0x34] sm:$0xf] %vm1729_vm3, %v1714_v15  ;;  %v2888_v27 = vld [vmem:[#allocation5] sm:$0xff]   ;;  %v2915_v41 = vld [vmem:[#allocation5 + $0x28] sm:$0xff]  }
 0x32b   : > { %1983 = vmatmul.bf16.vlgmr.msra.gmra.mxu0 %v2888_v27  ;;  %v2877_v42 = vld [vmem:[#allocation5 + $0x28] sm:$0xff] }
 0x331   : > { %v2878_v63 = vld [vmem:[#allocation5 + $0x30] sm:$0xff] }
 0x332   : > { %1907 = vmatmul.bf16.gmra.mxu3 %v2973_v30 }
 0x33b   : > { %1988 = vmatmul.bf16.gmra.mxu0 %v2911_v31 }
 0x342   : > { %2135 = vmatmul.bf16.vlgmr.msra.gmra.mxu3 %v2873_v32 }
 0x34b   : > { %1993 = vmatmul.bf16.gmra.mxu0 %v2912_v55 }
 0x352   : > { %2140 = vmatmul.bf16.gmra.mxu3 %v2874_v6 }
 0x35b   : > { %1998 = vmatmul.bf16.gmra.mxu0 %v2913_v28 }
 0x362   : > { %2145 = vmatmul.bf16.gmra.mxu3 %v2875_v53 }
 0x365   : > { %v1883_v16 = vpop.f32.mrf.mxu3 }
 0x36b   : > { %2003 = vmatmul.bf16.gmra.mxu0 %v2914_v35 }
 0x36d   : > { %v1885_v36 = vpop.f32.mrf.mxu3 }
 0x372   : > { %2150 = vmatmul.bf16.gmra.mxu3 %v2876_v37 }
 0x375   : > { %v1888_v38 = vpop.f32.mrf.mxu3 }
 0x37b   : > { %2008 = vmatmul.bf16.gmra.mxu0 %v2915_v41 }
 0x37d   : > { %v1890_v24 = vpop.f32.mrf.mxu3 }
 0x382   : > { %2155 = vmatmul.bf16.gmra.mxu3 %v2877_v42 }
 0x385   : > { %v1893_v33 = vpop.f32.mrf.mxu3 }
 0x38d   : > { %v1895_v43 = vpop.f32.mrf.mxu3 }
 0x392   : > { %2160 = vmatmul.bf16.gmra.mxu3 %v2878_v63 }
 0x395   : > { %v1898_v44 = vpop.f32.mrf.mxu3 }
 0x39d   : > { %v1900_v47 = vpop.f32.mrf.mxu3 }
 0x3a5   : > { %v1903_v40 = vpop.f32.mrf.mxu3 }
 0x3a8   : > { %v1984_v48 = vpop.f32.mrf.mxu0 }
 0x3a9   : > { %v1985_v56 = vadd.f32 %v1984_v48, %v1883_v16 }
 0x3ad   : > { %v1905_v34 = vpop.f32.mrf.mxu3 }
 0x3b0   : > { %v1986_v29 = vpop.f32.mrf.mxu0 }
 0x3b1   : > { %v1987_v62 = vadd.f32 %v1986_v29, %v1885_v36 }
 0x3b5   : > { %v3579_v51 = vpop.f32.mrf.mxu3 }
 0x3b8   : > { %v1989_v54 = vpop.f32.mrf.mxu0 }
 0x3b9   : > { %v1990_v39 = vadd.f32 %v1989_v54, %v1888_v38 }
 0x3bd   : > { %v3581_v50 = vpop.f32.mrf.mxu3 }
 0x3c0   : > { %v1991_v60 = vpop.f32.mrf.mxu0 }
 0x3c1   : > { %v1992_v21 = vadd.f32 %v1991_v60, %v1890_v24 }
 0x3c5   : > { %v2136_v58 = vpop.f32.mrf.mxu3 }
 0x3c6   : > { %v2166_v59 = vadd.f32 %v2136_v58, %v1985_v56 }
 0x3c8   : > { %v2182_v52 = vadd.f32 %v3587_v57, %v2166_v59  ;;  %v1994_v3 = vpop.f32.mrf.mxu0 }
 0x3c9   : > { %v1995_v11 = vadd.f32 %v1994_v3, %v1893_v33 }
 0x3ca   : > { %2194 = vst.msk [vmem:[%s3592_s22] sm:$0xff] %vm344_vm0, %v2182_v52 }
 0x3cd   : > { %v2138_v14 = vpop.f32.mrf.mxu3 }
 0x3ce   : > { %v2167_v1 = vadd.f32 %v2138_v14, %v1987_v62 }
 0x3d0   : > { %v2183_v2 = vadd.f32 %v3587_v57, %v2167_v1  ;;  %v1996_v46 = vpop.f32.mrf.mxu0 }
 0x3d1   : > { %v1997_v19 = vadd.f32 %v1996_v46, %v1895_v43 }
 0x3d2   : > { %2195 = vst.msk [vmem:[%s3592_s22 + $0x8] sm:$0xff] %vm344_vm0, %v2183_v2 }
 0x3d5   : > { %v2141_v5 = vpop.f32.mrf.mxu3 }
 0x3d6   : > { %v2168_v7 = vadd.f32 %v2141_v5, %v1990_v39 }
 0x3d8   : > { %v2184_v8 = vadd.f32 %v3587_v57, %v2168_v7  ;;  %v1999_v20 = vpop.f32.mrf.mxu0 }
 0x3d9   : > { %v2000_v23 = vadd.f32 %v1999_v20, %v1898_v44 }
 0x3da   : > { %2196 = vst.msk [vmem:[%s3592_s22 + $0x10] sm:$0xff] %vm344_vm0, %v2184_v8 }
 0x3dd   : > { %v2143_v9 = vpop.f32.mrf.mxu3 }
 0x3de   : > { %v2169_v12 = vadd.f32 %v2143_v9, %v1992_v21 }
 0x3e0   : > { %v2185_v10 = vadd.f32 %v3587_v57, %v2169_v12  ;;  %v2001_v22 = vpop.f32.mrf.mxu0 }
 0x3e1   : > { %v2002_v15 = vadd.f32 %v2001_v22, %v1900_v47 }
 0x3e2   : > { %2197 = vst.msk [vmem:[%s3592_s22 + $0x18] sm:$0xff] %vm344_vm0, %v2185_v10 }
 0x3e5   : > { %v2146_v13 = vpop.f32.mrf.mxu3 }
 0x3e6   : > { %v2170_v61 = vadd.f32 %v2146_v13, %v1995_v11 }
 0x3e8   : > { %v2186_v17 = vadd.f32 %v3587_v57, %v2170_v61  ;;  %v2004_v18 = vpop.f32.mrf.mxu0 }
 0x3e9   : > { %v2005_v32 = vadd.f32 %v2004_v18, %v1903_v40 }
 0x3ea   : > { %2198 = vst.msk [vmem:[%s3592_s22 + $0x20] sm:$0xff] %vm344_vm0, %v2186_v17 }
 0x3ed   : > { %v2148_v45 = vpop.f32.mrf.mxu3 }
 0x3ee   : > { %v2171_v4 = vadd.f32 %v2148_v45, %v1997_v19 }
 0x3f0   : > { %v2187_v49 = vadd.f32 %v3587_v57, %v2171_v4  ;;  %v2006_v55 = vpop.f32.mrf.mxu0 }
 0x3f1   : > { %v2007_v16 = vadd.f32 %v2006_v55, %v1905_v34 }
 0x3f2   : > { %2199 = vst.msk [vmem:[%s3592_s22 + $0x28] sm:$0xff] %vm344_vm0, %v2187_v49 }
 0x3f5   : > { %v2151_v25 = vpop.f32.mrf.mxu3 }
 0x3f6   : > { %v2172_v26 = vadd.f32 %v2151_v25, %v2000_v23 }
 0x3f8   : > { %v2188_v0 = vadd.f32 %v3587_v57, %v2172_v26  ;;  %v2009_v37 = vpop.f32.mrf.mxu0 }
 0x3f9   : > { %v2010_v41 = vadd.f32 %v2009_v37, %v3579_v51 }
 0x3fa   : > { %2200 = vst.msk [vmem:[%s3592_s22 + $0x30] sm:$0xff] %vm344_vm0, %v2188_v0 }
 0x3fd   : > { %v2153_v27 = vpop.f32.mrf.mxu3 }
 0x3fe   : > { %v2173_v30 = vadd.f32 %v2153_v27, %v2002_v15 }
 0x400   : > { %v2189_v31 = vadd.f32 %v3587_v57, %v2173_v30  ;;  %v2011_v43 = vpop.f32.mrf.mxu0 }
 0x401   : > { %v2012_v63 = vadd.f32 %v2011_v43, %v3581_v50 }
 0x402   : > { %2201 = vst.msk [vmem:[%s3592_s22 + $0x38] sm:$0xff] %vm344_vm0, %v2189_v31 }
 0x405   : > { %v2156_v6 = vpop.f32.mrf.mxu3 }
 0x406   : > { %v2174_v28 = vadd.f32 %v2156_v6, %v2005_v32 }
 0x408   : > { %v2190_v53 = vadd.f32 %v3587_v57, %v2174_v28 }
 0x40a   : > { %2202 = vst.msk [vmem:[%s3592_s22 + $0x40] sm:$0xff] %vm344_vm0, %v2190_v53 }
 0x40d   : > { %v2158_v35 = vpop.f32.mrf.mxu3 }
 0x40e   : > { %v2175_v36 = vadd.f32 %v2158_v35, %v2007_v16 }
 0x410   : > { %v2191_v38 = vadd.f32 %v3587_v57, %v2175_v36 }
 0x412   : > { %2203 = vst.msk [vmem:[%s3592_s22 + $0x48] sm:$0xff] %vm344_vm0, %v2191_v38 }
 0x415   : > { %v2161_v24 = vpop.f32.mrf.mxu3 }
 0x416   : > { %v2176_v42 = vadd.f32 %v2161_v24, %v2010_v41 }
 0x418   : > { %v2192_v33 = vadd.f32 %v3587_v57, %v2176_v42 }
 0x41a   : > { %2204 = vst.msk [vmem:[%s3592_s22 + $0x50] sm:$0xff] %vm344_vm0, %v2192_v33 }
 0x41d   : > { %v2163_v44 = vpop.f32.mrf.mxu3 }
 0x41e   : > { %v2177_v47 = vadd.f32 %v2163_v44, %v2012_v63 }
 0x420   : > { %v2193_v40 = vadd.f32 %v3587_v57, %v2177_v47 }
 0x422   : > { %2205 = vst.msk [vmem:[%s3592_s22 + $0x58] sm:$0xff] %vm344_vm0, %v2193_v40 }
 0x423 PF: > { %s18_s27 = sadd.s32 1, %s2994_s27  }
 0x424   : > { %p15_p4 = scmp.ge.s32.totalorder %s18_s27, 4  }
 0x426   :  { %17 = sbr.rel (!%p15_p4) target bundleno = 1 (0x1), region = 89 }

// kernel: decoder_forward.3
= control target key start
LH: loop header
LB: loop body
LE: loop exit
PB: predicated region body
PF: predicated region fallthrough
CT: control target
= control target key end

     0   :  { %s4975_s27 = smov 0   ;;  %s6235_s0 = inlined_call_operand.vmem [shape: bf16[2,192,32], index: 0, kind: input, shape index: {}]   ;;  %s6236_s1 = inlined_call_operand.vmem [shape: f32[2,384,32], index: 1, kind: input, shape index: {}]   ;;  %s6237_s2 = inlined_call_operand.vmem [shape: bf16[32,64], index: 2, kind: input, shape index: {}]   ;;  %s6238_s3 = inlined_call_operand.vmem [shape: f32[1,64], index: 3, kind: input, shape index: {}]   ;;  %s6239_s4 = inlined_call_operand.vmem [shape: bf16[3,128,32], index: 4, kind: input, shape index: {}]   ;;  %s6240_s5 = inlined_call_operand.vmem [shape: f32[1,32], index: 5, kind: input, shape index: {}]   ;;  %s6241_s6 = inlined_call_operand.vmem [shape: bf16[3,64,32], index: 6, kind: input, shape index: {}]   ;;  %s6242_s7 = inlined_call_operand.vmem [shape: f32[1,32], index: 7, kind: input, shape index: {}]   ;;  %s6243_s8 = inlined_call_operand.vmem [shape: f32[2,320,32], index: 8, kind: output, shape index: {}]  }
   0x1 LB: > { %s4062_s28 = sadd.s32 4294967295, %s4924_s27   ;;  %p4066_p0 = scmp.ge.s32.totalorder %s4924_s27, 1  ;;  %s4924_s27 = sphi %s4975_s27, %s18_s27  }
   0x2   : > { %p272_p1 = scmp.lt.s32.totalorder %s4924_s27, 3 }
   0x4   : > { %p273_p2 = pnand %p4066_p0, %p272_p1 }
   0x5   : > { %p311_p3 = scmp.lt.s32.totalorder (!%p273_p2), %s4062_s28, 1  ;;  %s4927_s21 = smov (!%p273_p2), 32  }
   0x6   : > { %276 = sbr.rel (%p273_p2) target bundleno = 1804 (0x70c), region = 52  ;;  %s4928_s22 = smov (!%p273_p2), 96  }
   0x7   : > { %s4929_s23 = smov (!%p273_p2), 64  }
   0xb   : > { %v4749_v0 = vld [vmem:[%s6237_s2 + $0x8] sm:$0xff]  ;;  %v4748_v1 = vld [vmem:[%s6237_s2] sm:$0xff]  ;;  %s6245_s28 = smov (!%p311_p3, %s4062_s28), 1  ;;  %vm377_vm0 = vcmask 261120   ;;  %vm327_vm1 = vcmask 523264   ;;  %v4926_v9 = vmov 0.0  }
   0xc   : > { %525 = vmatpush.bf16.msra.mxu0 %v4749_v0  ;;  %s4896_s11 = smul.u32 96, %s6245_s28  ;;  %329 = vst.msk [vmem:[#allocation2 + $0x8] sm:$0xff] %vm327_vm1, %v4926_v9  ;;  %v5092_v13 = vld [vmem:[%s6238_s3] ss:$0 sm:$0xff]  ;;  %vm589_vm2 = vcmask 257024   ;;  %vm973_vm3 = vcmask 523520  }
   0xd   : > { %328 = vst.msk [vmem:[#allocation2] sm:$0xff] %vm327_vm1, %v4926_v9  ;;  %s4897_s17 = smul.u32 384, %s6245_s28  ;;  %vm1118_vm4 = vcmask 519168   ;;  %vm1455_vm5 = vcmask 1043968   ;;  %vm2991_vm6 = vcmask 519424  }
   0xe   : > { %s4995_s14 = scalar_lea.vmem %s6235_s0, %s4896_s11  ;;  %330 = vst.msk [vmem:[#allocation2 + $0x10] sm:$0xff] %vm327_vm1, %v4926_v9  ;;  %s4898_s11 = smul.u32 320, %s6245_s28 }
   0xf   : > { %v4736_v2 = vld [vmem:[%s4995_s14] sm:$0xff]  ;;  %v4737_v3 = vld [vmem:[%s4995_s14 + $0x8] sm:$0xff]  ;;  %v4738_v4 = vld [vmem:[%s4995_s14 + $0x10] sm:$0xff]  ;;  %331 = vst.msk [vmem:[#allocation2 + $0x18] sm:$0xff] %vm327_vm1, %v4926_v9  ;;  %s5188_s20 = scalar_lea.vmem %s6236_s1, %s4897_s17 }
  0x10   : > { %526 = vmatpush.bf16.msra.mxu0 %v4748_v1  ;;  %v4739_v5 = vld [vmem:[%s4995_s14 + $0x18] sm:$0xff]  ;;  %v4740_v6 = vld [vmem:[%s4995_s14 + $0x20] sm:$0xff]  ;;  %v4741_v7 = vld [vmem:[%s4995_s14 + $0x28] sm:$0xff]  ;;  %332 = vst.msk [vmem:[#allocation2 + $0x20] sm:$0xff] %vm327_vm1, %v4926_v9  ;;  %s5951_s15 = scalar_lea.vmem %s6243_s8, %s4898_s11 }
  0x11   : > { %v4742_v8 = vld [vmem:[%s4995_s14 + $0x30] sm:$0xff]  ;;  %333 = vst.msk [vmem:[#allocation2 + $0x28] sm:$0xff] %vm327_vm1, %v4926_v9  ;;  %v4743_v10 = vld [vmem:[%s4995_s14 + $0x38] sm:$0xff]  ;;  %v4744_v11 = vld [vmem:[%s4995_s14 + $0x40] sm:$0xff] }
  0x12   : > { %334 = vst.msk [vmem:[#allocation2 + $0x30] sm:$0xff] %vm327_vm1, %v4926_v9  ;;  %v4745_v16 = vld [vmem:[%s4995_s14 + $0x48] sm:$0xff]  ;;  %v4746_v34 = vld [vmem:[%s4995_s14 + $0x50] sm:$0xff]  ;;  %v768_v44 = vld [vmem:[%s5188_s20 + $0x118] sm:$0xff] }
  0x13   : > { %4126 = vmatmul.msk.bf16.vlgmr.msra.gmra.mxu0 %vm377_vm0, %v4736_v2  ;;  %335 = vst.msk [vmem:[#allocation2 + $0x38] sm:$0xff] %vm327_vm1, %v4926_v9  ;;  %v767_v41 = vld [vmem:[%s5188_s20 + $0x110] sm:$0xff]  ;;  %v4747_v45 = vld [vmem:[%s4995_s14 + $0x58] sm:$0xff]  ;;  %v769_v49 = vld [vmem:[%s5188_s20 + $0x120] sm:$0xff] }
  0x14   : > { %336 = vst.msk [vmem:[#allocation2 + $0x40] sm:$0xff] %vm327_vm1, %v4926_v9  ;;  %897 = vrot.lane.b32.xlu1 %v767_v41, %s4927_s21  ;;  %v771_v48 = vld [vmem:[%s5188_s20 + $0x130] sm:$0xff]  ;;  %901 = vrot.lane.b32.xlu2 %v769_v49, %s4927_s21  ;;  %v773_v52 = vld [vmem:[%s5188_s20 + $0x140] sm:$0xff] }
  0x15   : > { %337 = vst.msk [vmem:[#allocation2 + $0x48] sm:$0xff] %vm327_vm1, %v4926_v9  ;;  %v775_v55 = vld [vmem:[%s5188_s20 + $0x150] sm:$0xff]  ;;  %v770_v58 = vld [vmem:[%s5188_s20 + $0x128] sm:$0xff]  ;;  %v772_v61 = vld [vmem:[%s5188_s20 + $0x138] sm:$0xff] }
  0x16   : > { %338 = vst.msk [vmem:[#allocation2 + $0x50] sm:$0xff] %vm327_vm1, %v4926_v9  ;;  %v774_v0 = vld [vmem:[%s5188_s20 + $0x148] sm:$0xff]  ;;  %v776_v49 = vld [vmem:[%s5188_s20 + $0x158] sm:$0xff] }
  0x17   : > { %339 = vst.msk [vmem:[#allocation2 + $0x58] sm:$0xff] %vm327_vm1, %v4926_v9 }
  0x18   : > { %340 = vst.msk [vmem:[#allocation2 + $0x60] sm:$0xff] %vm327_vm1, %v4926_v9 }
  0x19   : > { %341 = vst.msk [vmem:[#allocation2 + $0x68] sm:$0xff] %vm327_vm1, %v4926_v9 }
  0x1a   : > { %342 = vst.msk [vmem:[#allocation2 + $0x70] sm:$0xff] %vm327_vm1, %v4926_v9 }
  0x1b   : > { %343 = vst.msk [vmem:[#allocation2 + $0x78] sm:$0xff] %vm327_vm1, %v4926_v9 }
  0x1c   : > { %344 = vst.msk [vmem:[#allocation2 + $0x80] sm:$0xff] %vm327_vm1, %v4926_v9  ;;  %899 = vrot.lane.b32.xlu1 %v768_v44, %s4927_s21 }
  0x1d   : > { %345 = vst.msk [vmem:[#allocation2 + $0x88] sm:$0xff] %vm327_vm1, %v4926_v9 }
  0x1e   : > { %346 = vst.msk [vmem:[#allocation2 + $0x90] sm:$0xff] %vm327_vm1, %v4926_v9 }
  0x1f   : > { %347 = vst.msk [vmem:[#allocation2 + $0x98] sm:$0xff] %vm327_vm1, %v4926_v9 }
  0x20   : > { %348 = vst.msk [vmem:[#allocation2 + $0xa0] sm:$0xff] %vm327_vm1, %v4926_v9 }
  0x21   : > { %349 = vst.msk [vmem:[#allocation2 + $0xa8] sm:$0xff] %vm327_vm1, %v4926_v9 }
  0x22   : > { %350 = vst.msk [vmem:[#allocation2 + $0xb0] sm:$0xff] %vm327_vm1, %v4926_v9 }
  0x23   : > { %4127 = vmatmul.msk.bf16.gmra.mxu0 %vm377_vm0, %v4737_v3  ;;  %351 = vst.msk [vmem:[#allocation2 + $0xb8] sm:$0xff] %vm327_vm1, %v4926_v9 }
  0x24   : > { %352 = vst.msk [vmem:[#allocation2 + $0xc0] sm:$0xff] %vm327_vm1, %v4926_v9  ;;  %905 = vrot.lane.b32.xlu1 %v771_v48, %s4927_s21  ;;  %v777_v48 = vld [vmem:[%s5188_s20 + $0x160] sm:$0xff] }
  0x25   : > { %353 = vst.msk [vmem:[#allocation2 + $0xc8] sm:$0xff] %vm327_vm1, %v4926_v9 }
  0x26   : > { %354 = vst.msk [vmem:[#allocation2 + $0xd0] sm:$0xff] %vm327_vm1, %v4926_v9 }
  0x27   : > { %355 = vst.msk [vmem:[#allocation2 + $0xd8] sm:$0xff] %vm327_vm1, %v4926_v9 }
  0x28   : > { %356 = vst.msk [vmem:[#allocation2 + $0xe0] sm:$0xff] %vm327_vm1, %v4926_v9 }
  0x29   : > { %357 = vst.msk [vmem:[#allocation2 + $0xe8] sm:$0xff] %vm327_vm1, %v4926_v9 }
  0x2a   : > { %358 = vst.msk [vmem:[#allocation2 + $0xf0] sm:$0xff] %vm327_vm1, %v4926_v9 }
  0x2b   : > { %359 = vst.msk [vmem:[#allocation2 + $0xf8] sm:$0xff] %vm327_vm1, %v4926_v9 }
  0x2c   : > { %360 = vst.msk [vmem:[#allocation2 + $0x100] sm:$0xff] %vm327_vm1, %v4926_v9  ;;  %909 = vrot.lane.b32.xlu1 %v773_v52, %s4927_s21 }
  0x2d   : > { %361 = vst.msk [vmem:[#allocation2 + $0x108] sm:$0xff] %vm327_vm1, %v4926_v9 }
  0x2e   : > { %362 = vst.msk [vmem:[#allocation2 + $0x110] sm:$0xff] %vm327_vm1, %v4926_v9 }
  0x2f   : > { %363 = vst.msk [vmem:[#allocation2 + $0x118] sm:$0xff] %vm327_vm1, %v4926_v9 }
  0x30   : > { %364 = vst.msk [vmem:[#allocation2 + $0x120] sm:$0xff] %vm327_vm1, %v4926_v9 }
  0x31   : > { %365 = vst.msk [vmem:[#allocation2 + $0x128] sm:$0xff] %vm327_vm1, %v4926_v9 }
  0x32   : > { %366 = vst.msk [vmem:[#allocation2 + $0x130] sm:$0xff] %vm327_vm1, %v4926_v9 }
  0x33   : > { %4128 = vmatmul.msk.bf16.gmra.mxu0 %vm377_vm0, %v4738_v4  ;;  %367 = vst.msk [vmem:[#allocation2 + $0x138] sm:$0xff] %vm327_vm1, %v4926_v9 }
  0x34   : > { %368 = vst.msk [vmem:[#allocation2 + $0x140] sm:$0xff] %vm327_vm1, %v4926_v9  ;;  %913 = vrot.lane.b32.xlu1 %v775_v55, %s4927_s21  ;;  %v778_v55 = vld [vmem:[%s5188_s20 + $0x168] sm:$0xff] }
  0x35   : > { %369 = vst.msk [vmem:[#allocation2 + $0x148] sm:$0xff] %vm327_vm1, %v4926_v9 }
  0x36   : > { %370 = vst.msk [vmem:[#allocation2 + $0x150] sm:$0xff] %vm327_vm1, %v4926_v9 }
  0x37   : > { %371 = vst.msk [vmem:[#allocation2 + $0x158] sm:$0xff] %vm327_vm1, %v4926_v9 }
  0x38   : > { %372 = vst.msk [vmem:[#allocation2 + $0x160] sm:$0xff] %vm327_vm1, %v4926_v9 }
  0x39   : > { %373 = vst.msk [vmem:[#allocation2 + $0x168] sm:$0xff] %vm327_vm1, %v4926_v9 }
  0x3a   : > { %374 = vst.msk [vmem:[#allocation2 + $0x170] sm:$0xff] %vm327_vm1, %v4926_v9 }
  0x3b   : > { %375 = vst.msk [vmem:[#allocation2 + $0x178] sm:$0xff] %vm327_vm1, %v4926_v9 }
  0x3c   : > { %376 = vst.msk [vmem:[#allocation2 + $0x180] sm:$0xff] %vm327_vm1, %v4926_v9 }
  0x3d   : > { %378 = vst.msk [vmem:[#allocation4 + $0x160] sm:$0xff] %vm377_vm0, %v4926_v9 }
  0x43   : > { %4129 = vmatmul.msk.bf16.gmra.mxu0 %vm377_vm0, %v4739_v5 }
  0x53   : > { %4130 = vmatmul.msk.bf16.gmra.mxu0 %vm377_vm0, %v4740_v6 }
  0x63   : > { %4131 = vmatmul.msk.bf16.gmra.mxu0 %vm377_vm0, %v4741_v7 }
  0x6e   : > { %v902_v6 = vpop.permute.xlu2 %901 }
  0x73   : > { %4132 = vmatmul.msk.bf16.gmra.mxu0 %vm377_vm0, %v4742_v8 }
  0x83   : > { %4133 = vmatmul.msk.bf16.gmra.mxu0 %vm377_vm0, %v4743_v10 }
  0x86   : > { %v898_v5 = vpop.permute.xlu1 %897 }
  0x8e   : > { %v900_v7 = vpop.permute.xlu1 %899 }
  0x90   : > { %v528_v12 = vpop.f32.mrf.mxu0 }
  0x91   : > { %v5119_v18 = vadd.f32 %v5092_v13, %v528_v12 }
  0x93   : > { %4134 = vmatmul.msk.bf16.gmra.mxu0 %vm377_vm0, %v4744_v11  ;;  %588 = vst.msk [vmem:[#allocation2] sm:$0xff] %vm377_vm0, %v5119_v18 }
  0x96   : > { %v906_v8 = vpop.permute.xlu1 %905 }
  0x98   : > { %v530_v14 = vpop.f32.mrf.mxu0 }
  0x99   : > { %v5099_v15 = vadd.f32 %v5092_v13, %v530_v14 }
  0x9b   : > { %590 = vst.msk [vmem:[#allocation2 + $0x8] sm:$0xf] %vm589_vm2, %v5099_v15 }
  0x9e   : > { %v910_v12 = vpop.permute.xlu1 %909 }
  0xa0   : > { %v533_v17 = vpop.f32.mrf.mxu0 }
  0xa1   : > { %v5126_v19 = vadd.f32 %v5092_v13, %v533_v17 }
  0xa3   : > { %4135 = vmatmul.msk.bf16.gmra.mxu0 %vm377_vm0, %v4745_v16  ;;  %601 = vst.msk [vmem:[#allocation2 + $0x20] sm:$0xff] %vm377_vm0, %v5126_v19 }
  0xa8   : > { %v535_v20 = vpop.f32.mrf.mxu0 }
  0xa9   : > { %v5138_v21 = vadd.f32 %v5092_v13, %v535_v20 }
  0xab   : > { %602 = vst.msk [vmem:[#allocation2 + $0x28] sm:$0xf] %vm589_vm2, %v5138_v21 }
  0xb0   : > { %v538_v22 = vpop.f32.mrf.mxu0 }
  0xb1   : > { %v5143_v23 = vadd.f32 %v5092_v13, %v538_v22 }
  0xb3   : > { %613 = vst.msk [vmem:[#allocation2 + $0x40] sm:$0xff] %vm377_vm0, %v5143_v23  ;;  %4136 = vmatmul.msk.bf16.gmra.mxu0 %vm377_vm0, %v4746_v34 }
  0xb8   : > { %v540_v24 = vpop.f32.mrf.mxu0 }
  0xb9   : > { %v5148_v25 = vadd.f32 %v5092_v13, %v540_v24 }
  0xbb   : > { %614 = vst.msk [vmem:[#allocation2 + $0x48] sm:$0xf] %vm589_vm2, %v5148_v25 }
  0xc0   : > { %v543_v26 = vpop.f32.mrf.mxu0 }
  0xc1   : > { %v5153_v27 = vadd.f32 %v5092_v13, %v543_v26 }
  0xc3   : > { %625 = vst.msk [vmem:[#allocation2 + $0x60] sm:$0xff] %vm377_vm0, %v5153_v27  ;;  %4137 = vmatmul.msk.bf16.gmra.mxu0 %vm377_vm0, %v4747_v45 }
  0xc8   : > { %v545_v28 = vpop.f32.mrf.mxu0 }
  0xc9   : > { %v5158_v29 = vadd.f32 %v5092_v13, %v545_v28 }
  0xcb   : > { %626 = vst.msk [vmem:[#allocation2 + $0x68] sm:$0xf] %vm589_vm2, %v5158_v29 }
  0xd0   : > { %v548_v30 = vpop.f32.mrf.mxu0 }
  0xd1   : > { %v5163_v31 = vadd.f32 %v5092_v13, %v548_v30 }
  0xd3   : > { %637 = vst.msk [vmem:[#allocation2 + $0x80] sm:$0xff] %vm377_vm0, %v5163_v31 }
  0xd8   : > { %v550_v32 = vpop.f32.mrf.mxu0 }
  0xd9   : > { %v5168_v33 = vadd.f32 %v5092_v13, %v550_v32 }
  0xdb   : > { %638 = vst.msk [vmem:[#allocation2 + $0x88] sm:$0xf] %vm589_vm2, %v5168_v33 }
  0xe0   : > { %v553_v35 = vpop.f32.mrf.mxu0 }
  0xe1   : > { %v5175_v36 = vadd.f32 %v5092_v13, %v553_v35 }
  0xe3   : > { %649 = vst.msk [vmem:[#allocation2 + $0xa0] sm:$0xff] %vm377_vm0, %v5175_v36 }
  0xe8   : > { %v555_v37 = vpop.f32.mrf.mxu0 }
  0xe9   : > { %v5180_v38 = vadd.f32 %v5092_v13, %v555_v37 }
  0xeb   : > { %650 = vst.msk [vmem:[#allocation2 + $0xa8] sm:$0xf] %vm589_vm2, %v5180_v38 }
  0xf0   : > { %v558_v39 = vpop.f32.mrf.mxu0 }
  0xf1   : > { %v5191_v40 = vadd.f32 %v5092_v13, %v558_v39 }
  0xf3   : > { %661 = vst.msk [vmem:[#allocation2 + $0xc0] sm:$0xff] %vm377_vm0, %v5191_v40 }
  0xf8   : > { %v560_v42 = vpop.f32.mrf.mxu0 }
  0xf9   : > { %v5198_v43 = vadd.f32 %v5092_v13, %v560_v42 }
  0xfb   : > { %662 = vst.msk [vmem:[#allocation2 + $0xc8] sm:$0xf] %vm589_vm2, %v5198_v43 }
 0x100   : > { %v563_v46 = vpop.f32.mrf.mxu0 }
 0x101   : > { %v5207_v47 = vadd.f32 %v5092_v13, %v563_v46 }
 0x103   : > { %673 = vst.msk [vmem:[#allocation2 + $0xe0] sm:$0xff] %vm377_vm0, %v5207_v47 }
 0x108   : > { %v565_v50 = vpop.f32.mrf.mxu0 }
 0x109   : > { %v5216_v51 = vadd.f32 %v5092_v13, %v565_v50 }
 0x10b   : > { %674 = vst.msk [vmem:[#allocation2 + $0xe8] sm:$0xf] %vm589_vm2, %v5216_v51 }
 0x110   : > { %v568_v53 = vpop.f32.mrf.mxu0 }
 0x111   : > { %v569_v54 = vadd.f32 %v5092_v13, %v568_v53 }
 0x113   : > { %685 = vst.msk [vmem:[#allocation2 + $0x100] sm:$0xff] %vm377_vm0, %v569_v54  ;;  %689 = vrot.lane.b32.xlu0 %v569_v54, %s4928_s22 }
 0x118   : > { %v570_v56 = vpop.f32.mrf.mxu0 }
 0x119   : > { %v571_v57 = vadd.f32 %v5092_v13, %v570_v56 }
 0x11b   : > { %686 = vst.msk [vmem:[#allocation2 + $0x108] sm:$0xf] %vm589_vm2, %v571_v57  ;;  %691 = vrot.lane.b32.xlu0 %v571_v57, %s4928_s22 }
 0x120   : > { %v573_v59 = vpop.f32.mrf.mxu0 }
 0x121   : > { %v574_v60 = vadd.f32 %v5092_v13, %v573_v59 }
 0x123   : > { %903 = vrot.lane.b32.xlu0 %v770_v58, %s4927_s21  ;;  %697 = vst.msk [vmem:[#allocation2 + $0x120] sm:$0xff] %vm377_vm0, %v574_v60  ;;  %701 = vrot.lane.b32.xlu2 %v574_v60, %s4928_s22 }
 0x124   : > { %1010 = vst.msk [vmem:[#allocation2 + $0x120] sm:$0xff] %vm973_vm3, %v902_v6  ;;  %v765_v6 = vld [vmem:[%s5188_s20 + $0x100] sm:$0xff] }
 0x128   : > { %v575_v62 = vpop.f32.mrf.mxu0 }
 0x129   : > { %v576_v63 = vadd.f32 %v5092_v13, %v575_v62 }
 0x12b   : > { %907 = vrot.lane.b32.xlu0 %v772_v61, %s4927_s21  ;;  %698 = vst.msk [vmem:[#allocation2 + $0x128] sm:$0xf] %vm589_vm2, %v576_v63  ;;  %703 = vrot.lane.b32.xlu2 %v576_v63, %s4928_s22  ;;  %v1058_v22 = vld [vmem:[#allocation2 + $0x120] sm:$0xff] }
 0x12c   : > { %v1106_v24 = vpack.c.bf16 %v1058_v22, %v1058_v22  ;;  %v4784_v22 = vld [vmem:[%s6239_s4 + $0x58] sm:$0xff] }
 0x12e   : > { %1155 = vst.msk [vmem:[#allocation3 + $0x90] sm:$0xf] %vm1118_vm4, %v1106_v24  ;;  %v4783_v24 = vld [vmem:[%s6239_s4 + $0x50] sm:$0xff] }
 0x130   : > { %v578_v1 = vpop.f32.mrf.mxu0 }
 0x131   : > { %v579_v2 = vadd.f32 %v5092_v13, %v578_v1  ;;  %v763_v1 = vld [vmem:[%s5188_s20 + $0xf0] sm:$0xff] }
 0x133   : > { %911 = vrot.lane.b32.xlu0 %v774_v0, %s4927_s21  ;;  %709 = vst.msk [vmem:[#allocation2 + $0x140] sm:$0xff] %vm377_vm0, %v579_v2  ;;  %713 = vrot.lane.b32.xlu2 %v579_v2, %s4928_s22  ;;  %v779_v0 = vld [vmem:[%s5188_s20 + $0x170] sm:$0xff]  ;;  %v914_v2 = vpop.permute.xlu1 %913 }
 0x134   : > { %1014 = vst.msk [vmem:[#allocation2 + $0x140] sm:$0xff] %vm973_vm3, %v910_v12  ;;  %v4787_v12 = vld [vmem:[%s6239_s4 + $0x70] sm:$0xff] }
 0x138   : > { %v580_v3 = vpop.f32.mrf.mxu0 }
 0x139   : > { %v581_v4 = vadd.f32 %v5092_v13, %v580_v3 }
 0x13b   : > { %710 = vst.msk [vmem:[#allocation2 + $0x148] sm:$0xf] %vm589_vm2, %v581_v4  ;;  %715 = vrot.lane.b32.xlu1 %v581_v4, %s4928_s22 }
 0x140   : > { %v583_v9 = vpop.f32.mrf.mxu0 }
 0x141   : > { %v584_v10 = vadd.f32 %v5092_v13, %v583_v9 }
 0x143   : > { %721 = vst.msk [vmem:[#allocation2 + $0x160] sm:$0xff] %vm377_vm0, %v584_v10 }
 0x148   : > { %v585_v14 = vpop.f32.mrf.mxu0 }
 0x149   : > { %v5255_v16 = vadd.f32 %v5092_v13, %v585_v14 }
 0x14b   : > { %722 = vst.msk [vmem:[#allocation2 + $0x168] sm:$0xf] %vm589_vm2, %v5255_v16 }
 0x17d   : > { %v702_v11 = vpop.permute.xlu2 %701 }
 0x17e   : > { %707 = vst.msk [vmem:[#allocation2 + $0x130] sm:$0xff] %vm377_vm0, %v702_v11  ;;  %v766_v11 = vld [vmem:[%s5188_s20 + $0x108] sm:$0xff] }
 0x17f   : > { %1012 = vst.msk [vmem:[#allocation2 + $0x130] sm:$0xff] %vm973_vm3, %v906_v8  ;;  %v1062_v8 = vld [vmem:[#allocation2 + $0x140] sm:$0xff] }
 0x180   : > { %v1110_v9 = vpack.c.bf16 %v1062_v8, %v1062_v8 }
 0x182   : > { %1159 = vst.msk [vmem:[#allocation3 + $0xa0] sm:$0xf] %vm1118_vm4, %v1110_v9 }
 0x185   : > { %v690_v17 = vpop.permute.xlu0 %689  ;;  %v704_v20 = vpop.permute.xlu2 %703 }
 0x186   : > { %695 = vst.msk [vmem:[#allocation2 + $0x110] sm:$0xff] %vm377_vm0, %v690_v17  ;;  %v1060_v52 = vld [vmem:[#allocation2 + $0x130] sm:$0xff]  ;;  %v4786_v17 = vld [vmem:[%s6239_s4 + $0x68] sm:$0xff] }
 0x187   : > { %1008 = vst.msk [vmem:[#allocation2 + $0x110] sm:$0xff] %vm973_vm3, %v898_v5  ;;  %v1108_v53 = vpack.c.bf16 %v1060_v52, %v1060_v52 }
 0x188   : > { %708 = vst.msk [vmem:[#allocation2 + $0x138] sm:$0xf] %vm589_vm2, %v704_v20  ;;  %v4785_v20 = vld [vmem:[%s6239_s4 + $0x60] sm:$0xff] }
 0x189   : > { %1157 = vst.msk [vmem:[#allocation3 + $0x98] sm:$0xf] %vm1118_vm4, %v1108_v53 }
 0x18d   : > { %v692_v26 = vpop.permute.xlu0 %691  ;;  %v714_v3 = vpop.permute.xlu2 %713 }
 0x18e   : > { %696 = vst.msk [vmem:[#allocation2 + $0x118] sm:$0xf] %vm589_vm2, %v692_v26  ;;  %v1056_v13 = vld [vmem:[#allocation2 + $0x110] sm:$0xff]  ;;  %v4782_v26 = vld [vmem:[%s6239_s4 + $0x48] sm:$0xff] }
 0x18f   : > { %1009 = vst.msk [vmem:[#allocation2 + $0x118] sm:$0xff] %vm973_vm3, %v900_v7  ;;  %v1104_v28 = vpack.c.bf16 %v1056_v13, %v1056_v13  ;;  %v764_v7 = vld [vmem:[%s5188_s20 + $0xf8] sm:$0xff] }
 0x190   : > { %719 = vst.msk [vmem:[#allocation2 + $0x150] sm:$0xff] %vm377_vm0, %v714_v3 }
 0x191   : > { %1153 = vst.msk [vmem:[#allocation3 + $0x88] sm:$0xf] %vm1118_vm4, %v1104_v28  ;;  %v4781_v28 = vld [vmem:[%s6239_s4 + $0x40] sm:$0xff] }
 0x192   : > { %1016 = vst.msk [vmem:[#allocation2 + $0x150] sm:$0xff] %vm973_vm3, %v914_v2 }
 0x195   : > { %v904_v30 = vpop.permute.xlu0 %903 }
 0x196   : > { %1011 = vst.msk [vmem:[#allocation2 + $0x128] sm:$0xff] %vm973_vm3, %v904_v30  ;;  %v1202_v32 = vld [vmem:[#allocation2 + $0x119] sm:$0xff]  ;;  %v1201_v34 = vld [vmem:[#allocation2 + $0x111] sm:$0xff] }
 0x197   : > { %v1057_v35 = vld [vmem:[#allocation2 + $0x118] sm:$0xff]  ;;  %v1250_v37 = vpack.c.bf16 %v1202_v32, %v1202_v32  ;;  %v1249_v39 = vpack.c.bf16 %v1201_v34, %v1201_v34 }
 0x198   : > { %v1105_v41 = vpack.c.bf16 %v1057_v35, %v1057_v35 }
 0x199   : > { %1381 = vrot.lane.b32.xlu0 %v1250_v37, %s4929_s23  ;;  %1379 = vrot.lane.b32.xlu2 %v1249_v39, %s4929_s23 }
 0x19a   : > { %1154 = vst.msk [vmem:[#allocation3 + $0x8c] sm:$0xf] %vm1118_vm4, %v1105_v41 }
 0x19d   : > { %v1203_v42 = vld [vmem:[#allocation2 + $0x121] sm:$0xff]  ;;  %v908_v44 = vpop.permute.xlu0 %907  ;;  %v1204_v54 = vld [vmem:[#allocation2 + $0x129] sm:$0xff] }
 0x19e   : > { %v1059_v45 = vld [vmem:[#allocation2 + $0x128] sm:$0xff]  ;;  %v1251_v46 = vpack.c.bf16 %v1203_v42, %v1203_v42  ;;  %1013 = vst.msk [vmem:[#allocation2 + $0x138] sm:$0xff] %vm973_vm3, %v908_v44  ;;  %v1252_v56 = vpack.c.bf16 %v1204_v54, %v1204_v54  ;;  %v1064_v44 = vld [vmem:[#allocation2 + $0x150] sm:$0xff] }
 0x19f   : > { %v1107_v50 = vpack.c.bf16 %v1059_v45, %v1059_v45 }
 0x1a0   : > { %1383 = vrot.lane.b32.xlu1 %v1251_v46, %s4929_s23  ;;  %v1112_v46 = vpack.c.bf16 %v1064_v44, %v1064_v44 }
 0x1a1   : > { %1156 = vst.msk [vmem:[#allocation3 + $0x94] sm:$0xf] %vm1118_vm4, %v1107_v50  ;;  %917 = vrot.lane.b32.xlu0 %v777_v48, %s4927_s21  ;;  %915 = vrot.lane.b32.xlu2 %v776_v49, %s4927_s21 }
 0x1a2   : > { %1161 = vst.msk [vmem:[#allocation3 + $0xa8] sm:$0xf] %vm1118_vm4, %v1112_v46  ;;  %v734_v46 = vld [vmem:[%s5188_s20 + $0x8] sm:$0xff] }
 0x1a5   : > { %v912_v57 = vpop.permute.xlu0 %911  ;;  %v1061_v58 = vld [vmem:[#allocation2 + $0x138] sm:$0xff] }
 0x1a6   : > { %1015 = vst.msk [vmem:[#allocation2 + $0x148] sm:$0xff] %vm973_vm3, %v912_v57  ;;  %v1109_v59 = vpack.c.bf16 %v1061_v58, %v1061_v58  ;;  %v1206_v60 = vld [vmem:[#allocation2 + $0x139] sm:$0xff]  ;;  %v1205_v61 = vld [vmem:[#allocation2 + $0x131] sm:$0xff] }
 0x1a7   : > { %v1254_v62 = vpack.c.bf16 %v1206_v60, %v1206_v60  ;;  %v1253_v63 = vpack.c.bf16 %v1205_v61, %v1205_v61 }
 0x1a8   : > { %919 = vrot.lane.b32.xlu1 %v778_v55, %s4927_s21  ;;  %1158 = vst.msk [vmem:[#allocation3 + $0x9c] sm:$0xf] %vm1118_vm4, %v1109_v59 }
 0x1a9   : > { %725 = vrot.lane.b32.xlu0 %v584_v10, %s4928_s22  ;;  %1385 = vrot.lane.b32.xlu2 %v1252_v56, %s4929_s23 }
 0x1ad   : > { %v1207_v4 = vld [vmem:[#allocation2 + $0x141] sm:$0xff]  ;;  %v1208_v10 = vld [vmem:[#allocation2 + $0x149] sm:$0xff]  ;;  %v716_v14 = vpop.permute.xlu1 %715 }
 0x1ae   : > { %v1255_v5 = vpack.c.bf16 %v1207_v4, %v1207_v4  ;;  %720 = vst.msk [vmem:[#allocation2 + $0x158] sm:$0xf] %vm589_vm2, %v716_v14  ;;  %v1063_v32 = vld [vmem:[#allocation2 + $0x148] sm:$0xff] }
 0x1af   : > { %v1111_v34 = vpack.c.bf16 %v1063_v32, %v1063_v32 }
 0x1b0   : > { %1389 = vrot.lane.b32.xlu1 %v1254_v62, %s4929_s23 }
 0x1b1   : > { %921 = vrot.lane.b32.xlu2 %v779_v0, %s4927_s21  ;;  %1387 = vrot.lane.b32.xlu0 %v1253_v63, %s4929_s23  ;;  %1160 = vst.msk [vmem:[#allocation3 + $0xa4] sm:$0xf] %vm1118_vm4, %v1111_v34 }
 0x1b8   : > { %889 = vrot.lane.b32.xlu1 %v763_v1, %s4927_s21 }
 0x1b9   : > { %679 = vrot.lane.b32.xlu0 %v5216_v51, %s4928_s22  ;;  %677 = vrot.lane.b32.xlu2 %v5207_v47, %s4928_s22  ;;  %v1256_v51 = vpack.c.bf16 %v1208_v10, %v1208_v10  ;;  %v4788_v47 = vld [vmem:[%s6239_s4 + $0x78] sm:$0xff] }
 0x1ba   : > { %4873 = vmatpush.bf16.msra.mxu3 %v4788_v47  ;;  %1763 = vmatpush.bf16.msrb.mxu0 %v4788_v47 }
 0x1bb   : > { %4872 = vmatpush.bf16.msra.mxu1 %v4788_v47 }
 0x1be   : > { %4875 = vmatpush.bf16.msra.mxu3 %v4787_v12  ;;  %1764 = vmatpush.bf16.msrb.mxu0 %v4787_v12 }
 0x1bf   : > { %4874 = vmatpush.bf16.msra.mxu1 %v4787_v12 }
 0x1c0   : > { %1391 = vrot.lane.b32.xlu1 %v1255_v5, %s4929_s23 }
 0x1c1   : > { %893 = vrot.lane.b32.xlu0 %v765_v6, %s4927_s21  ;;  %891 = vrot.lane.b32.xlu2 %v764_v7, %s4927_s21 }
 0x1c2   : > { %4877 = vmatpush.bf16.msra.mxu3 %v4786_v17  ;;  %1765 = vmatpush.bf16.msrb.mxu0 %v4786_v17 }
 0x1c3   : > { %4876 = vmatpush.bf16.msra.mxu1 %v4786_v17 }
 0x1c6   : > { %4879 = vmatpush.bf16.msra.mxu3 %v4785_v20  ;;  %1766 = vmatpush.bf16.msrb.mxu0 %v4785_v20 }
 0x1c7   : > { %4878 = vmatpush.bf16.msra.mxu1 %v4785_v20 }
 0x1c9   : > { %895 = vrot.lane.b32.xlu0 %v766_v11, %s4927_s21  ;;  %1393 = vrot.lane.b32.xlu2 %v1256_v51, %s4929_s23 }
 0x1ca   : > { %4881 = vmatpush.bf16.msra.mxu3 %v4784_v22  ;;  %1767 = vmatpush.bf16.msrb.mxu0 %v4784_v22 }
 0x1cb   : > { %4880 = vmatpush.bf16.msra.mxu1 %v4784_v22 }
 0x1ce   : > { %4883 = vmatpush.bf16.msra.mxu3 %v4783_v24  ;;  %1768 = vmatpush.bf16.msrb.mxu0 %v4783_v24 }
 0x1cf   : > { %4882 = vmatpush.bf16.msra.mxu1 %v4783_v24 }
 0x1d2   : > { %4885 = vmatpush.bf16.msra.mxu3 %v4782_v26  ;;  %1769 = vmatpush.bf16.msrb.mxu0 %v4782_v26 }
 0x1d3   : > { %4884 = vmatpush.bf16.msra.mxu1 %v4782_v26 }
 0x1d6   : > { %4887 = vmatpush.bf16.msra.mxu3 %v4781_v28  ;;  %1770 = vmatpush.bf16.msrb.mxu0 %v4781_v28 }
 0x1d7   : > { %4886 = vmatpush.bf16.msra.mxu1 %v4781_v28 }
 0x1f3   : > { %v1380_v13 = vpop.permute.xlu2 %1379 }
 0x1f4   : > { %1490 = vst.msk [vmem:[#allocation3 + $0x88] sm:$0xf] %vm1455_vm5, %v1380_v13 }
 0x1fb   : > { %v916_v30 = vpop.permute.xlu2 %915 }
 0x1fc   : > { %1017 = vst.msk [vmem:[#allocation2 + $0x158] sm:$0xff] %vm973_vm3, %v916_v30 }
 0x203   : > { %v1386_v35 = vpop.permute.xlu2 %1385  ;;  %v1209_v37 = vld [vmem:[#allocation2 + $0x151] sm:$0xff] }
 0x204   : > { %1493 = vst.msk [vmem:[#allocation3 + $0x94] sm:$0xf] %vm1455_vm5, %v1386_v35  ;;  %v1257_v39 = vpack.c.bf16 %v1209_v37, %v1209_v37  ;;  %v1065_v45 = vld [vmem:[#allocation2 + $0x158] sm:$0xff] }
 0x205   : > { %v1113_v48 = vpack.c.bf16 %v1065_v45, %v1065_v45  ;;  %v733_v45 = vld [vmem:[%s5188_s20] sm:$0xff] }
 0x206   : > { %1395 = vrot.lane.b32.xlu1 %v1257_v39, %s4929_s23 }
 0x207   : > { %1162 = vst.msk [vmem:[#allocation3 + $0xac] sm:$0xf] %vm1118_vm4, %v1113_v48  ;;  %v735_v48 = vld [vmem:[%s5188_s20 + $0x10] sm:$0xff] }
 0x20b   : > { %v922_v41 = vpop.permute.xlu2 %921  ;;  %v1382_v42 = vpop.permute.xlu0 %1381 }
 0x20c   : > { %1491 = vst.msk [vmem:[#allocation3 + $0x8c] sm:$0xf] %vm1455_vm5, %v1382_v42 }
 0x212   : > { %v1384_v49 = vpop.permute.xlu1 %1383 }
 0x213   : > { %1492 = vst.msk [vmem:[#allocation3 + $0x90] sm:$0xf] %vm1455_vm5, %v1384_v49  ;;  %v918_v50 = vpop.permute.xlu0 %917  ;;  %v678_v52 = vpop.permute.xlu2 %677  ;;  %v5339_v53 = vld [vmem:[#allocation3 + $0x88] sm:$0xff]  ;;  %v737_v49 = vld [vmem:[%s5188_s20 + $0x20] sm:$0xff] }
 0x214   : > { %1018 = vst.msk [vmem:[#allocation2 + $0x160] sm:$0xff] %vm973_vm3, %v918_v50  ;;  %1851 = vmatmul.bf16.vlgmr.msra.gmra.mxu3 %v5339_v53  ;;  %v738_v50 = vld [vmem:[%s5188_s20 + $0x28] sm:$0xff] }
 0x215   : > { %683 = vst.msk [vmem:[#allocation2 + $0xf0] sm:$0xff] %vm377_vm0, %v678_v52  ;;  %v736_v52 = vld [vmem:[%s5188_s20 + $0x18] sm:$0xff] }
 0x21a   : > { %v920_v54 = vpop.permute.xlu1 %919  ;;  %v5350_v1 = vld [vmem:[#allocation3 + $0x90] sm:$0xff] }
 0x21b   : > { %1019 = vst.msk [vmem:[#allocation2 + $0x168] sm:$0xff] %vm973_vm3, %v920_v54  ;;  %v726_v55 = vpop.permute.xlu0 %725  ;;  %v1210_v56 = vld [vmem:[#allocation2 + $0x159] sm:$0xff]  ;;  %v892_v57 = vpop.permute.xlu2 %891 }
 0x21c   : > { %v1066_v58 = vld [vmem:[#allocation2 + $0x160] sm:$0xff]  ;;  %731 = vst.msk [vmem:[#allocation2 + $0x170] sm:$0xff] %vm377_vm0, %v726_v55  ;;  %v1258_v59 = vpack.c.bf16 %v1210_v56, %v1210_v56  ;;  %v740_v54 = vld [vmem:[%s5188_s20 + $0x38] sm:$0xff]  ;;  %v743_v56 = vld [vmem:[%s5188_s20 + $0x50] sm:$0xff] }
 0x21d   : > { %v1114_v60 = vpack.c.bf16 %v1066_v58, %v1066_v58  ;;  %1020 = vst.msk [vmem:[#allocation2 + $0x170] sm:$0xff] %vm973_vm3, %v922_v41  ;;  %v741_v55 = vld [vmem:[%s5188_s20 + $0x40] sm:$0xff] }
 0x21e   : > { %1397 = vrot.lane.b32.xlu2 %v1258_v59, %s4929_s23  ;;  %v744_v59 = vld [vmem:[%s5188_s20 + $0x58] sm:$0xff] }
 0x21f   : > { %1163 = vst.msk [vmem:[#allocation3 + $0xb0] sm:$0xf] %vm1118_vm4, %v1114_v60  ;;  %v4776_v60 = vld [vmem:[%s6239_s4 + $0x20] sm:$0xff] }
 0x222   : > { %v1390_v61 = vpop.permute.xlu1 %1389  ;;  %v1211_v62 = vld [vmem:[#allocation2 + $0x161] sm:$0xff] }
 0x223   : > { %1495 = vst.msk [vmem:[#allocation3 + $0x9c] sm:$0xf] %vm1455_vm5, %v1390_v61  ;;  %v1388_v63 = vpop.permute.xlu0 %1387  ;;  %v1259_v0 = vpack.c.bf16 %v1211_v62, %v1211_v62  ;;  %v1394_v2 = vpop.permute.xlu2 %1393  ;;  %v1067_v6 = vld [vmem:[#allocation2 + $0x168] sm:$0xff]  ;;  %v4775_v61 = vld [vmem:[%s6239_s4 + $0x18] sm:$0xff]  ;;  %v4774_v62 = vld [vmem:[%s6239_s4 + $0x10] sm:$0xff] }
 0x224   : > { %1494 = vst.msk [vmem:[#allocation3 + $0x98] sm:$0xf] %vm1455_vm5, %v1388_v63  ;;  %v1212_v3 = vld [vmem:[#allocation2 + $0x169] sm:$0xff]  ;;  %1856 = vmatmul.bf16.gmra.mxu3 %v5350_v1  ;;  %v1115_v8 = vpack.c.bf16 %v1067_v6, %v1067_v6 }
 0x225   : > { %v1068_v4 = vld [vmem:[#allocation2 + $0x170] sm:$0xff]  ;;  %1399 = vrot.lane.b32.xlu0 %v1259_v0, %s4929_s23  ;;  %v1260_v5 = vpack.c.bf16 %v1212_v3, %v1212_v3  ;;  %1497 = vst.msk [vmem:[#allocation3 + $0xa4] sm:$0xf] %vm1455_vm5, %v1394_v2  ;;  %v4773_v0 = vld [vmem:[%s6239_s4 + $0x8] sm:$0xff]  ;;  %v4772_v2 = vld [vmem:[%s6239_s4] sm:$0xff] }
 0x226   : > { %v1116_v7 = vpack.c.bf16 %v1068_v4, %v1068_v4  ;;  %1164 = vst.msk [vmem:[#allocation3 + $0xb4] sm:$0xf] %vm1118_vm4, %v1115_v8 }
 0x227   : > { %1401 = vrot.lane.b32.xlu1 %v1260_v5, %s4929_s23 }
 0x228   : > { %1165 = vst.msk [vmem:[#allocation3 + $0xb8] sm:$0xf] %vm1118_vm4, %v1116_v7 }
 0x22a   : > { %v890_v9 = vpop.permute.xlu1 %889 }
 0x22b   : > { %v680_v10 = vpop.permute.xlu0 %679  ;;  %1004 = vst.msk [vmem:[#allocation2 + $0xf0] sm:$0xff] %vm973_vm3, %v890_v9  ;;  %v5362_v47 = vld [vmem:[#allocation3 + $0x98] sm:$0xff] }
 0x22c   : > { %684 = vst.msk [vmem:[#allocation2 + $0xf8] sm:$0xf] %vm589_vm2, %v680_v10 }
 0x22d   : > { %1005 = vst.msk [vmem:[#allocation2 + $0xf8] sm:$0xff] %vm973_vm3, %v892_v57 }
 0x232   : > { %v1392_v51 = vpop.permute.xlu1 %1391  ;;  %v1052_v41 = vld [vmem:[#allocation2 + $0xf0] sm:$0xff] }
 0x233   : > { %v894_v11 = vpop.permute.xlu0 %893  ;;  %1496 = vst.msk [vmem:[#allocation3 + $0xa0] sm:$0xf] %vm1455_vm5, %v1392_v51  ;;  %v1100_v44 = vpack.c.bf16 %v1052_v41, %v1052_v41 }
 0x234   : > { %1006 = vst.msk [vmem:[#allocation2 + $0x100] sm:$0xff] %vm973_vm3, %v894_v11  ;;  %v1197_v12 = vld [vmem:[#allocation2 + $0xf1] sm:$0xff]  ;;  %1861 = vmatmul.bf16.gmra.mxu3 %v5362_v47 }
 0x235   : > { %v1053_v14 = vld [vmem:[#allocation2 + $0xf8] sm:$0xff]  ;;  %v1245_v17 = vpack.c.bf16 %v1197_v12, %v1197_v12  ;;  %1149 = vst.msk [vmem:[#allocation3 + $0x78] sm:$0xf] %vm1118_vm4, %v1100_v44 }
 0x236   : > { %v1101_v20 = vpack.c.bf16 %v1053_v14, %v1053_v14 }
 0x237   : > { %1371 = vrot.lane.b32.xlu2 %v1245_v17, %s4929_s23 }
 0x238   : > { %1150 = vst.msk [vmem:[#allocation3 + $0x7c] sm:$0xf] %vm1118_vm4, %v1101_v20 }
 0x23a   : > { %v5372_v30 = vld [vmem:[#allocation3 + $0xa0] sm:$0xff] }
 0x23b   : > { %v896_v22 = vpop.permute.xlu0 %895  ;;  %v1198_v24 = vld [vmem:[#allocation2 + $0xf9] sm:$0xff] }
 0x23c   : > { %v1054_v26 = vld [vmem:[#allocation2 + $0x100] sm:$0xff]  ;;  %1007 = vst.msk [vmem:[#allocation2 + $0x108] sm:$0xff] %vm973_vm3, %v896_v22  ;;  %v1246_v13 = vpack.c.bf16 %v1198_v24, %v1198_v24 }
 0x23d   : > { %v1102_v28 = vpack.c.bf16 %v1054_v26, %v1054_v26 }
 0x23e   : > { %1373 = vrot.lane.b32.xlu0 %v1246_v13, %s4929_s23 }
 0x23f   : > { %1151 = vst.msk [vmem:[#allocation3 + $0x80] sm:$0xf] %vm1118_vm4, %v1102_v28 }
 0x243   : > { %v1199_v32 = vld [vmem:[#allocation2 + $0x101] sm:$0xff]  ;;  %v1200_v34 = vld [vmem:[#allocation2 + $0x109] sm:$0xff] }
 0x244   : > { %v1055_v35 = vld [vmem:[#allocation2 + $0x108] sm:$0xff]  ;;  %v1247_v37 = vpack.c.bf16 %v1199_v32, %v1199_v32  ;;  %v1248_v39 = vpack.c.bf16 %v1200_v34, %v1200_v34  ;;  %1866 = vmatmul.bf16.gmra.mxu3 %v5372_v30 }
 0x245   : > { %v1103_v42 = vpack.c.bf16 %v1055_v35, %v1055_v35 }
 0x246   : > { %1375 = vrot.lane.b32.xlu1 %v1247_v37, %s4929_s23  ;;  %1377 = vrot.lane.b32.xlu2 %v1248_v39, %s4929_s23 }
 0x247   : > { %1152 = vst.msk [vmem:[#allocation3 + $0x84] sm:$0xf] %vm1118_vm4, %v1103_v42  ;;  %593 = vrot.lane.b32.xlu0 %v5119_v18, %s4928_s22  ;;  %v739_v18 = vld [vmem:[%s5188_s20 + $0x30] sm:$0xff] }
 0x24e   : > { %829 = vrot.lane.b32.xlu1 %v733_v45, %s4927_s21  ;;  %831 = vrot.lane.b32.xlu2 %v734_v46, %s4927_s21 }
 0x24f   : > { %833 = vrot.lane.b32.xlu0 %v735_v48, %s4927_s21 }
 0x256   : > { %837 = vrot.lane.b32.xlu2 %v737_v49, %s4927_s21  ;;  %605 = vrot.lane.b32.xlu1 %v5126_v19, %s4928_s22  ;;  %v742_v19 = vld [vmem:[%s5188_s20 + $0x48] sm:$0xff] }
 0x257   : > { %839 = vrot.lane.b32.xlu0 %v738_v50, %s4927_s21  ;;  %v745_v50 = vld [vmem:[%s5188_s20 + $0x60] sm:$0xff] }
 0x25e   : > { %841 = vrot.lane.b32.xlu1 %v739_v18, %s4927_s21  ;;  %595 = vrot.lane.b32.xlu2 %v5099_v15, %s4928_s22 }
 0x25f   : > { %835 = vrot.lane.b32.xlu0 %v736_v52, %s4927_s21 }
 0x266   : > { %607 = vrot.lane.b32.xlu1 %v5138_v21, %s4928_s22  ;;  %843 = vrot.lane.b32.xlu2 %v740_v54, %s4927_s21  ;;  %v4779_v21 = vld [vmem:[%s6239_s4 + $0x38] sm:$0xff] }
 0x267   : > { %845 = vrot.lane.b32.xlu0 %v741_v55, %s4927_s21  ;;  %4888 = vmatpush.bf16.msrb.mxu3 %v4779_v21 }
 0x268   : > { %1936 = vmatpush.bf16.msra.mxu2 %v4779_v21 }
 0x26e   : > { %617 = vrot.lane.b32.xlu1 %v5143_v23, %s4928_s22  ;;  %847 = vrot.lane.b32.xlu2 %v742_v19, %s4927_s21  ;;  %v4778_v23 = vld [vmem:[%s6239_s4 + $0x30] sm:$0xff] }
 0x26f   : > { %849 = vrot.lane.b32.xlu0 %v743_v56, %s4927_s21  ;;  %4889 = vmatpush.bf16.msrb.mxu3 %v4778_v23 }
 0x270   : > { %1937 = vmatpush.bf16.msra.mxu2 %v4778_v23 }
 0x276   : > { %619 = vrot.lane.b32.xlu1 %v5148_v25, %s4928_s22  ;;  %v4777_v25 = vld [vmem:[%s6239_s4 + $0x28] sm:$0xff] }
 0x277   : > { %4890 = vmatpush.bf16.msrb.mxu3 %v4777_v25  ;;  %1938 = vmatpush.bf16.msra.mxu2 %v4777_v25 }
 0x278   : > { %v1396_v15 = vpop.permute.xlu1 %1395  ;;  %v1398_v57 = vpop.permute.xlu2 %1397 }
 0x279   : > { %1498 = vst.msk [vmem:[#allocation3 + $0xa8] sm:$0xf] %vm1455_vm5, %v1396_v15 }
 0x27a   : > { %1499 = vst.msk [vmem:[#allocation3 + $0xac] sm:$0xf] %vm1455_vm5, %v1398_v57 }
 0x27b   : > { %4891 = vmatpush.bf16.msrb.mxu3 %v4776_v60  ;;  %1939 = vmatpush.bf16.msra.mxu2 %v4776_v60 }
 0x27e   : > { %851 = vrot.lane.b32.xlu1 %v744_v59, %s4927_s21 }
 0x27f   : > { %4892 = vmatpush.bf16.msrb.mxu3 %v4775_v61  ;;  %1940 = vmatpush.bf16.msra.mxu2 %v4775_v61 }
 0x281   : > { %v5421_v58 = vld [vmem:[#allocation3 + $0xa8] sm:$0xff] }
 0x282   : > { %1871 = vmatmul.bf16.gmra.mxu3 %v5421_v58 }
 0x283   : > { %4893 = vmatpush.bf16.msrb.mxu3 %v4774_v62  ;;  %1941 = vmatpush.bf16.msra.mxu2 %v4774_v62 }
 0x287   : > { %4894 = vmatpush.bf16.msrb.mxu3 %v4773_v0  ;;  %1942 = vmatpush.bf16.msra.mxu2 %v4773_v0 }
 0x28b   : > { %4895 = vmatpush.bf16.msrb.mxu3 %v4772_v2  ;;  %1943 = vmatpush.bf16.msra.mxu2 %v4772_v2  ;;  %v747_v2 = vld [vmem:[%s5188_s20 + $0x70] sm:$0xff] }
 0x291   : > { %v1372_v63 = vpop.permute.xlu2 %1371 }
 0x292   : > { %1486 = vst.msk [vmem:[#allocation3 + $0x78] sm:$0xf] %vm1455_vm5, %v1372_v63 }
 0x297   : > { %v1400_v3 = vpop.permute.xlu0 %1399  ;;  %v5480_v61 = vpop.f32.mrf.mxu3 }
 0x298   : > { %1500 = vst.msk [vmem:[#allocation3 + $0xb0] sm:$0xf] %vm1455_vm5, %v1400_v3 }
 0x299   : > { %v1402_v4 = vpop.permute.xlu1 %1401 }
 0x29a   : > { %1501 = vst.msk [vmem:[#allocation3 + $0xb4] sm:$0xf] %vm1455_vm5, %v1402_v4 }
 0x2a0   : > { %v1378_v5 = vpop.permute.xlu2 %1377 }
 0x2a1   : > { %1489 = vst.msk [vmem:[#allocation3 + $0x84] sm:$0xf] %vm1455_vm5, %v1378_v5  ;;  %v4780_v6 = vld [vmem:[#allocation3 + $0xb0] sm:$0xff] }
 0x2a2   : > { %1876 = vmatmul.bf16.gmra.mxu3 %v4780_v6 }
 0x2a8   : > { %v832_v7 = vpop.permute.xlu2 %831 }
 0x2a9   : > { %975 = vst.msk [vmem:[#allocation2 + $0x8] sm:$0xff] %vm973_vm3, %v832_v7  ;;  %v5489_v7 = vpop.f32.mrf.mxu3 }
 0x2b0   : > { %v1374_v8 = vpop.permute.xlu0 %1373  ;;  %v838_v9 = vpop.permute.xlu2 %837  ;;  %v1023_v14 = vld [vmem:[#allocation2 + $0x8] sm:$0xff] }
 0x2b1   : > { %1487 = vst.msk [vmem:[#allocation3 + $0x7c] sm:$0xf] %vm1455_vm5, %v1374_v8  ;;  %v1071_v17 = vpack.c.bf16 %v1023_v14, %v1023_v14  ;;  %v5502_v14 = vpop.f32.mrf.mxu3 }
 0x2b2   : > { %978 = vst.msk [vmem:[#allocation2 + $0x20] sm:$0xff] %vm973_vm3, %v838_v9 }
 0x2b3   : > { %1120 = vst.msk [vmem:[#allocation3 + $0x4] sm:$0xf] %vm1118_vm4, %v1071_v17 }
 0x2b8   : > { %v1376_v10 = vpop.permute.xlu1 %1375  ;;  %v596_v51 = vpop.permute.xlu2 %595  ;;  %v4765_v11 = vld [vmem:[#allocation3 + $0x78] sm:$0xff] }
 0x2b9   : > { %1488 = vst.msk [vmem:[#allocation3 + $0x80] sm:$0xf] %vm1455_vm5, %v1376_v10  ;;  %v594_v12 = vpop.permute.xlu0 %593  ;;  %2019 = vmatmul.bf16.vlgmr.msrb.gmra.mxu3 %v4765_v11  ;;  %v1026_v24 = vld [vmem:[#allocation2 + $0x20] sm:$0xff]  ;;  %v4818_v10 = vld [vmem:[%s6239_s4 + $0xb8] sm:$0xff] }
 0x2ba   : > { %600 = vst.msk [vmem:[#allocation2 + $0x18] sm:$0xf] %vm589_vm2, %v596_v51  ;;  %v1074_v26 = vpack.c.bf16 %v1026_v24, %v1026_v24  ;;  %v748_v51 = vld [vmem:[%s5188_s20 + $0x78] sm:$0xff]  ;;  %v749_v11 = vld [vmem:[%s5188_s20 + $0x80] sm:$0xff]  ;;  %2296 = vmatpush.bf16.msra.mxu3 %v4818_v10  ;;  %v750_v24 = vld [vmem:[%s5188_s20 + $0x88] sm:$0xff] }
 0x2bb   : > { %599 = vst.msk [vmem:[#allocation2 + $0x10] sm:$0xff] %vm377_vm0, %v594_v12 }
 0x2bc   : > { %1123 = vst.msk [vmem:[#allocation3 + $0x10] sm:$0xf] %vm1118_vm4, %v1074_v26  ;;  %v4817_v26 = vld [vmem:[%s6239_s4 + $0xb0] sm:$0xff] }
 0x2be   : > { %2297 = vmatpush.bf16.msra.mxu3 %v4817_v26 }
 0x2c0   : > { %v830_v20 = vpop.permute.xlu1 %829  ;;  %v844_v13 = vpop.permute.xlu2 %843  ;;  %v4766_v32 = vld [vmem:[#allocation3 + $0x80] sm:$0xff] }
 0x2c1   : > { %974 = vst.msk [vmem:[#allocation2] sm:$0xff] %vm973_vm3, %v830_v20  ;;  %v834_v22 = vpop.permute.xlu0 %833 }
 0x2c2   : > { %976 = vst.msk [vmem:[#allocation2 + $0x10] sm:$0xff] %vm973_vm3, %v834_v22 }
 0x2c8   : > { %v606_v28 = vpop.permute.xlu1 %605  ;;  %v1167_v34 = vld [vmem:[#allocation2 + $0x1] sm:$0xff]  ;;  %v848_v48 = vpop.permute.xlu2 %847 }
 0x2c9   : > { %v1022_v35 = vld [vmem:[#allocation2] sm:$0xff]  ;;  %611 = vst.msk [vmem:[#allocation2 + $0x30] sm:$0xff] %vm377_vm0, %v606_v28  ;;  %v840_v37 = vpop.permute.xlu0 %839  ;;  %v1168_v39 = vld [vmem:[#allocation2 + $0x9] sm:$0xff]  ;;  %v1215_v41 = vpack.c.bf16 %v1167_v34, %v1167_v34  ;;  %2024 = vmatmul.bf16.gmra.mxu3 %v4766_v32 }
 0x2ca   : > { %v1070_v42 = vpack.c.bf16 %v1022_v35, %v1022_v35  ;;  %v1024_v44 = vld [vmem:[#allocation2 + $0x10] sm:$0xff]  ;;  %979 = vst.msk [vmem:[#allocation2 + $0x28] sm:$0xff] %vm973_vm3, %v840_v37  ;;  %v1216_v45 = vpack.c.bf16 %v1168_v39, %v1168_v39  ;;  %v752_v39 = vld [vmem:[%s5188_s20 + $0x98] sm:$0xff] }
 0x2cb   : > { %v1072_v46 = vpack.c.bf16 %v1024_v44, %v1024_v44  ;;  %1311 = vrot.lane.b32.xlu2 %v1215_v41, %s4929_s23  ;;  %983 = vst.msk [vmem:[#allocation2 + $0x48] sm:$0xff] %vm973_vm3, %v848_v48  ;;  %v751_v34 = vld [vmem:[%s5188_s20 + $0x90] sm:$0xff] }
 0x2cc   : > { %1119 = vst.msk [vmem:[#allocation3] sm:$0xf] %vm1118_vm4, %v1070_v42  ;;  %1313 = vrot.lane.b32.xlu0 %v1216_v45, %s4929_s23  ;;  %v4816_v42 = vld [vmem:[%s6239_s4 + $0xa8] sm:$0xff] }
 0x2cd   : > { %1121 = vst.msk [vmem:[#allocation3 + $0x8] sm:$0xf] %vm1118_vm4, %v1072_v46  ;;  %2298 = vmatpush.bf16.msra.mxu3 %v4816_v42 }
 0x2d0   : > { %v842_v49 = vpop.permute.xlu1 %841 }
 0x2d1   : > { %980 = vst.msk [vmem:[#allocation2 + $0x30] sm:$0xff] %vm973_vm3, %v842_v49  ;;  %v836_v18 = vpop.permute.xlu0 %835  ;;  %v1171_v52 = vld [vmem:[#allocation2 + $0x21] sm:$0xff] }
 0x2d2   : > { %v1027_v54 = vld [vmem:[#allocation2 + $0x28] sm:$0xff]  ;;  %977 = vst.msk [vmem:[#allocation2 + $0x18] sm:$0xff] %vm973_vm3, %v836_v18  ;;  %v1219_v55 = vpack.c.bf16 %v1171_v52, %v1171_v52  ;;  %v4815_v49 = vld [vmem:[%s6239_s4 + $0xa0] sm:$0xff] }
 0x2d3   : > { %v1075_v19 = vpack.c.bf16 %v1027_v54, %v1027_v54  ;;  %853 = vrot.lane.b32.xlu2 %v745_v50, %s4927_s21  ;;  %v1031_v45 = vld [vmem:[#allocation2 + $0x48] sm:$0xff]  ;;  %2299 = vmatpush.bf16.msra.mxu3 %v4815_v49 }
 0x2d4   : > { %1319 = vrot.lane.b32.xlu0 %v1219_v55, %s4929_s23  ;;  %v1079_v48 = vpack.c.bf16 %v1031_v45, %v1031_v45  ;;  %v4814_v55 = vld [vmem:[%s6239_s4 + $0x98] sm:$0xff] }
 0x2d5   : > { %1124 = vst.msk [vmem:[#allocation3 + $0x14] sm:$0xf] %vm1118_vm4, %v1075_v19 }
 0x2d6   : > { %1128 = vst.msk [vmem:[#allocation3 + $0x24] sm:$0xf] %vm1118_vm4, %v1079_v48 }
 0x2d7   : > { %2300 = vmatpush.bf16.msra.mxu3 %v4814_v55 }
 0x2d8   : > { %v608_v56 = vpop.permute.xlu1 %607  ;;  %v1172_v15 = vld [vmem:[#allocation2 + $0x29] sm:$0xff] }
 0x2d9   : > { %612 = vst.msk [vmem:[#allocation2 + $0x38] sm:$0xf] %vm589_vm2, %v608_v56  ;;  %v1220_v57 = vpack.c.bf16 %v1172_v15, %v1172_v15  ;;  %v1169_v21 = vld [vmem:[#allocation2 + $0x11] sm:$0xff]  ;;  %v846_v23 = vpop.permute.xlu0 %845  ;;  %2029 = vmatmul.bf16.gmra.mxu3 %v5339_v53  ;;  %v1170_v62 = vld [vmem:[#allocation2 + $0x19] sm:$0xff]  ;;  %v746_v53 = vld [vmem:[%s5188_s20 + $0x68] sm:$0xff] }
 0x2da   : > { %v1025_v25 = vld [vmem:[#allocation2 + $0x18] sm:$0xff]  ;;  %v1217_v59 = vpack.c.bf16 %v1169_v21, %v1169_v21  ;;  %981 = vst.msk [vmem:[#allocation2 + $0x38] sm:$0xff] %vm973_vm3, %v844_v13  ;;  %v1218_v0 = vpack.c.bf16 %v1170_v62, %v1170_v62  ;;  %v5517_v13 = vpop.f32.mrf.mxu3  ;;  %v4812_v15 = vld [vmem:[%s6239_s4 + $0x88] sm:$0xff] }
 0x2db   : > { %v1073_v60 = vpack.c.bf16 %v1025_v25, %v1025_v25  ;;  %1321 = vrot.lane.b32.xlu1 %v1220_v57, %s4929_s23  ;;  %629 = vrot.lane.b32.xlu2 %v5153_v27, %s4928_s22  ;;  %982 = vst.msk [vmem:[#allocation2 + $0x40] sm:$0xff] %vm973_vm3, %v846_v23  ;;  %v4811_v57 = vld [vmem:[%s6239_s4 + $0x80] sm:$0xff] }
 0x2dc   : > { %1315 = vrot.lane.b32.xlu0 %v1217_v59, %s4929_s23 }
 0x2dd   : > { %1122 = vst.msk [vmem:[#allocation3 + $0xc] sm:$0xf] %vm1118_vm4, %v1073_v60 }
 0x2e0   : > { %v618_v63 = vpop.permute.xlu1 %617 }
 0x2e1   : > { %623 = vst.msk [vmem:[#allocation2 + $0x50] sm:$0xff] %vm377_vm0, %v618_v63  ;;  %v850_v3 = vpop.permute.xlu0 %849  ;;  %v1173_v27 = vld [vmem:[#allocation2 + $0x31] sm:$0xff] }
 0x2e2   : > { %984 = vst.msk [vmem:[#allocation2 + $0x50] sm:$0xff] %vm973_vm3, %v850_v3  ;;  %v1174_v4 = vld [vmem:[#allocation2 + $0x39] sm:$0xff]  ;;  %v1221_v5 = vpack.c.bf16 %v1173_v27, %v1173_v27  ;;  %v1175_v9 = vld [vmem:[#allocation2 + $0x41] sm:$0xff]  ;;  %v5524_v37 = vpop.f32.mrf.mxu3 }
 0x2e3   : > { %1317 = vrot.lane.b32.xlu1 %v1218_v0, %s4929_s23  ;;  %855 = vrot.lane.b32.xlu2 %v746_v53, %s4927_s21  ;;  %v1222_v6 = vpack.c.bf16 %v1174_v4, %v1174_v4  ;;  %v1223_v12 = vpack.c.bf16 %v1175_v9, %v1175_v9  ;;  %v1029_v35 = vld [vmem:[#allocation2 + $0x38] sm:$0xff]  ;;  %v753_v53 = vld [vmem:[%s5188_s20 + $0xa0] sm:$0xff] }
 0x2e4   : > { %857 = vrot.lane.b32.xlu0 %v747_v2, %s4927_s21 }
 0x2e8   : > { %v620_v8 = vpop.permute.xlu1 %619 }
 0x2e9   : > { %624 = vst.msk [vmem:[#allocation2 + $0x58] sm:$0xf] %vm589_vm2, %v620_v8  ;;  %2034 = vmatmul.bf16.gmra.mxu3 %v5350_v1  ;;  %v1028_v1 = vld [vmem:[#allocation2 + $0x30] sm:$0xff] }
 0x2ea   : > { %v1076_v17 = vpack.c.bf16 %v1028_v1, %v1028_v1  ;;  %v5535_v44 = vpop.f32.mrf.mxu3  ;;  %v1032_v46 = vld [vmem:[#allocation2 + $0x50] sm:$0xff] }
 0x2eb   : > { %1323 = vrot.lane.b32.xlu1 %v1221_v5, %s4929_s23  ;;  %1325 = vrot.lane.b32.xlu2 %v1222_v6, %s4929_s23 }
 0x2ec   : > { %631 = vrot.lane.b32.xlu0 %v5158_v29, %s4928_s22  ;;  %v1176_v29 = vld [vmem:[#allocation2 + $0x49] sm:$0xff]  ;;  %1125 = vst.msk [vmem:[#allocation3 + $0x18] sm:$0xf] %vm1118_vm4, %v1076_v17 }
 0x2ed   : > { %v1224_v22 = vpack.c.bf16 %v1176_v29, %v1176_v29 }
 0x2f0   : > { %v852_v20 = vpop.permute.xlu1 %851 }
 0x2f1   : > { %985 = vst.msk [vmem:[#allocation2 + $0x58] sm:$0xff] %vm973_vm3, %v852_v20 }
 0x2f3   : > { %859 = vrot.lane.b32.xlu1 %v748_v51, %s4927_s21  ;;  %861 = vrot.lane.b32.xlu2 %v749_v11, %s4927_s21 }
 0x2f4   : > { %1327 = vrot.lane.b32.xlu0 %v1223_v12, %s4929_s23  ;;  %v754_v12 = vld [vmem:[%s5188_s20 + $0xa8] sm:$0xff] }
 0x2f8   : > { %v1177_v28 = vld [vmem:[#allocation2 + $0x51] sm:$0xff] }
 0x2f9   : > { %2039 = vmatmul.bf16.gmra.mxu3 %v5362_v47  ;;  %v1225_v32 = vpack.c.bf16 %v1177_v28, %v1177_v28  ;;  %v1077_v47 = vpack.c.bf16 %v1029_v35, %v1029_v35  ;;  %v1033_v52 = vld [vmem:[#allocation2 + $0x58] sm:$0xff] }
 0x2fa   : > { %v1081_v54 = vpack.c.bf16 %v1033_v52, %v1033_v52 }
 0x2fb   : > { %1329 = vrot.lane.b32.xlu1 %v1224_v22, %s4929_s23  ;;  %641 = vrot.lane.b32.xlu2 %v5163_v31, %s4928_s22  ;;  %1126 = vst.msk [vmem:[#allocation3 + $0x1c] sm:$0xf] %vm1118_vm4, %v1077_v47  ;;  %v1030_v31 = vld [vmem:[#allocation2 + $0x40] sm:$0xff] }
 0x2fc   : > { %863 = vrot.lane.b32.xlu0 %v750_v24, %s4927_s21  ;;  %v1078_v41 = vpack.c.bf16 %v1030_v31, %v1030_v31  ;;  %1130 = vst.msk [vmem:[#allocation3 + $0x2c] sm:$0xf] %vm1118_vm4, %v1081_v54 }
 0x2fe   : > { %1127 = vst.msk [vmem:[#allocation3 + $0x20] sm:$0xf] %vm1118_vm4, %v1078_v41 }
 0x303   : > { %865 = vrot.lane.b32.xlu1 %v751_v34, %s4927_s21  ;;  %1331 = vrot.lane.b32.xlu2 %v1225_v32, %s4929_s23 }
 0x309   : > { %2044 = vmatmul.bf16.gmra.mxu3 %v5372_v30  ;;  %v1080_v30 = vpack.c.bf16 %v1032_v46, %v1032_v46 }
 0x30b   : > { %643 = vrot.lane.b32.xlu1 %v5168_v33, %s4928_s22  ;;  %867 = vrot.lane.b32.xlu2 %v752_v39, %s4927_s21  ;;  %1129 = vst.msk [vmem:[#allocation3 + $0x28] sm:$0xf] %vm1118_vm4, %v1080_v30  ;;  %v5539_v33 = vpop.f32.mrf.mxu3  ;;  %v755_v30 = vld [vmem:[%s5188_s20 + $0xb0] sm:$0xff] }
 0x313   : > { %v5545_v50 = vpop.f32.mrf.mxu3 }
 0x319   : > { %2049 = vmatmul.bf16.gmra.mxu3 %v5421_v58  ;;  %v4813_v58 = vld [vmem:[%s6239_s4 + $0x90] sm:$0xff] }
 0x31a   : > { %2301 = vmatpush.bf16.msra.mxu3 %v4813_v58 }
 0x31b   : > { %v5555_v19 = vpop.f32.mrf.mxu3 }
 0x31e   : > { %2302 = vmatpush.bf16.msra.mxu3 %v4812_v15 }
 0x322   : > { %2303 = vmatpush.bf16.msra.mxu3 %v4811_v57  ;;  %v756_v57 = vld [vmem:[%s5188_s20 + $0xb8] sm:$0xff] }
 0x323   : > { %v5564_v59 = vpop.f32.mrf.mxu3 }
 0x325   : > { %v1312_v18 = vpop.permute.xlu2 %1311 }
 0x326   : > { %1456 = vst.msk [vmem:[#allocation3] sm:$0xf] %vm1455_vm5, %v1312_v18 }
 0x32b   : > { %v5570_v0 = vpop.f32.mrf.mxu3 }
 0x32d   : > { %v854_v56 = vpop.permute.xlu2 %853 }
 0x32e   : > { %986 = vst.msk [vmem:[#allocation2 + $0x60] sm:$0xff] %vm973_vm3, %v854_v56 }
 0x333   : > { %v5577_v10 = vpop.f32.mrf.mxu3 }
 0x335   : > { %v630_v21 = vpop.permute.xlu2 %629  ;;  %v1178_v23 = vld [vmem:[#allocation2 + $0x59] sm:$0xff] }
 0x336   : > { %v1034_v25 = vld [vmem:[#allocation2 + $0x60] sm:$0xff]  ;;  %635 = vst.msk [vmem:[#allocation2 + $0x70] sm:$0xff] %vm377_vm0, %v630_v21  ;;  %v1226_v60 = vpack.c.bf16 %v1178_v23, %v1178_v23 }
 0x337   : > { %v1082_v62 = vpack.c.bf16 %v1034_v25, %v1034_v25  ;;  %v757_v25 = vld [vmem:[%s5188_s20 + $0xc0] sm:$0xff] }
 0x338   : > { %1333 = vrot.lane.b32.xlu0 %v1226_v60, %s4929_s23 }
 0x339   : > { %1131 = vst.msk [vmem:[#allocation3 + $0x30] sm:$0xf] %vm1118_vm4, %v1082_v62 }
 0x33c   : > { %v5586_v17 = vpop.f32.mrf.mxu3 }
 0x33d   : > { %v856_v63 = vpop.permute.xlu2 %855 }
 0x33e   : > { %v1314_v2 = vpop.permute.xlu0 %1313  ;;  %987 = vst.msk [vmem:[#allocation2 + $0x68] sm:$0xff] %vm973_vm3, %v856_v63 }
 0x33f   : > { %1457 = vst.msk [vmem:[#allocation3 + $0x4] sm:$0xf] %vm1455_vm5, %v1314_v2 }
 0x340   : > { %869 = vrot.lane.b32.xlu0 %v753_v53, %s4927_s21 }
 0x344   : > { %v5593_v26 = vpop.f32.mrf.mxu3 }
 0x345   : > { %v1326_v3 = vpop.permute.xlu2 %1325  ;;  %v1179_v27 = vld [vmem:[#allocation2 + $0x61] sm:$0xff] }
 0x346   : > { %v1035_v4 = vld [vmem:[#allocation2 + $0x68] sm:$0xff]  ;;  %v1320_v5 = vpop.permute.xlu0 %1319  ;;  %1463 = vst.msk [vmem:[#allocation3 + $0x1c] sm:$0xf] %vm1455_vm5, %v1326_v3  ;;  %v1227_v6 = vpack.c.bf16 %v1179_v27, %v1179_v27 }
 0x347   : > { %v4750_v8 = vld [vmem:[#allocation3] sm:$0xff]  ;;  %v1083_v9 = vpack.c.bf16 %v1035_v4, %v1035_v4  ;;  %1460 = vst.msk [vmem:[#allocation3 + $0x10] sm:$0xf] %vm1455_vm5, %v1320_v5 }
 0x348   : > { %653 = vrot.lane.b32.xlu0 %v5175_v36, %s4928_s22  ;;  %1335 = vrot.lane.b32.xlu1 %v1227_v6, %s4929_s23  ;;  %v758_v4 = vld [vmem:[%s5188_s20 + $0xc8] sm:$0xff]  ;;  %v759_v6 = vld [vmem:[%s5188_s20 + $0xd0] sm:$0xff] }
 0x349   : > { %1132 = vst.msk [vmem:[#allocation3 + $0x34] sm:$0xf] %vm1118_vm4, %v1083_v9  ;;  %1944 = vmatmul.bf16.vlgmr.msra.gmra.mxu2 %v4750_v8 }
 0x34c   : > { %v5600_v42 = vpop.f32.mrf.mxu3 }
 0x34d   : > { %v1322_v51 = vpop.permute.xlu1 %1321  ;;  %v862_v11 = vpop.permute.xlu2 %861 }
 0x34e   : > { %1461 = vst.msk [vmem:[#allocation3 + $0x14] sm:$0xf] %vm1455_vm5, %v1322_v51  ;;  %v1316_v1 = vpop.permute.xlu0 %1315 }
 0x34f   : > { %1458 = vst.msk [vmem:[#allocation3 + $0x8] sm:$0xf] %vm1455_vm5, %v1316_v1 }
 0x350   : > { %990 = vst.msk [vmem:[#allocation2 + $0x80] sm:$0xff] %vm973_vm3, %v862_v11  ;;  %871 = vrot.lane.b32.xlu1 %v754_v12, %s4927_s21 }
 0x354   : > { %v5606_v55 = vpop.f32.mrf.mxu3 }
 0x355   : > { %v1318_v36 = vpop.permute.xlu1 %1317  ;;  %v642_v29 = vpop.permute.xlu2 %641  ;;  %v4752_v20 = vld [vmem:[#allocation3 + $0x10] sm:$0xff] }
 0x356   : > { %v4789_v22 = vld [vmem:[#allocation3 + $0x10] sm:$0xff]  ;;  %1459 = vst.msk [vmem:[#allocation3 + $0xc] sm:$0xf] %vm1455_vm5, %v1318_v36  ;;  %v858_v24 = vpop.permute.xlu0 %857  ;;  %1776 = vmatmul.bf16.vlgmr.msra.gmra.mxu1 %v4752_v20 }
 0x357   : > { %988 = vst.msk [vmem:[#allocation2 + $0x70] sm:$0xff] %vm973_vm3, %v858_v24  ;;  %2304 = vmatmul.bf16.vlgmr.msra.gmra.mxu3 %v4789_v22  ;;  %v1038_v11 = vld [vmem:[#allocation2 + $0x80] sm:$0xff]  ;;  %v760_v36 = vld [vmem:[%s5188_s20 + $0xd8] sm:$0xff] }
 0x358   : > { %647 = vst.msk [vmem:[#allocation2 + $0x90] sm:$0xff] %vm377_vm0, %v642_v29  ;;  %v1086_v1 = vpack.c.bf16 %v1038_v11, %v1038_v11 }
 0x35a   : > { %1135 = vst.msk [vmem:[#allocation3 + $0x40] sm:$0xf] %vm1118_vm4, %v1086_v1 }
 0x35c   : > { %v5617_v63 = vpop.f32.mrf.mxu3 }
 0x35d   : > { %v1324_v28 = vpop.permute.xlu1 %1323  ;;  %v4751_v32 = vld [vmem:[#allocation3 + $0x8] sm:$0xff]  ;;  %v1332_v31 = vpop.permute.xlu2 %1331 }
 0x35e   : > { %1462 = vst.msk [vmem:[#allocation3 + $0x18] sm:$0xf] %vm1455_vm5, %v1324_v28  ;;  %v632_v34 = vpop.permute.xlu0 %631  ;;  %v1180_v35 = vld [vmem:[#allocation2 + $0x69] sm:$0xff]  ;;  %1771 = vmatmul.bf16.vlgmr.msrb.gmra.mxu0 %v4751_v32  ;;  %1949 = vmatmul.bf16.gmra.mxu2 %v4751_v32 }
 0x35f   : > { %v1036_v47 = vld [vmem:[#allocation2 + $0x70] sm:$0xff]  ;;  %636 = vst.msk [vmem:[#allocation2 + $0x78] sm:$0xf] %vm589_vm2, %v632_v34  ;;  %v1228_v39 = vpack.c.bf16 %v1180_v35, %v1180_v35 }
 0x360   : > { %v1084_v41 = vpack.c.bf16 %v1036_v47, %v1036_v47  ;;  %1466 = vst.msk [vmem:[#allocation3 + $0x28] sm:$0xf] %vm1455_vm5, %v1332_v31 }
 0x361   : > { %1337 = vrot.lane.b32.xlu2 %v1228_v39, %s4929_s23 }
 0x362   : > { %1133 = vst.msk [vmem:[#allocation3 + $0x38] sm:$0xf] %vm1118_vm4, %v1084_v41 }
 0x364   : > { %v5628_v5 = vpop.f32.mrf.mxu3 }
 0x365   : > { %v860_v45 = vpop.permute.xlu1 %859  ;;  %v4790_v46 = vld [vmem:[#allocation3 + $0x18] sm:$0xff] }
 0x366   : > { %v4753_v48 = vld [vmem:[#allocation3 + $0x18] sm:$0xff]  ;;  %989 = vst.msk [vmem:[#allocation2 + $0x78] sm:$0xff] %vm973_vm3, %v860_v45  ;;  %v1328_v49 = vpop.permute.xlu0 %1327 }
 0x367   : > { %2309 = vmatmul.bf16.gmra.mxu3 %v4790_v46  ;;  %1464 = vst.msk [vmem:[#allocation3 + $0x20] sm:$0xf] %vm1455_vm5, %v1328_v49  ;;  %1781 = vmatmul.bf16.gmra.mxu1 %v4753_v48 }
 0x369   : > { %873 = vrot.lane.b32.xlu2 %v755_v30, %s4927_s21 }
 0x36d   : > { %v1330_v18 = vpop.permute.xlu1 %1329  ;;  %v1181_v52 = vld [vmem:[#allocation2 + $0x71] sm:$0xff]  ;;  %v1182_v54 = vld [vmem:[#allocation2 + $0x79] sm:$0xff] }
 0x36e   : > { %1465 = vst.msk [vmem:[#allocation3 + $0x24] sm:$0xf] %vm1455_vm5, %v1330_v18  ;;  %v1229_v58 = vpack.c.bf16 %v1181_v52, %v1181_v52  ;;  %v1230_v56 = vpack.c.bf16 %v1182_v54, %v1182_v54  ;;  %v864_v15 = vpop.permute.xlu0 %863  ;;  %1954 = vmatmul.bf16.gmra.mxu2 %v4752_v20  ;;  %v1037_v51 = vld [vmem:[#allocation2 + $0x78] sm:$0xff] }
 0x36f   : > { %991 = vst.msk [vmem:[#allocation2 + $0x88] sm:$0xff] %vm973_vm3, %v864_v15  ;;  %v1085_v12 = vpack.c.bf16 %v1037_v51, %v1037_v51 }
 0x370   : > { %1339 = vrot.lane.b32.xlu0 %v1229_v58, %s4929_s23  ;;  %1341 = vrot.lane.b32.xlu1 %v1230_v56, %s4929_s23  ;;  %v761_v56 = vld [vmem:[%s5188_s20 + $0xe0] sm:$0xff] }
 0x371   : > { %655 = vrot.lane.b32.xlu2 %v5180_v38, %s4928_s22  ;;  %v868_v38 = vpop.permute.xlu2 %867  ;;  %1134 = vst.msk [vmem:[#allocation3 + $0x3c] sm:$0xf] %vm1118_vm4, %v1085_v12  ;;  %v5679_v12 = vld [vmem:[%s6240_s5] ss:$0 sm:$0xff] }
 0x375   : > { %v866_v21 = vpop.permute.xlu1 %865  ;;  %v4791_v23 = vld [vmem:[#allocation3 + $0x20] sm:$0xff] }
 0x376   : > { %v4754_v60 = vld [vmem:[#allocation3 + $0x20] sm:$0xff]  ;;  %992 = vst.msk [vmem:[#allocation2 + $0x90] sm:$0xff] %vm973_vm3, %v866_v21 }
 0x377   : > { %2314 = vmatmul.bf16.gmra.mxu3 %v4791_v23  ;;  %1786 = vmatmul.bf16.gmra.mxu1 %v4754_v60  ;;  %v1183_v62 = vld [vmem:[#allocation2 + $0x81] sm:$0xff] }
 0x378   : > { %875 = vrot.lane.b32.xlu0 %v756_v57, %s4927_s21  ;;  %877 = vrot.lane.b32.xlu1 %v757_v25, %s4927_s21  ;;  %v1231_v53 = vpack.c.bf16 %v1183_v62, %v1183_v62  ;;  %v1039_v20 = vld [vmem:[#allocation2 + $0x88] sm:$0xff] }
 0x379   : > { %v1087_v24 = vpack.c.bf16 %v1039_v20, %v1039_v20  ;;  %v762_v62 = vld [vmem:[%s5188_s20 + $0xe8] sm:$0xff] }
 0x37a   : > { %1343 = vrot.lane.b32.xlu2 %v1231_v53, %s4929_s23 }
 0x37b   : > { %1136 = vst.msk [vmem:[#allocation3 + $0x44] sm:$0xf] %vm1118_vm4, %v1087_v24 }
 0x37d   : > { %v644_v2 = vpop.permute.xlu1 %643  ;;  %v1184_v3 = vld [vmem:[#allocation2 + $0x89] sm:$0xff] }
 0x37e   : > { %648 = vst.msk [vmem:[#allocation2 + $0x98] sm:$0xf] %vm589_vm2, %v644_v2  ;;  %v1232_v27 = vpack.c.bf16 %v1184_v3, %v1184_v3  ;;  %1959 = vmatmul.bf16.gmra.mxu2 %v4753_v48  ;;  %v1040_v22 = vld [vmem:[#allocation2 + $0x90] sm:$0xff] }
 0x37f   : > { %993 = vst.msk [vmem:[#allocation2 + $0x98] sm:$0xff] %vm973_vm3, %v868_v38  ;;  %v1088_v28 = vpack.c.bf16 %v1040_v22, %v1040_v22 }
 0x380   : > { %665 = vrot.lane.b32.xlu1 %v5191_v40, %s4928_s22  ;;  %1345 = vrot.lane.b32.xlu0 %v1232_v27, %s4929_s23  ;;  %v5636_v40 = vpop.f32.mrf.mxu3 }
 0x381   : > { %1137 = vst.msk [vmem:[#allocation3 + $0x48] sm:$0xf] %vm1118_vm4, %v1088_v28 }
 0x382   : > { %879 = vrot.lane.b32.xlu2 %v758_v4, %s4927_s21 }
 0x386   : > { %v1185_v8 = vld [vmem:[#allocation2 + $0x91] sm:$0xff] }
 0x387   : > { %v1233_v9 = vpack.c.bf16 %v1185_v8, %v1185_v8  ;;  %v1041_v34 = vld [vmem:[#allocation2 + $0x98] sm:$0xff] }
 0x388   : > { %881 = vrot.lane.b32.xlu0 %v759_v6, %s4927_s21  ;;  %v5642_v29 = vpop.f32.mrf.mxu3  ;;  %v1089_v35 = vpack.c.bf16 %v1041_v34, %v1041_v34 }
 0x389   : > { %1347 = vrot.lane.b32.xlu1 %v1233_v9, %s4929_s23 }
 0x38a   : > { %1138 = vst.msk [vmem:[#allocation3 + $0x4c] sm:$0xf] %vm1118_vm4, %v1089_v35 }
 0x38e   : > { %1964 = vmatmul.bf16.gmra.mxu2 %v4754_v60 }
 0x390   : > { %667 = vrot.lane.b32.xlu0 %v5198_v43, %s4928_s22  ;;  %v5646_v32 = vpop.f32.mrf.mxu3 }
 0x391   : > { %883 = vrot.lane.b32.xlu1 %v760_v36, %s4927_s21 }
 0x398   : > { %v5648_v47 = vpop.f32.mrf.mxu3 }
 0x3a0   : > { %v5653_v45 = vpop.f32.mrf.mxu3 }
 0x3a8   : > { %v5659_v52 = vpop.f32.mrf.mxu3 }
 0x3aa   : > { %v1334_v39 = vpop.permute.xlu0 %1333 }
 0x3ab   : > { %1467 = vst.msk [vmem:[#allocation3 + $0x2c] sm:$0xf] %vm1455_vm5, %v1334_v39 }
 0x3b0   : > { %v5666_v25 = vpop.f32.mrf.mxu3 }
 0x3b2   : > { %v870_v43 = vpop.permute.xlu0 %869  ;;  %v4755_v31 = vld [vmem:[#allocation3 + $0x28] sm:$0xff] }
 0x3b3   : > { %v4792_v41 = vld [vmem:[#allocation3 + $0x28] sm:$0xff]  ;;  %994 = vst.msk [vmem:[#allocation2 + $0xa0] sm:$0xff] %vm973_vm3, %v870_v43  ;;  %1791 = vmatmul.bf16.gmra.mxu1 %v4755_v31  ;;  %1969 = vmatmul.bf16.gmra.mxu2 %v4755_v31 }
 0x3b4   : > { %2319 = vmatmul.bf16.gmra.mxu3 %v4792_v41 }
 0x3b8   : > { %v5673_v4 = vpop.f32.mrf.mxu3 }
 0x3ba   : > { %v654_v46 = vpop.permute.xlu0 %653  ;;  %v1336_v48 = vpop.permute.xlu1 %1335  ;;  %v1186_v30 = vld [vmem:[#allocation2 + $0x99] sm:$0xff] }
 0x3bb   : > { %659 = vst.msk [vmem:[#allocation2 + $0xb0] sm:$0xff] %vm377_vm0, %v654_v46  ;;  %v1338_v49 = vpop.permute.xlu2 %1337  ;;  %v1234_v18 = vpack.c.bf16 %v1186_v30, %v1186_v30  ;;  %v1042_v54 = vld [vmem:[#allocation2 + $0xa0] sm:$0xff] }
 0x3bc   : > { %1468 = vst.msk [vmem:[#allocation3 + $0x30] sm:$0xf] %vm1455_vm5, %v1336_v48  ;;  %v1090_v15 = vpack.c.bf16 %v1042_v54, %v1042_v54 }
 0x3bd   : > { %1469 = vst.msk [vmem:[#allocation3 + $0x34] sm:$0xf] %vm1455_vm5, %v1338_v49  ;;  %1349 = vrot.lane.b32.xlu2 %v1234_v18, %s4929_s23 }
 0x3be   : > { %1139 = vst.msk [vmem:[#allocation3 + $0x50] sm:$0xf] %vm1118_vm4, %v1090_v15 }
 0x3c2   : > { %v872_v58 = vpop.permute.xlu1 %871 }
 0x3c3   : > { %995 = vst.msk [vmem:[#allocation2 + $0xa8] sm:$0xff] %vm973_vm3, %v872_v58  ;;  %v874_v57 = vpop.permute.xlu2 %873 }
 0x3c4   : > { %996 = vst.msk [vmem:[#allocation2 + $0xb0] sm:$0xff] %vm973_vm3, %v874_v57  ;;  %v4756_v21 = vld [vmem:[#allocation3 + $0x30] sm:$0xff] }
 0x3c5   : > { %v4793_v23 = vld [vmem:[#allocation3 + $0x30] sm:$0xff]  ;;  %885 = vrot.lane.b32.xlu2 %v761_v56, %s4927_s21  ;;  %1796 = vmatmul.bf16.gmra.mxu1 %v4756_v21 }
 0x3c6   : > { %1974 = vmatmul.bf16.gmra.mxu2 %v4756_v21  ;;  %2324 = vmatmul.bf16.gmra.mxu3 %v4793_v23 }
 0x3ca   : > { %v1187_v60 = vld [vmem:[#allocation2 + $0xa1] sm:$0xff] }
 0x3cb   : > { %v656_v53 = vpop.permute.xlu2 %655  ;;  %v1235_v38 = vpack.c.bf16 %v1187_v60, %v1187_v60  ;;  %v1188_v2 = vld [vmem:[#allocation2 + $0xa9] sm:$0xff] }
 0x3cc   : > { %660 = vst.msk [vmem:[#allocation2 + $0xb8] sm:$0xf] %vm589_vm2, %v656_v53  ;;  %v1236_v3 = vpack.c.bf16 %v1188_v2, %v1188_v2  ;;  %v1945_v27 = vpop.f32.mrf.mxu2 }
 0x3cd   : > { %1351 = vrot.lane.b32.xlu0 %v1235_v38, %s4929_s23  ;;  %887 = vrot.lane.b32.xlu2 %v762_v62, %s4927_s21 }
 0x3ce   : > { %1353 = vrot.lane.b32.xlu1 %v1236_v3, %s4929_s23 }
 0x3d3   : > { %v1777_v43 = vpop.f32.mrf.mxu1 }
 0x3d4   : > { %v1344_v6 = vpop.permute.xlu2 %1343  ;;  %v1947_v9 = vpop.f32.mrf.mxu2 }
 0x3d5   : > { %1472 = vst.msk [vmem:[#allocation3 + $0x40] sm:$0xf] %vm1455_vm5, %v1344_v6 }
 0x3da   : > { %v2305_v8 = vpop.f32.mrf.mxu3 }
 0x3db   : > { %v1772_v51 = vpop.f32.mrf.mxu0  ;;  %v1779_v62 = vpop.f32.mrf.mxu1 }
 0x3dc   : > { %v1946_v11 = vadd.f32 %v1945_v27, %v1772_v51  ;;  %v880_v1 = vpop.permute.xlu2 %879 }
 0x3dd   : > { %999 = vst.msk [vmem:[#allocation2 + $0xc8] sm:$0xff] %vm973_vm3, %v880_v1 }
 0x3de   : > { %v2415_v36 = vadd.f32 %v2305_v8, %v1946_v11 }
 0x3e0   : > { %v2463_v20 = vadd.f32 %v5679_v12, %v2415_v36 }
 0x3e1   : > { %v1950_v34 = vpop.f32.mrf.mxu2 }
 0x3e2   : > { %v1340_v22 = vpop.permute.xlu0 %1339  ;;  %v1342_v24 = vpop.permute.xlu1 %1341  ;;  %v2507_v28 = vmax.f32 %v2463_v20, 0.0  ;;  %v1951_v48 = vadd.f32 %v1950_v34, %v1777_v43 }
 0x3e3   : > { %1470 = vst.msk [vmem:[#allocation3 + $0x38] sm:$0xf] %vm1455_vm5, %v1340_v22  ;;  %v2307_v35 = vpop.f32.mrf.mxu3  ;;  %v1774_v39 = vpop.f32.mrf.mxu0 }
 0x3e4   : > { %1471 = vst.msk [vmem:[#allocation3 + $0x3c] sm:$0xf] %vm1455_vm5, %v1342_v24  ;;  %v1948_v31 = vadd.f32 %v1947_v9, %v1774_v39  ;;  %v1782_v24 = vpop.f32.mrf.mxu1 }
 0x3e5   : > { %2551 = vst.msk [vmem:[#allocation4] sm:$0xff] %vm377_vm0, %v2507_v28 }
 0x3e6   : > { %v2416_v41 = vadd.f32 %v2307_v35, %v1948_v31 }
 0x3e8   : > { %v2464_v46 = vadd.f32 %v5679_v12, %v2416_v41 }
 0x3e9   : > { %v1952_v54 = vpop.f32.mrf.mxu2 }
 0x3ea   : > { %v876_v30 = vpop.permute.xlu0 %875  ;;  %v878_v49 = vpop.permute.xlu1 %877  ;;  %v2508_v18 = vmax.f32 %v2464_v46, 0.0  ;;  %v1953_v38 = vadd.f32 %v1952_v54, %v1779_v62  ;;  %v1043_v54 = vld [vmem:[#allocation2 + $0xa8] sm:$0xff] }
 0x3eb   : > { %997 = vst.msk [vmem:[#allocation2 + $0xb8] sm:$0xff] %vm973_vm3, %v876_v30  ;;  %v2310_v58 = vpop.f32.mrf.mxu3  ;;  %v4757_v56 = vld [vmem:[#allocation3 + $0x38] sm:$0xff] }
 0x3ec   : > { %v4794_v15 = vld [vmem:[#allocation3 + $0x38] sm:$0xff]  ;;  %998 = vst.msk [vmem:[#allocation2 + $0xc0] sm:$0xff] %vm973_vm3, %v878_v49  ;;  %v2417_v57 = vadd.f32 %v2310_v58, %v1951_v48  ;;  %v2595_v21 = vld [vmem:[#allocation4] sm:$0xff]  ;;  %1801 = vmatmul.bf16.gmra.mxu1 %v4757_v56  ;;  %1979 = vmatmul.bf16.gmra.mxu2 %v4757_v56  ;;  %v1044_v58 = vld [vmem:[#allocation2 + $0xb0] sm:$0xff]  ;;  %v1091_v56 = vpack.c.bf16 %v1043_v54, %v1043_v54 }
 0x3ed   : > { %2552 = vst.msk [vmem:[#allocation4 + $0x8] sm:$0xff] %vm377_vm0, %v2508_v18  ;;  %v2639_v23 = vpack.c.bf16 %v2595_v21, %v2595_v21  ;;  %2329 = vmatmul.bf16.gmra.mxu3 %v4794_v15  ;;  %v1092_v15 = vpack.c.bf16 %v1044_v58, %v1044_v58 }
 0x3ee   : > { %v2465_v60 = vadd.f32 %v5679_v12, %v2417_v57  ;;  %1140 = vst.msk [vmem:[#allocation3 + $0x54] sm:$0xf] %vm1118_vm4, %v1091_v56 }
 0x3ef   : > { %2683 = vst.msk [vmem:[#allocation5] sm:$0xf] %vm589_vm2, %v2639_v23 }
 0x3f0   : > { %v2509_v53 = vmax.f32 %v2465_v60, 0.0  ;;  %1141 = vst.msk [vmem:[#allocation3 + $0x58] sm:$0xf] %vm1118_vm4, %v1092_v15  ;;  %v1784_v60 = vpop.f32.mrf.mxu1 }
 0x3f1   : > { %v1955_v36 = vpop.f32.mrf.mxu2 }
 0x3f2   : > { %2553 = vst.msk [vmem:[#allocation4 + $0x10] sm:$0xff] %vm377_vm0, %v2509_v53  ;;  %v666_v2 = vpop.permute.xlu1 %665  ;;  %v1346_v3 = vpop.permute.xlu0 %1345  ;;  %v1189_v27 = vld [vmem:[#allocation2 + $0xb1] sm:$0xff]  ;;  %v1956_v35 = vadd.f32 %v1955_v36, %v1782_v24 }
 0x3f3   : > { %671 = vst.msk [vmem:[#allocation2 + $0xd0] sm:$0xff] %vm377_vm0, %v666_v2  ;;  %v2312_v6 = vpop.f32.mrf.mxu3  ;;  %v1190_v8 = vld [vmem:[#allocation2 + $0xb9] sm:$0xff]  ;;  %v1237_v9 = vpack.c.bf16 %v1189_v27, %v1189_v27  ;;  %v1191_v48 = vld [vmem:[#allocation2 + $0xc1] sm:$0xff] }
 0x3f4   : > { %1473 = vst.msk [vmem:[#allocation3 + $0x44] sm:$0xf] %vm1455_vm5, %v1346_v3  ;;  %v2418_v51 = vadd.f32 %v2312_v6, %v1953_v38  ;;  %v1238_v11 = vpack.c.bf16 %v1190_v8, %v1190_v8  ;;  %v2596_v1 = vld [vmem:[#allocation4 + $0x8] sm:$0xff]  ;;  %v1239_v18 = vpack.c.bf16 %v1191_v48, %v1191_v48  ;;  %v1046_v24 = vld [vmem:[#allocation2 + $0xc0] sm:$0xff] }
 0x3f5   : > { %1355 = vrot.lane.b32.xlu0 %v1237_v9, %s4929_s23  ;;  %v2640_v20 = vpack.c.bf16 %v2596_v1, %v2596_v1 }
 0x3f6   : > { %v2466_v22 = vadd.f32 %v5679_v12, %v2418_v51  ;;  %1357 = vrot.lane.b32.xlu1 %v1238_v11, %s4929_s23  ;;  %1359 = vrot.lane.b32.xlu2 %v1239_v18, %s4929_s23 }
 0x3f7   : > { %2684 = vst.msk [vmem:[#allocation5 + $0x4] sm:$0xf] %vm589_vm2, %v2640_v20 }
 0x3f8   : > { %v2510_v28 = vmax.f32 %v2466_v22, 0.0  ;;  %v1045_v22 = vld [vmem:[#allocation2 + $0xb8] sm:$0xff] }
 0x3f9   : > { %v2597_v34 = vld [vmem:[#allocation4 + $0x10] sm:$0xff]  ;;  %v1957_v21 = vpop.f32.mrf.mxu2 }
 0x3fa   : > { %2554 = vst.msk [vmem:[#allocation4 + $0x18] sm:$0xff] %vm377_vm0, %v2510_v28  ;;  %v882_v39 = vpop.permute.xlu0 %881  ;;  %v2641_v43 = vpack.c.bf16 %v2597_v34, %v2597_v34  ;;  %v1958_v53 = vadd.f32 %v1957_v21, %v1784_v60  ;;  %v1093_v34 = vpack.c.bf16 %v1045_v22, %v1045_v22 }
 0x3fb   : > { %1000 = vst.msk [vmem:[#allocation2 + $0xd0] sm:$0xff] %vm973_vm3, %v882_v39  ;;  %v2315_v31 = vpop.f32.mrf.mxu3  ;;  %v4758_v41 = vld [vmem:[#allocation3 + $0x40] sm:$0xff]  ;;  %v1348_v49 = vpop.permute.xlu1 %1347 }
 0x3fc   : > { %v4795_v46 = vld [vmem:[#allocation3 + $0x40] sm:$0xff]  ;;  %v2419_v30 = vadd.f32 %v2315_v31, %v1956_v35  ;;  %2685 = vst.msk [vmem:[#allocation5 + $0x8] sm:$0xf] %vm589_vm2, %v2641_v43  ;;  %1806 = vmatmul.bf16.gmra.mxu1 %v4758_v41  ;;  %1984 = vmatmul.bf16.gmra.mxu2 %v4758_v41  ;;  %v1094_v35 = vpack.c.bf16 %v1046_v24, %v1046_v24 }
 0x3fd   : > { %1474 = vst.msk [vmem:[#allocation3 + $0x48] sm:$0xf] %vm1455_vm5, %v1348_v49  ;;  %2334 = vmatmul.bf16.gmra.mxu3 %v4795_v46  ;;  %v1047_v41 = vld [vmem:[#allocation2 + $0xc8] sm:$0xff] }
 0x3fe   : > { %v2467_v57 = vadd.f32 %v5679_v12, %v2419_v30  ;;  %1142 = vst.msk [vmem:[#allocation3 + $0x5c] sm:$0xf] %vm1118_vm4, %v1093_v34  ;;  %v1095_v48 = vpack.c.bf16 %v1047_v41, %v1047_v41 }
 0x3ff   : > { %1143 = vst.msk [vmem:[#allocation3 + $0x60] sm:$0xf] %vm1118_vm4, %v1094_v35  ;;  %v4871_v35 = vld [vmem:[%s6241_s6 + $0x58] sm:$0xff] }
 0x400   : > { %v2511_v23 = vmax.f32 %v2467_v57, 0.0  ;;  %1144 = vst.msk [vmem:[#allocation3 + $0x64] sm:$0xf] %vm1118_vm4, %v1095_v48  ;;  %3766 = vmatpush.bf16.msrb.mxu2 %v4871_v35 }
 0x401   : > { %v2598_v62 = vld [vmem:[#allocation4 + $0x18] sm:$0xff] }
 0x402   : > { %2555 = vst.msk [vmem:[#allocation4 + $0x20] sm:$0xff] %vm377_vm0, %v2511_v23  ;;  %v668_v38 = vpop.permute.xlu0 %667  ;;  %v1192_v2 = vld [vmem:[#allocation2 + $0xc9] sm:$0xff]  ;;  %v2642_v3 = vpack.c.bf16 %v2598_v62, %v2598_v62 }
 0x403   : > { %672 = vst.msk [vmem:[#allocation2 + $0xd8] sm:$0xf] %vm589_vm2, %v668_v38  ;;  %v2317_v27 = vpop.f32.mrf.mxu3  ;;  %v1240_v6 = vpack.c.bf16 %v1192_v2, %v1192_v2  ;;  %v884_v9 = vpop.permute.xlu1 %883  ;;  %v1048_v46 = vld [vmem:[#allocation2 + $0xd0] sm:$0xff] }
 0x404   : > { %v2420_v8 = vadd.f32 %v2317_v27, %v1958_v53  ;;  %2686 = vst.msk [vmem:[#allocation5 + $0xc] sm:$0xf] %vm589_vm2, %v2642_v3  ;;  %v1096_v30 = vpack.c.bf16 %v1048_v46, %v1048_v46 }
 0x405   : > { %1361 = vrot.lane.b32.xlu0 %v1240_v6, %s4929_s23  ;;  %1001 = vst.msk [vmem:[#allocation2 + $0xd8] sm:$0xff] %vm973_vm3, %v884_v9  ;;  %v1787_v6 = vpop.f32.mrf.mxu1  ;;  %v2727_v9 = vld [vmem:[#allocation4 + $0x1] sm:$0xff] }
 0x406   : > { %v2468_v51 = vadd.f32 %v5679_v12, %v2420_v8  ;;  %1145 = vst.msk [vmem:[#allocation3 + $0x68] sm:$0xf] %vm1118_vm4, %v1096_v30  ;;  %v1960_v8 = vpop.f32.mrf.mxu2  ;;  %v2771_v22 = vpack.c.bf16 %v2727_v9, %v2727_v9 }
 0x408   : > { %v2512_v11 = vmax.f32 %v2468_v51, 0.0  ;;  %v2728_v51 = vld [vmem:[#allocation4 + $0x9] sm:$0xff] }
 0x409   : > { %v2599_v1 = vld [vmem:[#allocation4 + $0x20] sm:$0xff] }
 0x40a   : > { %2556 = vst.msk [vmem:[#allocation4 + $0x28] sm:$0xff] %vm377_vm0, %v2512_v11  ;;  %v2643_v36 = vpack.c.bf16 %v2599_v1, %v2599_v1  ;;  %v1961_v1 = vadd.f32 %v1960_v8, %v1787_v6  ;;  %v2730_v46 = vld [vmem:[#allocation4 + $0x19] sm:$0xff]  ;;  %v2729_v8 = vld [vmem:[#allocation4 + $0x11] sm:$0xff] }
 0x40c   : > { %v1193_v20 = vld [vmem:[#allocation2 + $0xd1] sm:$0xff]  ;;  %2687 = vst.msk [vmem:[#allocation5 + $0x10] sm:$0xf] %vm589_vm2, %v2643_v36 }
 0x40d   : > { %v1241_v28 = vpack.c.bf16 %v1193_v20, %v1193_v20  ;;  %v1049_v57 = vld [vmem:[#allocation2 + $0xd8] sm:$0xff] }
 0x40e   : > { %v1097_v21 = vpack.c.bf16 %v1049_v57, %v1049_v57 }
 0x40f   : > { %1363 = vrot.lane.b32.xlu1 %v1241_v28, %s4929_s23  ;;  %v2772_v28 = vpack.c.bf16 %v2728_v51, %v2728_v51 }
 0x410   : > { %1146 = vst.msk [vmem:[#allocation3 + $0x6c] sm:$0xf] %vm1118_vm4, %v1097_v21 }
 0x411   : > { %v2600_v39 = vld [vmem:[#allocation4 + $0x28] sm:$0xff] }
 0x412   : > { %v2644_v43 = vpack.c.bf16 %v2600_v39, %v2600_v39  ;;  %v2731_v23 = vld [vmem:[#allocation4 + $0x21] sm:$0xff]  ;;  %v4842_v39 = vld [vmem:[%s6241_s6 + $0x18] sm:$0xff] }
 0x413   : > { %v2775_v27 = vpack.c.bf16 %v2731_v23, %v2731_v23  ;;  %3424 = vmatpush.bf16.msrb.mxu1 %v4842_v39 }
 0x414   : > { %2688 = vst.msk [vmem:[#allocation5 + $0x14] sm:$0xf] %vm589_vm2, %v2644_v43  ;;  %v1789_v43 = vpop.f32.mrf.mxu1 }
 0x417   : > { %v1350_v31 = vpop.permute.xlu2 %1349 }
 0x418   : > { %1475 = vst.msk [vmem:[#allocation3 + $0x4c] sm:$0xf] %vm1455_vm5, %v1350_v31  ;;  %v1962_v31 = vpop.f32.mrf.mxu2 }
 0x419   : > { %v1963_v48 = vadd.f32 %v1962_v31, %v1789_v43 }
 0x41f   : > { %v886_v49 = vpop.permute.xlu2 %885  ;;  %v4759_v18 = vld [vmem:[#allocation3 + $0x48] sm:$0xff] }
 0x420   : > { %v4796_v54 = vld [vmem:[#allocation3 + $0x48] sm:$0xff]  ;;  %1002 = vst.msk [vmem:[#allocation2 + $0xe0] sm:$0xff] %vm973_vm3, %v886_v49  ;;  %1811 = vmatmul.bf16.gmra.mxu1 %v4759_v18  ;;  %1989 = vmatmul.bf16.gmra.mxu2 %v4759_v18  ;;  %v1965_v21 = vpop.f32.mrf.mxu2 }
 0x421   : > { %2339 = vmatmul.bf16.gmra.mxu3 %v4796_v54  ;;  %v2774_v54 = vpack.c.bf16 %v2730_v46, %v2730_v46 }
 0x427   : > { %v888_v58 = vpop.permute.xlu2 %887  ;;  %v1194_v56 = vld [vmem:[#allocation2 + $0xd9] sm:$0xff] }
 0x428   : > { %1003 = vst.msk [vmem:[#allocation2 + $0xe8] sm:$0xff] %vm973_vm3, %v888_v58  ;;  %v1242_v15 = vpack.c.bf16 %v1194_v56, %v1194_v56  ;;  %v1050_v60 = vld [vmem:[#allocation2 + $0xe0] sm:$0xff] }
 0x429   : > { %v1098_v38 = vpack.c.bf16 %v1050_v60, %v1050_v60 }
 0x42a   : > { %1365 = vrot.lane.b32.xlu2 %v1242_v15, %s4929_s23 }
 0x42b   : > { %1147 = vst.msk [vmem:[#allocation3 + $0x70] sm:$0xf] %vm1118_vm4, %v1098_v38 }
 0x42f   : > { %v1196_v62 = vld [vmem:[#allocation2 + $0xe9] sm:$0xff]  ;;  %v1195_v53 = vld [vmem:[#allocation2 + $0xe1] sm:$0xff] }
 0x430   : > { %v1244_v2 = vpack.c.bf16 %v1196_v62, %v1196_v62  ;;  %v1243_v3 = vpack.c.bf16 %v1195_v53, %v1195_v53  ;;  %v1051_v11 = vld [vmem:[#allocation2 + $0xe8] sm:$0xff]  ;;  %v1792_v15 = vpop.f32.mrf.mxu1 }
 0x431   : > { %v1099_v36 = vpack.c.bf16 %v1051_v11, %v1051_v11 }
 0x432   : > { %1369 = vrot.lane.b32.xlu1 %v1244_v2, %s4929_s23  ;;  %1367 = vrot.lane.b32.xlu0 %v1243_v3, %s4929_s23  ;;  %v1966_v3 = vadd.f32 %v1965_v21, %v1792_v15  ;;  %v780_v21 = vld [vmem:[%s5188_s20 + $0x178] sm:$0xff] }
 0x433   : > { %2867 = vrot.lane.b32.xlu2 %v2775_v27, %s4927_s21  ;;  %1148 = vst.msk [vmem:[#allocation3 + $0x74] sm:$0xf] %vm1118_vm4, %v1099_v36 }
 0x437   : > { %v2320_v20 = vpop.f32.mrf.mxu3 }
 0x438   : > { %v2421_v24 = vadd.f32 %v2320_v20, %v1961_v1  ;;  %v1794_v51 = vpop.f32.mrf.mxu1  ;;  %v2773_v20 = vpack.c.bf16 %v2729_v8, %v2729_v8 }
 0x43a   : > { %2859 = vrot.lane.b32.xlu1 %v2771_v22, %s4927_s21  ;;  %v2469_v34 = vadd.f32 %v5679_v12, %v2421_v24 }
 0x43b   : > { %2861 = vrot.lane.b32.xlu2 %v2772_v28, %s4927_s21  ;;  %v1967_v28 = vpop.f32.mrf.mxu2 }
 0x43c   : > { %v2513_v41 = vmax.f32 %v2469_v34, 0.0  ;;  %v1968_v34 = vadd.f32 %v1967_v28, %v1794_v51 }
 0x43e   : > { %2557 = vst.msk [vmem:[#allocation4 + $0x30] sm:$0xff] %vm377_vm0, %v2513_v41 }
 0x43f   : > { %v1352_v30 = vpop.permute.xlu0 %1351  ;;  %v2322_v18 = vpop.f32.mrf.mxu3 }
 0x440   : > { %1476 = vst.msk [vmem:[#allocation3 + $0x50] sm:$0xf] %vm1455_vm5, %v1352_v30  ;;  %v1354_v49 = vpop.permute.xlu1 %1353  ;;  %v2422_v58 = vadd.f32 %v2322_v18, %v1963_v48 }
 0x441   : > { %1477 = vst.msk [vmem:[#allocation3 + $0x54] sm:$0xf] %vm1455_vm5, %v1354_v49 }
 0x442   : > { %2865 = vrot.lane.b32.xlu1 %v2774_v54, %s4927_s21  ;;  %v2470_v56 = vadd.f32 %v5679_v12, %v2422_v58 }
 0x444   : > { %v2514_v57 = vmax.f32 %v2470_v56, 0.0 }
 0x445   : > { %v2732_v23 = vld [vmem:[#allocation4 + $0x29] sm:$0xff] }
 0x446   : > { %v2601_v60 = vld [vmem:[#allocation4 + $0x30] sm:$0xff]  ;;  %2558 = vst.msk [vmem:[#allocation4 + $0x38] sm:$0xff] %vm377_vm0, %v2514_v57  ;;  %v2776_v62 = vpack.c.bf16 %v2732_v23, %v2732_v23  ;;  %v1970_v23 = vpop.f32.mrf.mxu2 }
 0x447   : > { %v2645_v53 = vpack.c.bf16 %v2601_v60, %v2601_v60  ;;  %v1797_v60 = vpop.f32.mrf.mxu1 }
 0x448   : > { %v4760_v38 = vld [vmem:[#allocation3 + $0x50] sm:$0xff]  ;;  %2869 = vrot.lane.b32.xlu0 %v2776_v62, %s4927_s21  ;;  %v1971_v62 = vadd.f32 %v1970_v23, %v1797_v60 }
 0x449   : > { %v4797_v2 = vld [vmem:[#allocation3 + $0x50] sm:$0xff]  ;;  %2689 = vst.msk [vmem:[#allocation5 + $0x18] sm:$0xf] %vm589_vm2, %v2645_v53  ;;  %v2325_v27 = vpop.f32.mrf.mxu3  ;;  %1816 = vmatmul.bf16.gmra.mxu1 %v4760_v38  ;;  %1994 = vmatmul.bf16.gmra.mxu2 %v4760_v38 }
 0x44a   : > { %v2423_v6 = vadd.f32 %v2325_v27, %v1966_v3  ;;  %2344 = vmatmul.bf16.gmra.mxu3 %v4797_v2 }
 0x44c   : > { %v2471_v9 = vadd.f32 %v5679_v12, %v2423_v6 }
 0x44d   : > { %v2733_v11 = vld [vmem:[#allocation4 + $0x31] sm:$0xff] }
 0x44e   : > { %v2602_v1 = vld [vmem:[#allocation4 + $0x38] sm:$0xff]  ;;  %v2515_v36 = vmax.f32 %v2471_v9, 0.0  ;;  %v2777_v22 = vpack.c.bf16 %v2733_v11, %v2733_v11  ;;  %v1972_v3 = vpop.f32.mrf.mxu2  ;;  %v4870_v9 = vld [vmem:[%s6241_s6 + $0x50] sm:$0xff] }
 0x44f   : > { %v2646_v24 = vpack.c.bf16 %v2602_v1, %v2602_v1  ;;  %v1799_v27 = vpop.f32.mrf.mxu1  ;;  %3767 = vmatpush.bf16.msrb.mxu2 %v4870_v9 }
 0x450   : > { %2559 = vst.msk [vmem:[#allocation4 + $0x40] sm:$0xff] %vm377_vm0, %v2515_v36  ;;  %2863 = vrot.lane.b32.xlu0 %v2773_v20, %s4927_s21  ;;  %2871 = vrot.lane.b32.xlu2 %v2777_v22, %s4927_s21  ;;  %v1360_v30 = vpop.permute.xlu2 %1359  ;;  %v1973_v11 = vadd.f32 %v1972_v3, %v1799_v27  ;;  %v4841_v20 = vld [vmem:[%s6241_s6 + $0x10] sm:$0xff] }
 0x451   : > { %v2327_v35 = vpop.f32.mrf.mxu3  ;;  %2690 = vst.msk [vmem:[#allocation5 + $0x1c] sm:$0xf] %vm589_vm2, %v2646_v24  ;;  %3425 = vmatpush.bf16.msrb.mxu1 %v4841_v20 }
 0x452   : > { %v2424_v39 = vadd.f32 %v2327_v35, %v1968_v34  ;;  %1480 = vst.msk [vmem:[#allocation3 + $0x60] sm:$0xf] %vm1455_vm5, %v1360_v30 }
 0x454   : > { %v2472_v43 = vadd.f32 %v5679_v12, %v2424_v39 }
 0x456   : > { %v2516_v31 = vmax.f32 %v2472_v43, 0.0  ;;  %v1975_v28 = vpop.f32.mrf.mxu2 }
 0x457   : > { %v2734_v41 = vld [vmem:[#allocation4 + $0x39] sm:$0xff] }
 0x458   : > { %v2603_v46 = vld [vmem:[#allocation4 + $0x40] sm:$0xff]  ;;  %2560 = vst.msk [vmem:[#allocation4 + $0x48] sm:$0xff] %vm377_vm0, %v2516_v31  ;;  %v2778_v48 = vpack.c.bf16 %v2734_v41, %v2734_v41 }
 0x459   : > { %v2647_v49 = vpack.c.bf16 %v2603_v46, %v2603_v46 }
 0x45a   : > { %2873 = vrot.lane.b32.xlu0 %v2778_v48, %s4927_s21 }
 0x45b   : > { %2691 = vst.msk [vmem:[#allocation5 + $0x20] sm:$0xf] %vm589_vm2, %v2647_v49 }
 0x45f   : > { %v2735_v18 = vld [vmem:[#allocation4 + $0x41] sm:$0xff] }
 0x460   : > { %v2604_v54 = vld [vmem:[#allocation4 + $0x48] sm:$0xff]  ;;  %v2779_v58 = vpack.c.bf16 %v2735_v18, %v2735_v18 }
 0x461   : > { %v2648_v56 = vpack.c.bf16 %v2604_v54, %v2604_v54 }
 0x462   : > { %727 = vrot.lane.b32.xlu0 %v5255_v16, %s4928_s22  ;;  %2875 = vrot.lane.b32.xlu1 %v2779_v58, %s4927_s21 }
 0x463   : > { %2692 = vst.msk [vmem:[#allocation5 + $0x24] sm:$0xf] %vm589_vm2, %v2648_v56 }
 0x467   : > { %v1356_v15 = vpop.permute.xlu0 %1355 }
 0x468   : > { %v1358_v57 = vpop.permute.xlu1 %1357  ;;  %1478 = vst.msk [vmem:[#allocation3 + $0x58] sm:$0xf] %vm1455_vm5, %v1356_v15 }
 0x469   : > { %1479 = vst.msk [vmem:[#allocation3 + $0x5c] sm:$0xf] %vm1455_vm5, %v1358_v57  ;;  %v1802_v22 = vpop.f32.mrf.mxu1  ;;  %v1977_v57 = vpop.f32.mrf.mxu2 }
 0x46a   : > { %923 = vrot.lane.b32.xlu1 %v780_v21, %s4927_s21  ;;  %v1976_v43 = vadd.f32 %v1975_v28, %v1802_v22 }
 0x470   : > { %v4761_v53 = vld [vmem:[#allocation3 + $0x58] sm:$0xff]  ;;  %v2330_v2 = vpop.f32.mrf.mxu3 }
 0x471   : > { %v4798_v38 = vld [vmem:[#allocation3 + $0x58] sm:$0xff]  ;;  %v2425_v16 = vadd.f32 %v2330_v2, %v1971_v62  ;;  %1821 = vmatmul.bf16.gmra.mxu1 %v4761_v53  ;;  %1999 = vmatmul.bf16.gmra.mxu2 %v4761_v53  ;;  %v1804_v56 = vpop.f32.mrf.mxu1 }
 0x472   : > { %2349 = vmatmul.bf16.gmra.mxu3 %v4798_v38  ;;  %v1978_v60 = vadd.f32 %v1977_v57, %v1804_v56  ;;  %v4844_v57 = vld [vmem:[%s6241_s6 + $0x20] sm:$0xff] }
 0x473   : > { %v2473_v6 = vadd.f32 %v5679_v12, %v2425_v16 }
 0x475   : > { %v2517_v8 = vmax.f32 %v2473_v6, 0.0 }
 0x477   : > { %v1362_v51 = vpop.permute.xlu0 %1361  ;;  %2561 = vst.msk [vmem:[#allocation4 + $0x50] sm:$0xff] %vm377_vm0, %v2517_v8 }
 0x478   : > { %1481 = vst.msk [vmem:[#allocation3 + $0x64] sm:$0xf] %vm1455_vm5, %v1362_v51  ;;  %v2332_v1 = vpop.f32.mrf.mxu3 }
 0x479   : > { %v2426_v36 = vadd.f32 %v2332_v1, %v1973_v11 }
 0x47b   : > { %v2474_v24 = vadd.f32 %v5679_v12, %v2426_v36 }
 0x47d   : > { %v2518_v34 = vmax.f32 %v2474_v24, 0.0 }
 0x47e   : > { %v2736_v35 = vld [vmem:[#allocation4 + $0x49] sm:$0xff] }
 0x47f   : > { %v2605_v39 = vld [vmem:[#allocation4 + $0x50] sm:$0xff]  ;;  %2562 = vst.msk [vmem:[#allocation4 + $0x58] sm:$0xff] %vm377_vm0, %v2518_v34  ;;  %v2780_v31 = vpack.c.bf16 %v2736_v35, %v2736_v35  ;;  %v4762_v41 = vld [vmem:[#allocation3 + $0x60] sm:$0xff]  ;;  %v1807_v34 = vpop.f32.mrf.mxu1 }
 0x480   : > { %v4799_v46 = vld [vmem:[#allocation3 + $0x60] sm:$0xff]  ;;  %v2649_v48 = vpack.c.bf16 %v2605_v39, %v2605_v39  ;;  %v2335_v30 = vpop.f32.mrf.mxu3  ;;  %v4847_v35 = vld [vmem:[%s6241_s6 + $0x38] sm:$0xff] }
 0x481   : > { %v1364_v49 = vpop.permute.xlu1 %1363  ;;  %v2427_v18 = vadd.f32 %v2335_v30, %v1976_v43  ;;  %2877 = vrot.lane.b32.xlu2 %v2780_v31, %s4927_s21  ;;  %1826 = vmatmul.bf16.gmra.mxu1 %v4762_v41  ;;  %v4869_v39 = vld [vmem:[%s6241_s6 + $0x48] sm:$0xff]  ;;  %v1980_v43 = vpop.f32.mrf.mxu2  ;;  %v4846_v31 = vld [vmem:[%s6241_s6 + $0x30] sm:$0xff] }
 0x482   : > { %1482 = vst.msk [vmem:[#allocation3 + $0x68] sm:$0xf] %vm1455_vm5, %v1364_v49  ;;  %2004 = vmatmul.bf16.gmra.mxu2 %v4762_v41  ;;  %2354 = vmatmul.bf16.gmra.mxu3 %v4799_v46  ;;  %v4868_v41 = vld [vmem:[%s6241_s6 + $0x40] sm:$0xff]  ;;  %v1981_v46 = vadd.f32 %v1980_v43, %v1807_v34 }
 0x483   : > { %2693 = vst.msk [vmem:[#allocation5 + $0x28] sm:$0xf] %vm589_vm2, %v2649_v48  ;;  %v2475_v54 = vadd.f32 %v5679_v12, %v2427_v18  ;;  %3283 = vmatpush.bf16.msra.mxu0 %v4847_v35  ;;  %3768 = vmatpush.bf16.msrb.mxu2 %v4869_v39  ;;  %v4802_v34 = vld [vmem:[#allocation3 + $0x78] sm:$0xff] }
 0x484   : > { %v1366_v58 = vpop.permute.xlu2 %1365  ;;  %v4914_v35 = vld [vmem:[#allocation3 + $0x78] sm:$0xff] }
 0x485   : > { %1483 = vst.msk [vmem:[#allocation3 + $0x6c] sm:$0xf] %vm1455_vm5, %v1366_v58  ;;  %v2519_v15 = vmax.f32 %v2475_v54, 0.0  ;;  %v4845_v58 = vld [vmem:[%s6241_s6 + $0x28] sm:$0xff]  ;;  %v4839_v39 = vld [vmem:[%s6241_s6] sm:$0xff] }
 0x486   : > { %v2737_v21 = vld [vmem:[#allocation4 + $0x51] sm:$0xff] }
 0x487   : > { %v2606_v23 = vld [vmem:[#allocation4 + $0x58] sm:$0xff]  ;;  %2563 = vst.msk [vmem:[#allocation4 + $0x60] sm:$0xff] %vm377_vm0, %v2519_v15  ;;  %v2781_v62 = vpack.c.bf16 %v2737_v21, %v2737_v21  ;;  %3284 = vmatpush.bf16.msra.mxu0 %v4846_v31  ;;  %3769 = vmatpush.bf16.msrb.mxu2 %v4868_v41  ;;  %v1809_v56 = vpop.f32.mrf.mxu1 }
 0x488   : > { %v2650_v53 = vpack.c.bf16 %v2606_v23, %v2606_v23  ;;  %v2337_v38 = vpop.f32.mrf.mxu3 }
 0x489   : > { %v2428_v2 = vadd.f32 %v2337_v38, %v1978_v60  ;;  %2879 = vrot.lane.b32.xlu2 %v2781_v62, %s4927_s21  ;;  %v1982_v21 = vpop.f32.mrf.mxu2 }
 0x48a   : > { %2694 = vst.msk [vmem:[#allocation5 + $0x2c] sm:$0xf] %vm589_vm2, %v2650_v53  ;;  %v1983_v60 = vadd.f32 %v1982_v21, %v1809_v56  ;;  %v4915_v56 = vld [vmem:[#allocation3 + $0x80] sm:$0xff] }
 0x48b   : > { %v2476_v16 = vadd.f32 %v5679_v12, %v2428_v2  ;;  %3285 = vmatpush.bf16.msra.mxu0 %v4845_v58 }
 0x48c   : > { %v4763_v6 = vld [vmem:[#allocation3 + $0x68] sm:$0xff] }
 0x48d   : > { %v2868_v3 = vpop.permute.xlu2 %2867  ;;  %v2520_v27 = vmax.f32 %v2476_v16, 0.0  ;;  %v4800_v9 = vld [vmem:[#allocation3 + $0x68] sm:$0xff] }
 0x48e   : > { %2996 = vst.msk [vmem:[#allocation5 + $0x10] sm:$0xf] %vm2991_vm6, %v2868_v3  ;;  %v2738_v8 = vld [vmem:[#allocation4 + $0x59] sm:$0xff] }
 0x48f   : > { %v2607_v51 = vld [vmem:[#allocation4 + $0x60] sm:$0xff]  ;;  %2564 = vst.msk [vmem:[#allocation4 + $0x68] sm:$0xff] %vm377_vm0, %v2520_v27  ;;  %v2782_v11 = vpack.c.bf16 %v2738_v8, %v2738_v8  ;;  %3286 = vmatpush.bf16.msra.mxu0 %v4844_v57 }
 0x490   : > { %v2651_v1 = vpack.c.bf16 %v2607_v51, %v2607_v51 }
 0x491   : > { %2881 = vrot.lane.b32.xlu0 %v2782_v11, %s4927_s21  ;;  %1831 = vmatmul.bf16.gmra.mxu1 %v4763_v6 }
 0x492   : > { %2695 = vst.msk [vmem:[#allocation5 + $0x30] sm:$0xf] %vm589_vm2, %v2651_v1  ;;  %2359 = vmatmul.bf16.gmra.mxu3 %v4800_v9  ;;  %2009 = vmatmul.bf16.gmra.mxu2 %v4763_v6 }
 0x495   : > { %v2862_v36 = vpop.permute.xlu2 %2861 }
 0x496   : > { %2993 = vst.msk [vmem:[#allocation5 + $0x4] sm:$0xf] %vm2991_vm6, %v2862_v36  ;;  %v2739_v20 = vld [vmem:[#allocation4 + $0x61] sm:$0xff] }
 0x497   : > { %v2608_v22 = vld [vmem:[#allocation4 + $0x68] sm:$0xff]  ;;  %v2783_v24 = vpack.c.bf16 %v2739_v20, %v2739_v20 }
 0x498   : > { %v2652_v28 = vpack.c.bf16 %v2608_v22, %v2608_v22 }
 0x499   : > { %2883 = vrot.lane.b32.xlu1 %v2783_v24, %s4927_s21 }
 0x49a   : > { %2696 = vst.msk [vmem:[#allocation5 + $0x34] sm:$0xf] %vm589_vm2, %v2652_v28  ;;  %v4840_v28 = vld [vmem:[%s6241_s6 + $0x8] sm:$0xff] }
 0x49b   : > { %3426 = vmatpush.bf16.msrb.mxu1 %v4840_v28 }
 0x49d   : > { %v1812_v41 = vpop.f32.mrf.mxu1 }
 0x49f   : > { %3427 = vmatpush.bf16.msrb.mxu1 %v4839_v39 }
 0x4a4   : > { %v1370_v48 = vpop.permute.xlu1 %1369  ;;  %v1368_v30 = vpop.permute.xlu0 %1367 }
 0x4a5   : > { %1485 = vst.msk [vmem:[#allocation3 + $0x74] sm:$0xf] %vm1455_vm5, %v1370_v48  ;;  %v2340_v49 = vpop.f32.mrf.mxu3  ;;  %v1814_v57 = vpop.f32.mrf.mxu1 }
 0x4a6   : > { %1484 = vst.msk [vmem:[#allocation3 + $0x70] sm:$0xf] %vm1455_vm5, %v1368_v30  ;;  %v2429_v18 = vadd.f32 %v2340_v49, %v1981_v46  ;;  %v1985_v46 = vpop.f32.mrf.mxu2 }
 0x4a7   : > { %v1986_v30 = vadd.f32 %v1985_v46, %v1812_v41 }
 0x4a8   : > { %v2477_v54 = vadd.f32 %v5679_v12, %v2429_v18 }
 0x4aa   : > { %v2521_v15 = vmax.f32 %v2477_v54, 0.0  ;;  %v2872_v23 = vpop.permute.xlu2 %2871  ;;  %v4803_v54 = vld [vmem:[#allocation3 + $0x80] sm:$0xff] }
 0x4ab   : > { %2998 = vst.msk [vmem:[#allocation5 + $0x18] sm:$0xf] %vm2991_vm6, %v2872_v23 }
 0x4ac   : > { %2565 = vst.msk [vmem:[#allocation4 + $0x70] sm:$0xff] %vm377_vm0, %v2521_v15  ;;  %v2860_v62 = vpop.permute.xlu1 %2859 }
 0x4ad   : > { %v2342_v53 = vpop.f32.mrf.mxu3  ;;  %v4764_v38 = vld [vmem:[#allocation3 + $0x70] sm:$0xff]  ;;  %2992 = vst.msk [vmem:[#allocation5] sm:$0xf] %vm2991_vm6, %v2860_v62 }
 0x4ae   : > { %v4801_v2 = vld [vmem:[#allocation3 + $0x70] sm:$0xff]  ;;  %v2430_v16 = vadd.f32 %v2342_v53, %v1983_v60  ;;  %1836 = vmatmul.bf16.gmra.mxu1 %v4764_v38  ;;  %2014 = vmatmul.bf16.gmra.mxu2 %v4764_v38  ;;  %v1987_v23 = vpop.f32.mrf.mxu2 }
 0x4af   : > { %2364 = vmatmul.bf16.gmra.mxu3 %v4801_v2  ;;  %v1988_v60 = vadd.f32 %v1987_v23, %v1814_v57  ;;  %v4805_v57 = vld [vmem:[#allocation3 + $0x90] sm:$0xff] }
 0x4b0   : > { %v2478_v3 = vadd.f32 %v5679_v12, %v2430_v16 }
 0x4b2   : > { %v2522_v27 = vmax.f32 %v2478_v3, 0.0 }
 0x4b3   : > { %v2740_v6 = vld [vmem:[#allocation4 + $0x69] sm:$0xff] }
 0x4b4   : > { %v2609_v8 = vld [vmem:[#allocation4 + $0x70] sm:$0xff]  ;;  %2566 = vst.msk [vmem:[#allocation4 + $0x78] sm:$0xff] %vm377_vm0, %v2522_v27  ;;  %v2866_v9 = vpop.permute.xlu1 %2865  ;;  %v2784_v51 = vpack.c.bf16 %v2740_v6, %v2740_v6 }
 0x4b5   : > { %v2653_v11 = vpack.c.bf16 %v2609_v8, %v2609_v8  ;;  %2995 = vst.msk [vmem:[#allocation5 + $0xc] sm:$0xf] %vm2991_vm6, %v2866_v9 }
 0x4b6   : > { %2885 = vrot.lane.b32.xlu2 %v2784_v51, %s4927_s21  ;;  %v1990_v41 = vpop.f32.mrf.mxu2 }
 0x4b7   : > { %2697 = vst.msk [vmem:[#allocation5 + $0x38] sm:$0xf] %vm589_vm2, %v2653_v11 }
 0x4ba   : > { %v2870_v1 = vpop.permute.xlu0 %2869 }
 0x4bb   : > { %v2741_v36 = vld [vmem:[#allocation4 + $0x71] sm:$0xff]  ;;  %2997 = vst.msk [vmem:[#allocation5 + $0x14] sm:$0xf] %vm2991_vm6, %v2870_v1 }
 0x4bc   : > { %v2610_v20 = vld [vmem:[#allocation4 + $0x78] sm:$0xff]  ;;  %v2785_v22 = vpack.c.bf16 %v2741_v36, %v2741_v36  ;;  %v4819_v36 = vld [vmem:[#allocation5] sm:$0xff] }
 0x4bd   : > { %v2654_v24 = vpack.c.bf16 %v2610_v20, %v2610_v20 }
 0x4be   : > { %2887 = vrot.lane.b32.xlu0 %v2785_v22, %s4927_s21  ;;  %1841 = vmatmul.bf16.gmra.mxu1 %v4914_v35  ;;  %v4804_v22 = vld [vmem:[#allocation3 + $0x88] sm:$0xff] }
 0x4bf   : > { %2698 = vst.msk [vmem:[#allocation5 + $0x3c] sm:$0xf] %vm589_vm2, %v2654_v24  ;;  %2369 = vmatmul.bf16.gmra.mxu3 %v4802_v34 }
 0x4c2   : > { %v2864_v43 = vpop.permute.xlu0 %2863  ;;  %v4848_v31 = vld [vmem:[#allocation5 + $0x10] sm:$0xff] }
 0x4c3   : > { %2994 = vst.msk [vmem:[#allocation5 + $0x8] sm:$0xf] %vm2991_vm6, %v2864_v43  ;;  %4714 = vmatmul.msk.bf16.vlgmr.msrb.gmra.mxu2 %vm327_vm1, %v4848_v31  ;;  %v4821_v6 = vld [vmem:[#allocation5 + $0x10] sm:$0xff] }
 0x4c6   : > { %v1817_v24 = vpop.f32.mrf.mxu1 }
 0x4ca   : > { %v5833_v48 = vld [vmem:[#allocation5 + $0x8] sm:$0xff] }
 0x4cb   : > { %4550 = vmatmul.msk.bf16.vlgmr.msra.gmra.mxu0 %vm327_vm1, %v5833_v48 }
 0x4cc   : > { %v2874_v49 = vpop.permute.xlu0 %2873 }
 0x4cd   : > { %2999 = vst.msk [vmem:[#allocation5 + $0x1c] sm:$0xf] %vm2991_vm6, %v2874_v49  ;;  %v2345_v18 = vpop.f32.mrf.mxu3 }
 0x4ce   : > { %v2431_v58 = vadd.f32 %v2345_v18, %v1986_v30  ;;  %1846 = vmatmul.bf16.gmra.mxu1 %v4915_v56  ;;  %v1819_v56 = vpop.f32.mrf.mxu1 }
 0x4cf   : > { %2374 = vmatmul.bf16.gmra.mxu3 %v4803_v54 }
 0x4d0   : > { %v2479_v15 = vadd.f32 %v5679_v12, %v2431_v58 }
 0x4d2   : > { %v2523_v21 = vmax.f32 %v2479_v15, 0.0 }
 0x4d4   : > { %2567 = vst.msk [vmem:[#allocation4 + $0x80] sm:$0xff] %vm377_vm0, %v2523_v21  ;;  %v728_v62 = vpop.permute.xlu0 %727  ;;  %v2876_v53 = vpop.permute.xlu1 %2875  ;;  %v4849_v38 = vld [vmem:[#allocation5 + $0x18] sm:$0xff] }
 0x4d5   : > { %732 = vst.msk [vmem:[#allocation2 + $0x178] sm:$0xf] %vm589_vm2, %v728_v62  ;;  %v2347_v2 = vpop.f32.mrf.mxu3  ;;  %4715 = vmatmul.msk.bf16.gmra.mxu2 %vm327_vm1, %v4849_v38  ;;  %v5858_v15 = vld [vmem:[#allocation5 + $0x18] sm:$0xff]  ;;  %v1992_v21 = vpop.f32.mrf.mxu2 }
 0x4d6   : > { %3000 = vst.msk [vmem:[#allocation5 + $0x20] sm:$0xf] %vm2991_vm6, %v2876_v53  ;;  %v2432_v16 = vadd.f32 %v2347_v2, %v1988_v60  ;;  %v1991_v60 = vadd.f32 %v1990_v41, %v1817_v24 }
 0x4d8   : > { %v2480_v3 = vadd.f32 %v5679_v12, %v2432_v16 }
 0x4da   : > { %v2524_v27 = vmax.f32 %v2480_v3, 0.0 }
 0x4db   : > { %v2878_v8 = vpop.permute.xlu2 %2877  ;;  %v2742_v9 = vld [vmem:[#allocation4 + $0x79] sm:$0xff]  ;;  %4551 = vmatmul.msk.bf16.gmra.mxu0 %vm327_vm1, %v4821_v6 }
 0x4dc   : > { %v2611_v51 = vld [vmem:[#allocation4 + $0x80] sm:$0xff]  ;;  %2568 = vst.msk [vmem:[#allocation4 + $0x88] sm:$0xff] %vm377_vm0, %v2524_v27  ;;  %v924_v11 = vpop.permute.xlu1 %923  ;;  %v2786_v1 = vpack.c.bf16 %v2742_v9, %v2742_v9  ;;  %v4806_v9 = vld [vmem:[#allocation3 + $0x98] sm:$0xff] }
 0x4dd   : > { %v2655_v20 = vpack.c.bf16 %v2611_v51, %v2611_v51  ;;  %3001 = vst.msk [vmem:[#allocation5 + $0x24] sm:$0xf] %vm2991_vm6, %v2878_v8  ;;  %v1995_v38 = vpop.f32.mrf.mxu2  ;;  %v1993_v8 = vadd.f32 %v1992_v21, %v1819_v56 }
 0x4de   : > { %1021 = vst.msk [vmem:[#allocation2 + $0x178] sm:$0xff] %vm973_vm3, %v924_v11  ;;  %2889 = vrot.lane.b32.xlu1 %v2786_v1, %s4927_s21  ;;  %4590 = vmatmul.msk.bf16.vlgmr.msrb.gmra.mxu1 %vm327_vm1, %v4819_v36 }
 0x4df   : > { %2379 = vmatmul.bf16.gmra.mxu3 %v4804_v22  ;;  %2699 = vst.msk [vmem:[#allocation5 + $0x40] sm:$0xf] %vm589_vm2, %v2655_v20 }
 0x4e3   : > { %v2880_v28 = vpop.permute.xlu2 %2879  ;;  %v2743_v34 = vld [vmem:[#allocation4 + $0x81] sm:$0xff] }
 0x4e4   : > { %v2612_v35 = vld [vmem:[#allocation4 + $0x88] sm:$0xff]  ;;  %3002 = vst.msk [vmem:[#allocation5 + $0x28] sm:$0xf] %vm2991_vm6, %v2880_v28  ;;  %v2787_v39 = vpack.c.bf16 %v2743_v34, %v2743_v34 }
 0x4e5   : > { %v4850_v43 = vld [vmem:[#allocation5 + $0x20] sm:$0xff]  ;;  %v2656_v31 = vpack.c.bf16 %v2612_v35, %v2612_v35  ;;  %v1214_v46 = vld [vmem:[#allocation2 + $0x179] sm:$0xff]  ;;  %v1997_v1 = vpop.f32.mrf.mxu2 }
 0x4e6   : > { %v1213_v30 = vld [vmem:[#allocation2 + $0x171] sm:$0xff]  ;;  %2891 = vrot.lane.b32.xlu1 %v2787_v39, %s4927_s21  ;;  %4716 = vmatmul.msk.bf16.gmra.mxu2 %vm327_vm1, %v4850_v43  ;;  %v1262_v18 = vpack.c.bf16 %v1214_v46, %v1214_v46 }
 0x4e7   : > { %v1069_v49 = vld [vmem:[#allocation2 + $0x178] sm:$0xff]  ;;  %v1261_v54 = vpack.c.bf16 %v1213_v30, %v1213_v30  ;;  %2700 = vst.msk [vmem:[#allocation5 + $0x44] sm:$0xf] %vm589_vm2, %v2656_v31  ;;  %v5865_v3 = vld [vmem:[#allocation5 + $0x20] sm:$0xff] }
 0x4e8   : > { %v1117_v58 = vpack.c.bf16 %v1069_v49, %v1069_v49  ;;  %1405 = vrot.lane.b32.xlu0 %v1262_v18, %s4929_s23 }
 0x4e9   : > { %1403 = vrot.lane.b32.xlu2 %v1261_v54, %s4929_s23 }
 0x4ea   : > { %1166 = vst.msk [vmem:[#allocation3 + $0xbc] sm:$0xf] %vm1118_vm4, %v1117_v58 }
 0x4eb   : > { %4552 = vmatmul.msk.bf16.gmra.mxu0 %vm327_vm1, %v5858_v15 }
 0x4ee   : > { %4591 = vmatmul.msk.bf16.gmra.mxu1 %vm327_vm1, %v5833_v48  ;;  %v1822_v23 = vpop.f32.mrf.mxu1 }
 0x4ef   : > { %2384 = vmatmul.bf16.gmra.mxu3 %v4805_v57  ;;  %v1996_v28 = vadd.f32 %v1995_v38, %v1822_v23  ;;  %v5889_v38 = vld [vmem:[%s6240_s5] ss:$0 sm:$0xff] }
 0x4f4   : > { %v2000_v41 = vpop.f32.mrf.mxu2 }
 0x4f5   : > { %v2350_v62 = vpop.f32.mrf.mxu3 }
 0x4f6   : > { %v2433_v53 = vadd.f32 %v2350_v62, %v1991_v60  ;;  %v1824_v27 = vpop.f32.mrf.mxu1  ;;  %v4807_v60 = vld [vmem:[#allocation3 + $0xa0] sm:$0xff] }
 0x4f7   : > { %v1998_v54 = vadd.f32 %v1997_v1, %v1824_v27 }
 0x4f8   : > { %v2481_v2 = vadd.f32 %v5679_v12, %v2433_v53 }
 0x4fa   : > { %v2525_v16 = vmax.f32 %v2481_v2, 0.0 }
 0x4fb   : > { %4553 = vmatmul.msk.bf16.gmra.mxu0 %vm327_vm1, %v5865_v3 }
 0x4fc   : > { %2569 = vst.msk [vmem:[#allocation4 + $0x90] sm:$0xff] %vm377_vm0, %v2525_v16  ;;  %v2002_v27 = vpop.f32.mrf.mxu2 }
 0x4fd   : > { %v2352_v48 = vpop.f32.mrf.mxu3 }
 0x4fe   : > { %v2434_v51 = vadd.f32 %v2352_v48, %v1993_v8  ;;  %4592 = vmatmul.msk.bf16.gmra.mxu1 %vm327_vm1, %v4821_v6  ;;  %v1827_v39 = vpop.f32.mrf.mxu1 }
 0x4ff   : > { %2389 = vmatmul.bf16.gmra.mxu3 %v4806_v9  ;;  %v2001_v9 = vadd.f32 %v2000_v41, %v1827_v39 }
 0x500   : > { %v2482_v11 = vadd.f32 %v5679_v12, %v2434_v51 }
 0x502   : > { %v2526_v36 = vmax.f32 %v2482_v11, 0.0 }
 0x503   : > { %v2882_v20 = vpop.permute.xlu0 %2881  ;;  %v2744_v22 = vld [vmem:[#allocation4 + $0x89] sm:$0xff] }
 0x504   : > { %v2613_v24 = vld [vmem:[#allocation4 + $0x90] sm:$0xff]  ;;  %2570 = vst.msk [vmem:[#allocation4 + $0x98] sm:$0xff] %vm377_vm0, %v2526_v36  ;;  %v2788_v34 = vpack.c.bf16 %v2744_v22, %v2744_v22 }
 0x505   : > { %v2657_v35 = vpack.c.bf16 %v2613_v24, %v2613_v24  ;;  %3003 = vst.msk [vmem:[#allocation5 + $0x2c] sm:$0xf] %vm2991_vm6, %v2882_v20  ;;  %v2355_v43 = vpop.f32.mrf.mxu3 }
 0x506   : > { %v2435_v31 = vadd.f32 %v2355_v43, %v1996_v28  ;;  %2893 = vrot.lane.b32.xlu2 %v2788_v34, %s4927_s21 }
 0x507   : > { %2701 = vst.msk [vmem:[#allocation5 + $0x48] sm:$0xf] %vm589_vm2, %v2657_v35 }
 0x508   : > { %v2483_v6 = vadd.f32 %v5679_v12, %v2435_v31  ;;  %v1829_v12 = vpop.f32.mrf.mxu1  ;;  %v2005_v31 = vpop.f32.mrf.mxu2 }
 0x509   : > { %v2003_v34 = vadd.f32 %v2002_v27, %v1829_v12  ;;  %v4809_v27 = vld [vmem:[#allocation3 + $0xb0] sm:$0xff] }
 0x50a   : > { %v2527_v46 = vmax.f32 %v2483_v6, 0.0 }
 0x50b   : > { %v2884_v30 = vpop.permute.xlu1 %2883  ;;  %v2745_v49 = vld [vmem:[#allocation4 + $0x91] sm:$0xff] }
 0x50c   : > { %v2614_v18 = vld [vmem:[#allocation4 + $0x98] sm:$0xff]  ;;  %2571 = vst.msk [vmem:[#allocation4 + $0xa0] sm:$0xff] %vm377_vm0, %v2527_v46  ;;  %v5878_v58 = vld [vmem:[#allocation5 + $0x28] sm:$0xff]  ;;  %v2789_v57 = vpack.c.bf16 %v2745_v49, %v2745_v49  ;;  %v4808_v46 = vld [vmem:[#allocation3 + $0xa8] sm:$0xff] }
 0x50d   : > { %v4851_v56 = vld [vmem:[#allocation5 + $0x28] sm:$0xff]  ;;  %v2658_v21 = vpack.c.bf16 %v2614_v18, %v2614_v18  ;;  %3004 = vst.msk [vmem:[#allocation5 + $0x30] sm:$0xf] %vm2991_vm6, %v2884_v30  ;;  %v2357_v23 = vpop.f32.mrf.mxu3  ;;  %4554 = vmatmul.msk.bf16.gmra.mxu0 %vm327_vm1, %v5878_v58 }
 0x50e   : > { %v2436_v62 = vadd.f32 %v2357_v23, %v1998_v54  ;;  %4717 = vmatmul.msk.bf16.gmra.mxu2 %vm327_vm1, %v4851_v56  ;;  %2895 = vrot.lane.b32.xlu0 %v2789_v57, %s4927_s21 }
 0x50f   : > { %2702 = vst.msk [vmem:[#allocation5 + $0x4c] sm:$0xf] %vm589_vm2, %v2658_v21  ;;  %2394 = vmatmul.bf16.gmra.mxu3 %v4807_v60  ;;  %4593 = vmatmul.msk.bf16.gmra.mxu1 %vm327_vm1, %v5858_v15 }
 0x510   : > { %v2886_v53 = vpop.permute.xlu2 %2885  ;;  %v2484_v2 = vadd.f32 %v5889_v38, %v2436_v62  ;;  %v1832_v15 = vpop.f32.mrf.mxu1 }
 0x511   : > { %3005 = vst.msk [vmem:[#allocation5 + $0x34] sm:$0xf] %vm2991_vm6, %v2886_v53  ;;  %v2007_v60 = vpop.f32.mrf.mxu2 }
 0x512   : > { %v2528_v16 = vmax.f32 %v2484_v2, 0.0 }
 0x513   : > { %v2746_v8 = vld [vmem:[#allocation4 + $0x99] sm:$0xff] }
 0x514   : > { %v2615_v48 = vld [vmem:[#allocation4 + $0xa0] sm:$0xff]  ;;  %2572 = vst.msk [vmem:[#allocation4 + $0xa8] sm:$0xff] %vm377_vm0, %v2528_v16  ;;  %v2790_v51 = vpack.c.bf16 %v2746_v8, %v2746_v8 }
 0x515   : > { %v2659_v11 = vpack.c.bf16 %v2615_v48, %v2615_v48  ;;  %v2360_v1 = vpop.f32.mrf.mxu3  ;;  %v2006_v48 = vadd.f32 %v2005_v31, %v1832_v15 }
 0x516   : > { %v2437_v36 = vadd.f32 %v2360_v1, %v2001_v9  ;;  %2897 = vrot.lane.b32.xlu1 %v2790_v51, %s4927_s21 }
 0x517   : > { %2703 = vst.msk [vmem:[#allocation5 + $0x50] sm:$0xf] %vm589_vm2, %v2659_v11 }
 0x518   : > { %v2485_v20 = vadd.f32 %v5889_v38, %v2437_v36  ;;  %v4825_v39 = vld [vmem:[#allocation5 + $0x30] sm:$0xff]  ;;  %v1834_v54 = vpop.f32.mrf.mxu1 }
 0x519   : > { %v4852_v41 = vld [vmem:[#allocation5 + $0x30] sm:$0xff] }
 0x51a   : > { %v2529_v22 = vmax.f32 %v2485_v20, 0.0  ;;  %v2008_v20 = vadd.f32 %v2007_v60, %v1834_v54 }
 0x51b   : > { %v2747_v24 = vld [vmem:[#allocation4 + $0xa1] sm:$0xff] }
 0x51c   : > { %v2616_v28 = vld [vmem:[#allocation4 + $0xa8] sm:$0xff]  ;;  %2573 = vst.msk [vmem:[#allocation4 + $0xb0] sm:$0xff] %vm377_vm0, %v2529_v22  ;;  %v2791_v35 = vpack.c.bf16 %v2747_v24, %v2747_v24 }
 0x51d   : > { %v2660_v43 = vpack.c.bf16 %v2616_v28, %v2616_v28  ;;  %v2362_v6 = vpop.f32.mrf.mxu3  ;;  %4555 = vmatmul.msk.bf16.gmra.mxu0 %vm327_vm1, %v4825_v39 }
 0x51e   : > { %v2438_v30 = vadd.f32 %v2362_v6, %v2003_v34  ;;  %2899 = vrot.lane.b32.xlu2 %v2791_v35, %s4927_s21  ;;  %4718 = vmatmul.msk.bf16.gmra.mxu2 %vm327_vm1, %v4852_v41 }
 0x51f   : > { %2704 = vst.msk [vmem:[#allocation5 + $0x54] sm:$0xf] %vm589_vm2, %v2660_v43  ;;  %2399 = vmatmul.bf16.gmra.mxu3 %v4808_v46  ;;  %4594 = vmatmul.msk.bf16.gmra.mxu1 %vm327_vm1, %v5865_v3  ;;  %v2010_v3 = vpop.f32.mrf.mxu2 }
 0x520   : > { %v2486_v49 = vadd.f32 %v5889_v38, %v2438_v30 }
 0x522   : > { %v2530_v18 = vmax.f32 %v2486_v49, 0.0 }
 0x523   : > { %v2748_v56 = vld [vmem:[#allocation4 + $0xa9] sm:$0xff] }
 0x524   : > { %v2617_v57 = vld [vmem:[#allocation4 + $0xb0] sm:$0xff]  ;;  %2574 = vst.msk [vmem:[#allocation4 + $0xb8] sm:$0xff] %vm377_vm0, %v2530_v18  ;;  %v2792_v21 = vpack.c.bf16 %v2748_v56, %v2748_v56 }
 0x525   : > { %v2661_v23 = vpack.c.bf16 %v2617_v57, %v2617_v57 }
 0x526   : > { %2901 = vrot.lane.b32.xlu0 %v2792_v21, %s4927_s21 }
 0x527   : > { %2705 = vst.msk [vmem:[#allocation5 + $0x58] sm:$0xf] %vm589_vm2, %v2661_v23  ;;  %v2012_v22 = vpop.f32.mrf.mxu2 }
 0x52b   : > { %v1837_v62 = vpop.f32.mrf.mxu1  ;;  %v2749_v12 = vld [vmem:[#allocation4 + $0xb1] sm:$0xff] }
 0x52c   : > { %v2618_v53 = vld [vmem:[#allocation4 + $0xb8] sm:$0xff]  ;;  %v2793_v2 = vpack.c.bf16 %v2749_v12, %v2749_v12  ;;  %v2011_v31 = vadd.f32 %v2010_v3, %v1837_v62 }
 0x52d   : > { %v2662_v16 = vpack.c.bf16 %v2618_v53, %v2618_v53 }
 0x52e   : > { %2903 = vrot.lane.b32.xlu1 %v2793_v2, %s4927_s21 }
 0x52f   : > { %2706 = vst.msk [vmem:[#allocation5 + $0x5c] sm:$0xf] %vm589_vm2, %v2662_v16  ;;  %2404 = vmatmul.bf16.gmra.mxu3 %v4809_v27  ;;  %4595 = vmatmul.msk.bf16.gmra.mxu1 %vm327_vm1, %v5878_v58 }
 0x530   : > { %v2888_v8 = vpop.permute.xlu0 %2887 }
 0x531   : > { %3006 = vst.msk [vmem:[#allocation5 + $0x38] sm:$0xf] %vm2991_vm6, %v2888_v8  ;;  %v2015_v6 = vpop.f32.mrf.mxu2 }
 0x532   : > { %v2365_v9 = vpop.f32.mrf.mxu3 }
 0x533   : > { %v2439_v51 = vadd.f32 %v2365_v9, %v2006_v48  ;;  %v1839_v11 = vpop.f32.mrf.mxu1 }
 0x534   : > { %v2013_v23 = vadd.f32 %v2012_v22, %v1839_v11 }
 0x535   : > { %v2487_v1 = vadd.f32 %v5889_v38, %v2439_v51 }
 0x537   : > { %v2531_v36 = vmax.f32 %v2487_v1, 0.0 }
 0x539   : > { %2575 = vst.msk [vmem:[#allocation4 + $0xc0] sm:$0xff] %vm377_vm0, %v2531_v36  ;;  %v2017_v53 = vpop.f32.mrf.mxu2 }
 0x53a   : > { %v2367_v24 = vpop.f32.mrf.mxu3 }
 0x53b   : > { %v2440_v28 = vadd.f32 %v2367_v24, %v2008_v20  ;;  %v1842_v34 = vpop.f32.mrf.mxu1 }
 0x53c   : > { %v2016_v11 = vadd.f32 %v2015_v6, %v1842_v34 }
 0x53d   : > { %v2488_v35 = vadd.f32 %v5889_v38, %v2440_v28 }
 0x53f   : > { %v2532_v43 = vmax.f32 %v2488_v35, 0.0  ;;  %4596 = vmatmul.msk.bf16.gmra.mxu1 %vm327_vm1, %v4825_v39 }
 0x540   : > { %v2750_v58 = vld [vmem:[#allocation4 + $0xb9] sm:$0xff] }
 0x541   : > { %v2619_v15 = vld [vmem:[#allocation4 + $0xc0] sm:$0xff]  ;;  %2576 = vst.msk [vmem:[#allocation4 + $0xc8] sm:$0xff] %vm377_vm0, %v2532_v43  ;;  %v2794_v41 = vpack.c.bf16 %v2750_v58, %v2750_v58 }
 0x542   : > { %v2663_v46 = vpack.c.bf16 %v2619_v15, %v2619_v15  ;;  %v2370_v49 = vpop.f32.mrf.mxu3 }
 0x543   : > { %v1404_v30 = vpop.permute.xlu2 %1403  ;;  %v2441_v18 = vadd.f32 %v2370_v49, %v2011_v31  ;;  %2905 = vrot.lane.b32.xlu2 %v2794_v41, %s4927_s21  ;;  %v1844_v54 = vpop.f32.mrf.mxu1 }
 0x544   : > { %1502 = vst.msk [vmem:[#allocation3 + $0xb8] sm:$0xf] %vm1455_vm5, %v1404_v30  ;;  %v2018_v6 = vadd.f32 %v2017_v53, %v1844_v54 }
 0x545   : > { %2707 = vst.msk [vmem:[#allocation5 + $0x60] sm:$0xf] %vm589_vm2, %v2663_v46  ;;  %v2489_v39 = vadd.f32 %v5889_v38, %v2441_v18 }
 0x546   : > { %v3771_v22 = vpop.f32.mrf.mxu2 }
 0x547   : > { %v2533_v56 = vmax.f32 %v2489_v39, 0.0 }
 0x548   : > { %v2751_v57 = vld [vmem:[#allocation4 + $0xc1] sm:$0xff]  ;;  %v3288_v3 = vpop.f32.mrf.mxu0 }
 0x549   : > { %v2620_v21 = vld [vmem:[#allocation4 + $0xc8] sm:$0xff]  ;;  %2577 = vst.msk [vmem:[#allocation4 + $0xd0] sm:$0xff] %vm377_vm0, %v2533_v56  ;;  %v2795_v60 = vpack.c.bf16 %v2751_v57, %v2751_v57 }
 0x54a   : > { %v2664_v62 = vpack.c.bf16 %v2620_v21, %v2620_v21  ;;  %v2372_v12 = vpop.f32.mrf.mxu3  ;;  %v5944_v21 = vld [vmem:[%s6242_s7] ss:$0 sm:$0xff] }
 0x54b   : > { %v2442_v2 = vadd.f32 %v2372_v12, %v2013_v23  ;;  %2907 = vrot.lane.b32.xlu0 %v2795_v60, %s4927_s21  ;;  %v1847_v16 = vpop.f32.mrf.mxu1 }
 0x54c   : > { %2708 = vst.msk [vmem:[#allocation5 + $0x64] sm:$0xf] %vm589_vm2, %v2664_v62 }
 0x54d   : > { %v2490_v27 = vadd.f32 %v5889_v38, %v2442_v2 }
 0x54e   : > { %v3773_v23 = vpop.f32.mrf.mxu2 }
 0x54f   : > { %v2534_v8 = vmax.f32 %v2490_v27, 0.0 }
 0x550   : > { %v2890_v48 = vpop.permute.xlu1 %2889  ;;  %v2752_v9 = vld [vmem:[#allocation4 + $0xc9] sm:$0xff]  ;;  %v3290_v58 = vpop.f32.mrf.mxu0 }
 0x551   : > { %v2621_v51 = vld [vmem:[#allocation4 + $0xd0] sm:$0xff]  ;;  %2578 = vst.msk [vmem:[#allocation4 + $0xd8] sm:$0xff] %vm377_vm0, %v2534_v8  ;;  %v2796_v1 = vpack.c.bf16 %v2752_v9, %v2752_v9  ;;  %v2021_v8 = vadd.f32 %v5586_v17, %v1847_v16 }
 0x552   : > { %v2665_v36 = vpack.c.bf16 %v2621_v51, %v2621_v51  ;;  %3007 = vst.msk [vmem:[#allocation5 + $0x3c] sm:$0xf] %vm2991_vm6, %v2890_v48  ;;  %v2375_v20 = vpop.f32.mrf.mxu3 }
 0x553   : > { %v2443_v24 = vadd.f32 %v2375_v20, %v2016_v11  ;;  %2909 = vrot.lane.b32.xlu1 %v2796_v1, %s4927_s21  ;;  %v1849_v28 = vpop.f32.mrf.mxu1 }
 0x554   : > { %2709 = vst.msk [vmem:[#allocation5 + $0x68] sm:$0xf] %vm589_vm2, %v2665_v36 }
 0x555   : > { %v2491_v35 = vadd.f32 %v5889_v38, %v2443_v24 }
 0x557   : > { %v2535_v43 = vmax.f32 %v2491_v35, 0.0 }
 0x558   : > { %v2892_v15 = vpop.permute.xlu1 %2891  ;;  %v2753_v34 = vld [vmem:[#allocation4 + $0xd1] sm:$0xff]  ;;  %v3293_v51 = vpop.f32.mrf.mxu0 }
 0x559   : > { %v2622_v31 = vld [vmem:[#allocation4 + $0xd8] sm:$0xff]  ;;  %2579 = vst.msk [vmem:[#allocation4 + $0xe0] sm:$0xff] %vm377_vm0, %v2535_v43  ;;  %v2797_v41 = vpack.c.bf16 %v2753_v34, %v2753_v34  ;;  %v4826_v46 = vld [vmem:[#allocation5 + $0x38] sm:$0xff]  ;;  %v3776_v24 = vpop.f32.mrf.mxu2 }
 0x55a   : > { %v4853_v30 = vld [vmem:[#allocation5 + $0x38] sm:$0xff]  ;;  %v2666_v49 = vpack.c.bf16 %v2622_v31, %v2622_v31  ;;  %v1406_v18 = vpop.permute.xlu0 %1405  ;;  %3008 = vst.msk [vmem:[#allocation5 + $0x40] sm:$0xf] %vm2991_vm6, %v2892_v15  ;;  %v2377_v39 = vpop.f32.mrf.mxu3  ;;  %4556 = vmatmul.msk.bf16.gmra.mxu0 %vm327_vm1, %v4826_v46  ;;  %4597 = vmatmul.msk.bf16.gmra.mxu1 %vm327_vm1, %v4826_v46  ;;  %v2023_v31 = vadd.f32 %v5593_v26, %v1849_v28 }
 0x55b   : > { %1503 = vst.msk [vmem:[#allocation3 + $0xbc] sm:$0xf] %vm1455_vm5, %v1406_v18  ;;  %v2444_v56 = vadd.f32 %v2377_v39, %v2018_v6  ;;  %2911 = vrot.lane.b32.xlu2 %v2797_v41, %s4927_s21  ;;  %v3429_v57 = vpop.f32.mrf.mxu1  ;;  %4719 = vmatmul.msk.bf16.gmra.mxu2 %vm327_vm1, %v4853_v30 }
 0x55c   : > { %v3430_v54 = vadd.f32 %v3429_v57, %v3288_v3  ;;  %2710 = vst.msk [vmem:[#allocation5 + $0x6c] sm:$0xf] %vm589_vm2, %v2666_v49 }
 0x55d   : > { %v2492_v60 = vadd.f32 %v5889_v38, %v2444_v56 }
 0x55e   : > { %v3871_v62 = vadd.f32 %v3771_v22, %v3430_v54 }
 0x55f   : > { %v2536_v12 = vmax.f32 %v2492_v60, 0.0 }
 0x560   : > { %v3915_v53 = vadd.f32 %v5944_v21, %v3871_v62  ;;  %v2894_v2 = vpop.permute.xlu2 %2893  ;;  %v2754_v27 = vld [vmem:[#allocation4 + $0xd9] sm:$0xff]  ;;  %v3295_v39 = vpop.f32.mrf.mxu0  ;;  %v2026_v62 = vadd.f32 %v5600_v42, %v5480_v61 }
 0x561   : > { %v2623_v3 = vld [vmem:[#allocation4 + $0xe0] sm:$0xff]  ;;  %2580 = vst.msk [vmem:[#allocation4 + $0xe8] sm:$0xff] %vm377_vm0, %v2536_v12  ;;  %v2798_v48 = vpack.c.bf16 %v2754_v27, %v2754_v27  ;;  %v3778_v12 = vpop.f32.mrf.mxu2 }
 0x562   : > { %v2667_v9 = vpack.c.bf16 %v2623_v3, %v2623_v3  ;;  %3955 = vst.msk [vmem:[%s5951_s15] sm:$0xff] %vm377_vm0, %v3915_v53  ;;  %v2380_v11 = vpop.f32.mrf.mxu3  ;;  %v4810_v1 = vld [vmem:[#allocation3 + $0xb8] sm:$0xff] }
 0x563   : > { %3009 = vst.msk [vmem:[#allocation5 + $0x44] sm:$0xf] %vm2991_vm6, %v2894_v2  ;;  %v2445_v36 = vadd.f32 %v2380_v11, %v2021_v8  ;;  %2913 = vrot.lane.b32.xlu0 %v2798_v48, %s4927_s21  ;;  %v3431_v20 = vpop.f32.mrf.mxu1  ;;  %2409 = vmatmul.bf16.gmra.mxu3 %v4810_v1 }
 0x564   : > { %v3432_v22 = vadd.f32 %v3431_v20, %v3290_v58  ;;  %2711 = vst.msk [vmem:[#allocation5 + $0x70] sm:$0xf] %vm589_vm2, %v2667_v9 }
 0x565   : > { %v2493_v17 = vadd.f32 %v5889_v38, %v2445_v36 }
 0x566   : > { %v3872_v16 = vadd.f32 %v3773_v23, %v3432_v22  ;;  %v2028_v22 = vadd.f32 %v5606_v55, %v5489_v7 }
 0x567   : > { %v2537_v35 = vmax.f32 %v2493_v17, 0.0 }
 0x568   : > { %v3916_v43 = vadd.f32 %v5944_v21, %v3872_v16  ;;  %v2755_v15 = vld [vmem:[#allocation4 + $0xe1] sm:$0xff] }
 0x569   : > { %v2624_v34 = vld [vmem:[#allocation4 + $0xe8] sm:$0xff]  ;;  %2581 = vst.msk [vmem:[#allocation4 + $0xf0] sm:$0xff] %vm377_vm0, %v2537_v35  ;;  %v2799_v6 = vpack.c.bf16 %v2755_v15, %v2755_v15  ;;  %v3781_v35 = vpop.f32.mrf.mxu2 }
 0x56a   : > { %v2668_v41 = vpack.c.bf16 %v2624_v34, %v2624_v34  ;;  %3956 = vst.msk [vmem:[%s5951_s15 + $0x8] sm:$0xff] %vm377_vm0, %v3916_v43  ;;  %v2382_v58 = vpop.f32.mrf.mxu3  ;;  %v4827_v46 = vld [vmem:[#allocation5 + $0x40] sm:$0xff] }
 0x56b   : > { %v4854_v30 = vld [vmem:[#allocation5 + $0x40] sm:$0xff]  ;;  %v2446_v49 = vadd.f32 %v2382_v58, %v2023_v31  ;;  %2915 = vrot.lane.b32.xlu1 %v2799_v6, %s4927_s21  ;;  %v3434_v18 = vpop.f32.mrf.mxu1  ;;  %4557 = vmatmul.msk.bf16.gmra.mxu0 %vm327_vm1, %v4827_v46 }
 0x56c   : > { %2712 = vst.msk [vmem:[#allocation5 + $0x74] sm:$0xf] %vm589_vm2, %v2668_v41  ;;  %4598 = vmatmul.msk.bf16.gmra.mxu1 %vm327_vm1, %v4827_v46  ;;  %v3435_v26 = vadd.f32 %v3434_v18, %v3293_v51  ;;  %4720 = vmatmul.msk.bf16.gmra.mxu2 %vm327_vm1, %v4854_v30  ;;  %v3298_v51 = vpop.f32.mrf.mxu0  ;;  %v2031_v30 = vadd.f32 %v5617_v63, %v5502_v14 }
 0x56d   : > { %v2494_v28 = vadd.f32 %v5889_v38, %v2446_v49 }
 0x56e   : > { %v3873_v56 = vadd.f32 %v3776_v24, %v3435_v26 }
 0x56f   : > { %v2538_v57 = vmax.f32 %v2494_v28, 0.0 }
 0x570   : > { %v3917_v54 = vadd.f32 %v5944_v21, %v3873_v56  ;;  %v2756_v23 = vld [vmem:[#allocation4 + $0xe9] sm:$0xff] }
 0x571   : > { %v2625_v60 = vld [vmem:[#allocation4 + $0xf0] sm:$0xff]  ;;  %2582 = vst.msk [vmem:[#allocation4 + $0xf8] sm:$0xff] %vm377_vm0, %v2538_v57  ;;  %v2800_v53 = vpack.c.bf16 %v2756_v23, %v2756_v23 }
 0x572   : > { %v2669_v2 = vpack.c.bf16 %v2625_v60, %v2625_v60  ;;  %3957 = vst.msk [vmem:[%s5951_s15 + $0x10] sm:$0xff] %vm377_vm0, %v3917_v54  ;;  %v2385_v27 = vpop.f32.mrf.mxu3  ;;  %v3783_v54 = vpop.f32.mrf.mxu2 }
 0x573   : > { %v2447_v3 = vadd.f32 %v2385_v27, %v2026_v62  ;;  %2917 = vrot.lane.b32.xlu2 %v2800_v53, %s4927_s21  ;;  %v3436_v8 = vpop.f32.mrf.mxu1 }
 0x574   : > { %2713 = vst.msk [vmem:[#allocation5 + $0x78] sm:$0xf] %vm589_vm2, %v2669_v2  ;;  %v3437_v48 = vadd.f32 %v3436_v8, %v3295_v39  ;;  %v3300_v6 = vpop.f32.mrf.mxu0  ;;  %v2033_v2 = vadd.f32 %v5628_v5, %v5517_v13 }
 0x575   : > { %v2495_v9 = vadd.f32 %v5889_v38, %v2447_v3 }
 0x576   : > { %v3874_v61 = vadd.f32 %v3778_v12, %v3437_v48 }
 0x577   : > { %v2539_v42 = vmax.f32 %v2495_v9, 0.0 }
 0x578   : > { %v3918_v11 = vadd.f32 %v5944_v21, %v3874_v61  ;;  %v2900_v1 = vpop.permute.xlu2 %2899  ;;  %v2757_v36 = vld [vmem:[#allocation4 + $0xf1] sm:$0xff] }
 0x579   : > { %v2626_v20 = vld [vmem:[#allocation4 + $0xf8] sm:$0xff]  ;;  %2583 = vst.msk [vmem:[#allocation4 + $0x100] sm:$0xff] %vm377_vm0, %v2539_v42  ;;  %v2801_v17 = vpack.c.bf16 %v2757_v36, %v2757_v36 }
 0x57a   : > { %v2670_v16 = vpack.c.bf16 %v2626_v20, %v2626_v20  ;;  %3958 = vst.msk [vmem:[%s5951_s15 + $0x18] sm:$0xff] %vm377_vm0, %v3918_v11  ;;  %v2387_v24 = vpop.f32.mrf.mxu3 }
 0x57b   : > { %3012 = vst.msk [vmem:[#allocation5 + $0x50] sm:$0xf] %vm2991_vm6, %v2900_v1  ;;  %v2448_v43 = vadd.f32 %v2387_v24, %v2028_v22  ;;  %2919 = vrot.lane.b32.xlu0 %v2801_v17, %s4927_s21  ;;  %v3439_v15 = vpop.f32.mrf.mxu1  ;;  %v2036_v1 = vadd.f32 %v5636_v40, %v5524_v37 }
 0x57c   : > { %v3440_v34 = vadd.f32 %v3439_v15, %v3298_v51  ;;  %2714 = vst.msk [vmem:[#allocation5 + $0x7c] sm:$0xf] %vm589_vm2, %v2670_v16  ;;  %v3303_v8 = vpop.f32.mrf.mxu0 }
 0x57d   : > { %v2496_v7 = vadd.f32 %v5889_v38, %v2448_v43 }
 0x57e   : > { %v3875_v55 = vadd.f32 %v3781_v35, %v3440_v34 }
 0x57f   : > { %v2540_v31 = vmax.f32 %v2496_v7, 0.0 }
 0x580   : > { %v3919_v41 = vadd.f32 %v5944_v21, %v3875_v55  ;;  %v2758_v58 = vld [vmem:[#allocation4 + $0xf9] sm:$0xff]  ;;  %v2896_v49 = vpop.permute.xlu0 %2895 }
 0x581   : > { %v2627_v46 = vld [vmem:[#allocation4 + $0x100] sm:$0xff]  ;;  %2584 = vst.msk [vmem:[#allocation4 + $0x108] sm:$0xff] %vm377_vm0, %v2540_v31  ;;  %v2802_v18 = vpack.c.bf16 %v2758_v58, %v2758_v58  ;;  %v2038_v58 = vadd.f32 %v5642_v29, %v5535_v44 }
 0x582   : > { %v2671_v39 = vpack.c.bf16 %v2627_v46, %v2627_v46  ;;  %3959 = vst.msk [vmem:[%s5951_s15 + $0x20] sm:$0xff] %vm377_vm0, %v3919_v41  ;;  %v2390_v26 = vpop.f32.mrf.mxu3 }
 0x583   : > { %3010 = vst.msk [vmem:[#allocation5 + $0x48] sm:$0xf] %vm2991_vm6, %v2896_v49  ;;  %v2449_v28 = vadd.f32 %v2390_v26, %v2031_v30  ;;  %2921 = vrot.lane.b32.xlu1 %v2802_v18, %s4927_s21  ;;  %v3441_v56 = vpop.f32.mrf.mxu1 }
 0x584   : > { %v3442_v57 = vadd.f32 %v3441_v56, %v3300_v6  ;;  %2715 = vst.msk [vmem:[#allocation5 + $0x80] sm:$0xf] %vm589_vm2, %v2671_v39  ;;  %v3305_v15 = vpop.f32.mrf.mxu0 }
 0x585   : > { %v2497_v14 = vadd.f32 %v5889_v38, %v2449_v28 }
 0x586   : > { %v3876_v63 = vadd.f32 %v3783_v54, %v3442_v57 }
 0x587   : > { %v2541_v23 = vmax.f32 %v2497_v14, 0.0 }
 0x588   : > { %v3920_v60 = vadd.f32 %v5944_v21, %v3876_v63  ;;  %v2898_v62 = vpop.permute.xlu1 %2897  ;;  %v2759_v12 = vld [vmem:[#allocation4 + $0x101] sm:$0xff] }
 0x589   : > { %v2628_v53 = vld [vmem:[#allocation4 + $0x108] sm:$0xff]  ;;  %2585 = vst.msk [vmem:[#allocation4 + $0x110] sm:$0xff] %vm377_vm0, %v2541_v23  ;;  %v2803_v27 = vpack.c.bf16 %v2759_v12, %v2759_v12 }
 0x58a   : > { %v2672_v3 = vpack.c.bf16 %v2628_v53, %v2628_v53  ;;  %3960 = vst.msk [vmem:[%s5951_s15 + $0x28] sm:$0xff] %vm377_vm0, %v3920_v60  ;;  %v2392_v48 = vpop.f32.mrf.mxu3  ;;  %v2041_v60 = vadd.f32 %v5646_v32, %v5539_v33 }
 0x58b   : > { %3011 = vst.msk [vmem:[#allocation5 + $0x4c] sm:$0xf] %vm2991_vm6, %v2898_v62  ;;  %v2450_v9 = vadd.f32 %v2392_v48, %v2033_v2  ;;  %2923 = vrot.lane.b32.xlu2 %v2803_v27, %s4927_s21 }
 0x58c   : > { %2716 = vst.msk [vmem:[#allocation5 + $0x84] sm:$0xf] %vm589_vm2, %v2672_v3  ;;  %v3444_v61 = vpop.f32.mrf.mxu1  ;;  %v3308_v57 = vpop.f32.mrf.mxu0 }
 0x58d   : > { %v2498_v51 = vadd.f32 %v5889_v38, %v2450_v9  ;;  %v3445_v13 = vadd.f32 %v3444_v61, %v3303_v8 }
 0x58f   : > { %v2542_v42 = vmax.f32 %v2498_v51, 0.0 }
 0x590   : > { %v2760_v5 = vld [vmem:[#allocation4 + $0x109] sm:$0xff] }
 0x591   : > { %v2629_v11 = vld [vmem:[#allocation4 + $0x110] sm:$0xff]  ;;  %2586 = vst.msk [vmem:[#allocation4 + $0x118] sm:$0xff] %vm377_vm0, %v2542_v42  ;;  %v3786_v36 = vpop.f32.mrf.mxu2  ;;  %v2804_v20 = vpack.c.bf16 %v2760_v5, %v2760_v5 }
 0x592   : > { %v2673_v22 = vpack.c.bf16 %v2629_v11, %v2629_v11  ;;  %v3877_v17 = vadd.f32 %v3786_v36, %v3445_v13  ;;  %v2395_v16 = vpop.f32.mrf.mxu3  ;;  %v4828_v24 = vld [vmem:[#allocation5 + $0x48] sm:$0xff]  ;;  %v2043_v11 = vadd.f32 %v5648_v47, %v5545_v50 }
 0x593   : > { %v4855_v35 = vld [vmem:[#allocation5 + $0x48] sm:$0xff]  ;;  %v2451_v43 = vadd.f32 %v2395_v16, %v2036_v1  ;;  %2925 = vrot.lane.b32.xlu0 %v2804_v20, %s4927_s21  ;;  %4558 = vmatmul.msk.bf16.gmra.mxu0 %vm327_vm1, %v4828_v24 }
 0x594   : > { %2717 = vst.msk [vmem:[#allocation5 + $0x88] sm:$0xf] %vm589_vm2, %v2673_v22  ;;  %v3921_v34 = vadd.f32 %v5944_v21, %v3877_v17  ;;  %4599 = vmatmul.msk.bf16.gmra.mxu1 %vm327_vm1, %v4828_v24  ;;  %4721 = vmatmul.msk.bf16.gmra.mxu2 %vm327_vm1, %v4855_v35  ;;  %v3446_v40 = vpop.f32.mrf.mxu1  ;;  %v3310_v42 = vpop.f32.mrf.mxu0 }
 0x595   : > { %v2499_v37 = vadd.f32 %v5889_v38, %v2451_v43  ;;  %v3447_v55 = vadd.f32 %v3446_v40, %v3305_v15 }
 0x596   : > { %3961 = vst.msk [vmem:[%s5951_s15 + $0x30] sm:$0xff] %vm377_vm0, %v3921_v34  ;;  %v2046_v34 = vadd.f32 %v5653_v45, %v5555_v19 }
 0x597   : > { %v2543_v7 = vmax.f32 %v2499_v37, 0.0 }
 0x598   : > { %v2902_v31 = vpop.permute.xlu0 %2901  ;;  %v2761_v6 = vld [vmem:[#allocation4 + $0x111] sm:$0xff] }
 0x599   : > { %v2630_v41 = vld [vmem:[#allocation4 + $0x118] sm:$0xff]  ;;  %2587 = vst.msk [vmem:[#allocation4 + $0x120] sm:$0xff] %vm377_vm0, %v2543_v7  ;;  %v3788_v46 = vpop.f32.mrf.mxu2  ;;  %v2805_v30 = vpack.c.bf16 %v2761_v6, %v2761_v6 }
 0x59a   : > { %v2674_v49 = vpack.c.bf16 %v2630_v41, %v2630_v41  ;;  %3013 = vst.msk [vmem:[#allocation5 + $0x54] sm:$0xf] %vm2991_vm6, %v2902_v31  ;;  %v3878_v18 = vadd.f32 %v3788_v46, %v3447_v55  ;;  %v2397_v39 = vpop.f32.mrf.mxu3 }
 0x59b   : > { %v2452_v26 = vadd.f32 %v2397_v39, %v2038_v58  ;;  %2927 = vrot.lane.b32.xlu1 %v2805_v30, %s4927_s21  ;;  %v2048_v30 = vadd.f32 %v5659_v52, %v5564_v59 }
 0x59c   : > { %2718 = vst.msk [vmem:[#allocation5 + $0x8c] sm:$0xf] %vm589_vm2, %v2674_v49  ;;  %v3922_v28 = vadd.f32 %v5944_v21, %v3878_v18  ;;  %v3449_v44 = vpop.f32.mrf.mxu1 }
 0x59d   : > { %v2500_v56 = vadd.f32 %v5889_v38, %v2452_v26  ;;  %v2906_v29 = vpop.permute.xlu2 %2905  ;;  %v3450_v62 = vadd.f32 %v3449_v44, %v3308_v57 }
 0x59e   : > { %3962 = vst.msk [vmem:[%s5951_s15 + $0x38] sm:$0xff] %vm377_vm0, %v3922_v28 }
 0x59f   : > { %v2544_v54 = vmax.f32 %v2500_v56, 0.0  ;;  %3015 = vst.msk [vmem:[#allocation5 + $0x5c] sm:$0xf] %vm2991_vm6, %v2906_v29 }
 0x5a0   : > { %v2904_v14 = vpop.permute.xlu1 %2903  ;;  %v2762_v63 = vld [vmem:[#allocation4 + $0x119] sm:$0xff] }
 0x5a1   : > { %v2631_v23 = vld [vmem:[#allocation4 + $0x120] sm:$0xff]  ;;  %2588 = vst.msk [vmem:[#allocation4 + $0x128] sm:$0xff] %vm377_vm0, %v2544_v54  ;;  %v2806_v12 = vpack.c.bf16 %v2762_v63, %v2762_v63  ;;  %v4829_v53 = vld [vmem:[#allocation5 + $0x50] sm:$0xff]  ;;  %v3791_v3 = vpop.f32.mrf.mxu2 }
 0x5a2   : > { %v4856_v2 = vld [vmem:[#allocation5 + $0x50] sm:$0xff]  ;;  %v2675_v27 = vpack.c.bf16 %v2631_v23, %v2631_v23  ;;  %3014 = vst.msk [vmem:[#allocation5 + $0x58] sm:$0xf] %vm2991_vm6, %v2904_v14  ;;  %v2400_v8 = vpop.f32.mrf.mxu3  ;;  %v3879_v48 = vadd.f32 %v3791_v3, %v3450_v62  ;;  %v3313_v3 = vpop.f32.mrf.mxu0 }
 0x5a3   : > { %v2453_v9 = vadd.f32 %v2400_v8, %v2041_v60  ;;  %2929 = vrot.lane.b32.xlu2 %v2806_v12, %s4927_s21  ;;  %4559 = vmatmul.msk.bf16.gmra.mxu0 %vm327_vm1, %v4829_v53 }
 0x5a4   : > { %2719 = vst.msk [vmem:[#allocation5 + $0x90] sm:$0xf] %vm589_vm2, %v2675_v27  ;;  %4600 = vmatmul.msk.bf16.gmra.mxu1 %vm327_vm1, %v4829_v53  ;;  %v3923_v33 = vadd.f32 %v5944_v21, %v3879_v48  ;;  %4722 = vmatmul.msk.bf16.gmra.mxu2 %vm327_vm1, %v4856_v2  ;;  %v3451_v51 = vpop.f32.mrf.mxu1 }
 0x5a5   : > { %v2501_v32 = vadd.f32 %v5889_v38, %v2453_v9  ;;  %v3452_v1 = vadd.f32 %v3451_v51, %v3310_v42 }
 0x5a6   : > { %3963 = vst.msk [vmem:[%s5951_s15 + $0x40] sm:$0xff] %vm377_vm0, %v3923_v33 }
 0x5a7   : > { %v2545_v61 = vmax.f32 %v2501_v32, 0.0 }
 0x5a8   : > { %v2763_v13 = vld [vmem:[#allocation4 + $0x121] sm:$0xff] }
 0x5a9   : > { %v2632_v5 = vld [vmem:[#allocation4 + $0x128] sm:$0xff]  ;;  %2589 = vst.msk [vmem:[#allocation4 + $0x130] sm:$0xff] %vm377_vm0, %v2545_v61  ;;  %v2807_v36 = vpack.c.bf16 %v2763_v13, %v2763_v13  ;;  %v3793_v22 = vpop.f32.mrf.mxu2  ;;  %v4830_v55 = vld [vmem:[#allocation5 + $0x58] sm:$0xff] }
 0x5aa   : > { %v2676_v20 = vpack.c.bf16 %v2632_v5, %v2632_v5  ;;  %v2402_v17 = vpop.f32.mrf.mxu3  ;;  %v3880_v16 = vadd.f32 %v3793_v22, %v3452_v1  ;;  %v4857_v6 = vld [vmem:[#allocation5 + $0x58] sm:$0xff]  ;;  %v3315_v42 = vpop.f32.mrf.mxu0 }
 0x5ab   : > { %v2454_v24 = vadd.f32 %v2402_v17, %v2043_v11  ;;  %2931 = vrot.lane.b32.xlu0 %v2807_v36, %s4927_s21  ;;  %v2051_v11 = vadd.f32 %v5666_v25, %v5570_v0  ;;  %v2053_v0 = vadd.f32 %v5673_v4, %v5577_v10 }
 0x5ac   : > { %2720 = vst.msk [vmem:[#allocation5 + $0x94] sm:$0xf] %vm589_vm2, %v2676_v20  ;;  %v3924_v35 = vadd.f32 %v5944_v21, %v3880_v16  ;;  %v3454_v27 = vpop.f32.mrf.mxu1 }
 0x5ad   : > { %v2502_v43 = vadd.f32 %v5889_v38, %v2454_v24  ;;  %v3455_v33 = vadd.f32 %v3454_v27, %v3313_v3 }
 0x5ae   : > { %3964 = vst.msk [vmem:[%s5951_s15 + $0x48] sm:$0xff] %vm377_vm0, %v3924_v35 }
 0x5af   : > { %v2546_v50 = vmax.f32 %v2502_v43, 0.0 }
 0x5b0   : > { %v2764_v47 = vld [vmem:[#allocation4 + $0x129] sm:$0xff] }
 0x5b1   : > { %v2633_v15 = vld [vmem:[#allocation4 + $0x130] sm:$0xff]  ;;  %2590 = vst.msk [vmem:[#allocation4 + $0x138] sm:$0xff] %vm377_vm0, %v2546_v50  ;;  %v2808_v37 = vpack.c.bf16 %v2764_v47, %v2764_v47 }
 0x5b2   : > { %v2677_v40 = vpack.c.bf16 %v2633_v15, %v2633_v15  ;;  %v2405_v7 = vpop.f32.mrf.mxu3 }
 0x5b3   : > { %v2455_v31 = vadd.f32 %v2405_v7, %v2046_v34  ;;  %2933 = vrot.lane.b32.xlu1 %v2808_v37, %s4927_s21  ;;  %4560 = vmatmul.msk.bf16.gmra.mxu0 %vm327_vm1, %v4830_v55 }
 0x5b4   : > { %2721 = vst.msk [vmem:[#allocation5 + $0x98] sm:$0xf] %vm589_vm2, %v2677_v40  ;;  %4601 = vmatmul.msk.bf16.gmra.mxu1 %vm327_vm1, %v4830_v55  ;;  %4723 = vmatmul.msk.bf16.gmra.mxu2 %vm327_vm1, %v4857_v6  ;;  %v3456_v61 = vpop.f32.mrf.mxu1 }
 0x5b5   : > { %v2503_v41 = vadd.f32 %v5889_v38, %v2455_v31  ;;  %v2912_v19 = vpop.permute.xlu2 %2911  ;;  %v3457_v1 = vadd.f32 %v3456_v61, %v3315_v42 }
 0x5b6   : > { %3018 = vst.msk [vmem:[#allocation5 + $0x68] sm:$0xf] %vm2991_vm6, %v2912_v19 }
 0x5b7   : > { %v2547_v45 = vmax.f32 %v2503_v41, 0.0 }
 0x5b8   : > { %v2765_v58 = vld [vmem:[#allocation4 + $0x131] sm:$0xff] }
 0x5b9   : > { %v2634_v46 = vld [vmem:[#allocation4 + $0x138] sm:$0xff]  ;;  %2591 = vst.msk [vmem:[#allocation4 + $0x140] sm:$0xff] %vm377_vm0, %v2547_v45  ;;  %v2809_v49 = vpack.c.bf16 %v2765_v58, %v2765_v58 }
 0x5ba   : > { %v2678_v18 = vpack.c.bf16 %v2634_v46, %v2634_v46  ;;  %v2407_v39 = vpop.f32.mrf.mxu3 }
 0x5bb   : > { %v2456_v26 = vadd.f32 %v2407_v39, %v2048_v30  ;;  %2935 = vrot.lane.b32.xlu2 %v2809_v49, %s4927_s21 }
 0x5bc   : > { %2722 = vst.msk [vmem:[#allocation5 + $0x9c] sm:$0xf] %vm589_vm2, %v2678_v18  ;;  %v3459_v43 = vpop.f32.mrf.mxu1 }
 0x5bd   : > { %v2504_v28 = vadd.f32 %v5889_v38, %v2456_v26  ;;  %v2908_v56 = vpop.permute.xlu0 %2907 }
 0x5be   : > { %3016 = vst.msk [vmem:[#allocation5 + $0x60] sm:$0xf] %vm2991_vm6, %v2908_v56 }
 0x5bf   : > { %v2548_v44 = vmax.f32 %v2504_v28, 0.0 }
 0x5c0   : > { %v2766_v29 = vld [vmem:[#allocation4 + $0x139] sm:$0xff] }
 0x5c1   : > { %v2635_v57 = vld [vmem:[#allocation4 + $0x140] sm:$0xff]  ;;  %2592 = vst.msk [vmem:[#allocation4 + $0x148] sm:$0xff] %vm377_vm0, %v2548_v44  ;;  %v2810_v59 = vpack.c.bf16 %v2766_v29, %v2766_v29 }
 0x5c2   : > { %v2679_v52 = vpack.c.bf16 %v2635_v57, %v2635_v57 }
 0x5c3   : > { %2937 = vrot.lane.b32.xlu0 %v2810_v59, %s4927_s21 }
 0x5c4   : > { %2723 = vst.msk [vmem:[#allocation5 + $0xa0] sm:$0xf] %vm589_vm2, %v2679_v52  ;;  %v3461_v41 = vpop.f32.mrf.mxu1 }
 0x5c5   : > { %v2910_v54 = vpop.permute.xlu1 %2909 }
 0x5c6   : > { %3017 = vst.msk [vmem:[#allocation5 + $0x64] sm:$0xf] %vm2991_vm6, %v2910_v54 }
 0x5c8   : > { %v2767_v14 = vld [vmem:[#allocation4 + $0x141] sm:$0xff] }
 0x5c9   : > { %v2636_v63 = vld [vmem:[#allocation4 + $0x148] sm:$0xff]  ;;  %v2811_v23 = vpack.c.bf16 %v2767_v14, %v2767_v14 }
 0x5ca   : > { %v2680_v60 = vpack.c.bf16 %v2636_v63, %v2636_v63 }
 0x5cb   : > { %2939 = vrot.lane.b32.xlu1 %v2811_v23, %s4927_s21 }
 0x5cc   : > { %2724 = vst.msk [vmem:[#allocation5 + $0xa4] sm:$0xf] %vm589_vm2, %v2680_v60 }
 0x5cd   : > { %v2918_v62 = vpop.permute.xlu2 %2917  ;;  %v4831_v12 = vld [vmem:[#allocation5 + $0x60] sm:$0xff] }
 0x5ce   : > { %v4858_v53 = vld [vmem:[#allocation5 + $0x60] sm:$0xff]  ;;  %3021 = vst.msk [vmem:[#allocation5 + $0x74] sm:$0xf] %vm2991_vm6, %v2918_v62  ;;  %4561 = vmatmul.msk.bf16.gmra.mxu0 %vm327_vm1, %v4831_v12  ;;  %4602 = vmatmul.msk.bf16.gmra.mxu1 %vm327_vm1, %v4831_v12 }
 0x5cf   : > { %4724 = vmatmul.msk.bf16.gmra.mxu2 %vm327_vm1, %v4858_v53 }
 0x5d5   : > { %v2914_v2 = vpop.permute.xlu0 %2913 }
 0x5d6   : > { %3019 = vst.msk [vmem:[#allocation5 + $0x6c] sm:$0xf] %vm2991_vm6, %v2914_v2 }
 0x5d7   : > { %v3318_v16 = vpop.f32.mrf.mxu0  ;;  %v3464_v26 = vpop.f32.mrf.mxu1 }
 0x5d8   : > { %v3460_v34 = vadd.f32 %v3459_v43, %v3318_v16 }
 0x5dd   : > { %v2916_v8 = vpop.permute.xlu1 %2915  ;;  %v4832_v48 = vld [vmem:[#allocation5 + $0x68] sm:$0xff] }
 0x5de   : > { %v4859_v9 = vld [vmem:[#allocation5 + $0x68] sm:$0xff]  ;;  %3020 = vst.msk [vmem:[#allocation5 + $0x70] sm:$0xf] %vm2991_vm6, %v2916_v8  ;;  %v3796_v32 = vpop.f32.mrf.mxu2  ;;  %4562 = vmatmul.msk.bf16.gmra.mxu0 %vm327_vm1, %v4832_v48  ;;  %4603 = vmatmul.msk.bf16.gmra.mxu1 %vm327_vm1, %v4832_v48 }
 0x5df   : > { %v3881_v51 = vadd.f32 %v3796_v32, %v3455_v33  ;;  %4725 = vmatmul.msk.bf16.gmra.mxu2 %vm327_vm1, %v4859_v9  ;;  %v3320_v4 = vpop.f32.mrf.mxu0  ;;  %v3466_v60 = vpop.f32.mrf.mxu1 }
 0x5e0   : > { %v3462_v49 = vadd.f32 %v3461_v41, %v3320_v4 }
 0x5e1   : > { %v3925_v13 = vadd.f32 %v5944_v21, %v3881_v51 }
 0x5e3   : > { %3965 = vst.msk [vmem:[%s5951_s15 + $0x50] sm:$0xff] %vm377_vm0, %v3925_v13 }
 0x5e5   : > { %v2924_v5 = vpop.permute.xlu2 %2923  ;;  %v4833_v15 = vld [vmem:[#allocation5 + $0x70] sm:$0xff] }
 0x5e6   : > { %3024 = vst.msk [vmem:[#allocation5 + $0x80] sm:$0xf] %vm2991_vm6, %v2924_v5  ;;  %v2410_v36 = vpop.f32.mrf.mxu3  ;;  %v3798_v20 = vpop.f32.mrf.mxu2  ;;  %v4860_v25 = vld [vmem:[#allocation5 + $0x70] sm:$0xff] }
 0x5e7   : > { %v2457_v22 = vadd.f32 %v2410_v36, %v2051_v11  ;;  %v3882_v17 = vadd.f32 %v3798_v20, %v3457_v1 }
 0x5e8   : > { %v3323_v63 = vpop.f32.mrf.mxu0 }
 0x5e9   : > { %v2505_v24 = vadd.f32 %v5889_v38, %v2457_v22  ;;  %v3926_v35 = vadd.f32 %v5944_v21, %v3882_v17  ;;  %v3469_v27 = vpop.f32.mrf.mxu1  ;;  %v3465_v48 = vadd.f32 %v3464_v26, %v3323_v63 }
 0x5eb   : > { %v2549_v50 = vmax.f32 %v2505_v24, 0.0  ;;  %3966 = vst.msk [vmem:[%s5951_s15 + $0x58] sm:$0xff] %vm377_vm0, %v3926_v35 }
 0x5ed   : > { %v2920_v47 = vpop.permute.xlu0 %2919  ;;  %2593 = vst.msk [vmem:[#allocation4 + $0x150] sm:$0xff] %vm377_vm0, %v2549_v50 }
 0x5ee   : > { %3022 = vst.msk [vmem:[#allocation5 + $0x78] sm:$0xf] %vm2991_vm6, %v2920_v47  ;;  %v2412_v37 = vpop.f32.mrf.mxu3  ;;  %4563 = vmatmul.msk.bf16.gmra.mxu0 %vm327_vm1, %v4833_v15  ;;  %4604 = vmatmul.msk.bf16.gmra.mxu1 %vm327_vm1, %v4833_v15 }
 0x5ef   : > { %v2458_v40 = vadd.f32 %v2412_v37, %v2053_v0  ;;  %v3801_v7 = vpop.f32.mrf.mxu2  ;;  %4726 = vmatmul.msk.bf16.gmra.mxu2 %vm327_vm1, %v4860_v25 }
 0x5f0   : > { %v3883_v55 = vadd.f32 %v3801_v7, %v3460_v34  ;;  %v3325_v62 = vpop.f32.mrf.mxu0 }
 0x5f1   : > { %v2506_v31 = vadd.f32 %v5889_v38, %v2458_v40  ;;  %v3471_v32 = vpop.f32.mrf.mxu1  ;;  %v3467_v13 = vadd.f32 %v3466_v60, %v3325_v62 }
 0x5f2   : > { %v3927_v10 = vadd.f32 %v5944_v21, %v3883_v55 }
 0x5f3   : > { %v2550_v6 = vmax.f32 %v2506_v31, 0.0 }
 0x5f4   : > { %3967 = vst.msk [vmem:[%s5951_s15 + $0x60] sm:$0xff] %vm377_vm0, %v3927_v10  ;;  %v2768_v45 = vld [vmem:[#allocation4 + $0x149] sm:$0xff] }
 0x5f5   : > { %v2922_v19 = vpop.permute.xlu1 %2921  ;;  %v2637_v58 = vld [vmem:[#allocation4 + $0x150] sm:$0xff]  ;;  %2594 = vst.msk [vmem:[#allocation4 + $0x158] sm:$0xff] %vm377_vm0, %v2550_v6  ;;  %v2812_v46 = vpack.c.bf16 %v2768_v45, %v2768_v45 }
 0x5f6   : > { %v2681_v30 = vpack.c.bf16 %v2637_v58, %v2637_v58  ;;  %3023 = vst.msk [vmem:[#allocation5 + $0x7c] sm:$0xf] %vm2991_vm6, %v2922_v19 }
 0x5f7   : > { %v3803_v18 = vpop.f32.mrf.mxu2  ;;  %2941 = vrot.lane.b32.xlu2 %v2812_v46, %s4927_s21 }
 0x5f8   : > { %2725 = vst.msk [vmem:[#allocation5 + $0xa8] sm:$0xf] %vm589_vm2, %v2681_v30  ;;  %v3884_v38 = vadd.f32 %v3803_v18, %v3462_v49 }
 0x5fa   : > { %v3928_v39 = vadd.f32 %v5944_v21, %v3884_v38 }
 0x5fc   : > { %3968 = vst.msk [vmem:[%s5951_s15 + $0x68] sm:$0xff] %vm377_vm0, %v3928_v39  ;;  %v2770_v56 = vld [vmem:[#allocation4 + $0x159] sm:$0xff]  ;;  %v2769_v44 = vld [vmem:[#allocation4 + $0x151] sm:$0xff] }
 0x5fd   : > { %v2930_v28 = vpop.permute.xlu2 %2929  ;;  %v2638_v29 = vld [vmem:[#allocation4 + $0x158] sm:$0xff]  ;;  %v2814_v57 = vpack.c.bf16 %v2770_v56, %v2770_v56  ;;  %v2813_v59 = vpack.c.bf16 %v2769_v44, %v2769_v44  ;;  %v4834_v52 = vld [vmem:[#allocation5 + $0x78] sm:$0xff] }
 0x5fe   : > { %3027 = vst.msk [vmem:[#allocation5 + $0x8c] sm:$0xf] %vm2991_vm6, %v2930_v28  ;;  %v4861_v54 = vld [vmem:[#allocation5 + $0x78] sm:$0xff]  ;;  %v2682_v14 = vpack.c.bf16 %v2638_v29, %v2638_v29  ;;  %4564 = vmatmul.msk.bf16.gmra.mxu0 %vm327_vm1, %v4834_v52  ;;  %4605 = vmatmul.msk.bf16.gmra.mxu1 %vm327_vm1, %v4834_v52 }
 0x5ff   : > { %2945 = vrot.lane.b32.xlu1 %v2814_v57, %s4927_s21  ;;  %2943 = vrot.lane.b32.xlu0 %v2813_v59, %s4927_s21 }
 0x600   : > { %2726 = vst.msk [vmem:[#allocation5 + $0xac] sm:$0xf] %vm589_vm2, %v2682_v14  ;;  %4727 = vmatmul.msk.bf16.gmra.mxu2 %vm327_vm1, %v4861_v54 }
 0x605   : > { %v2926_v23 = vpop.permute.xlu0 %2925 }
 0x606   : > { %3025 = vst.msk [vmem:[#allocation5 + $0x84] sm:$0xf] %vm2991_vm6, %v2926_v23 }
 0x60d   : > { %v2928_v12 = vpop.permute.xlu1 %2927  ;;  %v4835_v53 = vld [vmem:[#allocation5 + $0x80] sm:$0xff] }
 0x60e   : > { %3026 = vst.msk [vmem:[#allocation5 + $0x88] sm:$0xf] %vm2991_vm6, %v2928_v12  ;;  %v4862_v2 = vld [vmem:[#allocation5 + $0x80] sm:$0xff]  ;;  %4565 = vmatmul.msk.bf16.gmra.mxu0 %vm327_vm1, %v4835_v53  ;;  %4606 = vmatmul.msk.bf16.gmra.mxu1 %vm327_vm1, %v4835_v53 }
 0x610   : > { %v3328_v3 = vpop.f32.mrf.mxu0  ;;  %4728 = vmatmul.msk.bf16.gmra.mxu2 %vm327_vm1, %v4862_v2 }
 0x611   : > { %v3474_v20 = vpop.f32.mrf.mxu1  ;;  %v3470_v24 = vadd.f32 %v3469_v27, %v3328_v3 }
 0x615   : > { %v2936_v8 = vpop.permute.xlu2 %2935  ;;  %v4836_v5 = vld [vmem:[#allocation5 + $0x88] sm:$0xff] }
 0x616   : > { %3030 = vst.msk [vmem:[#allocation5 + $0x98] sm:$0xf] %vm2991_vm6, %v2936_v8  ;;  %v4863_v1 = vld [vmem:[#allocation5 + $0x88] sm:$0xff] }
 0x617   : > { %v3806_v9 = vpop.f32.mrf.mxu2 }
 0x618   : > { %v3885_v33 = vadd.f32 %v3806_v9, %v3465_v48  ;;  %v3330_v61 = vpop.f32.mrf.mxu0 }
 0x619   : > { %v3476_v47 = vpop.f32.mrf.mxu1  ;;  %v3472_v25 = vadd.f32 %v3471_v32, %v3330_v61 }
 0x61a   : > { %v3929_v51 = vadd.f32 %v5944_v21, %v3885_v33 }
 0x61c   : > { %3969 = vst.msk [vmem:[%s5951_s15 + $0x70] sm:$0xff] %vm377_vm0, %v3929_v51 }
 0x61d   : > { %v2932_v42 = vpop.permute.xlu0 %2931 }
 0x61e   : > { %3028 = vst.msk [vmem:[#allocation5 + $0x90] sm:$0xf] %vm2991_vm6, %v2932_v42  ;;  %4566 = vmatmul.msk.bf16.gmra.mxu0 %vm327_vm1, %v4836_v5  ;;  %4607 = vmatmul.msk.bf16.gmra.mxu1 %vm327_vm1, %v4836_v5 }
 0x61f   : > { %v3808_v11 = vpop.f32.mrf.mxu2 }
 0x620   : > { %v3886_v36 = vadd.f32 %v3808_v11, %v3467_v13  ;;  %4729 = vmatmul.msk.bf16.gmra.mxu2 %vm327_vm1, %v4863_v1  ;;  %v3333_v16 = vpop.f32.mrf.mxu0 }
 0x621   : > { %v3475_v31 = vadd.f32 %v3474_v20, %v3333_v16  ;;  %v3479_v10 = vpop.f32.mrf.mxu1 }
 0x622   : > { %v3930_v22 = vadd.f32 %v5944_v21, %v3886_v36 }
 0x624   : > { %3970 = vst.msk [vmem:[%s5951_s15 + $0x78] sm:$0xff] %vm377_vm0, %v3930_v22 }
 0x625   : > { %v2934_v17 = vpop.permute.xlu1 %2933 }
 0x626   : > { %3029 = vst.msk [vmem:[#allocation5 + $0x94] sm:$0xf] %vm2991_vm6, %v2934_v17 }
 0x627   : > { %v3811_v35 = vpop.f32.mrf.mxu2 }
 0x628   : > { %v3887_v43 = vadd.f32 %v3811_v35, %v3470_v24  ;;  %v3335_v34 = vpop.f32.mrf.mxu0 }
 0x629   : > { %v3477_v30 = vadd.f32 %v3476_v47, %v3335_v34  ;;  %v3481_v18 = vpop.f32.mrf.mxu1 }
 0x62a   : > { %v3931_v50 = vadd.f32 %v5944_v21, %v3887_v43 }
 0x62c   : > { %3971 = vst.msk [vmem:[%s5951_s15 + $0x80] sm:$0xff] %vm377_vm0, %v3931_v50 }
 0x62d   : > { %v4837_v15 = vld [vmem:[#allocation5 + $0x90] sm:$0xff] }
 0x62e   : > { %v4864_v0 = vld [vmem:[#allocation5 + $0x90] sm:$0xff]  ;;  %4567 = vmatmul.msk.bf16.gmra.mxu0 %vm327_vm1, %v4837_v15  ;;  %4608 = vmatmul.msk.bf16.gmra.mxu1 %vm327_vm1, %v4837_v15 }
 0x62f   : > { %v3813_v37 = vpop.f32.mrf.mxu2 }
 0x630   : > { %v3888_v40 = vadd.f32 %v3813_v37, %v3472_v25  ;;  %4730 = vmatmul.msk.bf16.gmra.mxu2 %vm327_vm1, %v4864_v0  ;;  %v3338_v41 = vpop.f32.mrf.mxu0 }
 0x631   : > { %v3484_v28 = vpop.f32.mrf.mxu1  ;;  %v3480_v44 = vadd.f32 %v3479_v10, %v3338_v41 }
 0x632   : > { %v3932_v7 = vadd.f32 %v5944_v21, %v3888_v40 }
 0x634   : > { %3972 = vst.msk [vmem:[%s5951_s15 + $0x88] sm:$0xff] %vm377_vm0, %v3932_v7 }
 0x635   : > { %v2938_v55 = vpop.permute.xlu0 %2937 }
 0x636   : > { %3031 = vst.msk [vmem:[#allocation5 + $0x9c] sm:$0xf] %vm2991_vm6, %v2938_v55 }
 0x637   : > { %v3816_v4 = vpop.f32.mrf.mxu2 }
 0x638   : > { %v3889_v6 = vadd.f32 %v3816_v4, %v3475_v31  ;;  %v3340_v26 = vpop.f32.mrf.mxu0 }
 0x639   : > { %v3486_v54 = vpop.f32.mrf.mxu1  ;;  %v3482_v63 = vadd.f32 %v3481_v18, %v3340_v26 }
 0x63a   : > { %v3933_v19 = vadd.f32 %v5944_v21, %v3889_v6 }
 0x63c   : > { %3973 = vst.msk [vmem:[%s5951_s15 + $0x90] sm:$0xff] %vm377_vm0, %v3933_v19 }
 0x63d   : > { %v2940_v45 = vpop.permute.xlu1 %2939  ;;  %v4838_v58 = vld [vmem:[#allocation5 + $0x98] sm:$0xff] }
 0x63e   : > { %3032 = vst.msk [vmem:[#allocation5 + $0xa0] sm:$0xf] %vm2991_vm6, %v2940_v45  ;;  %v4865_v46 = vld [vmem:[#allocation5 + $0x98] sm:$0xff]  ;;  %4568 = vmatmul.msk.bf16.gmra.mxu0 %vm327_vm1, %v4838_v58  ;;  %4609 = vmatmul.msk.bf16.gmra.mxu1 %vm327_vm1, %v4838_v58 }
 0x63f   : > { %v3818_v49 = vpop.f32.mrf.mxu2 }
 0x640   : > { %v3890_v38 = vadd.f32 %v3818_v49, %v3477_v30  ;;  %4731 = vmatmul.msk.bf16.gmra.mxu2 %vm327_vm1, %v4865_v46 }
 0x642   : > { %v3934_v39 = vadd.f32 %v5944_v21, %v3890_v38 }
 0x644   : > { %3974 = vst.msk [vmem:[%s5951_s15 + $0x98] sm:$0xff] %vm377_vm0, %v3934_v39 }
 0x64b   : > { %v3343_v56 = vpop.f32.mrf.mxu0  ;;  %v3489_v2 = vpop.f32.mrf.mxu1 }
 0x64c   : > { %v3485_v3 = vadd.f32 %v3484_v28, %v3343_v56  ;;  %v6197_v28 = vld [vmem:[%s6242_s7] ss:$0 sm:$0xff] }
 0x651   : > { %v2942_v29 = vpop.permute.xlu2 %2941 }
 0x652   : > { %3033 = vst.msk [vmem:[#allocation5 + $0xa4] sm:$0xf] %vm2991_vm6, %v2942_v29  ;;  %v3821_v57 = vpop.f32.mrf.mxu2 }
 0x653   : > { %v3891_v59 = vadd.f32 %v3821_v57, %v3480_v44  ;;  %v3345_v52 = vpop.f32.mrf.mxu0  ;;  %v3491_v32 = vpop.f32.mrf.mxu1 }
 0x654   : > { %v3487_v51 = vadd.f32 %v3486_v54, %v3345_v52 }
 0x655   : > { %v3935_v14 = vadd.f32 %v5944_v21, %v3891_v59 }
 0x657   : > { %3975 = vst.msk [vmem:[%s5951_s15 + $0xa0] sm:$0xff] %vm377_vm0, %v3935_v14 }
 0x659   : > { %v4843_v23 = vld [vmem:[#allocation5 + $0xa0] sm:$0xff] }
 0x65a   : > { %v4866_v60 = vld [vmem:[#allocation5 + $0xa0] sm:$0xff]  ;;  %v3823_v62 = vpop.f32.mrf.mxu2  ;;  %4569 = vmatmul.msk.bf16.gmra.mxu0 %vm327_vm1, %v4843_v23 }
 0x65b   : > { %v3892_v12 = vadd.f32 %v3823_v62, %v3482_v63  ;;  %4732 = vmatmul.msk.bf16.gmra.mxu2 %vm327_vm1, %v4866_v60  ;;  %v3348_v53 = vpop.f32.mrf.mxu0  ;;  %v3494_v11 = vpop.f32.mrf.mxu1 }
 0x65c   : > { %v3490_v1 = vadd.f32 %v3489_v2, %v3348_v53 }
 0x65d   : > { %v3936_v27 = vadd.f32 %v5944_v21, %v3892_v12 }
 0x65f   : > { %3976 = vst.msk [vmem:[%s5951_s15 + $0xa8] sm:$0xff] %vm377_vm0, %v3936_v27 }
 0x662   : > { %v3826_v8 = vpop.f32.mrf.mxu2 }
 0x663   : > { %v3893_v48 = vadd.f32 %v3826_v8, %v3485_v3  ;;  %v3350_v9 = vpop.f32.mrf.mxu0  ;;  %v3496_v43 = vpop.f32.mrf.mxu1 }
 0x664   : > { %v3492_v35 = vadd.f32 %v3491_v32, %v3350_v9 }
 0x665   : > { %v3937_v33 = vadd.f32 %v5944_v21, %v3893_v48 }
 0x667   : > { %3977 = vst.msk [vmem:[%s5951_s15 + $0xb0] sm:$0xff] %vm377_vm0, %v3937_v33 }
 0x66a   : > { %v3828_v61 = vpop.f32.mrf.mxu2 }
 0x66b   : > { %v3894_v42 = vadd.f32 %v3828_v61, %v3487_v51  ;;  %v3353_v5 = vpop.f32.mrf.mxu0  ;;  %v3499_v37 = vpop.f32.mrf.mxu1 }
 0x66c   : > { %v3495_v34 = vadd.f32 %v3494_v11, %v3353_v5 }
 0x66d   : > { %v3938_v13 = vadd.f32 %v5944_v21, %v3894_v42 }
 0x66f   : > { %3978 = vst.msk [vmem:[%s5951_s15 + $0xb8] sm:$0xff] %vm377_vm0, %v3938_v13 }
 0x671   : > { %v2944_v36 = vpop.permute.xlu0 %2943  ;;  %v2946_v20 = vpop.permute.xlu1 %2945 }
 0x672   : > { %3034 = vst.msk [vmem:[#allocation5 + $0xa8] sm:$0xf] %vm2991_vm6, %v2944_v36  ;;  %v3831_v22 = vpop.f32.mrf.mxu2 }
 0x673   : > { %3035 = vst.msk [vmem:[#allocation5 + $0xac] sm:$0xf] %vm2991_vm6, %v2946_v20  ;;  %v3895_v17 = vadd.f32 %v3831_v22, %v3490_v1  ;;  %v3355_v24 = vpop.f32.mrf.mxu0  ;;  %v3501_v41 = vpop.f32.mrf.mxu1 }
 0x674   : > { %v3497_v31 = vadd.f32 %v3496_v43, %v3355_v24 }
 0x675   : > { %v3939_v16 = vadd.f32 %v5944_v21, %v3895_v17 }
 0x677   : > { %3979 = vst.msk [vmem:[%s5951_s15 + $0xc0] sm:$0xff] %vm377_vm0, %v3939_v16 }
 0x67a   : > { %v3833_v50 = vpop.f32.mrf.mxu2  ;;  %v4867_v47 = vld [vmem:[#allocation5 + $0xa8] sm:$0xff] }
 0x67b   : > { %v3896_v15 = vadd.f32 %v3833_v50, %v3492_v35  ;;  %4733 = vmatmul.msk.bf16.gmra.mxu2 %vm327_vm1, %v4867_v47  ;;  %v3358_v25 = vpop.f32.mrf.mxu0  ;;  %v3504_v18 = vpop.f32.mrf.mxu1 }
 0x67c   : > { %v3500_v45 = vadd.f32 %v3499_v37, %v3358_v25 }
 0x67d   : > { %v3940_v0 = vadd.f32 %v5944_v21, %v3896_v15 }
 0x67f   : > { %3980 = vst.msk [vmem:[%s5951_s15 + $0xc8] sm:$0xff] %vm377_vm0, %v3940_v0 }
 0x683   : > { %v3836_v40 = vpop.f32.mrf.mxu2  ;;  %v3360_v10 = vpop.f32.mrf.mxu0 }
 0x684   : > { %v3897_v7 = vadd.f32 %v3836_v40, %v3495_v34  ;;  %v3502_v38 = vadd.f32 %v3501_v41, %v3360_v10  ;;  %v3506_v29 = vpop.f32.mrf.mxu1 }
 0x686   : > { %v3941_v55 = vadd.f32 %v5944_v21, %v3897_v7 }
 0x688   : > { %3981 = vst.msk [vmem:[%s5951_s15 + $0xd0] sm:$0xff] %vm377_vm0, %v3941_v55 }
 0x68b   : > { %v3838_v4 = vpop.f32.mrf.mxu2  ;;  %v3363_v30 = vpop.f32.mrf.mxu0 }
 0x68c   : > { %v3898_v6 = vadd.f32 %v3838_v4, %v3497_v31  ;;  %v3505_v57 = vadd.f32 %v3504_v18, %v3363_v30  ;;  %v3509_v63 = vpop.f32.mrf.mxu1 }
 0x68e   : > { %v3942_v19 = vadd.f32 %v5944_v21, %v3898_v6 }
 0x690   : > { %3982 = vst.msk [vmem:[%s5951_s15 + $0xd8] sm:$0xff] %vm377_vm0, %v3942_v19 }
 0x693   : > { %v3841_v58 = vpop.f32.mrf.mxu2  ;;  %v3365_v44 = vpop.f32.mrf.mxu0 }
 0x694   : > { %v3899_v46 = vadd.f32 %v3841_v58, %v3500_v45  ;;  %v3507_v14 = vadd.f32 %v3506_v29, %v3365_v44  ;;  %v3511_v3 = vpop.f32.mrf.mxu1 }
 0x696   : > { %v3943_v49 = vadd.f32 %v5944_v21, %v3899_v46 }
 0x698   : > { %3983 = vst.msk [vmem:[%s5951_s15 + $0xe0] sm:$0xff] %vm377_vm0, %v3943_v49 }
 0x69b   : > { %v3843_v39 = vpop.f32.mrf.mxu2  ;;  %v3368_v54 = vpop.f32.mrf.mxu0 }
 0x69c   : > { %v3900_v26 = vadd.f32 %v3843_v39, %v3502_v38  ;;  %v3510_v12 = vadd.f32 %v3509_v63, %v3368_v54  ;;  %v3514_v61 = vpop.f32.mrf.mxu1 }
 0x69e   : > { %v3944_v56 = vadd.f32 %v6197_v28, %v3900_v26 }
 0x6a0   : > { %3984 = vst.msk [vmem:[%s5951_s15 + $0xe8] sm:$0xff] %vm377_vm0, %v3944_v56 }
 0x6a3   : > { %v3846_v21 = vpop.f32.mrf.mxu2  ;;  %v3370_v53 = vpop.f32.mrf.mxu0 }
 0x6a4   : > { %v3901_v59 = vadd.f32 %v3846_v21, %v3505_v57  ;;  %v3512_v48 = vadd.f32 %v3511_v3, %v3370_v53  ;;  %v3516_v36 = vpop.f32.mrf.mxu1 }
 0x6a6   : > { %v3945_v52 = vadd.f32 %v6197_v28, %v3901_v59 }
 0x6a8   : > { %3985 = vst.msk [vmem:[%s5951_s15 + $0xf0] sm:$0xff] %vm377_vm0, %v3945_v52 }
 0x6ab   : > { %v3848_v23 = vpop.f32.mrf.mxu2  ;;  %v3373_v32 = vpop.f32.mrf.mxu0 }
 0x6ac   : > { %v3902_v60 = vadd.f32 %v3848_v23, %v3507_v14  ;;  %v3515_v42 = vadd.f32 %v3514_v61, %v3373_v32  ;;  %v3519_v35 = vpop.f32.mrf.mxu1 }
 0x6ae   : > { %v3946_v62 = vadd.f32 %v6197_v28, %v3902_v60 }
 0x6b0   : > { %3986 = vst.msk [vmem:[%s5951_s15 + $0xf8] sm:$0xff] %vm377_vm0, %v3946_v62 }
 0x6b3   : > { %v3851_v2 = vpop.f32.mrf.mxu2  ;;  %v3375_v1 = vpop.f32.mrf.mxu0 }
 0x6b4   : > { %v3903_v27 = vadd.f32 %v3851_v2, %v3510_v12  ;;  %v3517_v20 = vadd.f32 %v3516_v36, %v3375_v1  ;;  %v3521_v25 = vpop.f32.mrf.mxu1 }
 0x6b6   : > { %v3947_v8 = vadd.f32 %v6197_v28, %v3903_v27 }
 0x6b8   : > { %3987 = vst.msk [vmem:[%s5951_s15 + $0x100] sm:$0xff] %vm377_vm0, %v3947_v8 }
 0x6bb   : > { %v3853_v9 = vpop.f32.mrf.mxu2  ;;  %v3378_v24 = vpop.f32.mrf.mxu0 }
 0x6bc   : > { %v3904_v33 = vadd.f32 %v3853_v9, %v3512_v48  ;;  %v3520_v43 = vadd.f32 %v3519_v35, %v3378_v24  ;;  %v3524_v31 = vpop.f32.mrf.mxu1 }
 0x6be   : > { %v3948_v51 = vadd.f32 %v6197_v28, %v3904_v33 }
 0x6c0   : > { %3988 = vst.msk [vmem:[%s5951_s15 + $0x108] sm:$0xff] %vm377_vm0, %v3948_v51 }
 0x6c3   : > { %v3856_v13 = vpop.f32.mrf.mxu2  ;;  %v3380_v0 = vpop.f32.mrf.mxu0 }
 0x6c4   : > { %v3905_v5 = vadd.f32 %v3856_v13, %v3515_v42  ;;  %v3522_v34 = vadd.f32 %v3521_v25, %v3380_v0  ;;  %v3526_v45 = vpop.f32.mrf.mxu1 }
 0x6c6   : > { %v3949_v11 = vadd.f32 %v6197_v28, %v3905_v5 }
 0x6c8   : > { %3989 = vst.msk [vmem:[%s5951_s15 + $0x110] sm:$0xff] %vm377_vm0, %v3949_v11 }
 0x6cb   : > { %v3858_v22 = vpop.f32.mrf.mxu2 }
 0x6cc   : > { %v3906_v17 = vadd.f32 %v3858_v22, %v3517_v20 }
 0x6ce   : > { %v3950_v16 = vadd.f32 %v6197_v28, %v3906_v17 }
 0x6d0   : > { %3990 = vst.msk [vmem:[%s5951_s15 + $0x118] sm:$0xff] %vm377_vm0, %v3950_v16 }
 0x6d7   : > { %v3383_v55 = vpop.f32.mrf.mxu0 }
 0x6d8   : > { %v3525_v10 = vadd.f32 %v3524_v31, %v3383_v55 }
 0x6de   : > { %v3861_v50 = vpop.f32.mrf.mxu2 }
 0x6df   : > { %v3907_v47 = vadd.f32 %v3861_v50, %v3520_v43  ;;  %v3385_v19 = vpop.f32.mrf.mxu0 }
 0x6e0   : > { %v3527_v58 = vadd.f32 %v3526_v45, %v3385_v19 }
 0x6e1   : > { %v3951_v15 = vadd.f32 %v6197_v28, %v3907_v47 }
 0x6e3   : > { %3991 = vst.msk [vmem:[%s5951_s15 + $0x120] sm:$0xff] %vm377_vm0, %v3951_v15 }
 0x6e6   : > { %v3863_v37 = vpop.f32.mrf.mxu2 }
 0x6e7   : > { %v3908_v40 = vadd.f32 %v3863_v37, %v3522_v34 }
 0x6e9   : > { %v3952_v7 = vadd.f32 %v6197_v28, %v3908_v40 }
 0x6eb   : > { %3992 = vst.msk [vmem:[%s5951_s15 + $0x128] sm:$0xff] %vm377_vm0, %v3952_v7 }
 0x6fe   : > { %v3866_v4 = vpop.f32.mrf.mxu2 }
 0x6ff   : > { %v3909_v6 = vadd.f32 %v3866_v4, %v3525_v10 }
 0x701   : > { %v3953_v41 = vadd.f32 %v6197_v28, %v3909_v6 }
 0x703   : > { %3993 = vst.msk [vmem:[%s5951_s15 + $0x130] sm:$0xff] %vm377_vm0, %v3953_v41 }
 0x706   : > { %v3868_v46 = vpop.f32.mrf.mxu2 }
 0x707   : > { %v3910_v30 = vadd.f32 %v3868_v46, %v3527_v58 }
 0x709   : > { %v3954_v49 = vadd.f32 %v6197_v28, %v3910_v30 }
 0x70b   : > { %3994 = vst.msk [vmem:[%s5951_s15 + $0x138] sm:$0xff] %vm377_vm0, %v3954_v49 }
 0x70c PF: > { %s18_s27 = sadd.s32 1, %s4924_s27  }
 0x70d   : > { %p15_p4 = scmp.ge.s32.totalorder %s18_s27, 4  }
 0x70f   :  { %17 = sbr.rel (!%p15_p4) target bundleno = 1 (0x1), region = 89 }

</bundles_post_ra>
